<compile_context>
chip_gen: v5e
topology: v5e:2x2
jax: 0.10.0
libtpu: 0.0.40
codegen_flags: <defaults>
</compile_context>

<pallas_src>
import functools
import math

import numpy as np
import jax
import jax.numpy as jnp
from jax.experimental import pallas as pl
from jax.experimental.pallas import tpu as pltpu

# ---------------- small deterministic config (stand-in for `Config`) ----------------
D_MODEL = 32
N_HEADS = 4
D_K = D_MODEL // N_HEADS      # 8
D_V = D_MODEL // N_HEADS      # 8
D_FF = 64
N_LAYERS = 6                  # config.layers
VOCAB = 50                    # input_vocab_num
MAX_SEQ_LEN = 16
PAD_IDX = 0
LN_EPS = 1e-5                 # nn.LayerNorm default eps


# ============================= fused Pallas kernel =============================

def _encoder_stack_kernel(x_ref, bias_ref, npad_ref,
                          wqkv_ref, bqkv_ref, wo_ref, bo_ref,
                          ln1g_ref, ln1b_ref,
                          w1_ref, b1_ref, w2_ref, b2_ref,
                          ln2g_ref, ln2b_ref,
                          o_ref,
                          *, n_layers, n_heads, d_k, d_v, batch, seqlen, eps):
    """Runs the whole encoder stack on VMEM-resident activations/weights.

    x_ref    : (B*L, D)          input activations (embedding + positional encoding)
    bias_ref : (B, 1, L)         additive key-pad bias (0.0 for real keys, -1e9 for PAD)
    npad_ref : (B*L, 1)          non-pad mask (1.0 real token, 0.0 PAD)
    w*_ref   : (n_layers, ...)   stacked per-layer weights
    o_ref    : (B*L, D)          output activations
    """
    scale = 1.0 / math.sqrt(d_k)
    hq = n_heads * d_k            # width of the Q (and K) block inside the fused QKV
    x = x_ref[...]                # (B*L, D) f32
    bias = bias_ref[...]          # (B, 1, L)
    npad = npad_ref[...]          # (B*L, 1)

    def layer_norm(y, g, b):
        mu = jnp.mean(y, axis=-1, keepdims=True)
        var = jnp.mean((y - mu) * (y - mu), axis=-1, keepdims=True)
        return (y - mu) * jax.lax.rsqrt(var + eps) * g + b

    for li in range(n_layers):                      # static unroll over layers
        wqkv = wqkv_ref[li]                         # (D, 3*H*dk)
        bqkv = bqkv_ref[li]                         # (1, 3*H*dk)
        wo = wo_ref[li]                             # (H*dv, D)
        bo = bo_ref[li]                             # (1, D)
        lg1 = ln1g_ref[li]; lb1 = ln1b_ref[li]      # (1, D)
        w1 = w1_ref[li]; fb1 = b1_ref[li]           # (D, D_ff), (1, D_ff)
        w2 = w2_ref[li]; fb2 = b2_ref[li]           # (D_ff, D), (1, D)
        lg2 = ln2g_ref[li]; lb2 = ln2b_ref[li]      # (1, D)

        # ---------------- multi-head self-attention ----------------
        residual = x
        qkv = jnp.dot(x, wqkv, preferred_element_type=jnp.float32) + bqkv   # (B*L, 96)

        attn = None
        for h in range(n_heads):                    # static unroll over heads
            qh = qkv[:, h * d_k:(h + 1) * d_k].reshape(batch, seqlen, d_k)
            kh = qkv[:, hq + h * d_k: hq + (h + 1) * d_k].reshape(batch, seqlen, d_k)
            vh = qkv[:, 2 * hq + h * d_v: 2 * hq + (h + 1) * d_v].reshape(batch, seqlen, d_v)

            s = jnp.einsum('bqd,bkd->bqk', qh, kh,
                           preferred_element_type=jnp.float32) * scale      # (B, L, L)
            s = s + bias                                                    # mask PAD keys
            s = s - jnp.max(s, axis=-1, keepdims=True)
            p = jnp.exp(s)
            p = p * pl.reciprocal(jnp.sum(p, axis=-1, keepdims=True), approx=True)

            ctx = jnp.einsum('bqk,bkd->bqd', p, vh,
                             preferred_element_type=jnp.float32)            # (B, L, dv)
            ctx2d = ctx.reshape(batch * seqlen, d_v)
            part = jnp.dot(ctx2d, wo[h * d_v:(h + 1) * d_v, :],
                           preferred_element_type=jnp.float32)              # (B*L, D)
            attn = part if attn is None else attn + part

        y = attn + bo + residual
        x = layer_norm(y, lg1, lb1) * npad          # fused add+LN+no-pad-mask epilogue

        # ---------------- position-wise FFN (Conv1d k=1 == matmul) ----------------
        residual = x
        hidden = jnp.maximum(jnp.dot(x, w1, preferred_element_type=jnp.float32) + fb1, 0.0)
        ffn = jnp.dot(hidden, w2, preferred_element_type=jnp.float32) + fb2
        x = layer_norm(ffn + residual, lg2, lb2) * npad

    o_ref[...] = x


def _full_spec(shape):
    n = len(shape)
    return pl.BlockSpec(shape, lambda i, _n=n: (0,) * _n)


def encoder_stack(x_flat, key_bias, no_pad, p):
    """x_flat: (B*L, D); key_bias: (B, 1, L); no_pad: (B*L, 1); p: stacked param dict."""
    BL, D = x_flat.shape
    B = key_bias.shape[0]
    L = key_bias.shape[2]
    args = (x_flat, key_bias, no_pad,
            p["wqkv"], p["bqkv"], p["wo"], p["bo"], p["ln1_g"], p["ln1_b"],
            p["w1"], p["b1"], p["w2"], p["b2"], p["ln2_g"], p["ln2_b"])
    kernel = functools.partial(
        _encoder_stack_kernel,
        n_layers=N_LAYERS, n_heads=N_HEADS, d_k=D_K, d_v=D_V,
        batch=B, seqlen=L, eps=LN_EPS)
    return pl.pallas_call(
        kernel,
        out_shape=jax.ShapeDtypeStruct((BL, D), jnp.float32),
        grid=(1,),
        in_specs=[_full_spec(a.shape) for a in args],
        out_specs=_full_spec((BL, D)),
        compiler_params=pltpu.CompilerParams(dimension_semantics=("arbitrary",)),
    )(*args)


# ============================= parameter init =============================

def _sinusoid_table(n_pos, d):
    pos = np.arange(n_pos)[:, None].astype(np.float64)
    i = np.arange(d)[None, :].astype(np.float64)
    angle = pos / np.power(10000.0, 2.0 * (i // 2) / d)
    table = np.zeros((n_pos, d), dtype=np.float32)
    table[:, 0::2] = np.sin(angle[:, 0::2])
    table[:, 1::2] = np.cos(angle[:, 1::2])
    table[PAD_IDX] = 0.0                                   # pad position row is zero
    return jnp.asarray(table)


def init_params(key):
    def nrm(k, shape, scale=0.02):
        return (scale * jax.random.normal(k, shape)).astype(jnp.float32)

    keys = jax.random.split(key, 1 + N_LAYERS)
    emb = nrm(keys[0], (VOCAB, D_MODEL))
    emb = emb.at[PAD_IDX].set(0.0)                         # padding_idx row is zero

    wqkv, wo, w1, w2 = [], [], [], []
    for li in range(N_LAYERS):
        ks = jax.random.split(keys[1 + li], 6)
        wq = nrm(ks[0], (D_MODEL, N_HEADS * D_K))
        wk = nrm(ks[1], (D_MODEL, N_HEADS * D_K))
        wv = nrm(ks[2], (D_MODEL, N_HEADS * D_V))
        wqkv.append(jnp.concatenate([wq, wk, wv], axis=1))  # fused QKV weight (D, 96)
        wo.append(nrm(ks[3], (N_HEADS * D_V, D_MODEL)))
        w1.append(nrm(ks[4], (D_MODEL, D_FF)))
        w2.append(nrm(ks[5], (D_FF, D_MODEL)))

    qkv_width = 2 * N_HEADS * D_K + N_HEADS * D_V
    return dict(
        emb=emb,
        pos_table=_sinusoid_table(MAX_SEQ_LEN + 1, D_MODEL),
        wqkv=jnp.stack(wqkv),
        bqkv=jnp.zeros((N_LAYERS, 1, qkv_width), jnp.float32),
        wo=jnp.stack(wo),
        bo=jnp.zeros((N_LAYERS, 1, D_MODEL), jnp.float32),
        ln1_g=jnp.ones((N_LAYERS, 1, D_MODEL), jnp.float32),
        ln1_b=jnp.zeros((N_LAYERS, 1, D_MODEL), jnp.float32),
        w1=jnp.stack(w1),
        b1=jnp.zeros((N_LAYERS, 1, D_FF), jnp.float32),
        w2=jnp.stack(w2),
        b2=jnp.zeros((N_LAYERS, 1, D_MODEL), jnp.float32),
        ln2_g=jnp.ones((N_LAYERS, 1, D_MODEL), jnp.float32),
        ln2_b=jnp.zeros((N_LAYERS, 1, D_MODEL), jnp.float32),
    )


# ============================= forward =============================

def encoder_forward(params, src_seq):
    """src_seq: (B, L) int32 token ids -> (B, L, D_MODEL) float32."""
    B, L = src_seq.shape
    # seq_2_pos: position i+1 for real tokens, 0 for PAD
    positions = jnp.where(src_seq != PAD_IDX,
                          jnp.arange(1, L + 1, dtype=jnp.int32)[None, :], 0)
    # TODO(synk): embedding / positional-table gathers done with plain JAX take
    #             (no tidy Pallas gather at this size)
    emb = jnp.take(params["emb"], src_seq, axis=0)          # (B, L, D)
    pos = jnp.take(params["pos_table"], positions, axis=0)  # (B, L, D)
    x_flat = (emb + pos).astype(jnp.float32).reshape(B * L, D_MODEL)

    # padding_mask(src_seq, src_seq) as an additive key bias (computed once, no (B,L,L) bcast)
    key_bias = jnp.where(src_seq == PAD_IDX, -1e9, 0.0).astype(jnp.float32)[:, None, :]  # (B,1,L)
    no_pad = (src_seq != PAD_IDX).astype(jnp.float32).reshape(B * L, 1)                  # (B*L,1)

    out = encoder_stack(x_flat, key_bias, no_pad, params)
    return out.reshape(B, L, D_MODEL)


# ============================= demo =============================

if __name__ == "__main__":
    key = jax.random.PRNGKey(0)
    params = init_params(key)

    B, L = 2, 8
    src = jax.random.randint(jax.random.PRNGKey(0), (B, L), 1, VOCAB, dtype=jnp.int32)
    # introduce some PAD tokens to exercise both masks
    src = src.at[0, 6:].set(PAD_IDX)
    src = src.at[1, 5:].set(PAD_IDX)

    out = jax.jit(encoder_forward)(params, src)
    out = jax.block_until_ready(out)
    assert out.shape == (B, L, D_MODEL)
    assert bool(jnp.all(jnp.isfinite(out)))
    # padded positions must be zeroed by no_pad_mask
    assert bool(jnp.all(out[0, 6:] == 0.0)) and bool(jnp.all(out[1, 5:] == 0.0))
    print("KERNEL_OK")
</pallas_src>

<mosaic_0001>
module attributes {stable_mosaic.version = 11 : i64} {
  func.func @_encoder_stack_kernel(%arg0: i32, %arg1: memref<16x32xf32, #tpu.memory_space<vmem>>, %arg2: memref<2x1x8xf32, #tpu.memory_space<vmem>>, %arg3: memref<16x1xf32, #tpu.memory_space<vmem>>, %arg4: memref<6x32x96xf32, #tpu.memory_space<vmem>>, %arg5: memref<6x1x96xf32, #tpu.memory_space<vmem>>, %arg6: memref<6x32x32xf32, #tpu.memory_space<vmem>>, %arg7: memref<6x1x32xf32, #tpu.memory_space<vmem>>, %arg8: memref<6x1x32xf32, #tpu.memory_space<vmem>>, %arg9: memref<6x1x32xf32, #tpu.memory_space<vmem>>, %arg10: memref<6x32x64xf32, #tpu.memory_space<vmem>>, %arg11: memref<6x1x64xf32, #tpu.memory_space<vmem>>, %arg12: memref<6x64x32xf32, #tpu.memory_space<vmem>>, %arg13: memref<6x1x32xf32, #tpu.memory_space<vmem>>, %arg14: memref<6x1x32xf32, #tpu.memory_space<vmem>>, %arg15: memref<6x1x32xf32, #tpu.memory_space<vmem>>, %arg16: memref<16x32xf32, #tpu.memory_space<vmem>>) attributes {dimension_semantics = [#tpu.dimension_semantics<arbitrary>], iteration_bounds = array<i64: 1>, scalar_prefetch = 0 : i64, scratch_operands = 0 : i64, tpu.core_type = #tpu.core_type<tc>, window_params = [{pipeline_mode = #tpu.pipeline_mode<synchronous>, transform_indices = @transform_0, window_bounds = array<i64: 16, 32>}, {pipeline_mode = #tpu.pipeline_mode<synchronous>, transform_indices = @transform_1, window_bounds = array<i64: 2, 1, 8>}, {pipeline_mode = #tpu.pipeline_mode<synchronous>, transform_indices = @transform_2, window_bounds = array<i64: 16, 1>}, {pipeline_mode = #tpu.pipeline_mode<synchronous>, transform_indices = @transform_3, window_bounds = array<i64: 6, 32, 96>}, {pipeline_mode = #tpu.pipeline_mode<synchronous>, transform_indices = @transform_4, window_bounds = array<i64: 6, 1, 96>}, {pipeline_mode = #tpu.pipeline_mode<synchronous>, transform_indices = @transform_5, window_bounds = array<i64: 6, 32, 32>}, {pipeline_mode = #tpu.pipeline_mode<synchronous>, transform_indices = @transform_6, window_bounds = array<i64: 6, 1, 32>}, {pipeline_mode = #tpu.pipeline_mode<synchronous>, transform_indices = @transform_7, window_bounds = array<i64: 6, 1, 32>}, {pipeline_mode = #tpu.pipeline_mode<synchronous>, transform_indices = @transform_8, window_bounds = array<i64: 6, 1, 32>}, {pipeline_mode = #tpu.pipeline_mode<synchronous>, transform_indices = @transform_9, window_bounds = array<i64: 6, 32, 64>}, {pipeline_mode = #tpu.pipeline_mode<synchronous>, transform_indices = @transform_10, window_bounds = array<i64: 6, 1, 64>}, {pipeline_mode = #tpu.pipeline_mode<synchronous>, transform_indices = @transform_11, window_bounds = array<i64: 6, 64, 32>}, {pipeline_mode = #tpu.pipeline_mode<synchronous>, transform_indices = @transform_12, window_bounds = array<i64: 6, 1, 32>}, {pipeline_mode = #tpu.pipeline_mode<synchronous>, transform_indices = @transform_13, window_bounds = array<i64: 6, 1, 32>}, {pipeline_mode = #tpu.pipeline_mode<synchronous>, transform_indices = @transform_14, window_bounds = array<i64: 6, 1, 32>}, {pipeline_mode = #tpu.pipeline_mode<synchronous>, transform_indices = @transform_15, window_bounds = array<i64: 16, 32>}]} {
    %c0 = arith.constant 0 : index
    %c0_0 = arith.constant 0 : index
    %0 = vector.load %arg1[%c0, %c0_0] : memref<16x32xf32, #tpu.memory_space<vmem>>, vector<16x32xf32>
    %c0_1 = arith.constant 0 : index
    %c0_2 = arith.constant 0 : index
    %c0_3 = arith.constant 0 : index
    %1 = vector.load %arg2[%c0_1, %c0_2, %c0_3] : memref<2x1x8xf32, #tpu.memory_space<vmem>>, vector<2x1x8xf32>
    %c0_4 = arith.constant 0 : index
    %c0_5 = arith.constant 0 : index
    %2 = vector.load %arg3[%c0_4, %c0_5] : memref<16x1xf32, #tpu.memory_space<vmem>>, vector<16x1xf32>
    %c0_6 = arith.constant 0 : index
    %c0_7 = arith.constant 0 : index
    %c0_8 = arith.constant 0 : index
    %3 = vector.load %arg4[%c0_6, %c0_7, %c0_8] : memref<6x32x96xf32, #tpu.memory_space<vmem>>, vector<1x32x96xf32>
    %4 = vector.shape_cast %3 : vector<1x32x96xf32> to vector<32x96xf32>
    %c0_9 = arith.constant 0 : index
    %c0_10 = arith.constant 0 : index
    %c0_11 = arith.constant 0 : index
    %5 = vector.load %arg5[%c0_9, %c0_10, %c0_11] : memref<6x1x96xf32, #tpu.memory_space<vmem>>, vector<1x1x96xf32>
    %6 = vector.shape_cast %5 : vector<1x1x96xf32> to vector<1x96xf32>
    %c0_12 = arith.constant 0 : index
    %c0_13 = arith.constant 0 : index
    %c0_14 = arith.constant 0 : index
    %7 = vector.load %arg6[%c0_12, %c0_13, %c0_14] : memref<6x32x32xf32, #tpu.memory_space<vmem>>, vector<1x32x32xf32>
    %8 = vector.shape_cast %7 : vector<1x32x32xf32> to vector<32x32xf32>
    %c0_15 = arith.constant 0 : index
    %c0_16 = arith.constant 0 : index
    %c0_17 = arith.constant 0 : index
    %9 = vector.load %arg7[%c0_15, %c0_16, %c0_17] : memref<6x1x32xf32, #tpu.memory_space<vmem>>, vector<1x1x32xf32>
    %10 = vector.shape_cast %9 : vector<1x1x32xf32> to vector<1x32xf32>
    %c0_18 = arith.constant 0 : index
    %c0_19 = arith.constant 0 : index
    %c0_20 = arith.constant 0 : index
    %11 = vector.load %arg8[%c0_18, %c0_19, %c0_20] : memref<6x1x32xf32, #tpu.memory_space<vmem>>, vector<1x1x32xf32>
    %12 = vector.shape_cast %11 : vector<1x1x32xf32> to vector<1x32xf32>
    %c0_21 = arith.constant 0 : index
    %c0_22 = arith.constant 0 : index
    %c0_23 = arith.constant 0 : index
    %13 = vector.load %arg9[%c0_21, %c0_22, %c0_23] : memref<6x1x32xf32, #tpu.memory_space<vmem>>, vector<1x1x32xf32>
    %14 = vector.shape_cast %13 : vector<1x1x32xf32> to vector<1x32xf32>
    %c0_24 = arith.constant 0 : index
    %c0_25 = arith.constant 0 : index
    %c0_26 = arith.constant 0 : index
    %15 = vector.load %arg10[%c0_24, %c0_25, %c0_26] : memref<6x32x64xf32, #tpu.memory_space<vmem>>, vector<1x32x64xf32>
    %16 = vector.shape_cast %15 : vector<1x32x64xf32> to vector<32x64xf32>
    %c0_27 = arith.constant 0 : index
    %c0_28 = arith.constant 0 : index
    %c0_29 = arith.constant 0 : index
    %17 = vector.load %arg11[%c0_27, %c0_28, %c0_29] : memref<6x1x64xf32, #tpu.memory_space<vmem>>, vector<1x1x64xf32>
    %18 = vector.shape_cast %17 : vector<1x1x64xf32> to vector<1x64xf32>
    %c0_30 = arith.constant 0 : index
    %c0_31 = arith.constant 0 : index
    %c0_32 = arith.constant 0 : index
    %19 = vector.load %arg12[%c0_30, %c0_31, %c0_32] : memref<6x64x32xf32, #tpu.memory_space<vmem>>, vector<1x64x32xf32>
    %20 = vector.shape_cast %19 : vector<1x64x32xf32> to vector<64x32xf32>
    %c0_33 = arith.constant 0 : index
    %c0_34 = arith.constant 0 : index
    %c0_35 = arith.constant 0 : index
    %21 = vector.load %arg13[%c0_33, %c0_34, %c0_35] : memref<6x1x32xf32, #tpu.memory_space<vmem>>, vector<1x1x32xf32>
    %22 = vector.shape_cast %21 : vector<1x1x32xf32> to vector<1x32xf32>
    %c0_36 = arith.constant 0 : index
    %c0_37 = arith.constant 0 : index
    %c0_38 = arith.constant 0 : index
    %23 = vector.load %arg14[%c0_36, %c0_37, %c0_38] : memref<6x1x32xf32, #tpu.memory_space<vmem>>, vector<1x1x32xf32>
    %24 = vector.shape_cast %23 : vector<1x1x32xf32> to vector<1x32xf32>
    %c0_39 = arith.constant 0 : index
    %c0_40 = arith.constant 0 : index
    %c0_41 = arith.constant 0 : index
    %25 = vector.load %arg15[%c0_39, %c0_40, %c0_41] : memref<6x1x32xf32, #tpu.memory_space<vmem>>, vector<1x1x32xf32>
    %26 = vector.shape_cast %25 : vector<1x1x32xf32> to vector<1x32xf32>
    %cst = arith.constant dense<0.000000e+00> : vector<16x96xf32>
    %27 = tpu.matmul %0, %4, %cst {dimension_numbers = #tpu.dot_dimension_numbers<[1], [0], [0], [1], [0, 0, 1, 1], [], []>} : vector<16x32xf32>, vector<32x96xf32>, vector<16x96xf32> -> vector<16x96xf32>
    %28 = vector.broadcast %6 : vector<1x96xf32> to vector<16x96xf32>
    %29 = arith.addf %27, %28 : vector<16x96xf32>
    %30 = vector.extract_strided_slice %29 {offsets = [0, 0], sizes = [16, 8], strides = [1, 1]} : vector<16x96xf32> to vector<16x8xf32>
    %31 = vector.shape_cast %30 : vector<16x8xf32> to vector<2x8x8xf32>
    %32 = vector.extract_strided_slice %29 {offsets = [0, 32], sizes = [16, 8], strides = [1, 1]} : vector<16x96xf32> to vector<16x8xf32>
    %33 = vector.shape_cast %32 : vector<16x8xf32> to vector<2x8x8xf32>
    %34 = vector.extract_strided_slice %29 {offsets = [0, 64], sizes = [16, 8], strides = [1, 1]} : vector<16x96xf32> to vector<16x8xf32>
    %35 = vector.shape_cast %34 : vector<16x8xf32> to vector<2x8x8xf32>
    "tpu.trace_start"() <{level = 10 : i32, message = "bqd,bkd->bqk"}> : () -> ()
    %cst_42 = arith.constant dense<0.000000e+00> : vector<2x8x8xf32>
    %36 = tpu.matmul %31, %33, %cst_42 {dimension_numbers = #tpu.dot_dimension_numbers<[2], [2], [1], [1], [0, 0, 0, 1, 1, 1], [0], [0]>} : vector<2x8x8xf32>, vector<2x8x8xf32>, vector<2x8x8xf32> -> vector<2x8x8xf32>
    "tpu.trace_stop"() : () -> ()
    %cst_43 = arith.constant 0.353553385 : f32
    %37 = vector.broadcast %cst_43 : f32 to vector<2x8x8xf32>
    %38 = arith.mulf %36, %37 : vector<2x8x8xf32>
    %39 = vector.broadcast %1 : vector<2x1x8xf32> to vector<2x8x8xf32>
    %40 = arith.addf %38, %39 : vector<2x8x8xf32>
    %cst_44 = arith.constant dense<0xFF800000> : vector<2x8xf32>
    %41 = vector.multi_reduction <maximumf>, %40, %cst_44 [2] : vector<2x8x8xf32> to vector<2x8xf32>
    %42 = vector.shape_cast %41 : vector<2x8xf32> to vector<2x8x1xf32>
    %43 = vector.broadcast %42 : vector<2x8x1xf32> to vector<2x8x8xf32>
    %44 = arith.subf %40, %43 : vector<2x8x8xf32>
    %45 = math.exp %44 : vector<2x8x8xf32>
    %cst_45 = arith.constant dense<0.000000e+00> : vector<2x8xf32>
    %46 = vector.multi_reduction <add>, %45, %cst_45 [2] : vector<2x8x8xf32> to vector<2x8xf32>
    %47 = vector.shape_cast %46 : vector<2x8xf32> to vector<2x8x1xf32>
    %48 = tpu.reciprocal %47 {approx = true} : vector<2x8x1xf32> -> vector<2x8x1xf32>
    %49 = vector.broadcast %48 : vector<2x8x1xf32> to vector<2x8x8xf32>
    %50 = arith.mulf %45, %49 : vector<2x8x8xf32>
    "tpu.trace_start"() <{level = 10 : i32, message = "bqk,bkd->bqd"}> : () -> ()
    %cst_46 = arith.constant dense<0.000000e+00> : vector<2x8x8xf32>
    %51 = tpu.matmul %50, %35, %cst_46 {dimension_numbers = #tpu.dot_dimension_numbers<[2], [1], [1], [2], [0, 0, 0, 1, 1, 2], [0], [0]>} : vector<2x8x8xf32>, vector<2x8x8xf32>, vector<2x8x8xf32> -> vector<2x8x8xf32>
    "tpu.trace_stop"() : () -> ()
    %52 = vector.shape_cast %51 : vector<2x8x8xf32> to vector<16x8xf32>
    %53 = vector.extract_strided_slice %8 {offsets = [0, 0], sizes = [8, 32], strides = [1, 1]} : vector<32x32xf32> to vector<8x32xf32>
    %cst_47 = arith.constant dense<0.000000e+00> : vector<16x32xf32>
    %54 = tpu.matmul %52, %53, %cst_47 {dimension_numbers = #tpu.dot_dimension_numbers<[1], [0], [0], [1], [0, 0, 1, 1], [], []>} : vector<16x8xf32>, vector<8x32xf32>, vector<16x32xf32> -> vector<16x32xf32>
    %55 = vector.extract_strided_slice %29 {offsets = [0, 8], sizes = [16, 8], strides = [1, 1]} : vector<16x96xf32> to vector<16x8xf32>
    %56 = vector.shape_cast %55 : vector<16x8xf32> to vector<2x8x8xf32>
    %57 = vector.extract_strided_slice %29 {offsets = [0, 40], sizes = [16, 8], strides = [1, 1]} : vector<16x96xf32> to vector<16x8xf32>
    %58 = vector.shape_cast %57 : vector<16x8xf32> to vector<2x8x8xf32>
    %59 = vector.extract_strided_slice %29 {offsets = [0, 72], sizes = [16, 8], strides = [1, 1]} : vector<16x96xf32> to vector<16x8xf32>
    %60 = vector.shape_cast %59 : vector<16x8xf32> to vector<2x8x8xf32>
    "tpu.trace_start"() <{level = 10 : i32, message = "bqd,bkd->bqk"}> : () -> ()
    %cst_48 = arith.constant dense<0.000000e+00> : vector<2x8x8xf32>
    %61 = tpu.matmul %56, %58, %cst_48 {dimension_numbers = #tpu.dot_dimension_numbers<[2], [2], [1], [1], [0, 0, 0, 1, 1, 1], [0], [0]>} : vector<2x8x8xf32>, vector<2x8x8xf32>, vector<2x8x8xf32> -> vector<2x8x8xf32>
    "tpu.trace_stop"() : () -> ()
    %cst_49 = arith.constant 0.353553385 : f32
    %62 = vector.broadcast %cst_49 : f32 to vector<2x8x8xf32>
    %63 = arith.mulf %61, %62 : vector<2x8x8xf32>
    %64 = vector.broadcast %1 : vector<2x1x8xf32> to vector<2x8x8xf32>
    %65 = arith.addf %63, %64 : vector<2x8x8xf32>
    %cst_50 = arith.constant dense<0xFF800000> : vector<2x8xf32>
    %66 = vector.multi_reduction <maximumf>, %65, %cst_50 [2] : vector<2x8x8xf32> to vector<2x8xf32>
    %67 = vector.shape_cast %66 : vector<2x8xf32> to vector<2x8x1xf32>
    %68 = vector.broadcast %67 : vector<2x8x1xf32> to vector<2x8x8xf32>
    %69 = arith.subf %65, %68 : vector<2x8x8xf32>
    %70 = math.exp %69 : vector<2x8x8xf32>
    %cst_51 = arith.constant dense<0.000000e+00> : vector<2x8xf32>
    %71 = vector.multi_reduction <add>, %70, %cst_51 [2] : vector<2x8x8xf32> to vector<2x8xf32>
    %72 = vector.shape_cast %71 : vector<2x8xf32> to vector<2x8x1xf32>
    %73 = tpu.reciprocal %72 {approx = true} : vector<2x8x1xf32> -> vector<2x8x1xf32>
    %74 = vector.broadcast %73 : vector<2x8x1xf32> to vector<2x8x8xf32>
    %75 = arith.mulf %70, %74 : vector<2x8x8xf32>
    "tpu.trace_start"() <{level = 10 : i32, message = "bqk,bkd->bqd"}> : () -> ()
    %cst_52 = arith.constant dense<0.000000e+00> : vector<2x8x8xf32>
    %76 = tpu.matmul %75, %60, %cst_52 {dimension_numbers = #tpu.dot_dimension_numbers<[2], [1], [1], [2], [0, 0, 0, 1, 1, 2], [0], [0]>} : vector<2x8x8xf32>, vector<2x8x8xf32>, vector<2x8x8xf32> -> vector<2x8x8xf32>
    "tpu.trace_stop"() : () -> ()
    %77 = vector.shape_cast %76 : vector<2x8x8xf32> to vector<16x8xf32>
    %78 = vector.extract_strided_slice %8 {offsets = [8, 0], sizes = [8, 32], strides = [1, 1]} : vector<32x32xf32> to vector<8x32xf32>
    %cst_53 = arith.constant dense<0.000000e+00> : vector<16x32xf32>
    %79 = tpu.matmul %77, %78, %cst_53 {dimension_numbers = #tpu.dot_dimension_numbers<[1], [0], [0], [1], [0, 0, 1, 1], [], []>} : vector<16x8xf32>, vector<8x32xf32>, vector<16x32xf32> -> vector<16x32xf32>
    %80 = arith.addf %54, %79 : vector<16x32xf32>
    %81 = vector.extract_strided_slice %29 {offsets = [0, 16], sizes = [16, 8], strides = [1, 1]} : vector<16x96xf32> to vector<16x8xf32>
    %82 = vector.shape_cast %81 : vector<16x8xf32> to vector<2x8x8xf32>
    %83 = vector.extract_strided_slice %29 {offsets = [0, 48], sizes = [16, 8], strides = [1, 1]} : vector<16x96xf32> to vector<16x8xf32>
    %84 = vector.shape_cast %83 : vector<16x8xf32> to vector<2x8x8xf32>
    %85 = vector.extract_strided_slice %29 {offsets = [0, 80], sizes = [16, 8], strides = [1, 1]} : vector<16x96xf32> to vector<16x8xf32>
    %86 = vector.shape_cast %85 : vector<16x8xf32> to vector<2x8x8xf32>
    "tpu.trace_start"() <{level = 10 : i32, message = "bqd,bkd->bqk"}> : () -> ()
    %cst_54 = arith.constant dense<0.000000e+00> : vector<2x8x8xf32>
    %87 = tpu.matmul %82, %84, %cst_54 {dimension_numbers = #tpu.dot_dimension_numbers<[2], [2], [1], [1], [0, 0, 0, 1, 1, 1], [0], [0]>} : vector<2x8x8xf32>, vector<2x8x8xf32>, vector<2x8x8xf32> -> vector<2x8x8xf32>
    "tpu.trace_stop"() : () -> ()
    %cst_55 = arith.constant 0.353553385 : f32
    %88 = vector.broadcast %cst_55 : f32 to vector<2x8x8xf32>
    %89 = arith.mulf %87, %88 : vector<2x8x8xf32>
    %90 = vector.broadcast %1 : vector<2x1x8xf32> to vector<2x8x8xf32>
    %91 = arith.addf %89, %90 : vector<2x8x8xf32>
    %cst_56 = arith.constant dense<0xFF800000> : vector<2x8xf32>
    %92 = vector.multi_reduction <maximumf>, %91, %cst_56 [2] : vector<2x8x8xf32> to vector<2x8xf32>
    %93 = vector.shape_cast %92 : vector<2x8xf32> to vector<2x8x1xf32>
    %94 = vector.broadcast %93 : vector<2x8x1xf32> to vector<2x8x8xf32>
    %95 = arith.subf %91, %94 : vector<2x8x8xf32>
    %96 = math.exp %95 : vector<2x8x8xf32>
    %cst_57 = arith.constant dense<0.000000e+00> : vector<2x8xf32>
    %97 = vector.multi_reduction <add>, %96, %cst_57 [2] : vector<2x8x8xf32> to vector<2x8xf32>
    %98 = vector.shape_cast %97 : vector<2x8xf32> to vector<2x8x1xf32>
    %99 = tpu.reciprocal %98 {approx = true} : vector<2x8x1xf32> -> vector<2x8x1xf32>
    %100 = vector.broadcast %99 : vector<2x8x1xf32> to vector<2x8x8xf32>
    %101 = arith.mulf %96, %100 : vector<2x8x8xf32>
    "tpu.trace_start"() <{level = 10 : i32, message = "bqk,bkd->bqd"}> : () -> ()
    %cst_58 = arith.constant dense<0.000000e+00> : vector<2x8x8xf32>
    %102 = tpu.matmul %101, %86, %cst_58 {dimension_numbers = #tpu.dot_dimension_numbers<[2], [1], [1], [2], [0, 0, 0, 1, 1, 2], [0], [0]>} : vector<2x8x8xf32>, vector<2x8x8xf32>, vector<2x8x8xf32> -> vector<2x8x8xf32>
    "tpu.trace_stop"() : () -> ()
    %103 = vector.shape_cast %102 : vector<2x8x8xf32> to vector<16x8xf32>
    %104 = vector.extract_strided_slice %8 {offsets = [16, 0], sizes = [8, 32], strides = [1, 1]} : vector<32x32xf32> to vector<8x32xf32>
    %cst_59 = arith.constant dense<0.000000e+00> : vector<16x32xf32>
    %105 = tpu.matmul %103, %104, %cst_59 {dimension_numbers = #tpu.dot_dimension_numbers<[1], [0], [0], [1], [0, 0, 1, 1], [], []>} : vector<16x8xf32>, vector<8x32xf32>, vector<16x32xf32> -> vector<16x32xf32>
    %106 = arith.addf %80, %105 : vector<16x32xf32>
    %107 = vector.extract_strided_slice %29 {offsets = [0, 24], sizes = [16, 8], strides = [1, 1]} : vector<16x96xf32> to vector<16x8xf32>
    %108 = vector.shape_cast %107 : vector<16x8xf32> to vector<2x8x8xf32>
    %109 = vector.extract_strided_slice %29 {offsets = [0, 56], sizes = [16, 8], strides = [1, 1]} : vector<16x96xf32> to vector<16x8xf32>
    %110 = vector.shape_cast %109 : vector<16x8xf32> to vector<2x8x8xf32>
    %111 = vector.extract_strided_slice %29 {offsets = [0, 88], sizes = [16, 8], strides = [1, 1]} : vector<16x96xf32> to vector<16x8xf32>
    %112 = vector.shape_cast %111 : vector<16x8xf32> to vector<2x8x8xf32>
    "tpu.trace_start"() <{level = 10 : i32, message = "bqd,bkd->bqk"}> : () -> ()
    %cst_60 = arith.constant dense<0.000000e+00> : vector<2x8x8xf32>
    %113 = tpu.matmul %108, %110, %cst_60 {dimension_numbers = #tpu.dot_dimension_numbers<[2], [2], [1], [1], [0, 0, 0, 1, 1, 1], [0], [0]>} : vector<2x8x8xf32>, vector<2x8x8xf32>, vector<2x8x8xf32> -> vector<2x8x8xf32>
    "tpu.trace_stop"() : () -> ()
    %cst_61 = arith.constant 0.353553385 : f32
    %114 = vector.broadcast %cst_61 : f32 to vector<2x8x8xf32>
    %115 = arith.mulf %113, %114 : vector<2x8x8xf32>
    %116 = vector.broadcast %1 : vector<2x1x8xf32> to vector<2x8x8xf32>
    %117 = arith.addf %115, %116 : vector<2x8x8xf32>
    %cst_62 = arith.constant dense<0xFF800000> : vector<2x8xf32>
    %118 = vector.multi_reduction <maximumf>, %117, %cst_62 [2] : vector<2x8x8xf32> to vector<2x8xf32>
    %119 = vector.shape_cast %118 : vector<2x8xf32> to vector<2x8x1xf32>
    %120 = vector.broadcast %119 : vector<2x8x1xf32> to vector<2x8x8xf32>
    %121 = arith.subf %117, %120 : vector<2x8x8xf32>
    %122 = math.exp %121 : vector<2x8x8xf32>
    %cst_63 = arith.constant dense<0.000000e+00> : vector<2x8xf32>
    %123 = vector.multi_reduction <add>, %122, %cst_63 [2] : vector<2x8x8xf32> to vector<2x8xf32>
    %124 = vector.shape_cast %123 : vector<2x8xf32> to vector<2x8x1xf32>
    %125 = tpu.reciprocal %124 {approx = true} : vector<2x8x1xf32> -> vector<2x8x1xf32>
    %126 = vector.broadcast %125 : vector<2x8x1xf32> to vector<2x8x8xf32>
    %127 = arith.mulf %122, %126 : vector<2x8x8xf32>
    "tpu.trace_start"() <{level = 10 : i32, message = "bqk,bkd->bqd"}> : () -> ()
    %cst_64 = arith.constant dense<0.000000e+00> : vector<2x8x8xf32>
    %128 = tpu.matmul %127, %112, %cst_64 {dimension_numbers = #tpu.dot_dimension_numbers<[2], [1], [1], [2], [0, 0, 0, 1, 1, 2], [0], [0]>} : vector<2x8x8xf32>, vector<2x8x8xf32>, vector<2x8x8xf32> -> vector<2x8x8xf32>
    "tpu.trace_stop"() : () -> ()
    %129 = vector.shape_cast %128 : vector<2x8x8xf32> to vector<16x8xf32>
    %130 = vector.extract_strided_slice %8 {offsets = [24, 0], sizes = [8, 32], strides = [1, 1]} : vector<32x32xf32> to vector<8x32xf32>
    %cst_65 = arith.constant dense<0.000000e+00> : vector<16x32xf32>
    %131 = tpu.matmul %129, %130, %cst_65 {dimension_numbers = #tpu.dot_dimension_numbers<[1], [0], [0], [1], [0, 0, 1, 1], [], []>} : vector<16x8xf32>, vector<8x32xf32>, vector<16x32xf32> -> vector<16x32xf32>
    %132 = arith.addf %106, %131 : vector<16x32xf32>
    %133 = vector.broadcast %10 : vector<1x32xf32> to vector<16x32xf32>
    %134 = arith.addf %132, %133 : vector<16x32xf32>
    %135 = arith.addf %134, %0 : vector<16x32xf32>
    %cst_66 = arith.constant dense<0.000000e+00> : vector<16xf32>
    %136 = vector.multi_reduction <add>, %135, %cst_66 [1] : vector<16x32xf32> to vector<16xf32>
    %137 = vector.shape_cast %136 : vector<16xf32> to vector<16x1xf32>
    %cst_67 = arith.constant 3.200000e+01 : f32
    %138 = vector.broadcast %cst_67 : f32 to vector<16x1xf32>
    %139 = arith.divf %137, %138 : vector<16x1xf32>
    %140 = vector.broadcast %139 : vector<16x1xf32> to vector<16x32xf32>
    %141 = arith.subf %135, %140 : vector<16x32xf32>
    %142 = vector.broadcast %139 : vector<16x1xf32> to vector<16x32xf32>
    %143 = arith.subf %135, %142 : vector<16x32xf32>
    %144 = arith.mulf %141, %143 : vector<16x32xf32>
    %cst_68 = arith.constant dense<0.000000e+00> : vector<16xf32>
    %145 = vector.multi_reduction <add>, %144, %cst_68 [1] : vector<16x32xf32> to vector<16xf32>
    %146 = vector.shape_cast %145 : vector<16xf32> to vector<16x1xf32>
    %cst_69 = arith.constant 3.200000e+01 : f32
    %147 = vector.broadcast %cst_69 : f32 to vector<16x1xf32>
    %148 = arith.divf %146, %147 : vector<16x1xf32>
    %149 = vector.broadcast %139 : vector<16x1xf32> to vector<16x32xf32>
    %150 = arith.subf %135, %149 : vector<16x32xf32>
    %cst_70 = arith.constant 9.99999974E-6 : f32
    %151 = vector.broadcast %cst_70 : f32 to vector<16x1xf32>
    %152 = arith.addf %148, %151 : vector<16x1xf32>
    %153 = math.rsqrt %152 : vector<16x1xf32>
    %154 = vector.broadcast %153 : vector<16x1xf32> to vector<16x32xf32>
    %155 = arith.mulf %150, %154 : vector<16x32xf32>
    %156 = vector.broadcast %12 : vector<1x32xf32> to vector<16x32xf32>
    %157 = arith.mulf %155, %156 : vector<16x32xf32>
    %158 = vector.broadcast %14 : vector<1x32xf32> to vector<16x32xf32>
    %159 = arith.addf %157, %158 : vector<16x32xf32>
    %160 = vector.broadcast %2 : vector<16x1xf32> to vector<16x32xf32>
    %161 = arith.mulf %159, %160 : vector<16x32xf32>
    %cst_71 = arith.constant dense<0.000000e+00> : vector<16x64xf32>
    %162 = tpu.matmul %161, %16, %cst_71 {dimension_numbers = #tpu.dot_dimension_numbers<[1], [0], [0], [1], [0, 0, 1, 1], [], []>} : vector<16x32xf32>, vector<32x64xf32>, vector<16x64xf32> -> vector<16x64xf32>
    %163 = vector.broadcast %18 : vector<1x64xf32> to vector<16x64xf32>
    %164 = arith.addf %162, %163 : vector<16x64xf32>
    %cst_72 = arith.constant 0.000000e+00 : f32
    %165 = vector.broadcast %cst_72 : f32 to vector<16x64xf32>
    %166 = arith.maximumf %164, %165 : vector<16x64xf32>
    %cst_73 = arith.constant dense<0.000000e+00> : vector<16x32xf32>
    %167 = tpu.matmul %166, %20, %cst_73 {dimension_numbers = #tpu.dot_dimension_numbers<[1], [0], [0], [1], [0, 0, 1, 1], [], []>} : vector<16x64xf32>, vector<64x32xf32>, vector<16x32xf32> -> vector<16x32xf32>
    %168 = vector.broadcast %22 : vector<1x32xf32> to vector<16x32xf32>
    %169 = arith.addf %167, %168 : vector<16x32xf32>
    %170 = arith.addf %169, %161 : vector<16x32xf32>
    %cst_74 = arith.constant dense<0.000000e+00> : vector<16xf32>
    %171 = vector.multi_reduction <add>, %170, %cst_74 [1] : vector<16x32xf32> to vector<16xf32>
    %172 = vector.shape_cast %171 : vector<16xf32> to vector<16x1xf32>
    %cst_75 = arith.constant 3.200000e+01 : f32
    %173 = vector.broadcast %cst_75 : f32 to vector<16x1xf32>
    %174 = arith.divf %172, %173 : vector<16x1xf32>
    %175 = vector.broadcast %174 : vector<16x1xf32> to vector<16x32xf32>
    %176 = arith.subf %170, %175 : vector<16x32xf32>
    %177 = vector.broadcast %174 : vector<16x1xf32> to vector<16x32xf32>
    %178 = arith.subf %170, %177 : vector<16x32xf32>
    %179 = arith.mulf %176, %178 : vector<16x32xf32>
    %cst_76 = arith.constant dense<0.000000e+00> : vector<16xf32>
    %180 = vector.multi_reduction <add>, %179, %cst_76 [1] : vector<16x32xf32> to vector<16xf32>
    %181 = vector.shape_cast %180 : vector<16xf32> to vector<16x1xf32>
    %cst_77 = arith.constant 3.200000e+01 : f32
    %182 = vector.broadcast %cst_77 : f32 to vector<16x1xf32>
    %183 = arith.divf %181, %182 : vector<16x1xf32>
    %184 = vector.broadcast %174 : vector<16x1xf32> to vector<16x32xf32>
    %185 = arith.subf %170, %184 : vector<16x32xf32>
    %cst_78 = arith.constant 9.99999974E-6 : f32
    %186 = vector.broadcast %cst_78 : f32 to vector<16x1xf32>
    %187 = arith.addf %183, %186 : vector<16x1xf32>
    %188 = math.rsqrt %187 : vector<16x1xf32>
    %189 = vector.broadcast %188 : vector<16x1xf32> to vector<16x32xf32>
    %190 = arith.mulf %185, %189 : vector<16x32xf32>
    %191 = vector.broadcast %24 : vector<1x32xf32> to vector<16x32xf32>
    %192 = arith.mulf %190, %191 : vector<16x32xf32>
    %193 = vector.broadcast %26 : vector<1x32xf32> to vector<16x32xf32>
    %194 = arith.addf %192, %193 : vector<16x32xf32>
    %195 = vector.broadcast %2 : vector<16x1xf32> to vector<16x32xf32>
    %196 = arith.mulf %194, %195 : vector<16x32xf32>
    %c1 = arith.constant 1 : index
    %c0_79 = arith.constant 0 : index
    %c0_80 = arith.constant 0 : index
    %197 = vector.load %arg4[%c1, %c0_79, %c0_80] : memref<6x32x96xf32, #tpu.memory_space<vmem>>, vector<1x32x96xf32>
    %198 = vector.shape_cast %197 : vector<1x32x96xf32> to vector<32x96xf32>
    %c1_81 = arith.constant 1 : index
    %c0_82 = arith.constant 0 : index
    %c0_83 = arith.constant 0 : index
    %199 = vector.load %arg5[%c1_81, %c0_82, %c0_83] : memref<6x1x96xf32, #tpu.memory_space<vmem>>, vector<1x1x96xf32>
    %200 = vector.shape_cast %199 : vector<1x1x96xf32> to vector<1x96xf32>
    %c1_84 = arith.constant 1 : index
    %c0_85 = arith.constant 0 : index
    %c0_86 = arith.constant 0 : index
    %201 = vector.load %arg6[%c1_84, %c0_85, %c0_86] : memref<6x32x32xf32, #tpu.memory_space<vmem>>, vector<1x32x32xf32>
    %202 = vector.shape_cast %201 : vector<1x32x32xf32> to vector<32x32xf32>
    %c1_87 = arith.constant 1 : index
    %c0_88 = arith.constant 0 : index
    %c0_89 = arith.constant 0 : index
    %203 = vector.load %arg7[%c1_87, %c0_88, %c0_89] : memref<6x1x32xf32, #tpu.memory_space<vmem>>, vector<1x1x32xf32>
    %204 = vector.shape_cast %203 : vector<1x1x32xf32> to vector<1x32xf32>
    %c1_90 = arith.constant 1 : index
    %c0_91 = arith.constant 0 : index
    %c0_92 = arith.constant 0 : index
    %205 = vector.load %arg8[%c1_90, %c0_91, %c0_92] : memref<6x1x32xf32, #tpu.memory_space<vmem>>, vector<1x1x32xf32>
    %206 = vector.shape_cast %205 : vector<1x1x32xf32> to vector<1x32xf32>
    %c1_93 = arith.constant 1 : index
    %c0_94 = arith.constant 0 : index
    %c0_95 = arith.constant 0 : index
    %207 = vector.load %arg9[%c1_93, %c0_94, %c0_95] : memref<6x1x32xf32, #tpu.memory_space<vmem>>, vector<1x1x32xf32>
    %208 = vector.shape_cast %207 : vector<1x1x32xf32> to vector<1x32xf32>
    %c1_96 = arith.constant 1 : index
    %c0_97 = arith.constant 0 : index
    %c0_98 = arith.constant 0 : index
    %209 = vector.load %arg10[%c1_96, %c0_97, %c0_98] : memref<6x32x64xf32, #tpu.memory_space<vmem>>, vector<1x32x64xf32>
    %210 = vector.shape_cast %209 : vector<1x32x64xf32> to vector<32x64xf32>
    %c1_99 = arith.constant 1 : index
    %c0_100 = arith.constant 0 : index
    %c0_101 = arith.constant 0 : index
    %211 = vector.load %arg11[%c1_99, %c0_100, %c0_101] : memref<6x1x64xf32, #tpu.memory_space<vmem>>, vector<1x1x64xf32>
    %212 = vector.shape_cast %211 : vector<1x1x64xf32> to vector<1x64xf32>
    %c1_102 = arith.constant 1 : index
    %c0_103 = arith.constant 0 : index
    %c0_104 = arith.constant 0 : index
    %213 = vector.load %arg12[%c1_102, %c0_103, %c0_104] : memref<6x64x32xf32, #tpu.memory_space<vmem>>, vector<1x64x32xf32>
    %214 = vector.shape_cast %213 : vector<1x64x32xf32> to vector<64x32xf32>
    %c1_105 = arith.constant 1 : index
    %c0_106 = arith.constant 0 : index
    %c0_107 = arith.constant 0 : index
    %215 = vector.load %arg13[%c1_105, %c0_106, %c0_107] : memref<6x1x32xf32, #tpu.memory_space<vmem>>, vector<1x1x32xf32>
    %216 = vector.shape_cast %215 : vector<1x1x32xf32> to vector<1x32xf32>
    %c1_108 = arith.constant 1 : index
    %c0_109 = arith.constant 0 : index
    %c0_110 = arith.constant 0 : index
    %217 = vector.load %arg14[%c1_108, %c0_109, %c0_110] : memref<6x1x32xf32, #tpu.memory_space<vmem>>, vector<1x1x32xf32>
    %218 = vector.shape_cast %217 : vector<1x1x32xf32> to vector<1x32xf32>
    %c1_111 = arith.constant 1 : index
    %c0_112 = arith.constant 0 : index
    %c0_113 = arith.constant 0 : index
    %219 = vector.load %arg15[%c1_111, %c0_112, %c0_113] : memref<6x1x32xf32, #tpu.memory_space<vmem>>, vector<1x1x32xf32>
    %220 = vector.shape_cast %219 : vector<1x1x32xf32> to vector<1x32xf32>
    %cst_114 = arith.constant dense<0.000000e+00> : vector<16x96xf32>
    %221 = tpu.matmul %196, %198, %cst_114 {dimension_numbers = #tpu.dot_dimension_numbers<[1], [0], [0], [1], [0, 0, 1, 1], [], []>} : vector<16x32xf32>, vector<32x96xf32>, vector<16x96xf32> -> vector<16x96xf32>
    %222 = vector.broadcast %200 : vector<1x96xf32> to vector<16x96xf32>
    %223 = arith.addf %221, %222 : vector<16x96xf32>
    %224 = vector.extract_strided_slice %223 {offsets = [0, 0], sizes = [16, 8], strides = [1, 1]} : vector<16x96xf32> to vector<16x8xf32>
    %225 = vector.shape_cast %224 : vector<16x8xf32> to vector<2x8x8xf32>
    %226 = vector.extract_strided_slice %223 {offsets = [0, 32], sizes = [16, 8], strides = [1, 1]} : vector<16x96xf32> to vector<16x8xf32>
    %227 = vector.shape_cast %226 : vector<16x8xf32> to vector<2x8x8xf32>
    %228 = vector.extract_strided_slice %223 {offsets = [0, 64], sizes = [16, 8], strides = [1, 1]} : vector<16x96xf32> to vector<16x8xf32>
    %229 = vector.shape_cast %228 : vector<16x8xf32> to vector<2x8x8xf32>
    "tpu.trace_start"() <{level = 10 : i32, message = "bqd,bkd->bqk"}> : () -> ()
    %cst_115 = arith.constant dense<0.000000e+00> : vector<2x8x8xf32>
    %230 = tpu.matmul %225, %227, %cst_115 {dimension_numbers = #tpu.dot_dimension_numbers<[2], [2], [1], [1], [0, 0, 0, 1, 1, 1], [0], [0]>} : vector<2x8x8xf32>, vector<2x8x8xf32>, vector<2x8x8xf32> -> vector<2x8x8xf32>
    "tpu.trace_stop"() : () -> ()
    %cst_116 = arith.constant 0.353553385 : f32
    %231 = vector.broadcast %cst_116 : f32 to vector<2x8x8xf32>
    %232 = arith.mulf %230, %231 : vector<2x8x8xf32>
    %233 = vector.broadcast %1 : vector<2x1x8xf32> to vector<2x8x8xf32>
    %234 = arith.addf %232, %233 : vector<2x8x8xf32>
    %cst_117 = arith.constant dense<0xFF800000> : vector<2x8xf32>
    %235 = vector.multi_reduction <maximumf>, %234, %cst_117 [2] : vector<2x8x8xf32> to vector<2x8xf32>
    %236 = vector.shape_cast %235 : vector<2x8xf32> to vector<2x8x1xf32>
    %237 = vector.broadcast %236 : vector<2x8x1xf32> to vector<2x8x8xf32>
    %238 = arith.subf %234, %237 : vector<2x8x8xf32>
    %239 = math.exp %238 : vector<2x8x8xf32>
    %cst_118 = arith.constant dense<0.000000e+00> : vector<2x8xf32>
    %240 = vector.multi_reduction <add>, %239, %cst_118 [2] : vector<2x8x8xf32> to vector<2x8xf32>
    %241 = vector.shape_cast %240 : vector<2x8xf32> to vector<2x8x1xf32>
    %242 = tpu.reciprocal %241 {approx = true} : vector<2x8x1xf32> -> vector<2x8x1xf32>
    %243 = vector.broadcast %242 : vector<2x8x1xf32> to vector<2x8x8xf32>
    %244 = arith.mulf %239, %243 : vector<2x8x8xf32>
    "tpu.trace_start"() <{level = 10 : i32, message = "bqk,bkd->bqd"}> : () -> ()
    %cst_119 = arith.constant dense<0.000000e+00> : vector<2x8x8xf32>
    %245 = tpu.matmul %244, %229, %cst_119 {dimension_numbers = #tpu.dot_dimension_numbers<[2], [1], [1], [2], [0, 0, 0, 1, 1, 2], [0], [0]>} : vector<2x8x8xf32>, vector<2x8x8xf32>, vector<2x8x8xf32> -> vector<2x8x8xf32>
    "tpu.trace_stop"() : () -> ()
    %246 = vector.shape_cast %245 : vector<2x8x8xf32> to vector<16x8xf32>
    %247 = vector.extract_strided_slice %202 {offsets = [0, 0], sizes = [8, 32], strides = [1, 1]} : vector<32x32xf32> to vector<8x32xf32>
    %cst_120 = arith.constant dense<0.000000e+00> : vector<16x32xf32>
    %248 = tpu.matmul %246, %247, %cst_120 {dimension_numbers = #tpu.dot_dimension_numbers<[1], [0], [0], [1], [0, 0, 1, 1], [], []>} : vector<16x8xf32>, vector<8x32xf32>, vector<16x32xf32> -> vector<16x32xf32>
    %249 = vector.extract_strided_slice %223 {offsets = [0, 8], sizes = [16, 8], strides = [1, 1]} : vector<16x96xf32> to vector<16x8xf32>
    %250 = vector.shape_cast %249 : vector<16x8xf32> to vector<2x8x8xf32>
    %251 = vector.extract_strided_slice %223 {offsets = [0, 40], sizes = [16, 8], strides = [1, 1]} : vector<16x96xf32> to vector<16x8xf32>
    %252 = vector.shape_cast %251 : vector<16x8xf32> to vector<2x8x8xf32>
    %253 = vector.extract_strided_slice %223 {offsets = [0, 72], sizes = [16, 8], strides = [1, 1]} : vector<16x96xf32> to vector<16x8xf32>
    %254 = vector.shape_cast %253 : vector<16x8xf32> to vector<2x8x8xf32>
    "tpu.trace_start"() <{level = 10 : i32, message = "bqd,bkd->bqk"}> : () -> ()
    %cst_121 = arith.constant dense<0.000000e+00> : vector<2x8x8xf32>
    %255 = tpu.matmul %250, %252, %cst_121 {dimension_numbers = #tpu.dot_dimension_numbers<[2], [2], [1], [1], [0, 0, 0, 1, 1, 1], [0], [0]>} : vector<2x8x8xf32>, vector<2x8x8xf32>, vector<2x8x8xf32> -> vector<2x8x8xf32>
    "tpu.trace_stop"() : () -> ()
    %cst_122 = arith.constant 0.353553385 : f32
    %256 = vector.broadcast %cst_122 : f32 to vector<2x8x8xf32>
    %257 = arith.mulf %255, %256 : vector<2x8x8xf32>
    %258 = vector.broadcast %1 : vector<2x1x8xf32> to vector<2x8x8xf32>
    %259 = arith.addf %257, %258 : vector<2x8x8xf32>
    %cst_123 = arith.constant dense<0xFF800000> : vector<2x8xf32>
    %260 = vector.multi_reduction <maximumf>, %259, %cst_123 [2] : vector<2x8x8xf32> to vector<2x8xf32>
    %261 = vector.shape_cast %260 : vector<2x8xf32> to vector<2x8x1xf32>
    %262 = vector.broadcast %261 : vector<2x8x1xf32> to vector<2x8x8xf32>
    %263 = arith.subf %259, %262 : vector<2x8x8xf32>
    %264 = math.exp %263 : vector<2x8x8xf32>
    %cst_124 = arith.constant dense<0.000000e+00> : vector<2x8xf32>
    %265 = vector.multi_reduction <add>, %264, %cst_124 [2] : vector<2x8x8xf32> to vector<2x8xf32>
    %266 = vector.shape_cast %265 : vector<2x8xf32> to vector<2x8x1xf32>
    %267 = tpu.reciprocal %266 {approx = true} : vector<2x8x1xf32> -> vector<2x8x1xf32>
    %268 = vector.broadcast %267 : vector<2x8x1xf32> to vector<2x8x8xf32>
    %269 = arith.mulf %264, %268 : vector<2x8x8xf32>
    "tpu.trace_start"() <{level = 10 : i32, message = "bqk,bkd->bqd"}> : () -> ()
    %cst_125 = arith.constant dense<0.000000e+00> : vector<2x8x8xf32>
    %270 = tpu.matmul %269, %254, %cst_125 {dimension_numbers = #tpu.dot_dimension_numbers<[2], [1], [1], [2], [0, 0, 0, 1, 1, 2], [0], [0]>} : vector<2x8x8xf32>, vector<2x8x8xf32>, vector<2x8x8xf32> -> vector<2x8x8xf32>
    "tpu.trace_stop"() : () -> ()
    %271 = vector.shape_cast %270 : vector<2x8x8xf32> to vector<16x8xf32>
    %272 = vector.extract_strided_slice %202 {offsets = [8, 0], sizes = [8, 32], strides = [1, 1]} : vector<32x32xf32> to vector<8x32xf32>
    %cst_126 = arith.constant dense<0.000000e+00> : vector<16x32xf32>
    %273 = tpu.matmul %271, %272, %cst_126 {dimension_numbers = #tpu.dot_dimension_numbers<[1], [0], [0], [1], [0, 0, 1, 1], [], []>} : vector<16x8xf32>, vector<8x32xf32>, vector<16x32xf32> -> vector<16x32xf32>
    %274 = arith.addf %248, %273 : vector<16x32xf32>
    %275 = vector.extract_strided_slice %223 {offsets = [0, 16], sizes = [16, 8], strides = [1, 1]} : vector<16x96xf32> to vector<16x8xf32>
    %276 = vector.shape_cast %275 : vector<16x8xf32> to vector<2x8x8xf32>
    %277 = vector.extract_strided_slice %223 {offsets = [0, 48], sizes = [16, 8], strides = [1, 1]} : vector<16x96xf32> to vector<16x8xf32>
    %278 = vector.shape_cast %277 : vector<16x8xf32> to vector<2x8x8xf32>
    %279 = vector.extract_strided_slice %223 {offsets = [0, 80], sizes = [16, 8], strides = [1, 1]} : vector<16x96xf32> to vector<16x8xf32>
    %280 = vector.shape_cast %279 : vector<16x8xf32> to vector<2x8x8xf32>
    "tpu.trace_start"() <{level = 10 : i32, message = "bqd,bkd->bqk"}> : () -> ()
    %cst_127 = arith.constant dense<0.000000e+00> : vector<2x8x8xf32>
    %281 = tpu.matmul %276, %278, %cst_127 {dimension_numbers = #tpu.dot_dimension_numbers<[2], [2], [1], [1], [0, 0, 0, 1, 1, 1], [0], [0]>} : vector<2x8x8xf32>, vector<2x8x8xf32>, vector<2x8x8xf32> -> vector<2x8x8xf32>
    "tpu.trace_stop"() : () -> ()
    %cst_128 = arith.constant 0.353553385 : f32
    %282 = vector.broadcast %cst_128 : f32 to vector<2x8x8xf32>
    %283 = arith.mulf %281, %282 : vector<2x8x8xf32>
    %284 = vector.broadcast %1 : vector<2x1x8xf32> to vector<2x8x8xf32>
    %285 = arith.addf %283, %284 : vector<2x8x8xf32>
    %cst_129 = arith.constant dense<0xFF800000> : vector<2x8xf32>
    %286 = vector.multi_reduction <maximumf>, %285, %cst_129 [2] : vector<2x8x8xf32> to vector<2x8xf32>
    %287 = vector.shape_cast %286 : vector<2x8xf32> to vector<2x8x1xf32>
    %288 = vector.broadcast %287 : vector<2x8x1xf32> to vector<2x8x8xf32>
    %289 = arith.subf %285, %288 : vector<2x8x8xf32>
    %290 = math.exp %289 : vector<2x8x8xf32>
    %cst_130 = arith.constant dense<0.000000e+00> : vector<2x8xf32>
    %291 = vector.multi_reduction <add>, %290, %cst_130 [2] : vector<2x8x8xf32> to vector<2x8xf32>
    %292 = vector.shape_cast %291 : vector<2x8xf32> to vector<2x8x1xf32>
    %293 = tpu.reciprocal %292 {approx = true} : vector<2x8x1xf32> -> vector<2x8x1xf32>
    %294 = vector.broadcast %293 : vector<2x8x1xf32> to vector<2x8x8xf32>
    %295 = arith.mulf %290, %294 : vector<2x8x8xf32>
    "tpu.trace_start"() <{level = 10 : i32, message = "bqk,bkd->bqd"}> : () -> ()
    %cst_131 = arith.constant dense<0.000000e+00> : vector<2x8x8xf32>
    %296 = tpu.matmul %295, %280, %cst_131 {dimension_numbers = #tpu.dot_dimension_numbers<[2], [1], [1], [2], [0, 0, 0, 1, 1, 2], [0], [0]>} : vector<2x8x8xf32>, vector<2x8x8xf32>, vector<2x8x8xf32> -> vector<2x8x8xf32>
    "tpu.trace_stop"() : () -> ()
    %297 = vector.shape_cast %296 : vector<2x8x8xf32> to vector<16x8xf32>
    %298 = vector.extract_strided_slice %202 {offsets = [16, 0], sizes = [8, 32], strides = [1, 1]} : vector<32x32xf32> to vector<8x32xf32>
    %cst_132 = arith.constant dense<0.000000e+00> : vector<16x32xf32>
    %299 = tpu.matmul %297, %298, %cst_132 {dimension_numbers = #tpu.dot_dimension_numbers<[1], [0], [0], [1], [0, 0, 1, 1], [], []>} : vector<16x8xf32>, vector<8x32xf32>, vector<16x32xf32> -> vector<16x32xf32>
    %300 = arith.addf %274, %299 : vector<16x32xf32>
    %301 = vector.extract_strided_slice %223 {offsets = [0, 24], sizes = [16, 8], strides = [1, 1]} : vector<16x96xf32> to vector<16x8xf32>
    %302 = vector.shape_cast %301 : vector<16x8xf32> to vector<2x8x8xf32>
    %303 = vector.extract_strided_slice %223 {offsets = [0, 56], sizes = [16, 8], strides = [1, 1]} : vector<16x96xf32> to vector<16x8xf32>
    %304 = vector.shape_cast %303 : vector<16x8xf32> to vector<2x8x8xf32>
    %305 = vector.extract_strided_slice %223 {offsets = [0, 88], sizes = [16, 8], strides = [1, 1]} : vector<16x96xf32> to vector<16x8xf32>
    %306 = vector.shape_cast %305 : vector<16x8xf32> to vector<2x8x8xf32>
    "tpu.trace_start"() <{level = 10 : i32, message = "bqd,bkd->bqk"}> : () -> ()
    %cst_133 = arith.constant dense<0.000000e+00> : vector<2x8x8xf32>
    %307 = tpu.matmul %302, %304, %cst_133 {dimension_numbers = #tpu.dot_dimension_numbers<[2], [2], [1], [1], [0, 0, 0, 1, 1, 1], [0], [0]>} : vector<2x8x8xf32>, vector<2x8x8xf32>, vector<2x8x8xf32> -> vector<2x8x8xf32>
    "tpu.trace_stop"() : () -> ()
    %cst_134 = arith.constant 0.353553385 : f32
    %308 = vector.broadcast %cst_134 : f32 to vector<2x8x8xf32>
    %309 = arith.mulf %307, %308 : vector<2x8x8xf32>
    %310 = vector.broadcast %1 : vector<2x1x8xf32> to vector<2x8x8xf32>
    %311 = arith.addf %309, %310 : vector<2x8x8xf32>
    %cst_135 = arith.constant dense<0xFF800000> : vector<2x8xf32>
    %312 = vector.multi_reduction <maximumf>, %311, %cst_135 [2] : vector<2x8x8xf32> to vector<2x8xf32>
    %313 = vector.shape_cast %312 : vector<2x8xf32> to vector<2x8x1xf32>
    %314 = vector.broadcast %313 : vector<2x8x1xf32> to vector<2x8x8xf32>
    %315 = arith.subf %311, %314 : vector<2x8x8xf32>
    %316 = math.exp %315 : vector<2x8x8xf32>
    %cst_136 = arith.constant dense<0.000000e+00> : vector<2x8xf32>
    %317 = vector.multi_reduction <add>, %316, %cst_136 [2] : vector<2x8x8xf32> to vector<2x8xf32>
    %318 = vector.shape_cast %317 : vector<2x8xf32> to vector<2x8x1xf32>
    %319 = tpu.reciprocal %318 {approx = true} : vector<2x8x1xf32> -> vector<2x8x1xf32>
    %320 = vector.broadcast %319 : vector<2x8x1xf32> to vector<2x8x8xf32>
    %321 = arith.mulf %316, %320 : vector<2x8x8xf32>
    "tpu.trace_start"() <{level = 10 : i32, message = "bqk,bkd->bqd"}> : () -> ()
    %cst_137 = arith.constant dense<0.000000e+00> : vector<2x8x8xf32>
    %322 = tpu.matmul %321, %306, %cst_137 {dimension_numbers = #tpu.dot_dimension_numbers<[2], [1], [1], [2], [0, 0, 0, 1, 1, 2], [0], [0]>} : vector<2x8x8xf32>, vector<2x8x8xf32>, vector<2x8x8xf32> -> vector<2x8x8xf32>
    "tpu.trace_stop"() : () -> ()
    %323 = vector.shape_cast %322 : vector<2x8x8xf32> to vector<16x8xf32>
    %324 = vector.extract_strided_slice %202 {offsets = [24, 0], sizes = [8, 32], strides = [1, 1]} : vector<32x32xf32> to vector<8x32xf32>
    %cst_138 = arith.constant dense<0.000000e+00> : vector<16x32xf32>
    %325 = tpu.matmul %323, %324, %cst_138 {dimension_numbers = #tpu.dot_dimension_numbers<[1], [0], [0], [1], [0, 0, 1, 1], [], []>} : vector<16x8xf32>, vector<8x32xf32>, vector<16x32xf32> -> vector<16x32xf32>
    %326 = arith.addf %300, %325 : vector<16x32xf32>
    %327 = vector.broadcast %204 : vector<1x32xf32> to vector<16x32xf32>
    %328 = arith.addf %326, %327 : vector<16x32xf32>
    %329 = arith.addf %328, %196 : vector<16x32xf32>
    %cst_139 = arith.constant dense<0.000000e+00> : vector<16xf32>
    %330 = vector.multi_reduction <add>, %329, %cst_139 [1] : vector<16x32xf32> to vector<16xf32>
    %331 = vector.shape_cast %330 : vector<16xf32> to vector<16x1xf32>
    %cst_140 = arith.constant 3.200000e+01 : f32
    %332 = vector.broadcast %cst_140 : f32 to vector<16x1xf32>
    %333 = arith.divf %331, %332 : vector<16x1xf32>
    %334 = vector.broadcast %333 : vector<16x1xf32> to vector<16x32xf32>
    %335 = arith.subf %329, %334 : vector<16x32xf32>
    %336 = vector.broadcast %333 : vector<16x1xf32> to vector<16x32xf32>
    %337 = arith.subf %329, %336 : vector<16x32xf32>
    %338 = arith.mulf %335, %337 : vector<16x32xf32>
    %cst_141 = arith.constant dense<0.000000e+00> : vector<16xf32>
    %339 = vector.multi_reduction <add>, %338, %cst_141 [1] : vector<16x32xf32> to vector<16xf32>
    %340 = vector.shape_cast %339 : vector<16xf32> to vector<16x1xf32>
    %cst_142 = arith.constant 3.200000e+01 : f32
    %341 = vector.broadcast %cst_142 : f32 to vector<16x1xf32>
    %342 = arith.divf %340, %341 : vector<16x1xf32>
    %343 = vector.broadcast %333 : vector<16x1xf32> to vector<16x32xf32>
    %344 = arith.subf %329, %343 : vector<16x32xf32>
    %cst_143 = arith.constant 9.99999974E-6 : f32
    %345 = vector.broadcast %cst_143 : f32 to vector<16x1xf32>
    %346 = arith.addf %342, %345 : vector<16x1xf32>
    %347 = math.rsqrt %346 : vector<16x1xf32>
    %348 = vector.broadcast %347 : vector<16x1xf32> to vector<16x32xf32>
    %349 = arith.mulf %344, %348 : vector<16x32xf32>
    %350 = vector.broadcast %206 : vector<1x32xf32> to vector<16x32xf32>
    %351 = arith.mulf %349, %350 : vector<16x32xf32>
    %352 = vector.broadcast %208 : vector<1x32xf32> to vector<16x32xf32>
    %353 = arith.addf %351, %352 : vector<16x32xf32>
    %354 = vector.broadcast %2 : vector<16x1xf32> to vector<16x32xf32>
    %355 = arith.mulf %353, %354 : vector<16x32xf32>
    %cst_144 = arith.constant dense<0.000000e+00> : vector<16x64xf32>
    %356 = tpu.matmul %355, %210, %cst_144 {dimension_numbers = #tpu.dot_dimension_numbers<[1], [0], [0], [1], [0, 0, 1, 1], [], []>} : vector<16x32xf32>, vector<32x64xf32>, vector<16x64xf32> -> vector<16x64xf32>
    %357 = vector.broadcast %212 : vector<1x64xf32> to vector<16x64xf32>
    %358 = arith.addf %356, %357 : vector<16x64xf32>
    %cst_145 = arith.constant 0.000000e+00 : f32
    %359 = vector.broadcast %cst_145 : f32 to vector<16x64xf32>
    %360 = arith.maximumf %358, %359 : vector<16x64xf32>
    %cst_146 = arith.constant dense<0.000000e+00> : vector<16x32xf32>
    %361 = tpu.matmul %360, %214, %cst_146 {dimension_numbers = #tpu.dot_dimension_numbers<[1], [0], [0], [1], [0, 0, 1, 1], [], []>} : vector<16x64xf32>, vector<64x32xf32>, vector<16x32xf32> -> vector<16x32xf32>
    %362 = vector.broadcast %216 : vector<1x32xf32> to vector<16x32xf32>
    %363 = arith.addf %361, %362 : vector<16x32xf32>
    %364 = arith.addf %363, %355 : vector<16x32xf32>
    %cst_147 = arith.constant dense<0.000000e+00> : vector<16xf32>
    %365 = vector.multi_reduction <add>, %364, %cst_147 [1] : vector<16x32xf32> to vector<16xf32>
    %366 = vector.shape_cast %365 : vector<16xf32> to vector<16x1xf32>
    %cst_148 = arith.constant 3.200000e+01 : f32
    %367 = vector.broadcast %cst_148 : f32 to vector<16x1xf32>
    %368 = arith.divf %366, %367 : vector<16x1xf32>
    %369 = vector.broadcast %368 : vector<16x1xf32> to vector<16x32xf32>
    %370 = arith.subf %364, %369 : vector<16x32xf32>
    %371 = vector.broadcast %368 : vector<16x1xf32> to vector<16x32xf32>
    %372 = arith.subf %364, %371 : vector<16x32xf32>
    %373 = arith.mulf %370, %372 : vector<16x32xf32>
    %cst_149 = arith.constant dense<0.000000e+00> : vector<16xf32>
    %374 = vector.multi_reduction <add>, %373, %cst_149 [1] : vector<16x32xf32> to vector<16xf32>
    %375 = vector.shape_cast %374 : vector<16xf32> to vector<16x1xf32>
    %cst_150 = arith.constant 3.200000e+01 : f32
    %376 = vector.broadcast %cst_150 : f32 to vector<16x1xf32>
    %377 = arith.divf %375, %376 : vector<16x1xf32>
    %378 = vector.broadcast %368 : vector<16x1xf32> to vector<16x32xf32>
    %379 = arith.subf %364, %378 : vector<16x32xf32>
    %cst_151 = arith.constant 9.99999974E-6 : f32
    %380 = vector.broadcast %cst_151 : f32 to vector<16x1xf32>
    %381 = arith.addf %377, %380 : vector<16x1xf32>
    %382 = math.rsqrt %381 : vector<16x1xf32>
    %383 = vector.broadcast %382 : vector<16x1xf32> to vector<16x32xf32>
    %384 = arith.mulf %379, %383 : vector<16x32xf32>
    %385 = vector.broadcast %218 : vector<1x32xf32> to vector<16x32xf32>
    %386 = arith.mulf %384, %385 : vector<16x32xf32>
    %387 = vector.broadcast %220 : vector<1x32xf32> to vector<16x32xf32>
    %388 = arith.addf %386, %387 : vector<16x32xf32>
    %389 = vector.broadcast %2 : vector<16x1xf32> to vector<16x32xf32>
    %390 = arith.mulf %388, %389 : vector<16x32xf32>
    %c2 = arith.constant 2 : index
    %c0_152 = arith.constant 0 : index
    %c0_153 = arith.constant 0 : index
    %391 = vector.load %arg4[%c2, %c0_152, %c0_153] : memref<6x32x96xf32, #tpu.memory_space<vmem>>, vector<1x32x96xf32>
    %392 = vector.shape_cast %391 : vector<1x32x96xf32> to vector<32x96xf32>
    %c2_154 = arith.constant 2 : index
    %c0_155 = arith.constant 0 : index
    %c0_156 = arith.constant 0 : index
    %393 = vector.load %arg5[%c2_154, %c0_155, %c0_156] : memref<6x1x96xf32, #tpu.memory_space<vmem>>, vector<1x1x96xf32>
    %394 = vector.shape_cast %393 : vector<1x1x96xf32> to vector<1x96xf32>
    %c2_157 = arith.constant 2 : index
    %c0_158 = arith.constant 0 : index
    %c0_159 = arith.constant 0 : index
    %395 = vector.load %arg6[%c2_157, %c0_158, %c0_159] : memref<6x32x32xf32, #tpu.memory_space<vmem>>, vector<1x32x32xf32>
    %396 = vector.shape_cast %395 : vector<1x32x32xf32> to vector<32x32xf32>
    %c2_160 = arith.constant 2 : index
    %c0_161 = arith.constant 0 : index
    %c0_162 = arith.constant 0 : index
    %397 = vector.load %arg7[%c2_160, %c0_161, %c0_162] : memref<6x1x32xf32, #tpu.memory_space<vmem>>, vector<1x1x32xf32>
    %398 = vector.shape_cast %397 : vector<1x1x32xf32> to vector<1x32xf32>
    %c2_163 = arith.constant 2 : index
    %c0_164 = arith.constant 0 : index
    %c0_165 = arith.constant 0 : index
    %399 = vector.load %arg8[%c2_163, %c0_164, %c0_165] : memref<6x1x32xf32, #tpu.memory_space<vmem>>, vector<1x1x32xf32>
    %400 = vector.shape_cast %399 : vector<1x1x32xf32> to vector<1x32xf32>
    %c2_166 = arith.constant 2 : index
    %c0_167 = arith.constant 0 : index
    %c0_168 = arith.constant 0 : index
    %401 = vector.load %arg9[%c2_166, %c0_167, %c0_168] : memref<6x1x32xf32, #tpu.memory_space<vmem>>, vector<1x1x32xf32>
    %402 = vector.shape_cast %401 : vector<1x1x32xf32> to vector<1x32xf32>
    %c2_169 = arith.constant 2 : index
    %c0_170 = arith.constant 0 : index
    %c0_171 = arith.constant 0 : index
    %403 = vector.load %arg10[%c2_169, %c0_170, %c0_171] : memref<6x32x64xf32, #tpu.memory_space<vmem>>, vector<1x32x64xf32>
    %404 = vector.shape_cast %403 : vector<1x32x64xf32> to vector<32x64xf32>
    %c2_172 = arith.constant 2 : index
    %c0_173 = arith.constant 0 : index
    %c0_174 = arith.constant 0 : index
    %405 = vector.load %arg11[%c2_172, %c0_173, %c0_174] : memref<6x1x64xf32, #tpu.memory_space<vmem>>, vector<1x1x64xf32>
    %406 = vector.shape_cast %405 : vector<1x1x64xf32> to vector<1x64xf32>
    %c2_175 = arith.constant 2 : index
    %c0_176 = arith.constant 0 : index
    %c0_177 = arith.constant 0 : index
    %407 = vector.load %arg12[%c2_175, %c0_176, %c0_177] : memref<6x64x32xf32, #tpu.memory_space<vmem>>, vector<1x64x32xf32>
    %408 = vector.shape_cast %407 : vector<1x64x32xf32> to vector<64x32xf32>
    %c2_178 = arith.constant 2 : index
    %c0_179 = arith.constant 0 : index
    %c0_180 = arith.constant 0 : index
    %409 = vector.load %arg13[%c2_178, %c0_179, %c0_180] : memref<6x1x32xf32, #tpu.memory_space<vmem>>, vector<1x1x32xf32>
    %410 = vector.shape_cast %409 : vector<1x1x32xf32> to vector<1x32xf32>
    %c2_181 = arith.constant 2 : index
    %c0_182 = arith.constant 0 : index
    %c0_183 = arith.constant 0 : index
    %411 = vector.load %arg14[%c2_181, %c0_182, %c0_183] : memref<6x1x32xf32, #tpu.memory_space<vmem>>, vector<1x1x32xf32>
    %412 = vector.shape_cast %411 : vector<1x1x32xf32> to vector<1x32xf32>
    %c2_184 = arith.constant 2 : index
    %c0_185 = arith.constant 0 : index
    %c0_186 = arith.constant 0 : index
    %413 = vector.load %arg15[%c2_184, %c0_185, %c0_186] : memref<6x1x32xf32, #tpu.memory_space<vmem>>, vector<1x1x32xf32>
    %414 = vector.shape_cast %413 : vector<1x1x32xf32> to vector<1x32xf32>
    %cst_187 = arith.constant dense<0.000000e+00> : vector<16x96xf32>
    %415 = tpu.matmul %390, %392, %cst_187 {dimension_numbers = #tpu.dot_dimension_numbers<[1], [0], [0], [1], [0, 0, 1, 1], [], []>} : vector<16x32xf32>, vector<32x96xf32>, vector<16x96xf32> -> vector<16x96xf32>
    %416 = vector.broadcast %394 : vector<1x96xf32> to vector<16x96xf32>
    %417 = arith.addf %415, %416 : vector<16x96xf32>
    %418 = vector.extract_strided_slice %417 {offsets = [0, 0], sizes = [16, 8], strides = [1, 1]} : vector<16x96xf32> to vector<16x8xf32>
    %419 = vector.shape_cast %418 : vector<16x8xf32> to vector<2x8x8xf32>
    %420 = vector.extract_strided_slice %417 {offsets = [0, 32], sizes = [16, 8], strides = [1, 1]} : vector<16x96xf32> to vector<16x8xf32>
    %421 = vector.shape_cast %420 : vector<16x8xf32> to vector<2x8x8xf32>
    %422 = vector.extract_strided_slice %417 {offsets = [0, 64], sizes = [16, 8], strides = [1, 1]} : vector<16x96xf32> to vector<16x8xf32>
    %423 = vector.shape_cast %422 : vector<16x8xf32> to vector<2x8x8xf32>
    "tpu.trace_start"() <{level = 10 : i32, message = "bqd,bkd->bqk"}> : () -> ()
    %cst_188 = arith.constant dense<0.000000e+00> : vector<2x8x8xf32>
    %424 = tpu.matmul %419, %421, %cst_188 {dimension_numbers = #tpu.dot_dimension_numbers<[2], [2], [1], [1], [0, 0, 0, 1, 1, 1], [0], [0]>} : vector<2x8x8xf32>, vector<2x8x8xf32>, vector<2x8x8xf32> -> vector<2x8x8xf32>
    "tpu.trace_stop"() : () -> ()
    %cst_189 = arith.constant 0.353553385 : f32
    %425 = vector.broadcast %cst_189 : f32 to vector<2x8x8xf32>
    %426 = arith.mulf %424, %425 : vector<2x8x8xf32>
    %427 = vector.broadcast %1 : vector<2x1x8xf32> to vector<2x8x8xf32>
    %428 = arith.addf %426, %427 : vector<2x8x8xf32>
    %cst_190 = arith.constant dense<0xFF800000> : vector<2x8xf32>
    %429 = vector.multi_reduction <maximumf>, %428, %cst_190 [2] : vector<2x8x8xf32> to vector<2x8xf32>
    %430 = vector.shape_cast %429 : vector<2x8xf32> to vector<2x8x1xf32>
    %431 = vector.broadcast %430 : vector<2x8x1xf32> to vector<2x8x8xf32>
    %432 = arith.subf %428, %431 : vector<2x8x8xf32>
    %433 = math.exp %432 : vector<2x8x8xf32>
    %cst_191 = arith.constant dense<0.000000e+00> : vector<2x8xf32>
    %434 = vector.multi_reduction <add>, %433, %cst_191 [2] : vector<2x8x8xf32> to vector<2x8xf32>
    %435 = vector.shape_cast %434 : vector<2x8xf32> to vector<2x8x1xf32>
    %436 = tpu.reciprocal %435 {approx = true} : vector<2x8x1xf32> -> vector<2x8x1xf32>
    %437 = vector.broadcast %436 : vector<2x8x1xf32> to vector<2x8x8xf32>
    %438 = arith.mulf %433, %437 : vector<2x8x8xf32>
    "tpu.trace_start"() <{level = 10 : i32, message = "bqk,bkd->bqd"}> : () -> ()
    %cst_192 = arith.constant dense<0.000000e+00> : vector<2x8x8xf32>
    %439 = tpu.matmul %438, %423, %cst_192 {dimension_numbers = #tpu.dot_dimension_numbers<[2], [1], [1], [2], [0, 0, 0, 1, 1, 2], [0], [0]>} : vector<2x8x8xf32>, vector<2x8x8xf32>, vector<2x8x8xf32> -> vector<2x8x8xf32>
    "tpu.trace_stop"() : () -> ()
    %440 = vector.shape_cast %439 : vector<2x8x8xf32> to vector<16x8xf32>
    %441 = vector.extract_strided_slice %396 {offsets = [0, 0], sizes = [8, 32], strides = [1, 1]} : vector<32x32xf32> to vector<8x32xf32>
    %cst_193 = arith.constant dense<0.000000e+00> : vector<16x32xf32>
    %442 = tpu.matmul %440, %441, %cst_193 {dimension_numbers = #tpu.dot_dimension_numbers<[1], [0], [0], [1], [0, 0, 1, 1], [], []>} : vector<16x8xf32>, vector<8x32xf32>, vector<16x32xf32> -> vector<16x32xf32>
    %443 = vector.extract_strided_slice %417 {offsets = [0, 8], sizes = [16, 8], strides = [1, 1]} : vector<16x96xf32> to vector<16x8xf32>
    %444 = vector.shape_cast %443 : vector<16x8xf32> to vector<2x8x8xf32>
    %445 = vector.extract_strided_slice %417 {offsets = [0, 40], sizes = [16, 8], strides = [1, 1]} : vector<16x96xf32> to vector<16x8xf32>
    %446 = vector.shape_cast %445 : vector<16x8xf32> to vector<2x8x8xf32>
    %447 = vector.extract_strided_slice %417 {offsets = [0, 72], sizes = [16, 8], strides = [1, 1]} : vector<16x96xf32> to vector<16x8xf32>
    %448 = vector.shape_cast %447 : vector<16x8xf32> to vector<2x8x8xf32>
    "tpu.trace_start"() <{level = 10 : i32, message = "bqd,bkd->bqk"}> : () -> ()
    %cst_194 = arith.constant dense<0.000000e+00> : vector<2x8x8xf32>
    %449 = tpu.matmul %444, %446, %cst_194 {dimension_numbers = #tpu.dot_dimension_numbers<[2], [2], [1], [1], [0, 0, 0, 1, 1, 1], [0], [0]>} : vector<2x8x8xf32>, vector<2x8x8xf32>, vector<2x8x8xf32> -> vector<2x8x8xf32>
    "tpu.trace_stop"() : () -> ()
    %cst_195 = arith.constant 0.353553385 : f32
    %450 = vector.broadcast %cst_195 : f32 to vector<2x8x8xf32>
    %451 = arith.mulf %449, %450 : vector<2x8x8xf32>
    %452 = vector.broadcast %1 : vector<2x1x8xf32> to vector<2x8x8xf32>
    %453 = arith.addf %451, %452 : vector<2x8x8xf32>
    %cst_196 = arith.constant dense<0xFF800000> : vector<2x8xf32>
    %454 = vector.multi_reduction <maximumf>, %453, %cst_196 [2] : vector<2x8x8xf32> to vector<2x8xf32>
    %455 = vector.shape_cast %454 : vector<2x8xf32> to vector<2x8x1xf32>
    %456 = vector.broadcast %455 : vector<2x8x1xf32> to vector<2x8x8xf32>
    %457 = arith.subf %453, %456 : vector<2x8x8xf32>
    %458 = math.exp %457 : vector<2x8x8xf32>
    %cst_197 = arith.constant dense<0.000000e+00> : vector<2x8xf32>
    %459 = vector.multi_reduction <add>, %458, %cst_197 [2] : vector<2x8x8xf32> to vector<2x8xf32>
    %460 = vector.shape_cast %459 : vector<2x8xf32> to vector<2x8x1xf32>
    %461 = tpu.reciprocal %460 {approx = true} : vector<2x8x1xf32> -> vector<2x8x1xf32>
    %462 = vector.broadcast %461 : vector<2x8x1xf32> to vector<2x8x8xf32>
    %463 = arith.mulf %458, %462 : vector<2x8x8xf32>
    "tpu.trace_start"() <{level = 10 : i32, message = "bqk,bkd->bqd"}> : () -> ()
    %cst_198 = arith.constant dense<0.000000e+00> : vector<2x8x8xf32>
    %464 = tpu.matmul %463, %448, %cst_198 {dimension_numbers = #tpu.dot_dimension_numbers<[2], [1], [1], [2], [0, 0, 0, 1, 1, 2], [0], [0]>} : vector<2x8x8xf32>, vector<2x8x8xf32>, vector<2x8x8xf32> -> vector<2x8x8xf32>
    "tpu.trace_stop"() : () -> ()
    %465 = vector.shape_cast %464 : vector<2x8x8xf32> to vector<16x8xf32>
    %466 = vector.extract_strided_slice %396 {offsets = [8, 0], sizes = [8, 32], strides = [1, 1]} : vector<32x32xf32> to vector<8x32xf32>
    %cst_199 = arith.constant dense<0.000000e+00> : vector<16x32xf32>
    %467 = tpu.matmul %465, %466, %cst_199 {dimension_numbers = #tpu.dot_dimension_numbers<[1], [0], [0], [1], [0, 0, 1, 1], [], []>} : vector<16x8xf32>, vector<8x32xf32>, vector<16x32xf32> -> vector<16x32xf32>
    %468 = arith.addf %442, %467 : vector<16x32xf32>
    %469 = vector.extract_strided_slice %417 {offsets = [0, 16], sizes = [16, 8], strides = [1, 1]} : vector<16x96xf32> to vector<16x8xf32>
    %470 = vector.shape_cast %469 : vector<16x8xf32> to vector<2x8x8xf32>
    %471 = vector.extract_strided_slice %417 {offsets = [0, 48], sizes = [16, 8], strides = [1, 1]} : vector<16x96xf32> to vector<16x8xf32>
    %472 = vector.shape_cast %471 : vector<16x8xf32> to vector<2x8x8xf32>
    %473 = vector.extract_strided_slice %417 {offsets = [0, 80], sizes = [16, 8], strides = [1, 1]} : vector<16x96xf32> to vector<16x8xf32>
    %474 = vector.shape_cast %473 : vector<16x8xf32> to vector<2x8x8xf32>
    "tpu.trace_start"() <{level = 10 : i32, message = "bqd,bkd->bqk"}> : () -> ()
    %cst_200 = arith.constant dense<0.000000e+00> : vector<2x8x8xf32>
    %475 = tpu.matmul %470, %472, %cst_200 {dimension_numbers = #tpu.dot_dimension_numbers<[2], [2], [1], [1], [0, 0, 0, 1, 1, 1], [0], [0]>} : vector<2x8x8xf32>, vector<2x8x8xf32>, vector<2x8x8xf32> -> vector<2x8x8xf32>
    "tpu.trace_stop"() : () -> ()
    %cst_201 = arith.constant 0.353553385 : f32
    %476 = vector.broadcast %cst_201 : f32 to vector<2x8x8xf32>
    %477 = arith.mulf %475, %476 : vector<2x8x8xf32>
    %478 = vector.broadcast %1 : vector<2x1x8xf32> to vector<2x8x8xf32>
    %479 = arith.addf %477, %478 : vector<2x8x8xf32>
    %cst_202 = arith.constant dense<0xFF800000> : vector<2x8xf32>
    %480 = vector.multi_reduction <maximumf>, %479, %cst_202 [2] : vector<2x8x8xf32> to vector<2x8xf32>
    %481 = vector.shape_cast %480 : vector<2x8xf32> to vector<2x8x1xf32>
    %482 = vector.broadcast %481 : vector<2x8x1xf32> to vector<2x8x8xf32>
    %483 = arith.subf %479, %482 : vector<2x8x8xf32>
    %484 = math.exp %483 : vector<2x8x8xf32>
    %cst_203 = arith.constant dense<0.000000e+00> : vector<2x8xf32>
    %485 = vector.multi_reduction <add>, %484, %cst_203 [2] : vector<2x8x8xf32> to vector<2x8xf32>
    %486 = vector.shape_cast %485 : vector<2x8xf32> to vector<2x8x1xf32>
    %487 = tpu.reciprocal %486 {approx = true} : vector<2x8x1xf32> -> vector<2x8x1xf32>
    %488 = vector.broadcast %487 : vector<2x8x1xf32> to vector<2x8x8xf32>
    %489 = arith.mulf %484, %488 : vector<2x8x8xf32>
    "tpu.trace_start"() <{level = 10 : i32, message = "bqk,bkd->bqd"}> : () -> ()
    %cst_204 = arith.constant dense<0.000000e+00> : vector<2x8x8xf32>
    %490 = tpu.matmul %489, %474, %cst_204 {dimension_numbers = #tpu.dot_dimension_numbers<[2], [1], [1], [2], [0, 0, 0, 1, 1, 2], [0], [0]>} : vector<2x8x8xf32>, vector<2x8x8xf32>, vector<2x8x8xf32> -> vector<2x8x8xf32>
    "tpu.trace_stop"() : () -> ()
    %491 = vector.shape_cast %490 : vector<2x8x8xf32> to vector<16x8xf32>
    %492 = vector.extract_strided_slice %396 {offsets = [16, 0], sizes = [8, 32], strides = [1, 1]} : vector<32x32xf32> to vector<8x32xf32>
    %cst_205 = arith.constant dense<0.000000e+00> : vector<16x32xf32>
    %493 = tpu.matmul %491, %492, %cst_205 {dimension_numbers = #tpu.dot_dimension_numbers<[1], [0], [0], [1], [0, 0, 1, 1], [], []>} : vector<16x8xf32>, vector<8x32xf32>, vector<16x32xf32> -> vector<16x32xf32>
    %494 = arith.addf %468, %493 : vector<16x32xf32>
    %495 = vector.extract_strided_slice %417 {offsets = [0, 24], sizes = [16, 8], strides = [1, 1]} : vector<16x96xf32> to vector<16x8xf32>
    %496 = vector.shape_cast %495 : vector<16x8xf32> to vector<2x8x8xf32>
    %497 = vector.extract_strided_slice %417 {offsets = [0, 56], sizes = [16, 8], strides = [1, 1]} : vector<16x96xf32> to vector<16x8xf32>
    %498 = vector.shape_cast %497 : vector<16x8xf32> to vector<2x8x8xf32>
    %499 = vector.extract_strided_slice %417 {offsets = [0, 88], sizes = [16, 8], strides = [1, 1]} : vector<16x96xf32> to vector<16x8xf32>
    %500 = vector.shape_cast %499 : vector<16x8xf32> to vector<2x8x8xf32>
    "tpu.trace_start"() <{level = 10 : i32, message = "bqd,bkd->bqk"}> : () -> ()
    %cst_206 = arith.constant dense<0.000000e+00> : vector<2x8x8xf32>
    %501 = tpu.matmul %496, %498, %cst_206 {dimension_numbers = #tpu.dot_dimension_numbers<[2], [2], [1], [1], [0, 0, 0, 1, 1, 1], [0], [0]>} : vector<2x8x8xf32>, vector<2x8x8xf32>, vector<2x8x8xf32> -> vector<2x8x8xf32>
    "tpu.trace_stop"() : () -> ()
    %cst_207 = arith.constant 0.353553385 : f32
    %502 = vector.broadcast %cst_207 : f32 to vector<2x8x8xf32>
    %503 = arith.mulf %501, %502 : vector<2x8x8xf32>
    %504 = vector.broadcast %1 : vector<2x1x8xf32> to vector<2x8x8xf32>
    %505 = arith.addf %503, %504 : vector<2x8x8xf32>
    %cst_208 = arith.constant dense<0xFF800000> : vector<2x8xf32>
    %506 = vector.multi_reduction <maximumf>, %505, %cst_208 [2] : vector<2x8x8xf32> to vector<2x8xf32>
    %507 = vector.shape_cast %506 : vector<2x8xf32> to vector<2x8x1xf32>
    %508 = vector.broadcast %507 : vector<2x8x1xf32> to vector<2x8x8xf32>
    %509 = arith.subf %505, %508 : vector<2x8x8xf32>
    %510 = math.exp %509 : vector<2x8x8xf32>
    %cst_209 = arith.constant dense<0.000000e+00> : vector<2x8xf32>
    %511 = vector.multi_reduction <add>, %510, %cst_209 [2] : vector<2x8x8xf32> to vector<2x8xf32>
    %512 = vector.shape_cast %511 : vector<2x8xf32> to vector<2x8x1xf32>
    %513 = tpu.reciprocal %512 {approx = true} : vector<2x8x1xf32> -> vector<2x8x1xf32>
    %514 = vector.broadcast %513 : vector<2x8x1xf32> to vector<2x8x8xf32>
    %515 = arith.mulf %510, %514 : vector<2x8x8xf32>
    "tpu.trace_start"() <{level = 10 : i32, message = "bqk,bkd->bqd"}> : () -> ()
    %cst_210 = arith.constant dense<0.000000e+00> : vector<2x8x8xf32>
    %516 = tpu.matmul %515, %500, %cst_210 {dimension_numbers = #tpu.dot_dimension_numbers<[2], [1], [1], [2], [0, 0, 0, 1, 1, 2], [0], [0]>} : vector<2x8x8xf32>, vector<2x8x8xf32>, vector<2x8x8xf32> -> vector<2x8x8xf32>
    "tpu.trace_stop"() : () -> ()
    %517 = vector.shape_cast %516 : vector<2x8x8xf32> to vector<16x8xf32>
    %518 = vector.extract_strided_slice %396 {offsets = [24, 0], sizes = [8, 32], strides = [1, 1]} : vector<32x32xf32> to vector<8x32xf32>
    %cst_211 = arith.constant dense<0.000000e+00> : vector<16x32xf32>
    %519 = tpu.matmul %517, %518, %cst_211 {dimension_numbers = #tpu.dot_dimension_numbers<[1], [0], [0], [1], [0, 0, 1, 1], [], []>} : vector<16x8xf32>, vector<8x32xf32>, vector<16x32xf32> -> vector<16x32xf32>
    %520 = arith.addf %494, %519 : vector<16x32xf32>
    %521 = vector.broadcast %398 : vector<1x32xf32> to vector<16x32xf32>
    %522 = arith.addf %520, %521 : vector<16x32xf32>
    %523 = arith.addf %522, %390 : vector<16x32xf32>
    %cst_212 = arith.constant dense<0.000000e+00> : vector<16xf32>
    %524 = vector.multi_reduction <add>, %523, %cst_212 [1] : vector<16x32xf32> to vector<16xf32>
    %525 = vector.shape_cast %524 : vector<16xf32> to vector<16x1xf32>
    %cst_213 = arith.constant 3.200000e+01 : f32
    %526 = vector.broadcast %cst_213 : f32 to vector<16x1xf32>
    %527 = arith.divf %525, %526 : vector<16x1xf32>
    %528 = vector.broadcast %527 : vector<16x1xf32> to vector<16x32xf32>
    %529 = arith.subf %523, %528 : vector<16x32xf32>
    %530 = vector.broadcast %527 : vector<16x1xf32> to vector<16x32xf32>
    %531 = arith.subf %523, %530 : vector<16x32xf32>
    %532 = arith.mulf %529, %531 : vector<16x32xf32>
    %cst_214 = arith.constant dense<0.000000e+00> : vector<16xf32>
    %533 = vector.multi_reduction <add>, %532, %cst_214 [1] : vector<16x32xf32> to vector<16xf32>
    %534 = vector.shape_cast %533 : vector<16xf32> to vector<16x1xf32>
    %cst_215 = arith.constant 3.200000e+01 : f32
    %535 = vector.broadcast %cst_215 : f32 to vector<16x1xf32>
    %536 = arith.divf %534, %535 : vector<16x1xf32>
    %537 = vector.broadcast %527 : vector<16x1xf32> to vector<16x32xf32>
    %538 = arith.subf %523, %537 : vector<16x32xf32>
    %cst_216 = arith.constant 9.99999974E-6 : f32
    %539 = vector.broadcast %cst_216 : f32 to vector<16x1xf32>
    %540 = arith.addf %536, %539 : vector<16x1xf32>
    %541 = math.rsqrt %540 : vector<16x1xf32>
    %542 = vector.broadcast %541 : vector<16x1xf32> to vector<16x32xf32>
    %543 = arith.mulf %538, %542 : vector<16x32xf32>
    %544 = vector.broadcast %400 : vector<1x32xf32> to vector<16x32xf32>
    %545 = arith.mulf %543, %544 : vector<16x32xf32>
    %546 = vector.broadcast %402 : vector<1x32xf32> to vector<16x32xf32>
    %547 = arith.addf %545, %546 : vector<16x32xf32>
    %548 = vector.broadcast %2 : vector<16x1xf32> to vector<16x32xf32>
    %549 = arith.mulf %547, %548 : vector<16x32xf32>
    %cst_217 = arith.constant dense<0.000000e+00> : vector<16x64xf32>
    %550 = tpu.matmul %549, %404, %cst_217 {dimension_numbers = #tpu.dot_dimension_numbers<[1], [0], [0], [1], [0, 0, 1, 1], [], []>} : vector<16x32xf32>, vector<32x64xf32>, vector<16x64xf32> -> vector<16x64xf32>
    %551 = vector.broadcast %406 : vector<1x64xf32> to vector<16x64xf32>
    %552 = arith.addf %550, %551 : vector<16x64xf32>
    %cst_218 = arith.constant 0.000000e+00 : f32
    %553 = vector.broadcast %cst_218 : f32 to vector<16x64xf32>
    %554 = arith.maximumf %552, %553 : vector<16x64xf32>
    %cst_219 = arith.constant dense<0.000000e+00> : vector<16x32xf32>
    %555 = tpu.matmul %554, %408, %cst_219 {dimension_numbers = #tpu.dot_dimension_numbers<[1], [0], [0], [1], [0, 0, 1, 1], [], []>} : vector<16x64xf32>, vector<64x32xf32>, vector<16x32xf32> -> vector<16x32xf32>
    %556 = vector.broadcast %410 : vector<1x32xf32> to vector<16x32xf32>
    %557 = arith.addf %555, %556 : vector<16x32xf32>
    %558 = arith.addf %557, %549 : vector<16x32xf32>
    %cst_220 = arith.constant dense<0.000000e+00> : vector<16xf32>
    %559 = vector.multi_reduction <add>, %558, %cst_220 [1] : vector<16x32xf32> to vector<16xf32>
    %560 = vector.shape_cast %559 : vector<16xf32> to vector<16x1xf32>
    %cst_221 = arith.constant 3.200000e+01 : f32
    %561 = vector.broadcast %cst_221 : f32 to vector<16x1xf32>
    %562 = arith.divf %560, %561 : vector<16x1xf32>
    %563 = vector.broadcast %562 : vector<16x1xf32> to vector<16x32xf32>
    %564 = arith.subf %558, %563 : vector<16x32xf32>
    %565 = vector.broadcast %562 : vector<16x1xf32> to vector<16x32xf32>
    %566 = arith.subf %558, %565 : vector<16x32xf32>
    %567 = arith.mulf %564, %566 : vector<16x32xf32>
    %cst_222 = arith.constant dense<0.000000e+00> : vector<16xf32>
    %568 = vector.multi_reduction <add>, %567, %cst_222 [1] : vector<16x32xf32> to vector<16xf32>
    %569 = vector.shape_cast %568 : vector<16xf32> to vector<16x1xf32>
    %cst_223 = arith.constant 3.200000e+01 : f32
    %570 = vector.broadcast %cst_223 : f32 to vector<16x1xf32>
    %571 = arith.divf %569, %570 : vector<16x1xf32>
    %572 = vector.broadcast %562 : vector<16x1xf32> to vector<16x32xf32>
    %573 = arith.subf %558, %572 : vector<16x32xf32>
    %cst_224 = arith.constant 9.99999974E-6 : f32
    %574 = vector.broadcast %cst_224 : f32 to vector<16x1xf32>
    %575 = arith.addf %571, %574 : vector<16x1xf32>
    %576 = math.rsqrt %575 : vector<16x1xf32>
    %577 = vector.broadcast %576 : vector<16x1xf32> to vector<16x32xf32>
    %578 = arith.mulf %573, %577 : vector<16x32xf32>
    %579 = vector.broadcast %412 : vector<1x32xf32> to vector<16x32xf32>
    %580 = arith.mulf %578, %579 : vector<16x32xf32>
    %581 = vector.broadcast %414 : vector<1x32xf32> to vector<16x32xf32>
    %582 = arith.addf %580, %581 : vector<16x32xf32>
    %583 = vector.broadcast %2 : vector<16x1xf32> to vector<16x32xf32>
    %584 = arith.mulf %582, %583 : vector<16x32xf32>
    %c3 = arith.constant 3 : index
    %c0_225 = arith.constant 0 : index
    %c0_226 = arith.constant 0 : index
    %585 = vector.load %arg4[%c3, %c0_225, %c0_226] : memref<6x32x96xf32, #tpu.memory_space<vmem>>, vector<1x32x96xf32>
    %586 = vector.shape_cast %585 : vector<1x32x96xf32> to vector<32x96xf32>
    %c3_227 = arith.constant 3 : index
    %c0_228 = arith.constant 0 : index
    %c0_229 = arith.constant 0 : index
    %587 = vector.load %arg5[%c3_227, %c0_228, %c0_229] : memref<6x1x96xf32, #tpu.memory_space<vmem>>, vector<1x1x96xf32>
    %588 = vector.shape_cast %587 : vector<1x1x96xf32> to vector<1x96xf32>
    %c3_230 = arith.constant 3 : index
    %c0_231 = arith.constant 0 : index
    %c0_232 = arith.constant 0 : index
    %589 = vector.load %arg6[%c3_230, %c0_231, %c0_232] : memref<6x32x32xf32, #tpu.memory_space<vmem>>, vector<1x32x32xf32>
    %590 = vector.shape_cast %589 : vector<1x32x32xf32> to vector<32x32xf32>
    %c3_233 = arith.constant 3 : index
    %c0_234 = arith.constant 0 : index
    %c0_235 = arith.constant 0 : index
    %591 = vector.load %arg7[%c3_233, %c0_234, %c0_235] : memref<6x1x32xf32, #tpu.memory_space<vmem>>, vector<1x1x32xf32>
    %592 = vector.shape_cast %591 : vector<1x1x32xf32> to vector<1x32xf32>
    %c3_236 = arith.constant 3 : index
    %c0_237 = arith.constant 0 : index
    %c0_238 = arith.constant 0 : index
    %593 = vector.load %arg8[%c3_236, %c0_237, %c0_238] : memref<6x1x32xf32, #tpu.memory_space<vmem>>, vector<1x1x32xf32>
    %594 = vector.shape_cast %593 : vector<1x1x32xf32> to vector<1x32xf32>
    %c3_239 = arith.constant 3 : index
    %c0_240 = arith.constant 0 : index
    %c0_241 = arith.constant 0 : index
    %595 = vector.load %arg9[%c3_239, %c0_240, %c0_241] : memref<6x1x32xf32, #tpu.memory_space<vmem>>, vector<1x1x32xf32>
    %596 = vector.shape_cast %595 : vector<1x1x32xf32> to vector<1x32xf32>
    %c3_242 = arith.constant 3 : index
    %c0_243 = arith.constant 0 : index
    %c0_244 = arith.constant 0 : index
    %597 = vector.load %arg10[%c3_242, %c0_243, %c0_244] : memref<6x32x64xf32, #tpu.memory_space<vmem>>, vector<1x32x64xf32>
    %598 = vector.shape_cast %597 : vector<1x32x64xf32> to vector<32x64xf32>
    %c3_245 = arith.constant 3 : index
    %c0_246 = arith.constant 0 : index
    %c0_247 = arith.constant 0 : index
    %599 = vector.load %arg11[%c3_245, %c0_246, %c0_247] : memref<6x1x64xf32, #tpu.memory_space<vmem>>, vector<1x1x64xf32>
    %600 = vector.shape_cast %599 : vector<1x1x64xf32> to vector<1x64xf32>
    %c3_248 = arith.constant 3 : index
    %c0_249 = arith.constant 0 : index
    %c0_250 = arith.constant 0 : index
    %601 = vector.load %arg12[%c3_248, %c0_249, %c0_250] : memref<6x64x32xf32, #tpu.memory_space<vmem>>, vector<1x64x32xf32>
    %602 = vector.shape_cast %601 : vector<1x64x32xf32> to vector<64x32xf32>
    %c3_251 = arith.constant 3 : index
    %c0_252 = arith.constant 0 : index
    %c0_253 = arith.constant 0 : index
    %603 = vector.load %arg13[%c3_251, %c0_252, %c0_253] : memref<6x1x32xf32, #tpu.memory_space<vmem>>, vector<1x1x32xf32>
    %604 = vector.shape_cast %603 : vector<1x1x32xf32> to vector<1x32xf32>
    %c3_254 = arith.constant 3 : index
    %c0_255 = arith.constant 0 : index
    %c0_256 = arith.constant 0 : index
    %605 = vector.load %arg14[%c3_254, %c0_255, %c0_256] : memref<6x1x32xf32, #tpu.memory_space<vmem>>, vector<1x1x32xf32>
    %606 = vector.shape_cast %605 : vector<1x1x32xf32> to vector<1x32xf32>
    %c3_257 = arith.constant 3 : index
    %c0_258 = arith.constant 0 : index
    %c0_259 = arith.constant 0 : index
    %607 = vector.load %arg15[%c3_257, %c0_258, %c0_259] : memref<6x1x32xf32, #tpu.memory_space<vmem>>, vector<1x1x32xf32>
    %608 = vector.shape_cast %607 : vector<1x1x32xf32> to vector<1x32xf32>
    %cst_260 = arith.constant dense<0.000000e+00> : vector<16x96xf32>
    %609 = tpu.matmul %584, %586, %cst_260 {dimension_numbers = #tpu.dot_dimension_numbers<[1], [0], [0], [1], [0, 0, 1, 1], [], []>} : vector<16x32xf32>, vector<32x96xf32>, vector<16x96xf32> -> vector<16x96xf32>
    %610 = vector.broadcast %588 : vector<1x96xf32> to vector<16x96xf32>
    %611 = arith.addf %609, %610 : vector<16x96xf32>
    %612 = vector.extract_strided_slice %611 {offsets = [0, 0], sizes = [16, 8], strides = [1, 1]} : vector<16x96xf32> to vector<16x8xf32>
    %613 = vector.shape_cast %612 : vector<16x8xf32> to vector<2x8x8xf32>
    %614 = vector.extract_strided_slice %611 {offsets = [0, 32], sizes = [16, 8], strides = [1, 1]} : vector<16x96xf32> to vector<16x8xf32>
    %615 = vector.shape_cast %614 : vector<16x8xf32> to vector<2x8x8xf32>
    %616 = vector.extract_strided_slice %611 {offsets = [0, 64], sizes = [16, 8], strides = [1, 1]} : vector<16x96xf32> to vector<16x8xf32>
    %617 = vector.shape_cast %616 : vector<16x8xf32> to vector<2x8x8xf32>
    "tpu.trace_start"() <{level = 10 : i32, message = "bqd,bkd->bqk"}> : () -> ()
    %cst_261 = arith.constant dense<0.000000e+00> : vector<2x8x8xf32>
    %618 = tpu.matmul %613, %615, %cst_261 {dimension_numbers = #tpu.dot_dimension_numbers<[2], [2], [1], [1], [0, 0, 0, 1, 1, 1], [0], [0]>} : vector<2x8x8xf32>, vector<2x8x8xf32>, vector<2x8x8xf32> -> vector<2x8x8xf32>
    "tpu.trace_stop"() : () -> ()
    %cst_262 = arith.constant 0.353553385 : f32
    %619 = vector.broadcast %cst_262 : f32 to vector<2x8x8xf32>
    %620 = arith.mulf %618, %619 : vector<2x8x8xf32>
    %621 = vector.broadcast %1 : vector<2x1x8xf32> to vector<2x8x8xf32>
    %622 = arith.addf %620, %621 : vector<2x8x8xf32>
    %cst_263 = arith.constant dense<0xFF800000> : vector<2x8xf32>
    %623 = vector.multi_reduction <maximumf>, %622, %cst_263 [2] : vector<2x8x8xf32> to vector<2x8xf32>
    %624 = vector.shape_cast %623 : vector<2x8xf32> to vector<2x8x1xf32>
    %625 = vector.broadcast %624 : vector<2x8x1xf32> to vector<2x8x8xf32>
    %626 = arith.subf %622, %625 : vector<2x8x8xf32>
    %627 = math.exp %626 : vector<2x8x8xf32>
    %cst_264 = arith.constant dense<0.000000e+00> : vector<2x8xf32>
    %628 = vector.multi_reduction <add>, %627, %cst_264 [2] : vector<2x8x8xf32> to vector<2x8xf32>
    %629 = vector.shape_cast %628 : vector<2x8xf32> to vector<2x8x1xf32>
    %630 = tpu.reciprocal %629 {approx = true} : vector<2x8x1xf32> -> vector<2x8x1xf32>
    %631 = vector.broadcast %630 : vector<2x8x1xf32> to vector<2x8x8xf32>
    %632 = arith.mulf %627, %631 : vector<2x8x8xf32>
    "tpu.trace_start"() <{level = 10 : i32, message = "bqk,bkd->bqd"}> : () -> ()
    %cst_265 = arith.constant dense<0.000000e+00> : vector<2x8x8xf32>
    %633 = tpu.matmul %632, %617, %cst_265 {dimension_numbers = #tpu.dot_dimension_numbers<[2], [1], [1], [2], [0, 0, 0, 1, 1, 2], [0], [0]>} : vector<2x8x8xf32>, vector<2x8x8xf32>, vector<2x8x8xf32> -> vector<2x8x8xf32>
    "tpu.trace_stop"() : () -> ()
    %634 = vector.shape_cast %633 : vector<2x8x8xf32> to vector<16x8xf32>
    %635 = vector.extract_strided_slice %590 {offsets = [0, 0], sizes = [8, 32], strides = [1, 1]} : vector<32x32xf32> to vector<8x32xf32>
    %cst_266 = arith.constant dense<0.000000e+00> : vector<16x32xf32>
    %636 = tpu.matmul %634, %635, %cst_266 {dimension_numbers = #tpu.dot_dimension_numbers<[1], [0], [0], [1], [0, 0, 1, 1], [], []>} : vector<16x8xf32>, vector<8x32xf32>, vector<16x32xf32> -> vector<16x32xf32>
    %637 = vector.extract_strided_slice %611 {offsets = [0, 8], sizes = [16, 8], strides = [1, 1]} : vector<16x96xf32> to vector<16x8xf32>
    %638 = vector.shape_cast %637 : vector<16x8xf32> to vector<2x8x8xf32>
    %639 = vector.extract_strided_slice %611 {offsets = [0, 40], sizes = [16, 8], strides = [1, 1]} : vector<16x96xf32> to vector<16x8xf32>
    %640 = vector.shape_cast %639 : vector<16x8xf32> to vector<2x8x8xf32>
    %641 = vector.extract_strided_slice %611 {offsets = [0, 72], sizes = [16, 8], strides = [1, 1]} : vector<16x96xf32> to vector<16x8xf32>
    %642 = vector.shape_cast %641 : vector<16x8xf32> to vector<2x8x8xf32>
    "tpu.trace_start"() <{level = 10 : i32, message = "bqd,bkd->bqk"}> : () -> ()
    %cst_267 = arith.constant dense<0.000000e+00> : vector<2x8x8xf32>
    %643 = tpu.matmul %638, %640, %cst_267 {dimension_numbers = #tpu.dot_dimension_numbers<[2], [2], [1], [1], [0, 0, 0, 1, 1, 1], [0], [0]>} : vector<2x8x8xf32>, vector<2x8x8xf32>, vector<2x8x8xf32> -> vector<2x8x8xf32>
    "tpu.trace_stop"() : () -> ()
    %cst_268 = arith.constant 0.353553385 : f32
    %644 = vector.broadcast %cst_268 : f32 to vector<2x8x8xf32>
    %645 = arith.mulf %643, %644 : vector<2x8x8xf32>
    %646 = vector.broadcast %1 : vector<2x1x8xf32> to vector<2x8x8xf32>
    %647 = arith.addf %645, %646 : vector<2x8x8xf32>
    %cst_269 = arith.constant dense<0xFF800000> : vector<2x8xf32>
    %648 = vector.multi_reduction <maximumf>, %647, %cst_269 [2] : vector<2x8x8xf32> to vector<2x8xf32>
    %649 = vector.shape_cast %648 : vector<2x8xf32> to vector<2x8x1xf32>
    %650 = vector.broadcast %649 : vector<2x8x1xf32> to vector<2x8x8xf32>
    %651 = arith.subf %647, %650 : vector<2x8x8xf32>
    %652 = math.exp %651 : vector<2x8x8xf32>
    %cst_270 = arith.constant dense<0.000000e+00> : vector<2x8xf32>
    %653 = vector.multi_reduction <add>, %652, %cst_270 [2] : vector<2x8x8xf32> to vector<2x8xf32>
    %654 = vector.shape_cast %653 : vector<2x8xf32> to vector<2x8x1xf32>
    %655 = tpu.reciprocal %654 {approx = true} : vector<2x8x1xf32> -> vector<2x8x1xf32>
    %656 = vector.broadcast %655 : vector<2x8x1xf32> to vector<2x8x8xf32>
    %657 = arith.mulf %652, %656 : vector<2x8x8xf32>
    "tpu.trace_start"() <{level = 10 : i32, message = "bqk,bkd->bqd"}> : () -> ()
    %cst_271 = arith.constant dense<0.000000e+00> : vector<2x8x8xf32>
    %658 = tpu.matmul %657, %642, %cst_271 {dimension_numbers = #tpu.dot_dimension_numbers<[2], [1], [1], [2], [0, 0, 0, 1, 1, 2], [0], [0]>} : vector<2x8x8xf32>, vector<2x8x8xf32>, vector<2x8x8xf32> -> vector<2x8x8xf32>
    "tpu.trace_stop"() : () -> ()
    %659 = vector.shape_cast %658 : vector<2x8x8xf32> to vector<16x8xf32>
    %660 = vector.extract_strided_slice %590 {offsets = [8, 0], sizes = [8, 32], strides = [1, 1]} : vector<32x32xf32> to vector<8x32xf32>
    %cst_272 = arith.constant dense<0.000000e+00> : vector<16x32xf32>
    %661 = tpu.matmul %659, %660, %cst_272 {dimension_numbers = #tpu.dot_dimension_numbers<[1], [0], [0], [1], [0, 0, 1, 1], [], []>} : vector<16x8xf32>, vector<8x32xf32>, vector<16x32xf32> -> vector<16x32xf32>
    %662 = arith.addf %636, %661 : vector<16x32xf32>
    %663 = vector.extract_strided_slice %611 {offsets = [0, 16], sizes = [16, 8], strides = [1, 1]} : vector<16x96xf32> to vector<16x8xf32>
    %664 = vector.shape_cast %663 : vector<16x8xf32> to vector<2x8x8xf32>
    %665 = vector.extract_strided_slice %611 {offsets = [0, 48], sizes = [16, 8], strides = [1, 1]} : vector<16x96xf32> to vector<16x8xf32>
    %666 = vector.shape_cast %665 : vector<16x8xf32> to vector<2x8x8xf32>
    %667 = vector.extract_strided_slice %611 {offsets = [0, 80], sizes = [16, 8], strides = [1, 1]} : vector<16x96xf32> to vector<16x8xf32>
    %668 = vector.shape_cast %667 : vector<16x8xf32> to vector<2x8x8xf32>
    "tpu.trace_start"() <{level = 10 : i32, message = "bqd,bkd->bqk"}> : () -> ()
    %cst_273 = arith.constant dense<0.000000e+00> : vector<2x8x8xf32>
    %669 = tpu.matmul %664, %666, %cst_273 {dimension_numbers = #tpu.dot_dimension_numbers<[2], [2], [1], [1], [0, 0, 0, 1, 1, 1], [0], [0]>} : vector<2x8x8xf32>, vector<2x8x8xf32>, vector<2x8x8xf32> -> vector<2x8x8xf32>
    "tpu.trace_stop"() : () -> ()
    %cst_274 = arith.constant 0.353553385 : f32
    %670 = vector.broadcast %cst_274 : f32 to vector<2x8x8xf32>
    %671 = arith.mulf %669, %670 : vector<2x8x8xf32>
    %672 = vector.broadcast %1 : vector<2x1x8xf32> to vector<2x8x8xf32>
    %673 = arith.addf %671, %672 : vector<2x8x8xf32>
    %cst_275 = arith.constant dense<0xFF800000> : vector<2x8xf32>
    %674 = vector.multi_reduction <maximumf>, %673, %cst_275 [2] : vector<2x8x8xf32> to vector<2x8xf32>
    %675 = vector.shape_cast %674 : vector<2x8xf32> to vector<2x8x1xf32>
    %676 = vector.broadcast %675 : vector<2x8x1xf32> to vector<2x8x8xf32>
    %677 = arith.subf %673, %676 : vector<2x8x8xf32>
    %678 = math.exp %677 : vector<2x8x8xf32>
    %cst_276 = arith.constant dense<0.000000e+00> : vector<2x8xf32>
    %679 = vector.multi_reduction <add>, %678, %cst_276 [2] : vector<2x8x8xf32> to vector<2x8xf32>
    %680 = vector.shape_cast %679 : vector<2x8xf32> to vector<2x8x1xf32>
    %681 = tpu.reciprocal %680 {approx = true} : vector<2x8x1xf32> -> vector<2x8x1xf32>
    %682 = vector.broadcast %681 : vector<2x8x1xf32> to vector<2x8x8xf32>
    %683 = arith.mulf %678, %682 : vector<2x8x8xf32>
    "tpu.trace_start"() <{level = 10 : i32, message = "bqk,bkd->bqd"}> : () -> ()
    %cst_277 = arith.constant dense<0.000000e+00> : vector<2x8x8xf32>
    %684 = tpu.matmul %683, %668, %cst_277 {dimension_numbers = #tpu.dot_dimension_numbers<[2], [1], [1], [2], [0, 0, 0, 1, 1, 2], [0], [0]>} : vector<2x8x8xf32>, vector<2x8x8xf32>, vector<2x8x8xf32> -> vector<2x8x8xf32>
    "tpu.trace_stop"() : () -> ()
    %685 = vector.shape_cast %684 : vector<2x8x8xf32> to vector<16x8xf32>
    %686 = vector.extract_strided_slice %590 {offsets = [16, 0], sizes = [8, 32], strides = [1, 1]} : vector<32x32xf32> to vector<8x32xf32>
    %cst_278 = arith.constant dense<0.000000e+00> : vector<16x32xf32>
    %687 = tpu.matmul %685, %686, %cst_278 {dimension_numbers = #tpu.dot_dimension_numbers<[1], [0], [0], [1], [0, 0, 1, 1], [], []>} : vector<16x8xf32>, vector<8x32xf32>, vector<16x32xf32> -> vector<16x32xf32>
    %688 = arith.addf %662, %687 : vector<16x32xf32>
    %689 = vector.extract_strided_slice %611 {offsets = [0, 24], sizes = [16, 8], strides = [1, 1]} : vector<16x96xf32> to vector<16x8xf32>
    %690 = vector.shape_cast %689 : vector<16x8xf32> to vector<2x8x8xf32>
    %691 = vector.extract_strided_slice %611 {offsets = [0, 56], sizes = [16, 8], strides = [1, 1]} : vector<16x96xf32> to vector<16x8xf32>
    %692 = vector.shape_cast %691 : vector<16x8xf32> to vector<2x8x8xf32>
    %693 = vector.extract_strided_slice %611 {offsets = [0, 88], sizes = [16, 8], strides = [1, 1]} : vector<16x96xf32> to vector<16x8xf32>
    %694 = vector.shape_cast %693 : vector<16x8xf32> to vector<2x8x8xf32>
    "tpu.trace_start"() <{level = 10 : i32, message = "bqd,bkd->bqk"}> : () -> ()
    %cst_279 = arith.constant dense<0.000000e+00> : vector<2x8x8xf32>
    %695 = tpu.matmul %690, %692, %cst_279 {dimension_numbers = #tpu.dot_dimension_numbers<[2], [2], [1], [1], [0, 0, 0, 1, 1, 1], [0], [0]>} : vector<2x8x8xf32>, vector<2x8x8xf32>, vector<2x8x8xf32> -> vector<2x8x8xf32>
    "tpu.trace_stop"() : () -> ()
    %cst_280 = arith.constant 0.353553385 : f32
    %696 = vector.broadcast %cst_280 : f32 to vector<2x8x8xf32>
    %697 = arith.mulf %695, %696 : vector<2x8x8xf32>
    %698 = vector.broadcast %1 : vector<2x1x8xf32> to vector<2x8x8xf32>
    %699 = arith.addf %697, %698 : vector<2x8x8xf32>
    %cst_281 = arith.constant dense<0xFF800000> : vector<2x8xf32>
    %700 = vector.multi_reduction <maximumf>, %699, %cst_281 [2] : vector<2x8x8xf32> to vector<2x8xf32>
    %701 = vector.shape_cast %700 : vector<2x8xf32> to vector<2x8x1xf32>
    %702 = vector.broadcast %701 : vector<2x8x1xf32> to vector<2x8x8xf32>
    %703 = arith.subf %699, %702 : vector<2x8x8xf32>
    %704 = math.exp %703 : vector<2x8x8xf32>
    %cst_282 = arith.constant dense<0.000000e+00> : vector<2x8xf32>
    %705 = vector.multi_reduction <add>, %704, %cst_282 [2] : vector<2x8x8xf32> to vector<2x8xf32>
    %706 = vector.shape_cast %705 : vector<2x8xf32> to vector<2x8x1xf32>
    %707 = tpu.reciprocal %706 {approx = true} : vector<2x8x1xf32> -> vector<2x8x1xf32>
    %708 = vector.broadcast %707 : vector<2x8x1xf32> to vector<2x8x8xf32>
    %709 = arith.mulf %704, %708 : vector<2x8x8xf32>
    "tpu.trace_start"() <{level = 10 : i32, message = "bqk,bkd->bqd"}> : () -> ()
    %cst_283 = arith.constant dense<0.000000e+00> : vector<2x8x8xf32>
    %710 = tpu.matmul %709, %694, %cst_283 {dimension_numbers = #tpu.dot_dimension_numbers<[2], [1], [1], [2], [0, 0, 0, 1, 1, 2], [0], [0]>} : vector<2x8x8xf32>, vector<2x8x8xf32>, vector<2x8x8xf32> -> vector<2x8x8xf32>
    "tpu.trace_stop"() : () -> ()
    %711 = vector.shape_cast %710 : vector<2x8x8xf32> to vector<16x8xf32>
    %712 = vector.extract_strided_slice %590 {offsets = [24, 0], sizes = [8, 32], strides = [1, 1]} : vector<32x32xf32> to vector<8x32xf32>
    %cst_284 = arith.constant dense<0.000000e+00> : vector<16x32xf32>
    %713 = tpu.matmul %711, %712, %cst_284 {dimension_numbers = #tpu.dot_dimension_numbers<[1], [0], [0], [1], [0, 0, 1, 1], [], []>} : vector<16x8xf32>, vector<8x32xf32>, vector<16x32xf32> -> vector<16x32xf32>
    %714 = arith.addf %688, %713 : vector<16x32xf32>
    %715 = vector.broadcast %592 : vector<1x32xf32> to vector<16x32xf32>
    %716 = arith.addf %714, %715 : vector<16x32xf32>
    %717 = arith.addf %716, %584 : vector<16x32xf32>
    %cst_285 = arith.constant dense<0.000000e+00> : vector<16xf32>
    %718 = vector.multi_reduction <add>, %717, %cst_285 [1] : vector<16x32xf32> to vector<16xf32>
    %719 = vector.shape_cast %718 : vector<16xf32> to vector<16x1xf32>
    %cst_286 = arith.constant 3.200000e+01 : f32
    %720 = vector.broadcast %cst_286 : f32 to vector<16x1xf32>
    %721 = arith.divf %719, %720 : vector<16x1xf32>
    %722 = vector.broadcast %721 : vector<16x1xf32> to vector<16x32xf32>
    %723 = arith.subf %717, %722 : vector<16x32xf32>
    %724 = vector.broadcast %721 : vector<16x1xf32> to vector<16x32xf32>
    %725 = arith.subf %717, %724 : vector<16x32xf32>
    %726 = arith.mulf %723, %725 : vector<16x32xf32>
    %cst_287 = arith.constant dense<0.000000e+00> : vector<16xf32>
    %727 = vector.multi_reduction <add>, %726, %cst_287 [1] : vector<16x32xf32> to vector<16xf32>
    %728 = vector.shape_cast %727 : vector<16xf32> to vector<16x1xf32>
    %cst_288 = arith.constant 3.200000e+01 : f32
    %729 = vector.broadcast %cst_288 : f32 to vector<16x1xf32>
    %730 = arith.divf %728, %729 : vector<16x1xf32>
    %731 = vector.broadcast %721 : vector<16x1xf32> to vector<16x32xf32>
    %732 = arith.subf %717, %731 : vector<16x32xf32>
    %cst_289 = arith.constant 9.99999974E-6 : f32
    %733 = vector.broadcast %cst_289 : f32 to vector<16x1xf32>
    %734 = arith.addf %730, %733 : vector<16x1xf32>
    %735 = math.rsqrt %734 : vector<16x1xf32>
    %736 = vector.broadcast %735 : vector<16x1xf32> to vector<16x32xf32>
    %737 = arith.mulf %732, %736 : vector<16x32xf32>
    %738 = vector.broadcast %594 : vector<1x32xf32> to vector<16x32xf32>
    %739 = arith.mulf %737, %738 : vector<16x32xf32>
    %740 = vector.broadcast %596 : vector<1x32xf32> to vector<16x32xf32>
    %741 = arith.addf %739, %740 : vector<16x32xf32>
    %742 = vector.broadcast %2 : vector<16x1xf32> to vector<16x32xf32>
    %743 = arith.mulf %741, %742 : vector<16x32xf32>
    %cst_290 = arith.constant dense<0.000000e+00> : vector<16x64xf32>
    %744 = tpu.matmul %743, %598, %cst_290 {dimension_numbers = #tpu.dot_dimension_numbers<[1], [0], [0], [1], [0, 0, 1, 1], [], []>} : vector<16x32xf32>, vector<32x64xf32>, vector<16x64xf32> -> vector<16x64xf32>
    %745 = vector.broadcast %600 : vector<1x64xf32> to vector<16x64xf32>
    %746 = arith.addf %744, %745 : vector<16x64xf32>
    %cst_291 = arith.constant 0.000000e+00 : f32
    %747 = vector.broadcast %cst_291 : f32 to vector<16x64xf32>
    %748 = arith.maximumf %746, %747 : vector<16x64xf32>
    %cst_292 = arith.constant dense<0.000000e+00> : vector<16x32xf32>
    %749 = tpu.matmul %748, %602, %cst_292 {dimension_numbers = #tpu.dot_dimension_numbers<[1], [0], [0], [1], [0, 0, 1, 1], [], []>} : vector<16x64xf32>, vector<64x32xf32>, vector<16x32xf32> -> vector<16x32xf32>
    %750 = vector.broadcast %604 : vector<1x32xf32> to vector<16x32xf32>
    %751 = arith.addf %749, %750 : vector<16x32xf32>
    %752 = arith.addf %751, %743 : vector<16x32xf32>
    %cst_293 = arith.constant dense<0.000000e+00> : vector<16xf32>
    %753 = vector.multi_reduction <add>, %752, %cst_293 [1] : vector<16x32xf32> to vector<16xf32>
    %754 = vector.shape_cast %753 : vector<16xf32> to vector<16x1xf32>
    %cst_294 = arith.constant 3.200000e+01 : f32
    %755 = vector.broadcast %cst_294 : f32 to vector<16x1xf32>
    %756 = arith.divf %754, %755 : vector<16x1xf32>
    %757 = vector.broadcast %756 : vector<16x1xf32> to vector<16x32xf32>
    %758 = arith.subf %752, %757 : vector<16x32xf32>
    %759 = vector.broadcast %756 : vector<16x1xf32> to vector<16x32xf32>
    %760 = arith.subf %752, %759 : vector<16x32xf32>
    %761 = arith.mulf %758, %760 : vector<16x32xf32>
    %cst_295 = arith.constant dense<0.000000e+00> : vector<16xf32>
    %762 = vector.multi_reduction <add>, %761, %cst_295 [1] : vector<16x32xf32> to vector<16xf32>
    %763 = vector.shape_cast %762 : vector<16xf32> to vector<16x1xf32>
    %cst_296 = arith.constant 3.200000e+01 : f32
    %764 = vector.broadcast %cst_296 : f32 to vector<16x1xf32>
    %765 = arith.divf %763, %764 : vector<16x1xf32>
    %766 = vector.broadcast %756 : vector<16x1xf32> to vector<16x32xf32>
    %767 = arith.subf %752, %766 : vector<16x32xf32>
    %cst_297 = arith.constant 9.99999974E-6 : f32
    %768 = vector.broadcast %cst_297 : f32 to vector<16x1xf32>
    %769 = arith.addf %765, %768 : vector<16x1xf32>
    %770 = math.rsqrt %769 : vector<16x1xf32>
    %771 = vector.broadcast %770 : vector<16x1xf32> to vector<16x32xf32>
    %772 = arith.mulf %767, %771 : vector<16x32xf32>
    %773 = vector.broadcast %606 : vector<1x32xf32> to vector<16x32xf32>
    %774 = arith.mulf %772, %773 : vector<16x32xf32>
    %775 = vector.broadcast %608 : vector<1x32xf32> to vector<16x32xf32>
    %776 = arith.addf %774, %775 : vector<16x32xf32>
    %777 = vector.broadcast %2 : vector<16x1xf32> to vector<16x32xf32>
    %778 = arith.mulf %776, %777 : vector<16x32xf32>
    %c4 = arith.constant 4 : index
    %c0_298 = arith.constant 0 : index
    %c0_299 = arith.constant 0 : index
    %779 = vector.load %arg4[%c4, %c0_298, %c0_299] : memref<6x32x96xf32, #tpu.memory_space<vmem>>, vector<1x32x96xf32>
    %780 = vector.shape_cast %779 : vector<1x32x96xf32> to vector<32x96xf32>
    %c4_300 = arith.constant 4 : index
    %c0_301 = arith.constant 0 : index
    %c0_302 = arith.constant 0 : index
    %781 = vector.load %arg5[%c4_300, %c0_301, %c0_302] : memref<6x1x96xf32, #tpu.memory_space<vmem>>, vector<1x1x96xf32>
    %782 = vector.shape_cast %781 : vector<1x1x96xf32> to vector<1x96xf32>
    %c4_303 = arith.constant 4 : index
    %c0_304 = arith.constant 0 : index
    %c0_305 = arith.constant 0 : index
    %783 = vector.load %arg6[%c4_303, %c0_304, %c0_305] : memref<6x32x32xf32, #tpu.memory_space<vmem>>, vector<1x32x32xf32>
    %784 = vector.shape_cast %783 : vector<1x32x32xf32> to vector<32x32xf32>
    %c4_306 = arith.constant 4 : index
    %c0_307 = arith.constant 0 : index
    %c0_308 = arith.constant 0 : index
    %785 = vector.load %arg7[%c4_306, %c0_307, %c0_308] : memref<6x1x32xf32, #tpu.memory_space<vmem>>, vector<1x1x32xf32>
    %786 = vector.shape_cast %785 : vector<1x1x32xf32> to vector<1x32xf32>
    %c4_309 = arith.constant 4 : index
    %c0_310 = arith.constant 0 : index
    %c0_311 = arith.constant 0 : index
    %787 = vector.load %arg8[%c4_309, %c0_310, %c0_311] : memref<6x1x32xf32, #tpu.memory_space<vmem>>, vector<1x1x32xf32>
    %788 = vector.shape_cast %787 : vector<1x1x32xf32> to vector<1x32xf32>
    %c4_312 = arith.constant 4 : index
    %c0_313 = arith.constant 0 : index
    %c0_314 = arith.constant 0 : index
    %789 = vector.load %arg9[%c4_312, %c0_313, %c0_314] : memref<6x1x32xf32, #tpu.memory_space<vmem>>, vector<1x1x32xf32>
    %790 = vector.shape_cast %789 : vector<1x1x32xf32> to vector<1x32xf32>
    %c4_315 = arith.constant 4 : index
    %c0_316 = arith.constant 0 : index
    %c0_317 = arith.constant 0 : index
    %791 = vector.load %arg10[%c4_315, %c0_316, %c0_317] : memref<6x32x64xf32, #tpu.memory_space<vmem>>, vector<1x32x64xf32>
    %792 = vector.shape_cast %791 : vector<1x32x64xf32> to vector<32x64xf32>
    %c4_318 = arith.constant 4 : index
    %c0_319 = arith.constant 0 : index
    %c0_320 = arith.constant 0 : index
    %793 = vector.load %arg11[%c4_318, %c0_319, %c0_320] : memref<6x1x64xf32, #tpu.memory_space<vmem>>, vector<1x1x64xf32>
    %794 = vector.shape_cast %793 : vector<1x1x64xf32> to vector<1x64xf32>
    %c4_321 = arith.constant 4 : index
    %c0_322 = arith.constant 0 : index
    %c0_323 = arith.constant 0 : index
    %795 = vector.load %arg12[%c4_321, %c0_322, %c0_323] : memref<6x64x32xf32, #tpu.memory_space<vmem>>, vector<1x64x32xf32>
    %796 = vector.shape_cast %795 : vector<1x64x32xf32> to vector<64x32xf32>
    %c4_324 = arith.constant 4 : index
    %c0_325 = arith.constant 0 : index
    %c0_326 = arith.constant 0 : index
    %797 = vector.load %arg13[%c4_324, %c0_325, %c0_326] : memref<6x1x32xf32, #tpu.memory_space<vmem>>, vector<1x1x32xf32>
    %798 = vector.shape_cast %797 : vector<1x1x32xf32> to vector<1x32xf32>
    %c4_327 = arith.constant 4 : index
    %c0_328 = arith.constant 0 : index
    %c0_329 = arith.constant 0 : index
    %799 = vector.load %arg14[%c4_327, %c0_328, %c0_329] : memref<6x1x32xf32, #tpu.memory_space<vmem>>, vector<1x1x32xf32>
    %800 = vector.shape_cast %799 : vector<1x1x32xf32> to vector<1x32xf32>
    %c4_330 = arith.constant 4 : index
    %c0_331 = arith.constant 0 : index
    %c0_332 = arith.constant 0 : index
    %801 = vector.load %arg15[%c4_330, %c0_331, %c0_332] : memref<6x1x32xf32, #tpu.memory_space<vmem>>, vector<1x1x32xf32>
    %802 = vector.shape_cast %801 : vector<1x1x32xf32> to vector<1x32xf32>
    %cst_333 = arith.constant dense<0.000000e+00> : vector<16x96xf32>
    %803 = tpu.matmul %778, %780, %cst_333 {dimension_numbers = #tpu.dot_dimension_numbers<[1], [0], [0], [1], [0, 0, 1, 1], [], []>} : vector<16x32xf32>, vector<32x96xf32>, vector<16x96xf32> -> vector<16x96xf32>
    %804 = vector.broadcast %782 : vector<1x96xf32> to vector<16x96xf32>
    %805 = arith.addf %803, %804 : vector<16x96xf32>
    %806 = vector.extract_strided_slice %805 {offsets = [0, 0], sizes = [16, 8], strides = [1, 1]} : vector<16x96xf32> to vector<16x8xf32>
    %807 = vector.shape_cast %806 : vector<16x8xf32> to vector<2x8x8xf32>
    %808 = vector.extract_strided_slice %805 {offsets = [0, 32], sizes = [16, 8], strides = [1, 1]} : vector<16x96xf32> to vector<16x8xf32>
    %809 = vector.shape_cast %808 : vector<16x8xf32> to vector<2x8x8xf32>
    %810 = vector.extract_strided_slice %805 {offsets = [0, 64], sizes = [16, 8], strides = [1, 1]} : vector<16x96xf32> to vector<16x8xf32>
    %811 = vector.shape_cast %810 : vector<16x8xf32> to vector<2x8x8xf32>
    "tpu.trace_start"() <{level = 10 : i32, message = "bqd,bkd->bqk"}> : () -> ()
    %cst_334 = arith.constant dense<0.000000e+00> : vector<2x8x8xf32>
    %812 = tpu.matmul %807, %809, %cst_334 {dimension_numbers = #tpu.dot_dimension_numbers<[2], [2], [1], [1], [0, 0, 0, 1, 1, 1], [0], [0]>} : vector<2x8x8xf32>, vector<2x8x8xf32>, vector<2x8x8xf32> -> vector<2x8x8xf32>
    "tpu.trace_stop"() : () -> ()
    %cst_335 = arith.constant 0.353553385 : f32
    %813 = vector.broadcast %cst_335 : f32 to vector<2x8x8xf32>
    %814 = arith.mulf %812, %813 : vector<2x8x8xf32>
    %815 = vector.broadcast %1 : vector<2x1x8xf32> to vector<2x8x8xf32>
    %816 = arith.addf %814, %815 : vector<2x8x8xf32>
    %cst_336 = arith.constant dense<0xFF800000> : vector<2x8xf32>
    %817 = vector.multi_reduction <maximumf>, %816, %cst_336 [2] : vector<2x8x8xf32> to vector<2x8xf32>
    %818 = vector.shape_cast %817 : vector<2x8xf32> to vector<2x8x1xf32>
    %819 = vector.broadcast %818 : vector<2x8x1xf32> to vector<2x8x8xf32>
    %820 = arith.subf %816, %819 : vector<2x8x8xf32>
    %821 = math.exp %820 : vector<2x8x8xf32>
    %cst_337 = arith.constant dense<0.000000e+00> : vector<2x8xf32>
    %822 = vector.multi_reduction <add>, %821, %cst_337 [2] : vector<2x8x8xf32> to vector<2x8xf32>
    %823 = vector.shape_cast %822 : vector<2x8xf32> to vector<2x8x1xf32>
    %824 = tpu.reciprocal %823 {approx = true} : vector<2x8x1xf32> -> vector<2x8x1xf32>
    %825 = vector.broadcast %824 : vector<2x8x1xf32> to vector<2x8x8xf32>
    %826 = arith.mulf %821, %825 : vector<2x8x8xf32>
    "tpu.trace_start"() <{level = 10 : i32, message = "bqk,bkd->bqd"}> : () -> ()
    %cst_338 = arith.constant dense<0.000000e+00> : vector<2x8x8xf32>
    %827 = tpu.matmul %826, %811, %cst_338 {dimension_numbers = #tpu.dot_dimension_numbers<[2], [1], [1], [2], [0, 0, 0, 1, 1, 2], [0], [0]>} : vector<2x8x8xf32>, vector<2x8x8xf32>, vector<2x8x8xf32> -> vector<2x8x8xf32>
    "tpu.trace_stop"() : () -> ()
    %828 = vector.shape_cast %827 : vector<2x8x8xf32> to vector<16x8xf32>
    %829 = vector.extract_strided_slice %784 {offsets = [0, 0], sizes = [8, 32], strides = [1, 1]} : vector<32x32xf32> to vector<8x32xf32>
    %cst_339 = arith.constant dense<0.000000e+00> : vector<16x32xf32>
    %830 = tpu.matmul %828, %829, %cst_339 {dimension_numbers = #tpu.dot_dimension_numbers<[1], [0], [0], [1], [0, 0, 1, 1], [], []>} : vector<16x8xf32>, vector<8x32xf32>, vector<16x32xf32> -> vector<16x32xf32>
    %831 = vector.extract_strided_slice %805 {offsets = [0, 8], sizes = [16, 8], strides = [1, 1]} : vector<16x96xf32> to vector<16x8xf32>
    %832 = vector.shape_cast %831 : vector<16x8xf32> to vector<2x8x8xf32>
    %833 = vector.extract_strided_slice %805 {offsets = [0, 40], sizes = [16, 8], strides = [1, 1]} : vector<16x96xf32> to vector<16x8xf32>
    %834 = vector.shape_cast %833 : vector<16x8xf32> to vector<2x8x8xf32>
    %835 = vector.extract_strided_slice %805 {offsets = [0, 72], sizes = [16, 8], strides = [1, 1]} : vector<16x96xf32> to vector<16x8xf32>
    %836 = vector.shape_cast %835 : vector<16x8xf32> to vector<2x8x8xf32>
    "tpu.trace_start"() <{level = 10 : i32, message = "bqd,bkd->bqk"}> : () -> ()
    %cst_340 = arith.constant dense<0.000000e+00> : vector<2x8x8xf32>
    %837 = tpu.matmul %832, %834, %cst_340 {dimension_numbers = #tpu.dot_dimension_numbers<[2], [2], [1], [1], [0, 0, 0, 1, 1, 1], [0], [0]>} : vector<2x8x8xf32>, vector<2x8x8xf32>, vector<2x8x8xf32> -> vector<2x8x8xf32>
    "tpu.trace_stop"() : () -> ()
    %cst_341 = arith.constant 0.353553385 : f32
    %838 = vector.broadcast %cst_341 : f32 to vector<2x8x8xf32>
    %839 = arith.mulf %837, %838 : vector<2x8x8xf32>
    %840 = vector.broadcast %1 : vector<2x1x8xf32> to vector<2x8x8xf32>
    %841 = arith.addf %839, %840 : vector<2x8x8xf32>
    %cst_342 = arith.constant dense<0xFF800000> : vector<2x8xf32>
    %842 = vector.multi_reduction <maximumf>, %841, %cst_342 [2] : vector<2x8x8xf32> to vector<2x8xf32>
    %843 = vector.shape_cast %842 : vector<2x8xf32> to vector<2x8x1xf32>
    %844 = vector.broadcast %843 : vector<2x8x1xf32> to vector<2x8x8xf32>
    %845 = arith.subf %841, %844 : vector<2x8x8xf32>
    %846 = math.exp %845 : vector<2x8x8xf32>
    %cst_343 = arith.constant dense<0.000000e+00> : vector<2x8xf32>
    %847 = vector.multi_reduction <add>, %846, %cst_343 [2] : vector<2x8x8xf32> to vector<2x8xf32>
    %848 = vector.shape_cast %847 : vector<2x8xf32> to vector<2x8x1xf32>
    %849 = tpu.reciprocal %848 {approx = true} : vector<2x8x1xf32> -> vector<2x8x1xf32>
    %850 = vector.broadcast %849 : vector<2x8x1xf32> to vector<2x8x8xf32>
    %851 = arith.mulf %846, %850 : vector<2x8x8xf32>
    "tpu.trace_start"() <{level = 10 : i32, message = "bqk,bkd->bqd"}> : () -> ()
    %cst_344 = arith.constant dense<0.000000e+00> : vector<2x8x8xf32>
    %852 = tpu.matmul %851, %836, %cst_344 {dimension_numbers = #tpu.dot_dimension_numbers<[2], [1], [1], [2], [0, 0, 0, 1, 1, 2], [0], [0]>} : vector<2x8x8xf32>, vector<2x8x8xf32>, vector<2x8x8xf32> -> vector<2x8x8xf32>
    "tpu.trace_stop"() : () -> ()
    %853 = vector.shape_cast %852 : vector<2x8x8xf32> to vector<16x8xf32>
    %854 = vector.extract_strided_slice %784 {offsets = [8, 0], sizes = [8, 32], strides = [1, 1]} : vector<32x32xf32> to vector<8x32xf32>
    %cst_345 = arith.constant dense<0.000000e+00> : vector<16x32xf32>
    %855 = tpu.matmul %853, %854, %cst_345 {dimension_numbers = #tpu.dot_dimension_numbers<[1], [0], [0], [1], [0, 0, 1, 1], [], []>} : vector<16x8xf32>, vector<8x32xf32>, vector<16x32xf32> -> vector<16x32xf32>
    %856 = arith.addf %830, %855 : vector<16x32xf32>
    %857 = vector.extract_strided_slice %805 {offsets = [0, 16], sizes = [16, 8], strides = [1, 1]} : vector<16x96xf32> to vector<16x8xf32>
    %858 = vector.shape_cast %857 : vector<16x8xf32> to vector<2x8x8xf32>
    %859 = vector.extract_strided_slice %805 {offsets = [0, 48], sizes = [16, 8], strides = [1, 1]} : vector<16x96xf32> to vector<16x8xf32>
    %860 = vector.shape_cast %859 : vector<16x8xf32> to vector<2x8x8xf32>
    %861 = vector.extract_strided_slice %805 {offsets = [0, 80], sizes = [16, 8], strides = [1, 1]} : vector<16x96xf32> to vector<16x8xf32>
    %862 = vector.shape_cast %861 : vector<16x8xf32> to vector<2x8x8xf32>
    "tpu.trace_start"() <{level = 10 : i32, message = "bqd,bkd->bqk"}> : () -> ()
    %cst_346 = arith.constant dense<0.000000e+00> : vector<2x8x8xf32>
    %863 = tpu.matmul %858, %860, %cst_346 {dimension_numbers = #tpu.dot_dimension_numbers<[2], [2], [1], [1], [0, 0, 0, 1, 1, 1], [0], [0]>} : vector<2x8x8xf32>, vector<2x8x8xf32>, vector<2x8x8xf32> -> vector<2x8x8xf32>
    "tpu.trace_stop"() : () -> ()
    %cst_347 = arith.constant 0.353553385 : f32
    %864 = vector.broadcast %cst_347 : f32 to vector<2x8x8xf32>
    %865 = arith.mulf %863, %864 : vector<2x8x8xf32>
    %866 = vector.broadcast %1 : vector<2x1x8xf32> to vector<2x8x8xf32>
    %867 = arith.addf %865, %866 : vector<2x8x8xf32>
    %cst_348 = arith.constant dense<0xFF800000> : vector<2x8xf32>
    %868 = vector.multi_reduction <maximumf>, %867, %cst_348 [2] : vector<2x8x8xf32> to vector<2x8xf32>
    %869 = vector.shape_cast %868 : vector<2x8xf32> to vector<2x8x1xf32>
    %870 = vector.broadcast %869 : vector<2x8x1xf32> to vector<2x8x8xf32>
    %871 = arith.subf %867, %870 : vector<2x8x8xf32>
    %872 = math.exp %871 : vector<2x8x8xf32>
    %cst_349 = arith.constant dense<0.000000e+00> : vector<2x8xf32>
    %873 = vector.multi_reduction <add>, %872, %cst_349 [2] : vector<2x8x8xf32> to vector<2x8xf32>
    %874 = vector.shape_cast %873 : vector<2x8xf32> to vector<2x8x1xf32>
    %875 = tpu.reciprocal %874 {approx = true} : vector<2x8x1xf32> -> vector<2x8x1xf32>
    %876 = vector.broadcast %875 : vector<2x8x1xf32> to vector<2x8x8xf32>
    %877 = arith.mulf %872, %876 : vector<2x8x8xf32>
    "tpu.trace_start"() <{level = 10 : i32, message = "bqk,bkd->bqd"}> : () -> ()
    %cst_350 = arith.constant dense<0.000000e+00> : vector<2x8x8xf32>
    %878 = tpu.matmul %877, %862, %cst_350 {dimension_numbers = #tpu.dot_dimension_numbers<[2], [1], [1], [2], [0, 0, 0, 1, 1, 2], [0], [0]>} : vector<2x8x8xf32>, vector<2x8x8xf32>, vector<2x8x8xf32> -> vector<2x8x8xf32>
    "tpu.trace_stop"() : () -> ()
    %879 = vector.shape_cast %878 : vector<2x8x8xf32> to vector<16x8xf32>
    %880 = vector.extract_strided_slice %784 {offsets = [16, 0], sizes = [8, 32], strides = [1, 1]} : vector<32x32xf32> to vector<8x32xf32>
    %cst_351 = arith.constant dense<0.000000e+00> : vector<16x32xf32>
    %881 = tpu.matmul %879, %880, %cst_351 {dimension_numbers = #tpu.dot_dimension_numbers<[1], [0], [0], [1], [0, 0, 1, 1], [], []>} : vector<16x8xf32>, vector<8x32xf32>, vector<16x32xf32> -> vector<16x32xf32>
    %882 = arith.addf %856, %881 : vector<16x32xf32>
    %883 = vector.extract_strided_slice %805 {offsets = [0, 24], sizes = [16, 8], strides = [1, 1]} : vector<16x96xf32> to vector<16x8xf32>
    %884 = vector.shape_cast %883 : vector<16x8xf32> to vector<2x8x8xf32>
    %885 = vector.extract_strided_slice %805 {offsets = [0, 56], sizes = [16, 8], strides = [1, 1]} : vector<16x96xf32> to vector<16x8xf32>
    %886 = vector.shape_cast %885 : vector<16x8xf32> to vector<2x8x8xf32>
    %887 = vector.extract_strided_slice %805 {offsets = [0, 88], sizes = [16, 8], strides = [1, 1]} : vector<16x96xf32> to vector<16x8xf32>
    %888 = vector.shape_cast %887 : vector<16x8xf32> to vector<2x8x8xf32>
    "tpu.trace_start"() <{level = 10 : i32, message = "bqd,bkd->bqk"}> : () -> ()
    %cst_352 = arith.constant dense<0.000000e+00> : vector<2x8x8xf32>
    %889 = tpu.matmul %884, %886, %cst_352 {dimension_numbers = #tpu.dot_dimension_numbers<[2], [2], [1], [1], [0, 0, 0, 1, 1, 1], [0], [0]>} : vector<2x8x8xf32>, vector<2x8x8xf32>, vector<2x8x8xf32> -> vector<2x8x8xf32>
    "tpu.trace_stop"() : () -> ()
    %cst_353 = arith.constant 0.353553385 : f32
    %890 = vector.broadcast %cst_353 : f32 to vector<2x8x8xf32>
    %891 = arith.mulf %889, %890 : vector<2x8x8xf32>
    %892 = vector.broadcast %1 : vector<2x1x8xf32> to vector<2x8x8xf32>
    %893 = arith.addf %891, %892 : vector<2x8x8xf32>
    %cst_354 = arith.constant dense<0xFF800000> : vector<2x8xf32>
    %894 = vector.multi_reduction <maximumf>, %893, %cst_354 [2] : vector<2x8x8xf32> to vector<2x8xf32>
    %895 = vector.shape_cast %894 : vector<2x8xf32> to vector<2x8x1xf32>
    %896 = vector.broadcast %895 : vector<2x8x1xf32> to vector<2x8x8xf32>
    %897 = arith.subf %893, %896 : vector<2x8x8xf32>
    %898 = math.exp %897 : vector<2x8x8xf32>
    %cst_355 = arith.constant dense<0.000000e+00> : vector<2x8xf32>
    %899 = vector.multi_reduction <add>, %898, %cst_355 [2] : vector<2x8x8xf32> to vector<2x8xf32>
    %900 = vector.shape_cast %899 : vector<2x8xf32> to vector<2x8x1xf32>
    %901 = tpu.reciprocal %900 {approx = true} : vector<2x8x1xf32> -> vector<2x8x1xf32>
    %902 = vector.broadcast %901 : vector<2x8x1xf32> to vector<2x8x8xf32>
    %903 = arith.mulf %898, %902 : vector<2x8x8xf32>
    "tpu.trace_start"() <{level = 10 : i32, message = "bqk,bkd->bqd"}> : () -> ()
    %cst_356 = arith.constant dense<0.000000e+00> : vector<2x8x8xf32>
    %904 = tpu.matmul %903, %888, %cst_356 {dimension_numbers = #tpu.dot_dimension_numbers<[2], [1], [1], [2], [0, 0, 0, 1, 1, 2], [0], [0]>} : vector<2x8x8xf32>, vector<2x8x8xf32>, vector<2x8x8xf32> -> vector<2x8x8xf32>
    "tpu.trace_stop"() : () -> ()
    %905 = vector.shape_cast %904 : vector<2x8x8xf32> to vector<16x8xf32>
    %906 = vector.extract_strided_slice %784 {offsets = [24, 0], sizes = [8, 32], strides = [1, 1]} : vector<32x32xf32> to vector<8x32xf32>
    %cst_357 = arith.constant dense<0.000000e+00> : vector<16x32xf32>
    %907 = tpu.matmul %905, %906, %cst_357 {dimension_numbers = #tpu.dot_dimension_numbers<[1], [0], [0], [1], [0, 0, 1, 1], [], []>} : vector<16x8xf32>, vector<8x32xf32>, vector<16x32xf32> -> vector<16x32xf32>
    %908 = arith.addf %882, %907 : vector<16x32xf32>
    %909 = vector.broadcast %786 : vector<1x32xf32> to vector<16x32xf32>
    %910 = arith.addf %908, %909 : vector<16x32xf32>
    %911 = arith.addf %910, %778 : vector<16x32xf32>
    %cst_358 = arith.constant dense<0.000000e+00> : vector<16xf32>
    %912 = vector.multi_reduction <add>, %911, %cst_358 [1] : vector<16x32xf32> to vector<16xf32>
    %913 = vector.shape_cast %912 : vector<16xf32> to vector<16x1xf32>
    %cst_359 = arith.constant 3.200000e+01 : f32
    %914 = vector.broadcast %cst_359 : f32 to vector<16x1xf32>
    %915 = arith.divf %913, %914 : vector<16x1xf32>
    %916 = vector.broadcast %915 : vector<16x1xf32> to vector<16x32xf32>
    %917 = arith.subf %911, %916 : vector<16x32xf32>
    %918 = vector.broadcast %915 : vector<16x1xf32> to vector<16x32xf32>
    %919 = arith.subf %911, %918 : vector<16x32xf32>
    %920 = arith.mulf %917, %919 : vector<16x32xf32>
    %cst_360 = arith.constant dense<0.000000e+00> : vector<16xf32>
    %921 = vector.multi_reduction <add>, %920, %cst_360 [1] : vector<16x32xf32> to vector<16xf32>
    %922 = vector.shape_cast %921 : vector<16xf32> to vector<16x1xf32>
    %cst_361 = arith.constant 3.200000e+01 : f32
    %923 = vector.broadcast %cst_361 : f32 to vector<16x1xf32>
    %924 = arith.divf %922, %923 : vector<16x1xf32>
    %925 = vector.broadcast %915 : vector<16x1xf32> to vector<16x32xf32>
    %926 = arith.subf %911, %925 : vector<16x32xf32>
    %cst_362 = arith.constant 9.99999974E-6 : f32
    %927 = vector.broadcast %cst_362 : f32 to vector<16x1xf32>
    %928 = arith.addf %924, %927 : vector<16x1xf32>
    %929 = math.rsqrt %928 : vector<16x1xf32>
    %930 = vector.broadcast %929 : vector<16x1xf32> to vector<16x32xf32>
    %931 = arith.mulf %926, %930 : vector<16x32xf32>
    %932 = vector.broadcast %788 : vector<1x32xf32> to vector<16x32xf32>
    %933 = arith.mulf %931, %932 : vector<16x32xf32>
    %934 = vector.broadcast %790 : vector<1x32xf32> to vector<16x32xf32>
    %935 = arith.addf %933, %934 : vector<16x32xf32>
    %936 = vector.broadcast %2 : vector<16x1xf32> to vector<16x32xf32>
    %937 = arith.mulf %935, %936 : vector<16x32xf32>
    %cst_363 = arith.constant dense<0.000000e+00> : vector<16x64xf32>
    %938 = tpu.matmul %937, %792, %cst_363 {dimension_numbers = #tpu.dot_dimension_numbers<[1], [0], [0], [1], [0, 0, 1, 1], [], []>} : vector<16x32xf32>, vector<32x64xf32>, vector<16x64xf32> -> vector<16x64xf32>
    %939 = vector.broadcast %794 : vector<1x64xf32> to vector<16x64xf32>
    %940 = arith.addf %938, %939 : vector<16x64xf32>
    %cst_364 = arith.constant 0.000000e+00 : f32
    %941 = vector.broadcast %cst_364 : f32 to vector<16x64xf32>
    %942 = arith.maximumf %940, %941 : vector<16x64xf32>
    %cst_365 = arith.constant dense<0.000000e+00> : vector<16x32xf32>
    %943 = tpu.matmul %942, %796, %cst_365 {dimension_numbers = #tpu.dot_dimension_numbers<[1], [0], [0], [1], [0, 0, 1, 1], [], []>} : vector<16x64xf32>, vector<64x32xf32>, vector<16x32xf32> -> vector<16x32xf32>
    %944 = vector.broadcast %798 : vector<1x32xf32> to vector<16x32xf32>
    %945 = arith.addf %943, %944 : vector<16x32xf32>
    %946 = arith.addf %945, %937 : vector<16x32xf32>
    %cst_366 = arith.constant dense<0.000000e+00> : vector<16xf32>
    %947 = vector.multi_reduction <add>, %946, %cst_366 [1] : vector<16x32xf32> to vector<16xf32>
    %948 = vector.shape_cast %947 : vector<16xf32> to vector<16x1xf32>
    %cst_367 = arith.constant 3.200000e+01 : f32
    %949 = vector.broadcast %cst_367 : f32 to vector<16x1xf32>
    %950 = arith.divf %948, %949 : vector<16x1xf32>
    %951 = vector.broadcast %950 : vector<16x1xf32> to vector<16x32xf32>
    %952 = arith.subf %946, %951 : vector<16x32xf32>
    %953 = vector.broadcast %950 : vector<16x1xf32> to vector<16x32xf32>
    %954 = arith.subf %946, %953 : vector<16x32xf32>
    %955 = arith.mulf %952, %954 : vector<16x32xf32>
    %cst_368 = arith.constant dense<0.000000e+00> : vector<16xf32>
    %956 = vector.multi_reduction <add>, %955, %cst_368 [1] : vector<16x32xf32> to vector<16xf32>
    %957 = vector.shape_cast %956 : vector<16xf32> to vector<16x1xf32>
    %cst_369 = arith.constant 3.200000e+01 : f32
    %958 = vector.broadcast %cst_369 : f32 to vector<16x1xf32>
    %959 = arith.divf %957, %958 : vector<16x1xf32>
    %960 = vector.broadcast %950 : vector<16x1xf32> to vector<16x32xf32>
    %961 = arith.subf %946, %960 : vector<16x32xf32>
    %cst_370 = arith.constant 9.99999974E-6 : f32
    %962 = vector.broadcast %cst_370 : f32 to vector<16x1xf32>
    %963 = arith.addf %959, %962 : vector<16x1xf32>
    %964 = math.rsqrt %963 : vector<16x1xf32>
    %965 = vector.broadcast %964 : vector<16x1xf32> to vector<16x32xf32>
    %966 = arith.mulf %961, %965 : vector<16x32xf32>
    %967 = vector.broadcast %800 : vector<1x32xf32> to vector<16x32xf32>
    %968 = arith.mulf %966, %967 : vector<16x32xf32>
    %969 = vector.broadcast %802 : vector<1x32xf32> to vector<16x32xf32>
    %970 = arith.addf %968, %969 : vector<16x32xf32>
    %971 = vector.broadcast %2 : vector<16x1xf32> to vector<16x32xf32>
    %972 = arith.mulf %970, %971 : vector<16x32xf32>
    %c5 = arith.constant 5 : index
    %c0_371 = arith.constant 0 : index
    %c0_372 = arith.constant 0 : index
    %973 = vector.load %arg4[%c5, %c0_371, %c0_372] : memref<6x32x96xf32, #tpu.memory_space<vmem>>, vector<1x32x96xf32>
    %974 = vector.shape_cast %973 : vector<1x32x96xf32> to vector<32x96xf32>
    %c5_373 = arith.constant 5 : index
    %c0_374 = arith.constant 0 : index
    %c0_375 = arith.constant 0 : index
    %975 = vector.load %arg5[%c5_373, %c0_374, %c0_375] : memref<6x1x96xf32, #tpu.memory_space<vmem>>, vector<1x1x96xf32>
    %976 = vector.shape_cast %975 : vector<1x1x96xf32> to vector<1x96xf32>
    %c5_376 = arith.constant 5 : index
    %c0_377 = arith.constant 0 : index
    %c0_378 = arith.constant 0 : index
    %977 = vector.load %arg6[%c5_376, %c0_377, %c0_378] : memref<6x32x32xf32, #tpu.memory_space<vmem>>, vector<1x32x32xf32>
    %978 = vector.shape_cast %977 : vector<1x32x32xf32> to vector<32x32xf32>
    %c5_379 = arith.constant 5 : index
    %c0_380 = arith.constant 0 : index
    %c0_381 = arith.constant 0 : index
    %979 = vector.load %arg7[%c5_379, %c0_380, %c0_381] : memref<6x1x32xf32, #tpu.memory_space<vmem>>, vector<1x1x32xf32>
    %980 = vector.shape_cast %979 : vector<1x1x32xf32> to vector<1x32xf32>
    %c5_382 = arith.constant 5 : index
    %c0_383 = arith.constant 0 : index
    %c0_384 = arith.constant 0 : index
    %981 = vector.load %arg8[%c5_382, %c0_383, %c0_384] : memref<6x1x32xf32, #tpu.memory_space<vmem>>, vector<1x1x32xf32>
    %982 = vector.shape_cast %981 : vector<1x1x32xf32> to vector<1x32xf32>
    %c5_385 = arith.constant 5 : index
    %c0_386 = arith.constant 0 : index
    %c0_387 = arith.constant 0 : index
    %983 = vector.load %arg9[%c5_385, %c0_386, %c0_387] : memref<6x1x32xf32, #tpu.memory_space<vmem>>, vector<1x1x32xf32>
    %984 = vector.shape_cast %983 : vector<1x1x32xf32> to vector<1x32xf32>
    %c5_388 = arith.constant 5 : index
    %c0_389 = arith.constant 0 : index
    %c0_390 = arith.constant 0 : index
    %985 = vector.load %arg10[%c5_388, %c0_389, %c0_390] : memref<6x32x64xf32, #tpu.memory_space<vmem>>, vector<1x32x64xf32>
    %986 = vector.shape_cast %985 : vector<1x32x64xf32> to vector<32x64xf32>
    %c5_391 = arith.constant 5 : index
    %c0_392 = arith.constant 0 : index
    %c0_393 = arith.constant 0 : index
    %987 = vector.load %arg11[%c5_391, %c0_392, %c0_393] : memref<6x1x64xf32, #tpu.memory_space<vmem>>, vector<1x1x64xf32>
    %988 = vector.shape_cast %987 : vector<1x1x64xf32> to vector<1x64xf32>
    %c5_394 = arith.constant 5 : index
    %c0_395 = arith.constant 0 : index
    %c0_396 = arith.constant 0 : index
    %989 = vector.load %arg12[%c5_394, %c0_395, %c0_396] : memref<6x64x32xf32, #tpu.memory_space<vmem>>, vector<1x64x32xf32>
    %990 = vector.shape_cast %989 : vector<1x64x32xf32> to vector<64x32xf32>
    %c5_397 = arith.constant 5 : index
    %c0_398 = arith.constant 0 : index
    %c0_399 = arith.constant 0 : index
    %991 = vector.load %arg13[%c5_397, %c0_398, %c0_399] : memref<6x1x32xf32, #tpu.memory_space<vmem>>, vector<1x1x32xf32>
    %992 = vector.shape_cast %991 : vector<1x1x32xf32> to vector<1x32xf32>
    %c5_400 = arith.constant 5 : index
    %c0_401 = arith.constant 0 : index
    %c0_402 = arith.constant 0 : index
    %993 = vector.load %arg14[%c5_400, %c0_401, %c0_402] : memref<6x1x32xf32, #tpu.memory_space<vmem>>, vector<1x1x32xf32>
    %994 = vector.shape_cast %993 : vector<1x1x32xf32> to vector<1x32xf32>
    %c5_403 = arith.constant 5 : index
    %c0_404 = arith.constant 0 : index
    %c0_405 = arith.constant 0 : index
    %995 = vector.load %arg15[%c5_403, %c0_404, %c0_405] : memref<6x1x32xf32, #tpu.memory_space<vmem>>, vector<1x1x32xf32>
    %996 = vector.shape_cast %995 : vector<1x1x32xf32> to vector<1x32xf32>
    %cst_406 = arith.constant dense<0.000000e+00> : vector<16x96xf32>
    %997 = tpu.matmul %972, %974, %cst_406 {dimension_numbers = #tpu.dot_dimension_numbers<[1], [0], [0], [1], [0, 0, 1, 1], [], []>} : vector<16x32xf32>, vector<32x96xf32>, vector<16x96xf32> -> vector<16x96xf32>
    %998 = vector.broadcast %976 : vector<1x96xf32> to vector<16x96xf32>
    %999 = arith.addf %997, %998 : vector<16x96xf32>
    %1000 = vector.extract_strided_slice %999 {offsets = [0, 0], sizes = [16, 8], strides = [1, 1]} : vector<16x96xf32> to vector<16x8xf32>
    %1001 = vector.shape_cast %1000 : vector<16x8xf32> to vector<2x8x8xf32>
    %1002 = vector.extract_strided_slice %999 {offsets = [0, 32], sizes = [16, 8], strides = [1, 1]} : vector<16x96xf32> to vector<16x8xf32>
    %1003 = vector.shape_cast %1002 : vector<16x8xf32> to vector<2x8x8xf32>
    %1004 = vector.extract_strided_slice %999 {offsets = [0, 64], sizes = [16, 8], strides = [1, 1]} : vector<16x96xf32> to vector<16x8xf32>
    %1005 = vector.shape_cast %1004 : vector<16x8xf32> to vector<2x8x8xf32>
    "tpu.trace_start"() <{level = 10 : i32, message = "bqd,bkd->bqk"}> : () -> ()
    %cst_407 = arith.constant dense<0.000000e+00> : vector<2x8x8xf32>
    %1006 = tpu.matmul %1001, %1003, %cst_407 {dimension_numbers = #tpu.dot_dimension_numbers<[2], [2], [1], [1], [0, 0, 0, 1, 1, 1], [0], [0]>} : vector<2x8x8xf32>, vector<2x8x8xf32>, vector<2x8x8xf32> -> vector<2x8x8xf32>
    "tpu.trace_stop"() : () -> ()
    %cst_408 = arith.constant 0.353553385 : f32
    %1007 = vector.broadcast %cst_408 : f32 to vector<2x8x8xf32>
    %1008 = arith.mulf %1006, %1007 : vector<2x8x8xf32>
    %1009 = vector.broadcast %1 : vector<2x1x8xf32> to vector<2x8x8xf32>
    %1010 = arith.addf %1008, %1009 : vector<2x8x8xf32>
    %cst_409 = arith.constant dense<0xFF800000> : vector<2x8xf32>
    %1011 = vector.multi_reduction <maximumf>, %1010, %cst_409 [2] : vector<2x8x8xf32> to vector<2x8xf32>
    %1012 = vector.shape_cast %1011 : vector<2x8xf32> to vector<2x8x1xf32>
    %1013 = vector.broadcast %1012 : vector<2x8x1xf32> to vector<2x8x8xf32>
    %1014 = arith.subf %1010, %1013 : vector<2x8x8xf32>
    %1015 = math.exp %1014 : vector<2x8x8xf32>
    %cst_410 = arith.constant dense<0.000000e+00> : vector<2x8xf32>
    %1016 = vector.multi_reduction <add>, %1015, %cst_410 [2] : vector<2x8x8xf32> to vector<2x8xf32>
    %1017 = vector.shape_cast %1016 : vector<2x8xf32> to vector<2x8x1xf32>
    %1018 = tpu.reciprocal %1017 {approx = true} : vector<2x8x1xf32> -> vector<2x8x1xf32>
    %1019 = vector.broadcast %1018 : vector<2x8x1xf32> to vector<2x8x8xf32>
    %1020 = arith.mulf %1015, %1019 : vector<2x8x8xf32>
    "tpu.trace_start"() <{level = 10 : i32, message = "bqk,bkd->bqd"}> : () -> ()
    %cst_411 = arith.constant dense<0.000000e+00> : vector<2x8x8xf32>
    %1021 = tpu.matmul %1020, %1005, %cst_411 {dimension_numbers = #tpu.dot_dimension_numbers<[2], [1], [1], [2], [0, 0, 0, 1, 1, 2], [0], [0]>} : vector<2x8x8xf32>, vector<2x8x8xf32>, vector<2x8x8xf32> -> vector<2x8x8xf32>
    "tpu.trace_stop"() : () -> ()
    %1022 = vector.shape_cast %1021 : vector<2x8x8xf32> to vector<16x8xf32>
    %1023 = vector.extract_strided_slice %978 {offsets = [0, 0], sizes = [8, 32], strides = [1, 1]} : vector<32x32xf32> to vector<8x32xf32>
    %cst_412 = arith.constant dense<0.000000e+00> : vector<16x32xf32>
    %1024 = tpu.matmul %1022, %1023, %cst_412 {dimension_numbers = #tpu.dot_dimension_numbers<[1], [0], [0], [1], [0, 0, 1, 1], [], []>} : vector<16x8xf32>, vector<8x32xf32>, vector<16x32xf32> -> vector<16x32xf32>
    %1025 = vector.extract_strided_slice %999 {offsets = [0, 8], sizes = [16, 8], strides = [1, 1]} : vector<16x96xf32> to vector<16x8xf32>
    %1026 = vector.shape_cast %1025 : vector<16x8xf32> to vector<2x8x8xf32>
    %1027 = vector.extract_strided_slice %999 {offsets = [0, 40], sizes = [16, 8], strides = [1, 1]} : vector<16x96xf32> to vector<16x8xf32>
    %1028 = vector.shape_cast %1027 : vector<16x8xf32> to vector<2x8x8xf32>
    %1029 = vector.extract_strided_slice %999 {offsets = [0, 72], sizes = [16, 8], strides = [1, 1]} : vector<16x96xf32> to vector<16x8xf32>
    %1030 = vector.shape_cast %1029 : vector<16x8xf32> to vector<2x8x8xf32>
    "tpu.trace_start"() <{level = 10 : i32, message = "bqd,bkd->bqk"}> : () -> ()
    %cst_413 = arith.constant dense<0.000000e+00> : vector<2x8x8xf32>
    %1031 = tpu.matmul %1026, %1028, %cst_413 {dimension_numbers = #tpu.dot_dimension_numbers<[2], [2], [1], [1], [0, 0, 0, 1, 1, 1], [0], [0]>} : vector<2x8x8xf32>, vector<2x8x8xf32>, vector<2x8x8xf32> -> vector<2x8x8xf32>
    "tpu.trace_stop"() : () -> ()
    %cst_414 = arith.constant 0.353553385 : f32
    %1032 = vector.broadcast %cst_414 : f32 to vector<2x8x8xf32>
    %1033 = arith.mulf %1031, %1032 : vector<2x8x8xf32>
    %1034 = vector.broadcast %1 : vector<2x1x8xf32> to vector<2x8x8xf32>
    %1035 = arith.addf %1033, %1034 : vector<2x8x8xf32>
    %cst_415 = arith.constant dense<0xFF800000> : vector<2x8xf32>
    %1036 = vector.multi_reduction <maximumf>, %1035, %cst_415 [2] : vector<2x8x8xf32> to vector<2x8xf32>
    %1037 = vector.shape_cast %1036 : vector<2x8xf32> to vector<2x8x1xf32>
    %1038 = vector.broadcast %1037 : vector<2x8x1xf32> to vector<2x8x8xf32>
    %1039 = arith.subf %1035, %1038 : vector<2x8x8xf32>
    %1040 = math.exp %1039 : vector<2x8x8xf32>
    %cst_416 = arith.constant dense<0.000000e+00> : vector<2x8xf32>
    %1041 = vector.multi_reduction <add>, %1040, %cst_416 [2] : vector<2x8x8xf32> to vector<2x8xf32>
    %1042 = vector.shape_cast %1041 : vector<2x8xf32> to vector<2x8x1xf32>
    %1043 = tpu.reciprocal %1042 {approx = true} : vector<2x8x1xf32> -> vector<2x8x1xf32>
    %1044 = vector.broadcast %1043 : vector<2x8x1xf32> to vector<2x8x8xf32>
    %1045 = arith.mulf %1040, %1044 : vector<2x8x8xf32>
    "tpu.trace_start"() <{level = 10 : i32, message = "bqk,bkd->bqd"}> : () -> ()
    %cst_417 = arith.constant dense<0.000000e+00> : vector<2x8x8xf32>
    %1046 = tpu.matmul %1045, %1030, %cst_417 {dimension_numbers = #tpu.dot_dimension_numbers<[2], [1], [1], [2], [0, 0, 0, 1, 1, 2], [0], [0]>} : vector<2x8x8xf32>, vector<2x8x8xf32>, vector<2x8x8xf32> -> vector<2x8x8xf32>
    "tpu.trace_stop"() : () -> ()
    %1047 = vector.shape_cast %1046 : vector<2x8x8xf32> to vector<16x8xf32>
    %1048 = vector.extract_strided_slice %978 {offsets = [8, 0], sizes = [8, 32], strides = [1, 1]} : vector<32x32xf32> to vector<8x32xf32>
    %cst_418 = arith.constant dense<0.000000e+00> : vector<16x32xf32>
    %1049 = tpu.matmul %1047, %1048, %cst_418 {dimension_numbers = #tpu.dot_dimension_numbers<[1], [0], [0], [1], [0, 0, 1, 1], [], []>} : vector<16x8xf32>, vector<8x32xf32>, vector<16x32xf32> -> vector<16x32xf32>
    %1050 = arith.addf %1024, %1049 : vector<16x32xf32>
    %1051 = vector.extract_strided_slice %999 {offsets = [0, 16], sizes = [16, 8], strides = [1, 1]} : vector<16x96xf32> to vector<16x8xf32>
    %1052 = vector.shape_cast %1051 : vector<16x8xf32> to vector<2x8x8xf32>
    %1053 = vector.extract_strided_slice %999 {offsets = [0, 48], sizes = [16, 8], strides = [1, 1]} : vector<16x96xf32> to vector<16x8xf32>
    %1054 = vector.shape_cast %1053 : vector<16x8xf32> to vector<2x8x8xf32>
    %1055 = vector.extract_strided_slice %999 {offsets = [0, 80], sizes = [16, 8], strides = [1, 1]} : vector<16x96xf32> to vector<16x8xf32>
    %1056 = vector.shape_cast %1055 : vector<16x8xf32> to vector<2x8x8xf32>
    "tpu.trace_start"() <{level = 10 : i32, message = "bqd,bkd->bqk"}> : () -> ()
    %cst_419 = arith.constant dense<0.000000e+00> : vector<2x8x8xf32>
    %1057 = tpu.matmul %1052, %1054, %cst_419 {dimension_numbers = #tpu.dot_dimension_numbers<[2], [2], [1], [1], [0, 0, 0, 1, 1, 1], [0], [0]>} : vector<2x8x8xf32>, vector<2x8x8xf32>, vector<2x8x8xf32> -> vector<2x8x8xf32>
    "tpu.trace_stop"() : () -> ()
    %cst_420 = arith.constant 0.353553385 : f32
    %1058 = vector.broadcast %cst_420 : f32 to vector<2x8x8xf32>
    %1059 = arith.mulf %1057, %1058 : vector<2x8x8xf32>
    %1060 = vector.broadcast %1 : vector<2x1x8xf32> to vector<2x8x8xf32>
    %1061 = arith.addf %1059, %1060 : vector<2x8x8xf32>
    %cst_421 = arith.constant dense<0xFF800000> : vector<2x8xf32>
    %1062 = vector.multi_reduction <maximumf>, %1061, %cst_421 [2] : vector<2x8x8xf32> to vector<2x8xf32>
    %1063 = vector.shape_cast %1062 : vector<2x8xf32> to vector<2x8x1xf32>
    %1064 = vector.broadcast %1063 : vector<2x8x1xf32> to vector<2x8x8xf32>
    %1065 = arith.subf %1061, %1064 : vector<2x8x8xf32>
    %1066 = math.exp %1065 : vector<2x8x8xf32>
    %cst_422 = arith.constant dense<0.000000e+00> : vector<2x8xf32>
    %1067 = vector.multi_reduction <add>, %1066, %cst_422 [2] : vector<2x8x8xf32> to vector<2x8xf32>
    %1068 = vector.shape_cast %1067 : vector<2x8xf32> to vector<2x8x1xf32>
    %1069 = tpu.reciprocal %1068 {approx = true} : vector<2x8x1xf32> -> vector<2x8x1xf32>
    %1070 = vector.broadcast %1069 : vector<2x8x1xf32> to vector<2x8x8xf32>
    %1071 = arith.mulf %1066, %1070 : vector<2x8x8xf32>
    "tpu.trace_start"() <{level = 10 : i32, message = "bqk,bkd->bqd"}> : () -> ()
    %cst_423 = arith.constant dense<0.000000e+00> : vector<2x8x8xf32>
    %1072 = tpu.matmul %1071, %1056, %cst_423 {dimension_numbers = #tpu.dot_dimension_numbers<[2], [1], [1], [2], [0, 0, 0, 1, 1, 2], [0], [0]>} : vector<2x8x8xf32>, vector<2x8x8xf32>, vector<2x8x8xf32> -> vector<2x8x8xf32>
    "tpu.trace_stop"() : () -> ()
    %1073 = vector.shape_cast %1072 : vector<2x8x8xf32> to vector<16x8xf32>
    %1074 = vector.extract_strided_slice %978 {offsets = [16, 0], sizes = [8, 32], strides = [1, 1]} : vector<32x32xf32> to vector<8x32xf32>
    %cst_424 = arith.constant dense<0.000000e+00> : vector<16x32xf32>
    %1075 = tpu.matmul %1073, %1074, %cst_424 {dimension_numbers = #tpu.dot_dimension_numbers<[1], [0], [0], [1], [0, 0, 1, 1], [], []>} : vector<16x8xf32>, vector<8x32xf32>, vector<16x32xf32> -> vector<16x32xf32>
    %1076 = arith.addf %1050, %1075 : vector<16x32xf32>
    %1077 = vector.extract_strided_slice %999 {offsets = [0, 24], sizes = [16, 8], strides = [1, 1]} : vector<16x96xf32> to vector<16x8xf32>
    %1078 = vector.shape_cast %1077 : vector<16x8xf32> to vector<2x8x8xf32>
    %1079 = vector.extract_strided_slice %999 {offsets = [0, 56], sizes = [16, 8], strides = [1, 1]} : vector<16x96xf32> to vector<16x8xf32>
    %1080 = vector.shape_cast %1079 : vector<16x8xf32> to vector<2x8x8xf32>
    %1081 = vector.extract_strided_slice %999 {offsets = [0, 88], sizes = [16, 8], strides = [1, 1]} : vector<16x96xf32> to vector<16x8xf32>
    %1082 = vector.shape_cast %1081 : vector<16x8xf32> to vector<2x8x8xf32>
    "tpu.trace_start"() <{level = 10 : i32, message = "bqd,bkd->bqk"}> : () -> ()
    %cst_425 = arith.constant dense<0.000000e+00> : vector<2x8x8xf32>
    %1083 = tpu.matmul %1078, %1080, %cst_425 {dimension_numbers = #tpu.dot_dimension_numbers<[2], [2], [1], [1], [0, 0, 0, 1, 1, 1], [0], [0]>} : vector<2x8x8xf32>, vector<2x8x8xf32>, vector<2x8x8xf32> -> vector<2x8x8xf32>
    "tpu.trace_stop"() : () -> ()
    %cst_426 = arith.constant 0.353553385 : f32
    %1084 = vector.broadcast %cst_426 : f32 to vector<2x8x8xf32>
    %1085 = arith.mulf %1083, %1084 : vector<2x8x8xf32>
    %1086 = vector.broadcast %1 : vector<2x1x8xf32> to vector<2x8x8xf32>
    %1087 = arith.addf %1085, %1086 : vector<2x8x8xf32>
    %cst_427 = arith.constant dense<0xFF800000> : vector<2x8xf32>
    %1088 = vector.multi_reduction <maximumf>, %1087, %cst_427 [2] : vector<2x8x8xf32> to vector<2x8xf32>
    %1089 = vector.shape_cast %1088 : vector<2x8xf32> to vector<2x8x1xf32>
    %1090 = vector.broadcast %1089 : vector<2x8x1xf32> to vector<2x8x8xf32>
    %1091 = arith.subf %1087, %1090 : vector<2x8x8xf32>
    %1092 = math.exp %1091 : vector<2x8x8xf32>
    %cst_428 = arith.constant dense<0.000000e+00> : vector<2x8xf32>
    %1093 = vector.multi_reduction <add>, %1092, %cst_428 [2] : vector<2x8x8xf32> to vector<2x8xf32>
    %1094 = vector.shape_cast %1093 : vector<2x8xf32> to vector<2x8x1xf32>
    %1095 = tpu.reciprocal %1094 {approx = true} : vector<2x8x1xf32> -> vector<2x8x1xf32>
    %1096 = vector.broadcast %1095 : vector<2x8x1xf32> to vector<2x8x8xf32>
    %1097 = arith.mulf %1092, %1096 : vector<2x8x8xf32>
    "tpu.trace_start"() <{level = 10 : i32, message = "bqk,bkd->bqd"}> : () -> ()
    %cst_429 = arith.constant dense<0.000000e+00> : vector<2x8x8xf32>
    %1098 = tpu.matmul %1097, %1082, %cst_429 {dimension_numbers = #tpu.dot_dimension_numbers<[2], [1], [1], [2], [0, 0, 0, 1, 1, 2], [0], [0]>} : vector<2x8x8xf32>, vector<2x8x8xf32>, vector<2x8x8xf32> -> vector<2x8x8xf32>
    "tpu.trace_stop"() : () -> ()
    %1099 = vector.shape_cast %1098 : vector<2x8x8xf32> to vector<16x8xf32>
    %1100 = vector.extract_strided_slice %978 {offsets = [24, 0], sizes = [8, 32], strides = [1, 1]} : vector<32x32xf32> to vector<8x32xf32>
    %cst_430 = arith.constant dense<0.000000e+00> : vector<16x32xf32>
    %1101 = tpu.matmul %1099, %1100, %cst_430 {dimension_numbers = #tpu.dot_dimension_numbers<[1], [0], [0], [1], [0, 0, 1, 1], [], []>} : vector<16x8xf32>, vector<8x32xf32>, vector<16x32xf32> -> vector<16x32xf32>
    %1102 = arith.addf %1076, %1101 : vector<16x32xf32>
    %1103 = vector.broadcast %980 : vector<1x32xf32> to vector<16x32xf32>
    %1104 = arith.addf %1102, %1103 : vector<16x32xf32>
    %1105 = arith.addf %1104, %972 : vector<16x32xf32>
    %cst_431 = arith.constant dense<0.000000e+00> : vector<16xf32>
    %1106 = vector.multi_reduction <add>, %1105, %cst_431 [1] : vector<16x32xf32> to vector<16xf32>
    %1107 = vector.shape_cast %1106 : vector<16xf32> to vector<16x1xf32>
    %cst_432 = arith.constant 3.200000e+01 : f32
    %1108 = vector.broadcast %cst_432 : f32 to vector<16x1xf32>
    %1109 = arith.divf %1107, %1108 : vector<16x1xf32>
    %1110 = vector.broadcast %1109 : vector<16x1xf32> to vector<16x32xf32>
    %1111 = arith.subf %1105, %1110 : vector<16x32xf32>
    %1112 = vector.broadcast %1109 : vector<16x1xf32> to vector<16x32xf32>
    %1113 = arith.subf %1105, %1112 : vector<16x32xf32>
    %1114 = arith.mulf %1111, %1113 : vector<16x32xf32>
    %cst_433 = arith.constant dense<0.000000e+00> : vector<16xf32>
    %1115 = vector.multi_reduction <add>, %1114, %cst_433 [1] : vector<16x32xf32> to vector<16xf32>
    %1116 = vector.shape_cast %1115 : vector<16xf32> to vector<16x1xf32>
    %cst_434 = arith.constant 3.200000e+01 : f32
    %1117 = vector.broadcast %cst_434 : f32 to vector<16x1xf32>
    %1118 = arith.divf %1116, %1117 : vector<16x1xf32>
    %1119 = vector.broadcast %1109 : vector<16x1xf32> to vector<16x32xf32>
    %1120 = arith.subf %1105, %1119 : vector<16x32xf32>
    %cst_435 = arith.constant 9.99999974E-6 : f32
    %1121 = vector.broadcast %cst_435 : f32 to vector<16x1xf32>
    %1122 = arith.addf %1118, %1121 : vector<16x1xf32>
    %1123 = math.rsqrt %1122 : vector<16x1xf32>
    %1124 = vector.broadcast %1123 : vector<16x1xf32> to vector<16x32xf32>
    %1125 = arith.mulf %1120, %1124 : vector<16x32xf32>
    %1126 = vector.broadcast %982 : vector<1x32xf32> to vector<16x32xf32>
    %1127 = arith.mulf %1125, %1126 : vector<16x32xf32>
    %1128 = vector.broadcast %984 : vector<1x32xf32> to vector<16x32xf32>
    %1129 = arith.addf %1127, %1128 : vector<16x32xf32>
    %1130 = vector.broadcast %2 : vector<16x1xf32> to vector<16x32xf32>
    %1131 = arith.mulf %1129, %1130 : vector<16x32xf32>
    %cst_436 = arith.constant dense<0.000000e+00> : vector<16x64xf32>
    %1132 = tpu.matmul %1131, %986, %cst_436 {dimension_numbers = #tpu.dot_dimension_numbers<[1], [0], [0], [1], [0, 0, 1, 1], [], []>} : vector<16x32xf32>, vector<32x64xf32>, vector<16x64xf32> -> vector<16x64xf32>
    %1133 = vector.broadcast %988 : vector<1x64xf32> to vector<16x64xf32>
    %1134 = arith.addf %1132, %1133 : vector<16x64xf32>
    %cst_437 = arith.constant 0.000000e+00 : f32
    %1135 = vector.broadcast %cst_437 : f32 to vector<16x64xf32>
    %1136 = arith.maximumf %1134, %1135 : vector<16x64xf32>
    %cst_438 = arith.constant dense<0.000000e+00> : vector<16x32xf32>
    %1137 = tpu.matmul %1136, %990, %cst_438 {dimension_numbers = #tpu.dot_dimension_numbers<[1], [0], [0], [1], [0, 0, 1, 1], [], []>} : vector<16x64xf32>, vector<64x32xf32>, vector<16x32xf32> -> vector<16x32xf32>
    %1138 = vector.broadcast %992 : vector<1x32xf32> to vector<16x32xf32>
    %1139 = arith.addf %1137, %1138 : vector<16x32xf32>
    %1140 = arith.addf %1139, %1131 : vector<16x32xf32>
    %cst_439 = arith.constant dense<0.000000e+00> : vector<16xf32>
    %1141 = vector.multi_reduction <add>, %1140, %cst_439 [1] : vector<16x32xf32> to vector<16xf32>
    %1142 = vector.shape_cast %1141 : vector<16xf32> to vector<16x1xf32>
    %cst_440 = arith.constant 3.200000e+01 : f32
    %1143 = vector.broadcast %cst_440 : f32 to vector<16x1xf32>
    %1144 = arith.divf %1142, %1143 : vector<16x1xf32>
    %1145 = vector.broadcast %1144 : vector<16x1xf32> to vector<16x32xf32>
    %1146 = arith.subf %1140, %1145 : vector<16x32xf32>
    %1147 = vector.broadcast %1144 : vector<16x1xf32> to vector<16x32xf32>
    %1148 = arith.subf %1140, %1147 : vector<16x32xf32>
    %1149 = arith.mulf %1146, %1148 : vector<16x32xf32>
    %cst_441 = arith.constant dense<0.000000e+00> : vector<16xf32>
    %1150 = vector.multi_reduction <add>, %1149, %cst_441 [1] : vector<16x32xf32> to vector<16xf32>
    %1151 = vector.shape_cast %1150 : vector<16xf32> to vector<16x1xf32>
    %cst_442 = arith.constant 3.200000e+01 : f32
    %1152 = vector.broadcast %cst_442 : f32 to vector<16x1xf32>
    %1153 = arith.divf %1151, %1152 : vector<16x1xf32>
    %1154 = vector.broadcast %1144 : vector<16x1xf32> to vector<16x32xf32>
    %1155 = arith.subf %1140, %1154 : vector<16x32xf32>
    %cst_443 = arith.constant 9.99999974E-6 : f32
    %1156 = vector.broadcast %cst_443 : f32 to vector<16x1xf32>
    %1157 = arith.addf %1153, %1156 : vector<16x1xf32>
    %1158 = math.rsqrt %1157 : vector<16x1xf32>
    %1159 = vector.broadcast %1158 : vector<16x1xf32> to vector<16x32xf32>
    %1160 = arith.mulf %1155, %1159 : vector<16x32xf32>
    %1161 = vector.broadcast %994 : vector<1x32xf32> to vector<16x32xf32>
    %1162 = arith.mulf %1160, %1161 : vector<16x32xf32>
    %1163 = vector.broadcast %996 : vector<1x32xf32> to vector<16x32xf32>
    %1164 = arith.addf %1162, %1163 : vector<16x32xf32>
    %1165 = vector.broadcast %2 : vector<16x1xf32> to vector<16x32xf32>
    %1166 = arith.mulf %1164, %1165 : vector<16x32xf32>
    %c0_444 = arith.constant 0 : index
    %c0_445 = arith.constant 0 : index
    %1167 = vector.load %arg16[%c0_444, %c0_445] : memref<16x32xf32, #tpu.memory_space<vmem>>, vector<16x32xf32>
    tpu.vector_store %arg16[%c0_444, %c0_445], %1166 {strides = array<i32>} : memref<16x32xf32, #tpu.memory_space<vmem>>, vector<16x32xf32>,
    return
  }
  func.func @transform_0(%arg0: i32) -> (i32, i32) {
    %c0_i32 = arith.constant 0 : i32
    %c0_i32_0 = arith.constant 0 : i32
    %c0_i32_1 = arith.constant 0 : i32
    return %c0_i32, %c0_i32_0 : i32, i32
  }
  func.func @transform_1(%arg0: i32) -> (i32, i32, i32) {
    %c0_i32 = arith.constant 0 : i32
    %c0_i32_0 = arith.constant 0 : i32
    %c0_i32_1 = arith.constant 0 : i32
    %c0_i32_2 = arith.constant 0 : i32
    return %c0_i32, %c0_i32_0, %c0_i32_1 : i32, i32, i32
  }
  func.func @transform_2(%arg0: i32) -> (i32, i32) {
    %c0_i32 = arith.constant 0 : i32
    %c0_i32_0 = arith.constant 0 : i32
    %c0_i32_1 = arith.constant 0 : i32
    return %c0_i32, %c0_i32_0 : i32, i32
  }
  func.func @transform_3(%arg0: i32) -> (i32, i32, i32) {
    %c0_i32 = arith.constant 0 : i32
    %c0_i32_0 = arith.constant 0 : i32
    %c0_i32_1 = arith.constant 0 : i32
    %c0_i32_2 = arith.constant 0 : i32
    return %c0_i32, %c0_i32_0, %c0_i32_1 : i32, i32, i32
  }
  func.func @transform_4(%arg0: i32) -> (i32, i32, i32) {
    %c0_i32 = arith.constant 0 : i32
    %c0_i32_0 = arith.constant 0 : i32
    %c0_i32_1 = arith.constant 0 : i32
    %c0_i32_2 = arith.constant 0 : i32
    return %c0_i32, %c0_i32_0, %c0_i32_1 : i32, i32, i32
  }
  func.func @transform_5(%arg0: i32) -> (i32, i32, i32) {
    %c0_i32 = arith.constant 0 : i32
    %c0_i32_0 = arith.constant 0 : i32
    %c0_i32_1 = arith.constant 0 : i32
    %c0_i32_2 = arith.constant 0 : i32
    return %c0_i32, %c0_i32_0, %c0_i32_1 : i32, i32, i32
  }
  func.func @transform_6(%arg0: i32) -> (i32, i32, i32) {
    %c0_i32 = arith.constant 0 : i32
    %c0_i32_0 = arith.constant 0 : i32
    %c0_i32_1 = arith.constant 0 : i32
    %c0_i32_2 = arith.constant 0 : i32
    return %c0_i32, %c0_i32_0, %c0_i32_1 : i32, i32, i32
  }
  func.func @transform_7(%arg0: i32) -> (i32, i32, i32) {
    %c0_i32 = arith.constant 0 : i32
    %c0_i32_0 = arith.constant 0 : i32
    %c0_i32_1 = arith.constant 0 : i32
    %c0_i32_2 = arith.constant 0 : i32
    return %c0_i32, %c0_i32_0, %c0_i32_1 : i32, i32, i32
  }
  func.func @transform_8(%arg0: i32) -> (i32, i32, i32) {
    %c0_i32 = arith.constant 0 : i32
    %c0_i32_0 = arith.constant 0 : i32
    %c0_i32_1 = arith.constant 0 : i32
    %c0_i32_2 = arith.constant 0 : i32
    return %c0_i32, %c0_i32_0, %c0_i32_1 : i32, i32, i32
  }
  func.func @transform_9(%arg0: i32) -> (i32, i32, i32) {
    %c0_i32 = arith.constant 0 : i32
    %c0_i32_0 = arith.constant 0 : i32
    %c0_i32_1 = arith.constant 0 : i32
    %c0_i32_2 = arith.constant 0 : i32
    return %c0_i32, %c0_i32_0, %c0_i32_1 : i32, i32, i32
  }
  func.func @transform_10(%arg0: i32) -> (i32, i32, i32) {
    %c0_i32 = arith.constant 0 : i32
    %c0_i32_0 = arith.constant 0 : i32
    %c0_i32_1 = arith.constant 0 : i32
    %c0_i32_2 = arith.constant 0 : i32
    return %c0_i32, %c0_i32_0, %c0_i32_1 : i32, i32, i32
  }
  func.func @transform_11(%arg0: i32) -> (i32, i32, i32) {
    %c0_i32 = arith.constant 0 : i32
    %c0_i32_0 = arith.constant 0 : i32
    %c0_i32_1 = arith.constant 0 : i32
    %c0_i32_2 = arith.constant 0 : i32
    return %c0_i32, %c0_i32_0, %c0_i32_1 : i32, i32, i32
  }
  func.func @transform_12(%arg0: i32) -> (i32, i32, i32) {
    %c0_i32 = arith.constant 0 : i32
    %c0_i32_0 = arith.constant 0 : i32
    %c0_i32_1 = arith.constant 0 : i32
    %c0_i32_2 = arith.constant 0 : i32
    return %c0_i32, %c0_i32_0, %c0_i32_1 : i32, i32, i32
  }
  func.func @transform_13(%arg0: i32) -> (i32, i32, i32) {
    %c0_i32 = arith.constant 0 : i32
    %c0_i32_0 = arith.constant 0 : i32
    %c0_i32_1 = arith.constant 0 : i32
    %c0_i32_2 = arith.constant 0 : i32
    return %c0_i32, %c0_i32_0, %c0_i32_1 : i32, i32, i32
  }
  func.func @transform_14(%arg0: i32) -> (i32, i32, i32) {
    %c0_i32 = arith.constant 0 : i32
    %c0_i32_0 = arith.constant 0 : i32
    %c0_i32_1 = arith.constant 0 : i32
    %c0_i32_2 = arith.constant 0 : i32
    return %c0_i32, %c0_i32_0, %c0_i32_1 : i32, i32, i32
  }
  func.func @transform_15(%arg0: i32) -> (i32, i32) {
    %c0_i32 = arith.constant 0 : i32
    %c0_i32_0 = arith.constant 0 : i32
    %c0_i32_1 = arith.constant 0 : i32
    return %c0_i32, %c0_i32_0 : i32, i32
  }
}

</mosaic_0001>

<bundles_post_ra>
// kernel: encoder_forward.1
= control target key start
LH: loop header
LB: loop body
LE: loop exit
PB: predicated region body
PF: predicated region fallthrough
CT: control target
= control target key end

     0   :  { %s7818_s0 = inlined_call_operand.vmem [shape: f32[16,32], index: 0, kind: input, shape index: {}]   ;;  %s7819_s1 = inlined_call_operand.vmem [shape: f32[2,1,8], index: 1, kind: input, shape index: {}]   ;;  %s7820_s2 = inlined_call_operand.vmem [shape: f32[16,1], index: 2, kind: input, shape index: {}]   ;;  %s7821_s3 = inlined_call_operand.vmem [shape: f32[6,32,96], index: 3, kind: input, shape index: {}]   ;;  %s7822_s4 = inlined_call_operand.vmem [shape: f32[6,1,96], index: 4, kind: input, shape index: {}]   ;;  %s7823_s5 = inlined_call_operand.vmem [shape: f32[6,32,32], index: 5, kind: input, shape index: {}]   ;;  %s7824_s6 = inlined_call_operand.vmem [shape: f32[6,1,32], index: 6, kind: input, shape index: {}]   ;;  %s7825_s7 = inlined_call_operand.vmem [shape: f32[6,1,32], index: 7, kind: input, shape index: {}]   ;;  %s7826_s8 = inlined_call_operand.vmem [shape: f32[6,1,32], index: 8, kind: input, shape index: {}]   ;;  %s7827_s9 = inlined_call_operand.vmem [shape: f32[6,32,64], index: 9, kind: input, shape index: {}]   ;;  %s7828_s10 = inlined_call_operand.vmem [shape: f32[6,1,64], index: 10, kind: input, shape index: {}]   ;;  %s7829_s11 = inlined_call_operand.vmem [shape: f32[6,64,32], index: 11, kind: input, shape index: {}]   ;;  %s7830_s12 = inlined_call_operand.vmem [shape: f32[6,1,32], index: 12, kind: input, shape index: {}]   ;;  %s7831_s13 = inlined_call_operand.vmem [shape: f32[6,1,32], index: 13, kind: input, shape index: {}]   ;;  %s7832_s14 = inlined_call_operand.vmem [shape: f32[6,1,32], index: 14, kind: input, shape index: {}]   ;;  %s7833_s15 = inlined_call_operand.hbm [shape: f32[16,32], index: 15, kind: output, shape index: {}]  }
   0x1   :  { %7862 = sst [smem:[#allocation5_spill]] %s7824_s6 }
   0x2   :  { %7863 = sst [smem:[#allocation6_spill]] %s7825_s7 }
   0x3   :  { %7864 = sst [smem:[#allocation7_spill]] %s7826_s8 }
   0x4   :  { %7865 = sst [smem:[#allocation8_spill]] %s7833_s15 }
   0x5   :  { %v60_v0 = vld [vmem:[%s7821_s3 + $0x18] sm:$0xff]  ;;  %v59_v1 = vld [vmem:[%s7821_s3 + $0x10] sm:$0xff]  ;;  %v58_v2 = vld [vmem:[%s7821_s3 + $0x8] sm:$0xff]  ;;  %vm88_vm0 = vcmask 261120  }
   0x6   :  { %107 = vmatpush.msra.mxu0 %v60_v0  ;;  %v57_v3 = vld [vmem:[%s7821_s3] sm:$0xff] }
   0x7   :  { %v6390_v4 = vld [vmem:[%s7818_s0] sm:$0xff] }
   0x8   :  { %108 = vmatpush.msra.mxu0 %v59_v1 }
   0xa   :  { %109 = vmatpush.msra.mxu0 %v58_v2 }
   0xc   :  { %110 = vmatpush.msra.mxu0 %v57_v3 }
   0xd   :  { %5569 = vmatmul.msk.f32.vlgmr.msra.gmra.mxu0 %vm88_vm0, %v6390_v4 }
   0xe   :  { %20 = vsyncpa [#allocation3], 0  ;;  %v5955_v5 = vld [vmem:[%s7822_s4] ss:$0 sm:$0xff]  ;;  %s7848_s30 = smov 64   ;;  %s7852_s16 = smov 96  }
   0xf   :  { %s7854_s17 = smov 88   ;;  %s7850_s18 = smov 120   ;;  %vm121_vm1 = vcmask 64512   ;;  %v6414_v11 = vld [vmem:[%s7818_s0 + $0x8] sm:$0xff]  ;;  %v6421_v12 = vld [vmem:[%s7819_s1] ss:$0 sm:$0xff] }
  0x10   :  { %v62_v31 = vld [vmem:[%s7823_s5] sm:$0xff]  ;;  %s7846_s26 = smov 80   ;;  %s7844_s27 = smov 56   ;;  %vm896_vm6 = vcmask 523264  }
  0x11   :  { %441 = vmatpush.msrb.mxu0 %v62_v31  ;;  %v6450_v37 = vld [vmem:[%s7819_s1 + $0x1] ss:$0 sm:$0xff]  ;;  %s7842_s28 = smov 112   ;;  %s7838_s29 = smov 72  }
  0x12   :  { %s7840_s19 = smov 104   ;;  %s7836_s22 = smov 48  }
  0x13   :  { %s7834_s0 = smov 40   ;;  %s7868_s21 = smov 72  }
  0x14   :  { %s7869_s23 = smov 48   ;;  %s7870_s20 = smov 40  }
  0x15   :  { %5570 = vmatmul.msk.f32.gmra.mxu0 %vm88_vm0, %v6414_v11  ;;  %s7871_s24 = smov 80   ;;  %s7878_s25 = sld [smem:[#allocation6_spill]] }
  0x8a   :  { %v112_v6 = vpop.f32.mrf.mxu0 }
  0x8b   :  { %v6397_v7 = vadd.f32 %v5955_v5, %v112_v6 }
  0x8d   :  { %205 = vrot.lane.b32.xlu2 %v6397_v7, %s7848_s30  ;;  %119 = vrot.lane.b32.xlu0 %v6397_v7, %s7852_s16 }
  0x92   :  { %v115_v17 = vpop.f32.mrf.mxu0 }
  0x93   :  { %v6425_v18 = vadd.f32 %v5955_v5, %v115_v17  ;;  %v63_v17 = vld [vmem:[%s7823_s5 + $0x8] sm:$0xff] }
  0x95   :  { %259 = vrot.lane.b32.xlu2 %v6397_v7, %s7854_s17 }
  0x9d   :  { %257 = vrot.lane.b32.xlu2 %v6397_v7, %s7850_s18 }
  0xa5   :  { %287 = vrot.lane.b32.xlu2 %v6425_v18, %s7854_s17 }
  0xad   :  { %285 = vrot.lane.b32.xlu2 %v6425_v18, %s7850_s18 }
  0xe7   :  { %v206_v8 = vpop.permute.xlu2 %205 }
  0xef   :  { %v260_v10 = vpop.permute.xlu2 %259 }
  0xf7   :  { %v258_v27 = vpop.permute.xlu2 %257 }
  0xff   :  { %v120_v9 = vpop.permute.xlu0 %119  ;;  %v288_v29 = vpop.permute.xlu2 %287 }
 0x100   :  { %5571 = vmatpush.xpose.msk.msra.mxu1 %vm121_vm1, %v120_v9 }
 0x103   :  { %5572 = vmatmul.msk.f32.vlgmr.msra.gmra.mxu1 %vm121_vm1, %v6397_v7 }
 0x104   :  { %226 = vmatpush.msrb.mxu1 %v206_v8 }
 0x106   :  { %5577 = vmatpush.xpose.msk.msra.mxu1 %vm121_vm1, %v260_v10 }
 0x107   :  { %v286_v30 = vpop.permute.xlu2 %285 }
 0x180   :  { %v143_v13 = vpop.f32.mrf.mxu1 }
 0x181   :  { %v173_v14 = vmul.f32 0.35355338, %v143_v13 }
 0x183   :  { %v181_v15 = vadd.f32 %v6421_v12, %v173_v14 }
 0x185   :  { %v183_v16 = vsel %vm121_vm1, %v181_v15, -inf }
 0x186   :  { %184 = vmax.xlane.f32.xlu0 %v183_v16 }
 0x1f9   :  { %v185_v19 = vpop.xlane.xlu0 %184 }
 0x1fa   :  { %v189_v20 = vsub.f32 %v181_v15, %v185_v19 }
 0x1fc   :  { %v191_v21 = vmul.f32 1.442695, %v189_v20 }
 0x1fe   :  { %6005 = vpow2.f32 %v191_v21 }
 0x204   :  { %v6006_v22 = vpop.eup %6005 }
 0x205   :  { %v195_v23 = vsel %vm121_vm1, %v6006_v22, 0.0 }
 0x206   :  { %196 = vadd.xlane.f32.xlu1 %v195_v23 }
 0x21f   :  { %147 = vrot.lane.b32.xlu1 %v6425_v18, %s7852_s16 }
 0x279   :  { %v197_v24 = vpop.xlane.xlu1 %196 }
 0x27a   :  { %6007 = vrcp.f32 %v197_v24 }
 0x280   :  { %v6008_v25 = vpop.eup %6007 }
 0x281   :  { %v203_v26 = vmul.f32 %v6008_v25, %v6006_v22 }
 0x283   :  { %5575 = vmatmul.msk.f32.vlgmr.msrb.gmra.mxu1 %vm121_vm1, %v203_v26 }
 0x28b   :  { %5578 = vmatmul.msk.f32.vlgmr.msra.gmra.mxu1 %vm121_vm1, %v258_v27 }
 0x291   :  { %v148_v28 = vpop.permute.xlu1 %147 }
 0x292   :  { %5573 = vmatpush.xpose.msk.msra.mxu2 %vm121_vm1, %v148_v28 }
 0x295   :  { %5574 = vmatmul.msk.f32.vlgmr.msra.gmra.mxu2 %vm121_vm1, %v6425_v18 }
 0x296   :  { %5579 = vmatpush.xpose.msk.msrb.mxu2 %vm121_vm1, %v288_v29 }
 0x29a   :  { %412 = vmatpush.msra.mxu2 %v63_v17  ;;  %v65_v17 = vld [vmem:[%s7823_s5 + $0x18] sm:$0xff] }
 0x29d   :  { %5580 = vmatmul.msk.f32.vlgmr.msrb.gmra.mxu2 %vm121_vm1, %v286_v30 }
 0x300   :  { %v228_v32 = vpop.f32.mrf.mxu1 }
 0x301   :  { %5585 = vmatmul.msk.f32.vlgmr.msrb.gmra.mxu0 %vm121_vm1, %v228_v32 }
 0x308   :  { %v282_v33 = vpop.f32.mrf.mxu1 }
 0x309   :  { %v313_v34 = vmul.f32 0.35355338, %v282_v33 }
 0x30b   :  { %v315_v35 = vadd.f32 %v6421_v12, %v313_v34 }
 0x30d   :  { %v317_v36 = vsel %vm121_vm1, %v315_v35, -inf }
 0x30e   :  { %318 = vmax.xlane.f32.xlu2 %v317_v36 }
 0x318   :  { %v170_v38 = vpop.f32.mrf.mxu2 }
 0x319   :  { %v174_v39 = vmul.f32 0.35355338, %v170_v38 }
 0x31b   :  { %v182_v40 = vadd.f32 %v6450_v37, %v174_v39 }
 0x31d   :  { %v186_v41 = vsel %vm121_vm1, %v182_v40, -inf }
 0x31e   :  { %187 = vmax.xlane.f32.xlu1 %v186_v41 }
 0x320   :  { %v310_v57 = vpop.f32.mrf.mxu2 }
 0x321   :  { %v314_v58 = vmul.f32 0.35355338, %v310_v57 }
 0x323   :  { %v316_v59 = vadd.f32 %v6450_v37, %v314_v58 }
 0x325   :  { %v320_v61 = vsel %vm121_vm1, %v316_v59, -inf }
 0x326   :  { %451 = vrot.lane.b32.xlu2 %v6397_v7, %s7846_s26 }
 0x32e   :  { %365 = vrot.lane.b32.xlu2 %v6425_v18, %s7844_s27 }
 0x336   :  { %479 = vrot.lane.b32.xlu2 %v6425_v18, %s7846_s26 }
 0x337   :  { %339 = vrot.lane.b32.xlu1 %v6397_v7, %s7844_s27 }
 0x33e   :  { %477 = vrot.lane.b32.xlu2 %v6425_v18, %s7842_s28 }
 0x346   :  { %616 = vrot.lane.b32.xlu2 %v6397_v7, %s7838_s29 }
 0x37e   :  { %v6500_v32 = vpop.f32.mrf.mxu0 }
 0x381   :  { %v319_v42 = vpop.xlane.xlu2 %318 }
 0x382   :  { %v323_v53 = vsub.f32 %v315_v35, %v319_v42 }
 0x384   :  { %v325_v54 = vmul.f32 1.442695, %v323_v53 }
 0x389   :  { %v452_v43 = vpop.permute.xlu2 %451 }
 0x391   :  { %v366_v44 = vpop.permute.xlu2 %365  ;;  %v188_v45 = vpop.xlane.xlu1 %187 }
 0x392   :  { %v190_v46 = vsub.f32 %v182_v40, %v188_v45  ;;  %386 = vmatpush.msrb.mxu1 %v366_v44 }
 0x394   :  { %v193_v47 = vmul.f32 1.442695, %v190_v46 }
 0x396   :  { %6009 = vpow2.f32 %v193_v47 }
 0x397   :  { %6011 = vpow2.f32 %v325_v54 }
 0x399   :  { %v480_v48 = vpop.permute.xlu2 %479 }
 0x39a   :  { %5589 = vmatpush.xpose.msk.msra.mxu1 %vm121_vm1, %v480_v48 }
 0x39c   :  { %v6010_v49 = vpop.eup %6009 }
 0x39d   :  { %v198_v50 = vsel %vm121_vm1, %v6010_v49, 0.0  ;;  %v6012_v55 = vpop.eup %6011 }
 0x39e   :  { %199 = vadd.xlane.f32.xlu0 %v198_v50  ;;  %v329_v56 = vsel %vm121_vm1, %v6012_v55, 0.0 }
 0x3a1   :  { %v478_v51 = vpop.permute.xlu2 %477 }
 0x3a9   :  { %v617_v52 = vpop.permute.xlu2 %616  ;;  %v340_v1 = vpop.permute.xlu1 %339 }
 0x3aa   :  { %5595 = vmatpush.xpose.msk.msra.mxu0 %vm121_vm1, %v617_v52 }
 0x3b2   :  { %231 = vrot.lane.b32.xlu0 %v6425_v18, %s7848_s30 }
 0x3dc   :  { %330 = vadd.xlane.f32.xlu0 %v329_v56 }
 0x3f0   :  { %449 = vrot.lane.b32.xlu0 %v6397_v7, %s7842_s28  ;;  %s7866_s28 = smov 112  }
 0x411   :  { %v200_v60 = vpop.xlane.xlu0 %199 }
 0x412   :  { %6013 = vrcp.f32 %v200_v60 }
 0x418   :  { %v6014_v62 = vpop.eup %6013 }
 0x419   :  { %v204_v0 = vmul.f32 %v6014_v62, %v6010_v49 }
 0x41a   :  { %321 = vmax.xlane.f32.xlu0 %v320_v61 }
 0x424   :  { %v232_v63 = vpop.permute.xlu0 %231 }
 0x425   :  { %252 = vmatpush.msra.mxu3 %v232_v63 }
 0x426   :  { %5576 = vmatmul.msk.f32.vlgmr.msra.gmra.mxu3 %vm121_vm1, %v204_v0 }
 0x427   :  { %360 = vmatpush.msrb.mxu3 %v340_v1 }
 0x429   :  { %5587 = vmatpush.xpose.msk.msra.mxu3 %vm121_vm1, %v452_v43 }
 0x42e   :  { %614 = vrot.lane.b32.xlu0 %v6397_v7, %s7840_s19 }
 0x436   :  { %644 = vrot.lane.b32.xlu0 %v6425_v18, %s7838_s29 }
 0x43e   :  { %642 = vrot.lane.b32.xlu0 %v6425_v18, %s7840_s19  ;;  %s7872_s19 = smov 56  }
 0x44f   :  { %v331_v2 = vpop.xlane.xlu0 %330 }
 0x450   :  { %6015 = vrcp.f32 %v331_v2 }
 0x456   :  { %v6016_v3 = vpop.eup %6015 }
 0x457   :  { %v337_v5 = vmul.f32 %v6016_v3, %v6012_v55 }
 0x459   :  { %5581 = vmatmul.msk.f32.vlgmr.msrb.gmra.mxu3 %vm121_vm1, %v337_v5 }
 0x462   :  { %v450_v6 = vpop.permute.xlu0 %449 }
 0x463   :  { %5588 = vmatmul.msk.f32.vlgmr.msra.gmra.mxu3 %vm121_vm1, %v450_v6 }
 0x48d   :  { %v322_v8 = vpop.xlane.xlu0 %321 }
 0x48e   :  { %v324_v9 = vsub.f32 %v316_v59, %v322_v8  ;;  %v64_v59 = vld [vmem:[%s7823_s5 + $0x10] sm:$0xff] }
 0x48f   :  { %604 = vmatpush.msrb.mxu2 %v64_v59  ;;  %v72_v59 = vld [vmem:[%s7827_s9 + $0x18] sm:$0xff] }
 0x490   :  { %v327_v10 = vmul.f32 1.442695, %v324_v9 }
 0x492   :  { %6017 = vpow2.f32 %v327_v10 }
 0x498   :  { %v6018_v13 = vpop.eup %6017 }
 0x499   :  { %v332_v14 = vsel %vm121_vm1, %v6018_v13, 0.0 }
 0x49a   :  { %333 = vadd.xlane.f32.xlu1 %v332_v14 }
 0x4a0   :  { %v615_v16 = vpop.permute.xlu0 %614 }
 0x4a8   :  { %v645_v46 = vpop.permute.xlu0 %644 }
 0x4a9   :  { %v254_v15 = vpop.f32.mrf.mxu3 }
 0x4aa   :  { %5586 = vmatmul.msk.f32.gmra.mxu0 %vm121_vm1, %v254_v15 }
 0x4b0   :  { %v643_v49 = vpop.permute.xlu0 %642 }
 0x4b2   :  { %5596 = vmatmul.msk.f32.vlgmr.msra.gmra.mxu0 %vm121_vm1, %v615_v16 }
 0x4dc   :  { %v362_v19 = vpop.f32.mrf.mxu3 }
 0x4dd   :  { %5583 = vmatmul.msk.f32.vlgmr.msra.gmra.mxu2 %vm121_vm1, %v362_v19 }
 0x4e6   :  { %v474_v20 = vpop.f32.mrf.mxu3 }
 0x4e7   :  { %v505_v21 = vmul.f32 0.35355338, %v474_v20 }
 0x4e9   :  { %v507_v22 = vadd.f32 %v6421_v12, %v505_v21 }
 0x4eb   :  { %v509_v23 = vsel %vm121_vm1, %v507_v22, -inf }
 0x4ec   :  { %510 = vmax.xlane.f32.xlu2 %v509_v23 }
 0x50d   :  { %v334_v24 = vpop.xlane.xlu1 %333 }
 0x50e   :  { %6019 = vrcp.f32 %v334_v24 }
 0x514   :  { %v6020_v25 = vpop.eup %6019 }
 0x515   :  { %v338_v26 = vmul.f32 %v6020_v25, %v6018_v13 }
 0x517   :  { %5582 = vmatmul.msk.f32.vlgmr.msrb.gmra.mxu1 %vm121_vm1, %v338_v26 }
 0x51f   :  { %5590 = vmatmul.msk.f32.vlgmr.msra.gmra.mxu1 %vm121_vm1, %v478_v51 }
 0x527   :  { %v6503_v34 = vpop.f32.mrf.mxu0 }
 0x52f   :  { %v639_v40 = vpop.f32.mrf.mxu0 }
 0x530   :  { %v670_v41 = vmul.f32 0.35355338, %v639_v40  ;;  %v6290_v40 = vmov 32.0  }
 0x532   :  { %v672_v42 = vadd.f32 %v6421_v12, %v670_v41  ;;  %v6291_v41 = vmov 0  }
 0x533   :  { %5953 = vset.pattern.permute.xlu2 %v6291_v41  ;;  %5954 = vset.pattern.permute.xlu0 %v6291_v41 }
 0x534   :  { %v674_v43 = vsel %vm121_vm1, %v672_v42, -inf }
 0x55f   :  { %v511_v27 = vpop.xlane.xlu2 %510 }
 0x560   :  { %v515_v28 = vsub.f32 %v507_v22, %v511_v27  ;;  %v414_v25 = vpop.f32.mrf.mxu2 }
 0x562   :  { %v517_v29 = vmul.f32 1.442695, %v515_v28  ;;  %v444_v28 = vadd.f32 %v6500_v32, %v414_v25  ;;  %v55_v32 = vld [vmem:[%s7820_s2] sm:$0xff] }
 0x564   :  { %6021 = vpow2.f32 %v517_v29 }
 0x56a   :  { %v6022_v30 = vpop.eup %6021 }
 0x56b   :  { %v521_v31 = vsel %vm121_vm1, %v6022_v30, 0.0 }
 0x56c   :  { %522 = vadd.xlane.f32.xlu1 %v521_v31 }
 0x585   :  { %531 = vrot.lane.b32.xlu1 %v6397_v7, %s7836_s22 }
 0x594   :  { %v388_v33 = vpop.f32.mrf.mxu1 }
 0x595   :  { %5584 = vmatmul.msk.f32.gmra.mxu2 %vm121_vm1, %v388_v33 }
 0x59c   :  { %v502_v35 = vpop.f32.mrf.mxu1 }
 0x59d   :  { %v506_v36 = vmul.f32 0.35355338, %v502_v35 }
 0x59f   :  { %v508_v38 = vadd.f32 %v6450_v37, %v506_v36 }
 0x5a1   :  { %v512_v39 = vsel %vm121_vm1, %v508_v38, -inf }
 0x5a2   :  { %513 = vmax.xlane.f32.xlu0 %v512_v39 }
 0x5af   :  { %675 = vmax.xlane.f32.xlu1 %v674_v43 }
 0x5b6   :  { %696 = vrot.lane.b32.xlu0 %v6397_v7, %s7834_s0 }
 0x5df   :  { %v523_v44 = vpop.xlane.xlu1 %522 }
 0x5e0   :  { %6023 = vrcp.f32 %v523_v44 }
 0x5e6   :  { %v6024_v45 = vpop.eup %6023 }
 0x5e7   :  { %v529_v47 = vmul.f32 %v6024_v45, %v6022_v30  ;;  %v5958_v30 = vld [vmem:[%s7824_s6] ss:$0 sm:$0xff] }
 0x5f7   :  { %v532_v48 = vpop.permute.xlu1 %531 }
 0x5f8   :  { %552 = vmatpush.msrb.mxu3 %v532_v48 }
 0x5f9   :  { %5591 = vmatmul.msk.f32.vlgmr.msrb.gmra.mxu3 %vm121_vm1, %v529_v47 }
 0x5fa   :  { %5597 = vmatpush.xpose.msk.msra.mxu3 %vm121_vm1, %v645_v46 }
 0x5fe   :  { %769 = vmatpush.msrb.mxu3 %v65_v17  ;;  %v56_v17 = vld [vmem:[%s7820_s2 + $0x8] sm:$0xff]  ;;  %s7867_s2 = smov 104  }
 0x601   :  { %5598 = vmatmul.msk.f32.vlgmr.msra.gmra.mxu3 %vm121_vm1, %v643_v49 }
 0x615   :  { %v514_v50 = vpop.xlane.xlu0 %513 }
 0x616   :  { %v516_v51 = vsub.f32 %v508_v38, %v514_v50 }
 0x618   :  { %v519_v52 = vmul.f32 1.442695, %v516_v51  ;;  %v417_v26 = vpop.f32.mrf.mxu2 }
 0x61a   :  { %6025 = vpow2.f32 %v519_v52 }
 0x620   :  { %v6026_v53 = vpop.eup %6025 }
 0x621   :  { %v524_v7 = vsel %vm121_vm1, %v6026_v53, 0.0 }
 0x622   :  { %525 = vadd.xlane.f32.xlu2 %v524_v7  ;;  %v676_v54 = vpop.xlane.xlu1 %675 }
 0x623   :  { %v680_v55 = vsub.f32 %v672_v42, %v676_v54 }
 0x625   :  { %v682_v56 = vmul.f32 1.442695, %v680_v55 }
 0x627   :  { %6027 = vpow2.f32 %v682_v56 }
 0x628   :  { %v697_v8 = vpop.permute.xlu0 %696 }
 0x62d   :  { %v6028_v57 = vpop.eup %6027 }
 0x62e   :  { %v686_v58 = vsel %vm121_vm1, %v6028_v57, 0.0 }
 0x62f   :  { %687 = vadd.xlane.f32.xlu2 %v686_v58 }
 0x647   :  { %557 = vrot.lane.b32.xlu2 %v6425_v18, %s7836_s22  ;;  %s7879_s22 = sld [smem:[#allocation7_spill]] }
 0x67c   :  { %v554_v60 = vpop.f32.mrf.mxu3 }
 0x67d   :  { %5593 = vmatmul.msk.f32.vlgmr.msrb.gmra.mxu2 %vm121_vm1, %v554_v60  ;;  %v71_v60 = vld [vmem:[%s7827_s9 + $0x10] sm:$0xff] }
 0x684   :  { %v667_v61 = vpop.f32.mrf.mxu3 }
 0x685   :  { %v671_v62 = vmul.f32 0.35355338, %v667_v61 }
 0x687   :  { %v673_v63 = vadd.f32 %v6450_v37, %v671_v62 }
 0x689   :  { %v677_v0 = vsel %vm121_vm1, %v673_v63, -inf }
 0x68a   :  { %678 = vmax.xlane.f32.xlu1 %v677_v0 }
 0x695   :  { %v526_v1 = vpop.xlane.xlu2 %525 }
 0x696   :  { %6029 = vrcp.f32 %v526_v1 }
 0x69c   :  { %v6030_v3 = vpop.eup %6029 }
 0x69d   :  { %v530_v5 = vmul.f32 %v6030_v3, %v6026_v53  ;;  %v447_v53 = vadd.f32 %v6503_v34, %v417_v26  ;;  %v70_v34 = vld [vmem:[%s7827_s9 + $0x8] sm:$0xff] }
 0x6a2   :  { %v688_v2 = vpop.xlane.xlu2 %687 }
 0x6a3   :  { %722 = vrot.lane.b32.xlu1 %v6425_v18, %s7834_s0  ;;  %6031 = vrcp.f32 %v688_v2 }
 0x6a9   :  { %v6032_v9 = vpop.eup %6031 }
 0x6aa   :  { %v558_v6 = vpop.permute.xlu2 %557  ;;  %v694_v10 = vmul.f32 %v6032_v9, %v6028_v57 }
 0x6ab   :  { %578 = vmatpush.msrb.mxu1 %v558_v6 }
 0x6ac   :  { %5592 = vmatmul.msk.f32.vlgmr.msrb.gmra.mxu1 %vm121_vm1, %v530_v5 }
 0x6ad   :  { %717 = vmatpush.msra.mxu1 %v697_v8  ;;  %v5959_v8 = vld [vmem:[%s7825_s7] ss:$0 sm:$0xff] }
 0x6af   :  { %880 = vmatpush.msrb.mxu1 %v72_v59 }
 0x6b1   :  { %881 = vmatpush.msrb.mxu1 %v71_v60 }
 0x6b3   :  { %882 = vmatpush.msrb.mxu1 %v70_v34 }
 0x6b4   :  { %5599 = vmatmul.msk.f32.vlgmr.msra.gmra.mxu1 %vm121_vm1, %v694_v10 }
 0x6fd   :  { %v679_v13 = vpop.xlane.xlu1 %678 }
 0x6fe   :  { %v681_v14 = vsub.f32 %v673_v63, %v679_v13  ;;  %v5960_v13 = vld [vmem:[%s7826_s8] ss:$0 sm:$0xff] }
 0x700   :  { %v684_v15 = vmul.f32 1.442695, %v681_v14  ;;  %v606_v27 = vpop.f32.mrf.mxu2 }
 0x701   :  { %v612_v29 = vadd.f32 %v606_v27, %v444_v28 }
 0x702   :  { %6033 = vpow2.f32 %v684_v15 }
 0x708   :  { %v6034_v16 = vpop.eup %6033 }
 0x709   :  { %v689_v18 = vsel %vm121_vm1, %v6034_v16, 0.0 }
 0x70a   :  { %690 = vadd.xlane.f32.xlu2 %v689_v18 }
 0x715   :  { %v723_v19 = vpop.permute.xlu1 %722 }
 0x716   :  { %743 = vmatpush.msrb.mxu0 %v723_v19  ;;  %v81_v19 = vld [vmem:[%s7829_s11 + $0x38] sm:$0xff] }
 0x717   :  { %911 = vmatpush.msra.mxu2 %v81_v19 }
 0x722   :  { %849 = vperm.xlu2 %5953, %v55_v32  }
 0x729   :  { %v580_v20 = vpop.f32.mrf.mxu1 }
 0x72a   :  { %5594 = vmatmul.msk.f32.gmra.mxu2 %vm121_vm1, %v580_v20  ;;  %v80_v20 = vld [vmem:[%s7829_s11 + $0x30] sm:$0xff] }
 0x72b   :  { %912 = vmatpush.msra.mxu2 %v80_v20 }
 0x731   :  { %v719_v21 = vpop.f32.mrf.mxu1 }
 0x732   :  { %5601 = vmatmul.msk.f32.vlgmr.msrb.gmra.mxu3 %vm121_vm1, %v719_v21  ;;  %v79_v21 = vld [vmem:[%s7829_s11 + $0x28] sm:$0xff] }
 0x733   :  { %913 = vmatpush.msra.mxu2 %v79_v21  ;;  %v5963_v21 = vld [vmem:[%s7831_s13] ss:$0 sm:$0xff] }
 0x77d   :  { %v691_v22 = vpop.xlane.xlu2 %690 }
 0x77e   :  { %6035 = vrcp.f32 %v691_v22  ;;  %v78_v22 = vld [vmem:[%s7829_s11 + $0x20] sm:$0xff] }
 0x77f   :  { %6037 = vrcp.f32 %v6290_v40  ;;  %914 = vmatpush.msra.mxu2 %v78_v22 }
 0x784   :  { %v6036_v23 = vpop.eup %6035 }
 0x785   :  { %v695_v24 = vmul.f32 %v6036_v23, %v6034_v16  ;;  %v6038_v42 = vpop.eup %6037  ;;  %v6571_v15 = vpop.permute.xlu2 %849  ;;  %v77_v23 = vld [vmem:[%s7829_s11 + $0x18] sm:$0xff] }
 0x786   :  { %v793_v43 = vmul.f32 32.0, %v6038_v42  ;;  %vm797_vm2 = vweird.f32 %v6038_v42  ;;  %915 = vmatpush.msra.mxu2 %v77_v23 }
 0x787   :  { %5600 = vmatmul.msk.f32.vlgmr.msrb.gmra.mxu0 %vm121_vm1, %v695_v24 }
 0x788   :  { %v794_v44 = vsub.f32 1.0, %v793_v43 }
 0x7ad   :  { %v609_v52 = vpop.f32.mrf.mxu2 }
 0x7ae   :  { %v613_v7 = vadd.f32 %v609_v52, %v447_v53  ;;  %v5962_v53 = vld [vmem:[%s7830_s12] ss:$0 sm:$0xff] }
 0x7b5   :  { %v771_v31 = vpop.f32.mrf.mxu3 }
 0x7b6   :  { %v777_v33 = vadd.f32 %v771_v31, %v612_v29  ;;  %v76_v29 = vld [vmem:[%s7829_s11 + $0x10] sm:$0xff]  ;;  %v74_v31 = vld [vmem:[%s7829_s11] sm:$0xff] }
 0x7b7   :  { %916 = vmatpush.msra.mxu2 %v76_v29 }
 0x7b8   :  { %v782_v35 = vadd.f32 %v5958_v30, %v777_v33  ;;  %v5961_v33 = vld [vmem:[%s7828_s10] ss:$0 sm:$0xff] }
 0x7ba   :  { %v784_v36 = vadd.f32 %v782_v35, %v6390_v4  ;;  %v795_v4 = vmul.f32 %v6038_v42, %v794_v44 }
 0x7bc   :  { %v786_v38 = vsel %vm88_vm0, %v784_v36, 0.0  ;;  %v796_v45 = vadd.f32 %v6038_v42, %v795_v4 }
 0x7bd   :  { %787 = vadd.xlane.f32.xlu0 %v786_v38 }
 0x7be   :  { %v6545_v46 = vsel %vm797_vm2, %v6038_v42, %v796_v45 }
 0x804   :  { %v745_v39 = vpop.f32.mrf.mxu0 }
 0x805   :  { %5602 = vmatmul.msk.f32.gmra.mxu3 %vm121_vm1, %v745_v39 }
 0x830   :  { %v788_v47 = vpop.xlane.xlu0 %787 }
 0x831   :  { %v799_v48 = vmul.f32 %v6545_v46, %v788_v47 }
 0x833   :  { %v801_v49 = vsub.f32 %v784_v36, %v799_v48 }
 0x835   :  { %v803_v50 = vmul.f32 %v801_v49, %v801_v49 }
 0x837   :  { %v805_v51 = vsel %vm88_vm0, %v803_v50, 0.0 }
 0x838   :  { %806 = vadd.xlane.f32.xlu1 %v805_v51 }
 0x888   :  { %v774_v54 = vpop.f32.mrf.mxu3 }
 0x889   :  { %v778_v55 = vadd.f32 %v774_v54, %v613_v7 }
 0x88b   :  { %v783_v56 = vadd.f32 %v5958_v30, %v778_v55  ;;  %v75_v30 = vld [vmem:[%s7829_s11 + $0x8] sm:$0xff] }
 0x88c   :  { %917 = vmatpush.msra.mxu2 %v75_v30 }
 0x88d   :  { %v785_v57 = vadd.f32 %v783_v56, %v6414_v11  ;;  %v69_v11 = vld [vmem:[%s7827_s9] sm:$0xff] }
 0x88e   :  { %883 = vmatpush.msrb.mxu1 %v69_v11  ;;  %918 = vmatpush.msra.mxu2 %v74_v31 }
 0x88f   :  { %v789_v58 = vsel %vm88_vm0, %v785_v57, 0.0 }
 0x890   :  { %790 = vadd.xlane.f32.xlu0 %v789_v58 }
 0x8a4   :  { %854 = vperm.xlu0 %5954, %v56_v17  }
 0x8ab   :  { %v807_v61 = vpop.xlane.xlu1 %806 }
 0x8ac   :  { %v811_v62 = vmul.f32 %v807_v61, %v6545_v46 }
 0x8ae   :  { %v813_v63 = vadd.f32 1e-05, %v811_v62 }
 0x8b0   :  { %6039 = vrsqrt.f32 %v813_v63  ;;  %vm821_vm4 = vweird.f32 %v813_v63 }
 0x8b6   :  { %v6040_v0 = vpop.eup %6039 }
 0x8b7   :  { %v816_v1 = vmul.f32 %v6040_v0, %v813_v63  ;;  %vm822_vm3 = vweird.f32 %v6040_v0 }
 0x8b8   :  { %vm823_vm5 = vmor %vm821_vm4, %vm822_vm3 }
 0x8b9   :  { %v817_v2 = vmul.f32 %v6040_v0, %v816_v1 }
 0x8bb   :  { %v818_v3 = vmul.f32 0.5, %v817_v2 }
 0x8bd   :  { %v819_v5 = vsub.f32 1.5, %v818_v3  ;;  %v5610_v3 = vld [vmem:[%s7821_s3 + $0x38] sm:$0xff] }
 0x8be   :  { %1045 = vmatpush.msra.mxu0 %v5610_v3 }
 0x8bf   :  { %v820_v6 = vmul.f32 %v6040_v0, %v819_v5  ;;  %v5609_v5 = vld [vmem:[%s7821_s3 + $0x30] sm:$0xff] }
 0x8c0   :  { %1046 = vmatpush.msra.mxu0 %v5609_v5 }
 0x8c1   :  { %v824_v9 = vsel %vm823_vm5, %v6040_v0, %v820_v6  ;;  %v5608_v6 = vld [vmem:[%s7821_s3 + $0x28] sm:$0xff] }
 0x8c2   :  { %v835_v10 = vmul.f32 %v824_v9, %v801_v49  ;;  %1047 = vmatpush.msra.mxu0 %v5608_v6 }
 0x8c4   :  { %v840_v14 = vmul.f32 %v5959_v8, %v835_v10 }
 0x8c6   :  { %v845_v16 = vadd.f32 %v5960_v13, %v840_v14 }
 0x8c8   :  { %v857_v18 = vmul.f32 %v6571_v15, %v845_v16 }
 0x8ca   :  { %5603 = vmatmul.msk.f32.vlgmr.msrb.gmra.mxu1 %vm88_vm0, %v857_v18 }
 0x903   :  { %v791_v24 = vpop.xlane.xlu0 %790 }
 0x904   :  { %v800_v25 = vmul.f32 %v6545_v46, %v791_v24  ;;  %v5964_v24 = vld [vmem:[%s7832_s14] ss:$0 sm:$0xff] }
 0x906   :  { %v802_v26 = vsub.f32 %v785_v57, %v800_v25 }
 0x908   :  { %v804_v27 = vmul.f32 %v802_v26, %v802_v26 }
 0x90a   :  { %v808_v28 = vsel %vm88_vm0, %v804_v27, 0.0 }
 0x90b   :  { %809 = vadd.xlane.f32.xlu2 %v808_v28 }
 0x916   :  { %v6609_v50 = vpop.permute.xlu0 %854 }
 0x947   :  { %v885_v35 = vpop.f32.mrf.mxu1 }
 0x948   :  { %v886_v36 = vadd.f32 %v5961_v33, %v885_v35  ;;  %v5965_v35 = vld [vmem:[%s7822_s4 + $0x1] ss:$0 sm:$0xff] }
 0x94a   :  { %v891_v38 = vmax.f32 %v886_v36, 0.0 }
 0x94c   :  { %5605 = vmatmul.msk.f32.vlgmr.msra.gmra.mxu2 %vm896_vm6, %v891_v38 }
 0x97e   :  { %v810_v39 = vpop.xlane.xlu2 %809 }
 0x97f   :  { %v812_v40 = vmul.f32 %v810_v39, %v6545_v46 }
 0x981   :  { %v814_v32 = vadd.f32 1e-05, %v812_v40 }
 0x983   :  { %6041 = vrsqrt.f32 %v814_v32  ;;  %vm831_vm8 = vweird.f32 %v814_v32 }
 0x989   :  { %v6042_v41 = vpop.eup %6041 }
 0x98a   :  { %v826_v42 = vmul.f32 %v6042_v41, %v814_v32  ;;  %vm832_vm7 = vweird.f32 %v6042_v41 }
 0x98b   :  { %vm833_vm9 = vmor %vm831_vm8, %vm832_vm7 }
 0x98c   :  { %v827_v43 = vmul.f32 %v6042_v41, %v826_v42 }
 0x98e   :  { %v828_v44 = vmul.f32 0.5, %v827_v43 }
 0x990   :  { %v829_v4 = vsub.f32 1.5, %v828_v44 }
 0x992   :  { %v830_v45 = vmul.f32 %v6042_v41, %v829_v4 }
 0x994   :  { %v834_v47 = vsel %vm833_vm9, %v6042_v41, %v830_v45 }
 0x995   :  { %v836_v48 = vmul.f32 %v834_v47, %v802_v26 }
 0x997   :  { %v841_v49 = vmul.f32 %v5959_v8, %v836_v48  ;;  %v5607_v8 = vld [vmem:[%s7821_s3 + $0x20] sm:$0xff] }
 0x998   :  { %1048 = vmatpush.msra.mxu0 %v5607_v8 }
 0x999   :  { %v846_v51 = vadd.f32 %v5960_v13, %v841_v49 }
 0x99b   :  { %v858_v52 = vmul.f32 %v6609_v50, %v846_v51 }
 0x99d   :  { %5604 = vmatmul.msk.f32.gmra.mxu1 %vm88_vm0, %v858_v52 }
 0x9cf   :  { %v920_v7 = vpop.f32.mrf.mxu2 }
 0x9d0   :  { %v921_v54 = vadd.f32 %v5962_v53, %v920_v7 }
 0x9d2   :  { %v926_v55 = vadd.f32 %v921_v54, %v857_v18 }
 0x9d4   :  { %v928_v56 = vsel %vm88_vm0, %v926_v55, 0.0 }
 0x9d5   :  { %929 = vadd.xlane.f32.xlu1 %v928_v56 }
 0xa1a   :  { %v888_v57 = vpop.f32.mrf.mxu1 }
 0xa1b   :  { %v889_v58 = vadd.f32 %v5961_v33, %v888_v57 }
 0xa1d   :  { %v892_v59 = vmax.f32 %v889_v58, 0.0 }
 0xa1f   :  { %5606 = vmatmul.msk.f32.gmra.mxu2 %vm896_vm6, %v892_v59 }
 0xa48   :  { %v930_v60 = vpop.xlane.xlu1 %929 }
 0xa49   :  { %v934_v34 = vmul.f32 %v930_v60, %v6545_v46 }
 0xa4b   :  { %v936_v11 = vsub.f32 %v926_v55, %v934_v34 }
 0xa4d   :  { %v938_v61 = vmul.f32 %v936_v11, %v936_v11 }
 0xa4f   :  { %v940_v62 = vsel %vm88_vm0, %v938_v61, 0.0 }
 0xa50   :  { %941 = vadd.xlane.f32.xlu1 %v940_v62 }
 0xaa2   :  { %v923_v63 = vpop.f32.mrf.mxu2 }
 0xaa3   :  { %v924_v0 = vadd.f32 %v5962_v53, %v923_v63 }
 0xaa5   :  { %v927_v1 = vadd.f32 %v924_v0, %v858_v52 }
 0xaa7   :  { %v931_v2 = vsel %vm88_vm0, %v927_v1, 0.0 }
 0xaa8   :  { %932 = vadd.xlane.f32.xlu1 %v931_v2 }
 0xac3   :  { %v942_v9 = vpop.xlane.xlu1 %941 }
 0xac4   :  { %v946_v10 = vmul.f32 %v942_v9, %v6545_v46 }
 0xac6   :  { %v948_v13 = vadd.f32 1e-05, %v946_v10 }
 0xac8   :  { %6043 = vrsqrt.f32 %v948_v13  ;;  %vm956_vm11 = vweird.f32 %v948_v13 }
 0xace   :  { %v6044_v14 = vpop.eup %6043 }
 0xacf   :  { %v951_v16 = vmul.f32 %v6044_v14, %v948_v13  ;;  %vm957_vm10 = vweird.f32 %v6044_v14 }
 0xad0   :  { %vm958_vm12 = vmor %vm956_vm11, %vm957_vm10 }
 0xad1   :  { %v952_v18 = vmul.f32 %v6044_v14, %v951_v16 }
 0xad3   :  { %v953_v17 = vmul.f32 0.5, %v952_v18 }
 0xad5   :  { %v954_v19 = vsub.f32 1.5, %v953_v17 }
 0xad7   :  { %v955_v20 = vmul.f32 %v6044_v14, %v954_v19 }
 0xad9   :  { %v959_v22 = vsel %vm958_vm12, %v6044_v14, %v955_v20 }
 0xada   :  { %v970_v23 = vmul.f32 %v959_v22, %v936_v11 }
 0xadc   :  { %v975_v25 = vmul.f32 %v5963_v21, %v970_v23 }
 0xade   :  { %v980_v26 = vadd.f32 %v5964_v24, %v975_v25 }
 0xae0   :  { %v6641_v27 = vmul.f32 %v980_v26, %v6571_v15 }
 0xae2   :  { %5635 = vmatmul.msk.f32.vlgmr.msra.gmra.mxu0 %vm88_vm0, %v6641_v27 }
 0xb1b   :  { %v933_v28 = vpop.xlane.xlu1 %932 }
 0xb1c   :  { %v935_v29 = vmul.f32 %v933_v28, %v6545_v46 }
 0xb1e   :  { %v937_v30 = vsub.f32 %v927_v1, %v935_v29 }
 0xb20   :  { %v939_v31 = vmul.f32 %v937_v30, %v937_v30 }
 0xb22   :  { %v943_v33 = vsel %vm88_vm0, %v939_v31, 0.0 }
 0xb23   :  { %944 = vadd.xlane.f32.xlu1 %v943_v33 }
 0xb5f   :  { %v1050_v36 = vpop.f32.mrf.mxu0 }
 0xb60   :  { %v6650_v38 = vadd.f32 %v5965_v35, %v1050_v36 }
 0xb62   :  { %1188 = vrot.lane.b32.xlu2 %v6650_v38, %s7850_s18  ;;  %1057 = vrot.lane.b32.xlu0 %v6650_v38, %s7852_s16 }
 0xb63   :  { %1190 = vrot.lane.b32.xlu1 %v6650_v38, %s7854_s17 }
 0xb96   :  { %v945_v39 = vpop.xlane.xlu1 %944 }
 0xb97   :  { %v947_v40 = vmul.f32 %v945_v39, %v6545_v46 }
 0xb99   :  { %v949_v32 = vadd.f32 1e-05, %v947_v40 }
 0xb9b   :  { %6045 = vrsqrt.f32 %v949_v32  ;;  %vm966_vm14 = vweird.f32 %v949_v32 }
 0xba1   :  { %v6046_v41 = vpop.eup %6045 }
 0xba2   :  { %v961_v42 = vmul.f32 %v6046_v41, %v949_v32  ;;  %vm967_vm13 = vweird.f32 %v6046_v41  ;;  %v5612_v32 = vld [vmem:[%s7823_s5 + $0x20] sm:$0xff] }
 0xba3   :  { %vm968_vm15 = vmor %vm966_vm14, %vm967_vm13 }
 0xba4   :  { %v962_v43 = vmul.f32 %v6046_v41, %v961_v42 }
 0xba6   :  { %v963_v44 = vmul.f32 0.5, %v962_v43 }
 0xba8   :  { %v964_v4 = vsub.f32 1.5, %v963_v44 }
 0xbaa   :  { %v965_v45 = vmul.f32 %v6046_v41, %v964_v4 }
 0xbac   :  { %v969_v47 = vsel %vm968_vm15, %v6046_v41, %v965_v45  ;;  %v5613_v41 = vld [vmem:[%s7823_s5 + $0x28] sm:$0xff] }
 0xbad   :  { %v971_v48 = vmul.f32 %v969_v47, %v937_v30 }
 0xbaf   :  { %v976_v49 = vmul.f32 %v5963_v21, %v971_v48 }
 0xbb1   :  { %v981_v51 = vadd.f32 %v5964_v24, %v976_v49 }
 0xbb3   :  { %v6660_v52 = vmul.f32 %v981_v51, %v6609_v50  ;;  %v6722_v51 = vld [vmem:[%s7819_s1] ss:$0 sm:$0xff] }
 0xbb5   :  { %5636 = vmatmul.msk.f32.gmra.mxu0 %vm88_vm0, %v6660_v52 }
 0xbbc   :  { %v1189_v54 = vpop.permute.xlu2 %1188 }
 0xbd4   :  { %v1058_v53 = vpop.permute.xlu0 %1057 }
 0xbd5   :  { %v1191_v7 = vpop.permute.xlu1 %1190  ;;  %5637 = vmatpush.xpose.msk.msra.mxu3 %vm121_vm1, %v1058_v53 }
 0xbd8   :  { %5638 = vmatmul.msk.f32.vlgmr.msra.gmra.mxu3 %vm121_vm1, %v6650_v38 }
 0xbd9   :  { %5643 = vmatpush.xpose.msk.msrb.mxu3 %vm121_vm1, %v1191_v7 }
 0xbdd   :  { %1343 = vmatpush.msra.mxu3 %v5613_v41 }
 0xbe0   :  { %5644 = vmatmul.msk.f32.vlgmr.msrb.gmra.mxu3 %vm121_vm1, %v1189_v54 }
 0xc32   :  { %v1053_v55 = vpop.f32.mrf.mxu0 }
 0xc33   :  { %v6669_v56 = vadd.f32 %v5965_v35, %v1053_v55 }
 0xc35   :  { %1084 = vrot.lane.b32.xlu0 %v6669_v56, %s7852_s16 }
 0xc5b   :  { %v1080_v57 = vpop.f32.mrf.mxu3 }
 0xc5c   :  { %v1110_v58 = vmul.f32 0.35355338, %v1080_v57 }
 0xc5e   :  { %v1112_v59 = vadd.f32 %v6421_v12, %v1110_v58 }
 0xc60   :  { %v1114_v60 = vsel %vm121_vm1, %v1112_v59, -inf }
 0xc61   :  { %1115 = vmax.xlane.f32.xlu0 %v1114_v60 }
 0xc63   :  { %v1213_v34 = vpop.f32.mrf.mxu3 }
 0xc64   :  { %v1244_v11 = vmul.f32 0.35355338, %v1213_v34 }
 0xc66   :  { %v1246_v61 = vadd.f32 %v6421_v12, %v1244_v11 }
 0xc68   :  { %v1248_v62 = vsel %vm121_vm1, %v1246_v61, -inf }
 0xc69   :  { %1249 = vmax.xlane.f32.xlu2 %v1248_v62 }
 0xc75   :  { %1218 = vrot.lane.b32.xlu0 %v6669_v56, %s7854_s17 }
 0xc7d   :  { %1270 = vrot.lane.b32.xlu0 %v6650_v38, %s7844_s27 }
 0xc85   :  { %1382 = vrot.lane.b32.xlu0 %v6650_v38, %s7846_s26 }
 0xca7   :  { %v1085_v63 = vpop.permute.xlu0 %1084 }
 0xca8   :  { %5639 = vmatpush.xpose.msk.msra.mxu1 %vm121_vm1, %v1085_v63 }
 0xcab   :  { %5640 = vmatmul.msk.f32.vlgmr.msra.gmra.mxu1 %vm121_vm1, %v6669_v56 }
 0xcd4   :  { %v1116_v0 = vpop.xlane.xlu0 %1115 }
 0xcd5   :  { %v1120_v12 = vsub.f32 %v1112_v59, %v1116_v0 }
 0xcd7   :  { %v1122_v1 = vmul.f32 1.442695, %v1120_v12 }
 0xcd9   :  { %6047 = vpow2.f32 %v1122_v1 }
 0xcdc   :  { %v1250_v2 = vpop.xlane.xlu2 %1249 }
 0xcdd   :  { %v1254_v3 = vsub.f32 %v1246_v61, %v1250_v2 }
 0xcdf   :  { %v6048_v5 = vpop.eup %6047  ;;  %v1256_v6 = vmul.f32 1.442695, %v1254_v3 }
 0xce0   :  { %v1126_v8 = vsel %vm121_vm1, %v6048_v5, 0.0 }
 0xce1   :  { %6049 = vpow2.f32 %v1256_v6  ;;  %1127 = vadd.xlane.f32.xlu1 %v1126_v8 }
 0xce7   :  { %v6050_v9 = vpop.eup %6049  ;;  %v1219_v10 = vpop.permute.xlu0 %1218 }
 0xce8   :  { %5645 = vmatpush.xpose.msk.msrb.mxu1 %vm121_vm1, %v1219_v10  ;;  %v1260_v13 = vsel %vm121_vm1, %v6050_v9, 0.0 }
 0xce9   :  { %1261 = vadd.xlane.f32.xlu2 %v1260_v13 }
 0xcec   :  { %1372 = vmatpush.msra.mxu1 %v5612_v32 }
 0xcef   :  { %v1271_v22 = vpop.permute.xlu0 %1270 }
 0xcf7   :  { %v1383_v26 = vpop.permute.xlu0 %1382 }
 0xcfa   :  { %1136 = vrot.lane.b32.xlu1 %v6650_v38, %s7848_s30 }
 0xd01   :  { %1216 = vrot.lane.b32.xlu2 %v6669_v56, %s7850_s18 }
 0xd02   :  { %1380 = vrot.lane.b32.xlu1 %v6650_v38, %s7866_s28 }
 0xd0a   :  { %1162 = vrot.lane.b32.xlu1 %v6669_v56, %s7848_s30 }
 0xd28   :  { %v1107_v14 = vpop.f32.mrf.mxu1 }
 0xd29   :  { %v1111_v16 = vmul.f32 0.35355338, %v1107_v14 }
 0xd2b   :  { %v1113_v18 = vadd.f32 %v6450_v37, %v1111_v16 }
 0xd2d   :  { %v1117_v17 = vsel %vm121_vm1, %v1113_v18, -inf }
 0xd2e   :  { %1118 = vmax.xlane.f32.xlu0 %v1117_v17 }
 0xd54   :  { %v1128_v20 = vpop.xlane.xlu1 %1127 }
 0xd55   :  { %6051 = vrcp.f32 %v1128_v20 }
 0xd5b   :  { %v6052_v23 = vpop.eup %6051 }
 0xd5c   :  { %v1262_v19 = vpop.xlane.xlu2 %1261  ;;  %v1134_v24 = vmul.f32 %v6052_v23, %v6048_v5 }
 0xd5d   :  { %6053 = vrcp.f32 %v1262_v19 }
 0xd63   :  { %v6054_v28 = vpop.eup %6053 }
 0xd64   :  { %v1217_v21 = vpop.permute.xlu2 %1216  ;;  %v1268_v29 = vmul.f32 %v6054_v28, %v6050_v9 }
 0xd65   :  { %5646 = vmatmul.msk.f32.vlgmr.msrb.gmra.mxu1 %vm121_vm1, %v1217_v21 }
 0xd6c   :  { %v1137_v25 = vpop.permute.xlu1 %1136 }
 0xd6d   :  { %1157 = vmatpush.msrb.mxu2 %v1137_v25 }
 0xd6e   :  { %5641 = vmatmul.msk.f32.vlgmr.msrb.gmra.mxu2 %vm121_vm1, %v1134_v24 }
 0xd6f   :  { %1291 = vmatpush.msra.mxu2 %v1271_v22 }
 0xd71   :  { %5653 = vmatpush.xpose.msk.msrb.mxu2 %vm121_vm1, %v1383_v26  ;;  %v5614_v26 = vld [vmem:[%s7823_s5 + $0x30] sm:$0xff] }
 0xd72   :  { %1535 = vmatpush.msrb.mxu3 %v5614_v26 }
 0xd74   :  { %v1381_v30 = vpop.permute.xlu1 %1380 }
 0xd76   :  { %5647 = vmatmul.msk.f32.vlgmr.msra.gmra.mxu2 %vm121_vm1, %v1268_v29 }
 0xd7c   :  { %v1163_v31 = vpop.permute.xlu1 %1162 }
 0xd7d   :  { %1183 = vmatpush.msrb.mxu0 %v1163_v31  ;;  %v6763_v31 = vld [vmem:[%s7819_s1 + $0x1] ss:$0 sm:$0xff] }
 0xd7e   :  { %5654 = vmatmul.msk.f32.vlgmr.msrb.gmra.mxu2 %vm121_vm1, %v1381_v30 }
 0xda1   :  { %v1119_v33 = vpop.xlane.xlu0 %1118 }
 0xda2   :  { %v1121_v35 = vsub.f32 %v1113_v18, %v1119_v33 }
 0xda4   :  { %v1124_v36 = vmul.f32 1.442695, %v1121_v35 }
 0xda6   :  { %6055 = vpow2.f32 %v1124_v36 }
 0xdac   :  { %v6056_v39 = vpop.eup %6055 }
 0xdad   :  { %v1129_v40 = vsel %vm121_vm1, %v6056_v39, 0.0 }
 0xdae   :  { %1130 = vadd.xlane.f32.xlu2 %v1129_v40 }
 0xdc6   :  { %1410 = vrot.lane.b32.xlu2 %v6669_v56, %s7846_s26  ;;  %s7875_s26 = smov 120  }
 0xde2   :  { %v1241_v42 = vpop.f32.mrf.mxu1 }
 0xde3   :  { %v1245_v43 = vmul.f32 0.35355338, %v1241_v42 }
 0xde5   :  { %v1247_v44 = vadd.f32 %v6450_v37, %v1245_v43 }
 0xde7   :  { %v1251_v4 = vsel %vm121_vm1, %v1247_v44, -inf }
 0xde8   :  { %1252 = vmax.xlane.f32.xlu1 %v1251_v4 }
 0xdf1   :  { %v1159_v45 = vpop.f32.mrf.mxu2 }
 0xdf2   :  { %5651 = vmatmul.msk.f32.vlgmr.msra.gmra.mxu1 %vm121_vm1, %v1159_v45 }
 0xdf9   :  { %v1293_v47 = vpop.f32.mrf.mxu2 }
 0xdfa   :  { %5649 = vmatmul.msk.f32.vlgmr.msra.gmra.mxu3 %vm121_vm1, %v1293_v47 }
 0xe01   :  { %1408 = vrot.lane.b32.xlu1 %v6669_v56, %s7866_s28  ;;  %v1405_v48 = vpop.f32.mrf.mxu2 }
 0xe02   :  { %v1436_v49 = vmul.f32 0.35355338, %v1405_v48 }
 0xe04   :  { %v1438_v37 = vadd.f32 %v6722_v51, %v1436_v49 }
 0xe06   :  { %v1440_v53 = vsel %vm121_vm1, %v1438_v37, -inf }
 0xe07   :  { %1441 = vmax.xlane.f32.xlu0 %v1440_v53 }
 0xe09   :  { %1545 = vrot.lane.b32.xlu1 %v6650_v38, %s7867_s2 }
 0xe11   :  { %1575 = vrot.lane.b32.xlu1 %v6669_v56, %s7868_s21 }
 0xe1b   :  { %1296 = vrot.lane.b32.xlu0 %v6669_v56, %s7844_s27  ;;  %s7876_s27 = smov 64  }
 0xe21   :  { %v1131_v7 = vpop.xlane.xlu2 %1130 }
 0xe22   :  { %6057 = vrcp.f32 %v1131_v7 }
 0xe28   :  { %v6058_v54 = vpop.eup %6057 }
 0xe29   :  { %v1135_v55 = vmul.f32 %v6058_v54, %v6056_v39  ;;  %v1411_v1 = vpop.permute.xlu2 %1410 }
 0xe2b   :  { %5642 = vmatmul.msk.f32.vlgmr.msrb.gmra.mxu0 %vm121_vm1, %v1135_v55 }
 0xe5b   :  { %v1253_v57 = vpop.xlane.xlu1 %1252 }
 0xe5c   :  { %v1255_v58 = vsub.f32 %v1247_v44, %v1253_v57 }
 0xe5e   :  { %v1258_v59 = vmul.f32 1.442695, %v1255_v58 }
 0xe60   :  { %6059 = vpow2.f32 %v1258_v59 }
 0xe66   :  { %v6060_v60 = vpop.eup %6059 }
 0xe67   :  { %v1263_v34 = vsel %vm121_vm1, %v6060_v60, 0.0 }
 0xe68   :  { %1264 = vadd.xlane.f32.xlu2 %v1263_v34 }
 0xe6f   :  { %v6750_v20 = vpop.f32.mrf.mxu1 }
 0xe73   :  { %v1409_v3 = vpop.permute.xlu1 %1408 }
 0xe7a   :  { %v1442_v11 = vpop.xlane.xlu0 %1441 }
 0xe7b   :  { %v1446_v61 = vsub.f32 %v1438_v37, %v1442_v11  ;;  %v1546_v8 = vpop.permute.xlu1 %1545 }
 0xe7d   :  { %v1448_v62 = vmul.f32 1.442695, %v1446_v61 }
 0xe7f   :  { %6061 = vpow2.f32 %v1448_v62 }
 0xe80   :  { %1547 = vrot.lane.b32.xlu2 %v6650_v38, %s7868_s21 }
 0xe83   :  { %v1576_v14 = vpop.permute.xlu1 %1575 }
 0xe85   :  { %v6062_v63 = vpop.eup %6061 }
 0xe86   :  { %v1452_v0 = vsel %vm121_vm1, %v6062_v63, 0.0 }
 0xe87   :  { %1453 = vadd.xlane.f32.xlu0 %v1452_v0 }
 0xe88   :  { %1462 = vrot.lane.b32.xlu2 %v6650_v38, %s7869_s23 }
 0xe8d   :  { %v1297_v12 = vpop.permute.xlu0 %1296 }
 0xe8e   :  { %1317 = vmatpush.msra.mxu0 %v1297_v12 }
 0xe90   :  { %5655 = vmatpush.xpose.msk.msrb.mxu0 %vm121_vm1, %v1411_v1  ;;  %1573 = vrot.lane.b32.xlu2 %v6669_v56, %s7867_s2 }
 0xea8   :  { %v1185_v2 = vpop.f32.mrf.mxu0 }
 0xea9   :  { %5652 = vmatmul.msk.f32.gmra.mxu1 %vm121_vm1, %v1185_v2  ;;  %v5615_v2 = vld [vmem:[%s7823_s5 + $0x38] sm:$0xff] }
 0xedb   :  { %v1265_v5 = vpop.xlane.xlu2 %1264 }
 0xedc   :  { %6063 = vrcp.f32 %v1265_v5 }
 0xee2   :  { %v6064_v6 = vpop.eup %6063 }
 0xee3   :  { %v1269_v9 = vmul.f32 %v6064_v6, %v6060_v60  ;;  %v1548_v10 = vpop.permute.xlu2 %1547 }
 0xee4   :  { %5661 = vmatpush.xpose.msk.msrb.mxu1 %vm121_vm1, %v1548_v10 }
 0xee5   :  { %5648 = vmatmul.msk.f32.vlgmr.msra.gmra.mxu0 %vm121_vm1, %v1269_v9 }
 0xee7   :  { %5662 = vmatmul.msk.f32.vlgmr.msrb.gmra.mxu1 %vm121_vm1, %v1546_v8  ;;  %v1345_v8 = vpop.f32.mrf.mxu3 }
 0xeeb   :  { %v1463_v13 = vpop.permute.xlu2 %1462 }
 0xeec   :  { %1483 = vmatpush.msra.mxu2 %v1463_v13  ;;  %v1375_v13 = vadd.f32 %v6750_v20, %v1345_v8 }
 0xeed   :  { %5656 = vmatmul.msk.f32.vlgmr.msrb.gmra.mxu0 %vm121_vm1, %v1409_v3 }
 0xeee   :  { %5663 = vmatpush.xpose.msk.msrb.mxu2 %vm121_vm1, %v1576_v14 }
 0xef3   :  { %v1574_v19 = vpop.permute.xlu2 %1573 }
 0xefa   :  { %v1454_v16 = vpop.xlane.xlu0 %1453 }
 0xefb   :  { %6065 = vrcp.f32 %v1454_v16  ;;  %v5966_v16 = vld [vmem:[%s7824_s6 + $0x1] ss:$0 sm:$0xff] }
 0xf01   :  { %v6066_v18 = vpop.eup %6065 }
 0xf02   :  { %v1460_v17 = vmul.f32 %v6066_v18, %v6062_v63 }
 0xf04   :  { %5657 = vmatmul.msk.f32.vlgmr.msra.gmra.mxu2 %vm121_vm1, %v1460_v17 }
 0xf05   :  { %1700 = vmatpush.msra.mxu2 %v5615_v2  ;;  %v5968_v2 = vld [vmem:[%s7826_s8 + $0x1] ss:$0 sm:$0xff] }
 0xf0c   :  { %5664 = vmatmul.msk.f32.vlgmr.msrb.gmra.mxu2 %vm121_vm1, %v1574_v19 }
 0xf26   :  { %v6752_v21 = vpop.f32.mrf.mxu1 }
 0xf62   :  { %v1319_v22 = vpop.f32.mrf.mxu0 }
 0xf63   :  { %5650 = vmatmul.msk.f32.gmra.mxu3 %vm121_vm1, %v1319_v22 }
 0xf64   :  { %v1570_v23 = vpop.f32.mrf.mxu1 }
 0xf65   :  { %v1601_v24 = vmul.f32 0.35355338, %v1570_v23 }
 0xf67   :  { %v1603_v25 = vadd.f32 %v6722_v51, %v1601_v24 }
 0xf69   :  { %v1605_v28 = vsel %vm121_vm1, %v1603_v25, -inf }
 0xf6a   :  { %v1433_v29 = vpop.f32.mrf.mxu0  ;;  %1606 = vmax.xlane.f32.xlu2 %v1605_v28 }
 0xf6b   :  { %v1437_v30 = vmul.f32 0.35355338, %v1433_v29 }
 0xf6d   :  { %v1439_v33 = vadd.f32 %v6763_v31, %v1437_v30 }
 0xf6f   :  { %v1443_v35 = vsel %vm121_vm1, %v1439_v33, -inf }
 0xf70   :  { %1444 = vmax.xlane.f32.xlu1 %v1443_v35 }
 0xf87   :  { %v1485_v36 = vpop.f32.mrf.mxu2 }
 0xf88   :  { %5659 = vmatmul.msk.f32.vlgmr.msrb.gmra.mxu3 %vm121_vm1, %v1485_v36 }
 0xf89   :  { %1627 = vrot.lane.b32.xlu1 %v6650_v38, %s7870_s20 }
 0xf8f   :  { %v1598_v39 = vpop.f32.mrf.mxu2 }
 0xf90   :  { %v1602_v40 = vmul.f32 0.35355338, %v1598_v39 }
 0xf92   :  { %v1604_v32 = vadd.f32 %v6763_v31, %v1602_v40 }
 0xf94   :  { %v1608_v41 = vsel %vm121_vm1, %v1604_v32, -inf }
 0xf95   :  { %1609 = vmax.xlane.f32.xlu0 %v1608_v41 }
 0xfdd   :  { %v1607_v42 = vpop.xlane.xlu2 %1606 }
 0xfde   :  { %v1611_v4 = vsub.f32 %v1603_v25, %v1607_v42 }
 0xfe0   :  { %v1613_v47 = vmul.f32 1.442695, %v1611_v4  ;;  %v5620_v4 = vld [vmem:[%s7827_s9 + $0x28] sm:$0xff] }
 0xfe3   :  { %v1445_v43 = vpop.xlane.xlu1 %1444 }
 0xfe4   :  { %v1447_v44 = vsub.f32 %v1439_v33, %v1445_v43 }
 0xfe6   :  { %v1450_v45 = vmul.f32 1.442695, %v1447_v44  ;;  %v1348_v9 = vpop.f32.mrf.mxu3  ;;  %v5621_v44 = vld [vmem:[%s7827_s9 + $0x30] sm:$0xff] }
 0xfe7   :  { %v1378_v24 = vadd.f32 %v6752_v21, %v1348_v9 }
 0xfe8   :  { %6067 = vpow2.f32 %v1450_v45  ;;  %v5619_v45 = vld [vmem:[%s7827_s9 + $0x20] sm:$0xff] }
 0xfe9   :  { %6069 = vpow2.f32 %v1613_v47 }
 0xfee   :  { %v6068_v48 = vpop.eup %6067 }
 0xfef   :  { %v1455_v49 = vsel %vm121_vm1, %v6068_v48, 0.0  ;;  %v6070_v38 = vpop.eup %6069 }
 0xff0   :  { %1456 = vadd.xlane.f32.xlu0 %v1455_v49  ;;  %v1617_v37 = vsel %vm121_vm1, %v6070_v38, 0.0 }
 0xff8   :  { %1618 = vadd.xlane.f32.xlu0 %v1617_v37  ;;  %v5630_v37 = vld [vmem:[%s7829_s11 + $0x70] sm:$0xff] }
 0xffb   :  { %v1628_v61 = vpop.permute.xlu1 %1627 }
0x1008   :  { %v1610_v53 = vpop.xlane.xlu0 %1609 }
0x1009   :  { %v1612_v7 = vsub.f32 %v1604_v32, %v1610_v53 }
0x100b   :  { %v1615_v54 = vmul.f32 1.442695, %v1612_v7  ;;  %v1537_v10 = vpop.f32.mrf.mxu3 }
0x100c   :  { %1488 = vrot.lane.b32.xlu0 %v6669_v56, %s7869_s23  ;;  %v1543_v14 = vadd.f32 %v1537_v10, %v1375_v13 }
0x100d   :  { %6071 = vpow2.f32 %v1615_v54 }
0x1013   :  { %v6072_v55 = vpop.eup %6071 }
0x1014   :  { %v1620_v57 = vsel %vm121_vm1, %v6072_v55, 0.0 }
0x1015   :  { %1621 = vadd.xlane.f32.xlu2 %v1620_v57 }
0x102d   :  { %1653 = vrot.lane.b32.xlu2 %v6669_v56, %s7870_s20 }
0x1063   :  { %v1457_v58 = vpop.xlane.xlu0 %1456 }
0x1064   :  { %6073 = vrcp.f32 %v1457_v58 }
0x106a   :  { %v6074_v60 = vpop.eup %6073 }
0x106b   :  { %v1619_v59 = vpop.xlane.xlu0 %1618  ;;  %v1461_v34 = vmul.f32 %v6074_v60, %v6068_v48 }
0x106c   :  { %6075 = vrcp.f32 %v1619_v59  ;;  %v5628_v59 = vld [vmem:[%s7829_s11 + $0x60] sm:$0xff] }
0x1072   :  { %v6076_v62 = vpop.eup %6075 }
0x1073   :  { %v1625_v63 = vmul.f32 %v6076_v62, %v6070_v38  ;;  %v5631_v38 = vld [vmem:[%s7829_s11 + $0x78] sm:$0xff] }
0x1074   :  { %1824 = vmatpush.msra.mxu3 %v5631_v38 }
0x1076   :  { %1825 = vmatpush.msra.mxu3 %v5630_v37 }
0x107e   :  { %v1489_v11 = vpop.permute.xlu0 %1488 }
0x107f   :  { %1509 = vmatpush.msra.mxu0 %v1489_v11 }
0x1080   :  { %5658 = vmatmul.msk.f32.vlgmr.msra.gmra.mxu0 %vm121_vm1, %v1461_v34  ;;  %v5627_v34 = vld [vmem:[%s7829_s11 + $0x58] sm:$0xff] }
0x1081   :  { %1648 = vmatpush.msrb.mxu0 %v1628_v61 }
0x1088   :  { %v1622_v0 = vpop.xlane.xlu2 %1621  ;;  %5665 = vmatmul.msk.f32.vlgmr.msrb.gmra.mxu0 %vm121_vm1, %v1625_v63 }
0x1089   :  { %6077 = vrcp.f32 %v1622_v0  ;;  %v5967_v0 = vld [vmem:[%s7825_s7 + $0x1] ss:$0 sm:$0xff] }
0x108f   :  { %v6078_v12 = vpop.eup %6077 }
0x1090   :  { %v1626_v56 = vmul.f32 %v6078_v12, %v6072_v55  ;;  %v1654_v1 = vpop.permute.xlu2 %1653  ;;  %v5629_v55 = vld [vmem:[%s7829_s11 + $0x68] sm:$0xff] }
0x1091   :  { %1674 = vmatpush.msra.mxu1 %v1654_v1  ;;  %1826 = vmatpush.msra.mxu3 %v5629_v55  ;;  %v5673_v55 = vld [vmem:[%s7821_s3 + $0x40] sm:$0xff] }
0x1092   :  { %5666 = vmatmul.msk.f32.vlgmr.msra.gmra.mxu1 %vm121_vm1, %v1626_v56 }
0x1093   :  { %1827 = vmatpush.msra.mxu3 %v5628_v59 }
0x1095   :  { %1828 = vmatpush.msra.mxu3 %v5627_v34 }
0x10fd   :  { %v1511_v3 = vpop.f32.mrf.mxu0 }
0x10fe   :  { %5660 = vmatmul.msk.f32.gmra.mxu3 %vm121_vm1, %v1511_v3 }
0x1105   :  { %v1650_v5 = vpop.f32.mrf.mxu0 }
0x1106   :  { %5667 = vmatmul.msk.f32.vlgmr.msra.gmra.mxu2 %vm121_vm1, %v1650_v5 }
0x110f   :  { %v1676_v6 = vpop.f32.mrf.mxu1 }
0x1110   :  { %5668 = vmatmul.msk.f32.gmra.mxu2 %vm121_vm1, %v1676_v6 }
0x1181   :  { %v1540_v23 = vpop.f32.mrf.mxu3 }
0x1182   :  { %v1544_v26 = vadd.f32 %v1540_v23, %v1378_v24  ;;  %v5625_v23 = vld [vmem:[%s7829_s11 + $0x48] sm:$0xff]  ;;  %v5624_v24 = vld [vmem:[%s7829_s11 + $0x40] sm:$0xff] }
0x1189   :  { %v1702_v18 = vpop.f32.mrf.mxu2 }
0x118a   :  { %v1708_v17 = vadd.f32 %v1702_v18, %v1543_v14 }
0x118c   :  { %v1713_v19 = vadd.f32 %v5966_v16, %v1708_v17 }
0x118e   :  { %v1715_v22 = vadd.f32 %v1713_v19, %v6641_v27 }
0x1190   :  { %v1717_v25 = vsel %vm88_vm0, %v1715_v22, 0.0 }
0x1191   :  { %1718 = vadd.xlane.f32.xlu0 %v1717_v25  ;;  %v5969_v25 = vld [vmem:[%s7828_s10 + $0x1] ss:$0 sm:$0xff] }
0x1193   :  { %v1705_v28 = vpop.f32.mrf.mxu2 }
0x1194   :  { %v1709_v29 = vadd.f32 %v1705_v28, %v1544_v26 }
0x1196   :  { %v1714_v20 = vadd.f32 %v5966_v16, %v1709_v29 }
0x1198   :  { %v1716_v30 = vadd.f32 %v1714_v20, %v6660_v52  ;;  %v5622_v52 = vld [vmem:[%s7827_s9 + $0x38] sm:$0xff] }
0x1199   :  { %1794 = vmatpush.msra.mxu0 %v5622_v52 }
0x119a   :  { %v1720_v33 = vsel %vm88_vm0, %v1716_v30, 0.0 }
0x119b   :  { %1721 = vadd.xlane.f32.xlu1 %v1720_v33  ;;  %1795 = vmatpush.msra.mxu0 %v5621_v44 }
0x119d   :  { %1796 = vmatpush.msra.mxu0 %v5620_v4 }
0x119f   :  { %1797 = vmatpush.msra.mxu0 %v5619_v45 }
0x1204   :  { %v1719_v35 = vpop.xlane.xlu0 %1718 }
0x1205   :  { %v1723_v36 = vmul.f32 %v1719_v35, %v6545_v46  ;;  %v5970_v35 = vld [vmem:[%s7830_s12 + $0x1] ss:$0 sm:$0xff] }
0x1207   :  { %v1725_v39 = vsub.f32 %v1715_v22, %v1723_v36  ;;  %v5626_v22 = vld [vmem:[%s7829_s11 + $0x50] sm:$0xff] }
0x1208   :  { %1829 = vmatpush.msra.mxu3 %v5626_v22 }
0x1209   :  { %v1727_v27 = vmul.f32 %v1725_v39, %v1725_v39 }
0x120a   :  { %1830 = vmatpush.msra.mxu3 %v5625_v23 }
0x120b   :  { %v1729_v40 = vsel %vm88_vm0, %v1727_v27, 0.0 }
0x120c   :  { %1730 = vadd.xlane.f32.xlu2 %v1729_v40  ;;  %1831 = vmatpush.msra.mxu3 %v5624_v24 }
0x120e   :  { %v1722_v21 = vpop.xlane.xlu1 %1721 }
0x120f   :  { %v1724_v32 = vmul.f32 %v1722_v21, %v6545_v46 }
0x1211   :  { %v1726_v41 = vsub.f32 %v1716_v30, %v1724_v32 }
0x1213   :  { %v1728_v42 = vmul.f32 %v1726_v41, %v1726_v41 }
0x1215   :  { %v1732_v43 = vsel %vm88_vm0, %v1728_v42, 0.0 }
0x1216   :  { %1733 = vadd.xlane.f32.xlu0 %v1732_v43 }
0x127f   :  { %v1731_v47 = vpop.xlane.xlu2 %1730 }
0x1280   :  { %v1735_v48 = vmul.f32 %v1731_v47, %v6545_v46 }
0x1282   :  { %v1737_v49 = vadd.f32 1e-05, %v1735_v48 }
0x1284   :  { %6079 = vrsqrt.f32 %v1737_v49  ;;  %vm1745_vm3 = vweird.f32 %v1737_v49 }
0x1289   :  { %v1734_v53 = vpop.xlane.xlu0 %1733 }
0x128a   :  { %v6080_v7 = vpop.eup %6079  ;;  %v1736_v54 = vmul.f32 %v1734_v53, %v6545_v46  ;;  %v5676_v53 = vld [vmem:[%s7821_s3 + $0x58] sm:$0xff] }
0x128b   :  { %v1740_v57 = vmul.f32 %v6080_v7, %v1737_v49  ;;  %vm1746_vm2 = vweird.f32 %v6080_v7  ;;  %1958 = vmatpush.msrb.mxu1 %v5676_v53 }
0x128c   :  { %v1738_v58 = vadd.f32 1e-05, %v1736_v54  ;;  %vm1747_vm4 = vmor %vm1745_vm3, %vm1746_vm2  ;;  %v5674_v54 = vld [vmem:[%s7821_s3 + $0x48] sm:$0xff] }
0x128d   :  { %v1741_v60 = vmul.f32 %v6080_v7, %v1740_v57 }
0x128e   :  { %6081 = vrsqrt.f32 %v1738_v58  ;;  %vm1755_vm7 = vweird.f32 %v1738_v58 }
0x128f   :  { %v1742_v11 = vmul.f32 0.5, %v1741_v60 }
0x1291   :  { %v1743_v61 = vsub.f32 1.5, %v1742_v11 }
0x1293   :  { %v1744_v62 = vmul.f32 %v6080_v7, %v1743_v61 }
0x1294   :  { %v6082_v63 = vpop.eup %6081 }
0x1295   :  { %v1748_v12 = vsel %vm1747_vm4, %v6080_v7, %v1744_v62  ;;  %v1750_v56 = vmul.f32 %v6082_v63, %v1738_v58  ;;  %vm1756_vm5 = vweird.f32 %v6082_v63  ;;  %v5675_v7 = vld [vmem:[%s7821_s3 + $0x50] sm:$0xff] }
0x1296   :  { %v1759_v1 = vmul.f32 %v1748_v12, %v1725_v39  ;;  %vm1757_vm8 = vmor %vm1755_vm7, %vm1756_vm5  ;;  %1959 = vmatpush.msrb.mxu1 %v5675_v7 }
0x1297   :  { %v1751_v3 = vmul.f32 %v6082_v63, %v1750_v56 }
0x1298   :  { %v1764_v5 = vmul.f32 %v5967_v0, %v1759_v1  ;;  %1960 = vmatpush.msrb.mxu1 %v5674_v54 }
0x1299   :  { %v1752_v6 = vmul.f32 0.5, %v1751_v3 }
0x129a   :  { %v1769_v8 = vadd.f32 %v5968_v2, %v1764_v5  ;;  %1961 = vmatpush.msrb.mxu1 %v5673_v55 }
0x129b   :  { %v1753_v9 = vsub.f32 1.5, %v1752_v6 }
0x129c   :  { %v1771_v10 = vmul.f32 %v1769_v8, %v6571_v15  ;;  %v5972_v8 = vld [vmem:[%s7832_s14 + $0x1] ss:$0 sm:$0xff] }
0x129d   :  { %v1754_v13 = vmul.f32 %v6082_v63, %v1753_v9 }
0x129e   :  { %5669 = vmatmul.msk.f32.vlgmr.msra.gmra.mxu0 %vm88_vm0, %v1771_v10 }
0x129f   :  { %v1758_v14 = vsel %vm1757_vm8, %v6082_v63, %v1754_v13 }
0x12a0   :  { %v1760_v16 = vmul.f32 %v1758_v14, %v1726_v41 }
0x12a2   :  { %v1765_v18 = vmul.f32 %v5967_v0, %v1760_v16 }
0x12a4   :  { %v1770_v17 = vadd.f32 %v5968_v2, %v1765_v18  ;;  %v5971_v2 = vld [vmem:[%s7831_s13 + $0x1] ss:$0 sm:$0xff] }
0x12a6   :  { %v1772_v19 = vmul.f32 %v1770_v17, %v6609_v50 }
0x12a8   :  { %5670 = vmatmul.msk.f32.gmra.mxu0 %vm88_vm0, %v1772_v19 }
0x131b   :  { %v1799_v26 = vpop.f32.mrf.mxu0 }
0x131c   :  { %v1800_v28 = vadd.f32 %v5969_v25, %v1799_v26  ;;  %v5973_v26 = vld [vmem:[%s7822_s4 + $0x2] ss:$0 sm:$0xff] }
0x131e   :  { %v1805_v29 = vmax.f32 %v1800_v28, 0.0 }
0x1320   :  { %5671 = vmatmul.msk.f32.vlgmr.msra.gmra.mxu3 %vm896_vm6, %v1805_v29 }
0x1325   :  { %v1802_v20 = vpop.f32.mrf.mxu0 }
0x1326   :  { %v1803_v30 = vadd.f32 %v5969_v25, %v1802_v20 }
0x1328   :  { %v1806_v33 = vmax.f32 %v1803_v30, 0.0 }
0x132a   :  { %5672 = vmatmul.msk.f32.gmra.mxu3 %vm896_vm6, %v1806_v33 }
0x13a3   :  { %v1833_v36 = vpop.f32.mrf.mxu3 }
0x13a4   :  { %v1834_v39 = vadd.f32 %v5970_v35, %v1833_v36 }
0x13a6   :  { %v1839_v27 = vadd.f32 %v1834_v39, %v1771_v10 }
0x13a8   :  { %v1841_v40 = vsel %vm88_vm0, %v1839_v27, 0.0 }
0x13a9   :  { %1842 = vadd.xlane.f32.xlu0 %v1841_v40 }
0x13ad   :  { %v1836_v21 = vpop.f32.mrf.mxu3 }
0x13ae   :  { %v1837_v32 = vadd.f32 %v5970_v35, %v1836_v21 }
0x13b0   :  { %v1840_v41 = vadd.f32 %v1837_v32, %v1772_v19 }
0x13b2   :  { %v1844_v42 = vsel %vm88_vm0, %v1840_v41, 0.0 }
0x13b3   :  { %1845 = vadd.xlane.f32.xlu1 %v1844_v42 }
0x141c   :  { %v1843_v43 = vpop.xlane.xlu0 %1842 }
0x141d   :  { %v1847_v52 = vmul.f32 %v1843_v43, %v6545_v46 }
0x141f   :  { %v1849_v44 = vsub.f32 %v1839_v27, %v1847_v52 }
0x1421   :  { %v1851_v4 = vmul.f32 %v1849_v44, %v1849_v44 }
0x1423   :  { %v1853_v45 = vsel %vm88_vm0, %v1851_v4, 0.0 }
0x1424   :  { %1854 = vadd.xlane.f32.xlu0 %v1853_v45 }
0x1426   :  { %v1846_v47 = vpop.xlane.xlu1 %1845 }
0x1427   :  { %v1848_v48 = vmul.f32 %v1846_v47, %v6545_v46 }
0x1429   :  { %v1850_v49 = vsub.f32 %v1840_v41, %v1848_v48 }
0x142b   :  { %v1852_v38 = vmul.f32 %v1850_v49, %v1850_v49 }
0x142d   :  { %v1856_v37 = vsel %vm88_vm0, %v1852_v38, 0.0 }
0x142e   :  { %1857 = vadd.xlane.f32.xlu1 %v1856_v37 }
0x1497   :  { %v1855_v57 = vpop.xlane.xlu0 %1854 }
0x1498   :  { %v1859_v58 = vmul.f32 %v1855_v57, %v6545_v46 }
0x149a   :  { %v1861_v59 = vadd.f32 1e-05, %v1859_v58 }
0x149c   :  { %6083 = vrsqrt.f32 %v1861_v59  ;;  %vm1869_vm10 = vweird.f32 %v1861_v59 }
0x14a1   :  { %v1858_v60 = vpop.xlane.xlu1 %1857 }
0x14a2   :  { %v6084_v34 = vpop.eup %6083  ;;  %v1860_v11 = vmul.f32 %v1858_v60, %v6545_v46 }
0x14a3   :  { %v1864_v61 = vmul.f32 %v6084_v34, %v1861_v59  ;;  %vm1870_vm9 = vweird.f32 %v6084_v34 }
0x14a4   :  { %v1862_v62 = vadd.f32 1e-05, %v1860_v11  ;;  %vm1871_vm11 = vmor %vm1869_vm10, %vm1870_vm9 }
0x14a5   :  { %v1865_v63 = vmul.f32 %v6084_v34, %v1864_v61 }
0x14a6   :  { %6085 = vrsqrt.f32 %v1862_v62  ;;  %vm1879_vm13 = vweird.f32 %v1862_v62 }
0x14a7   :  { %v1866_v0 = vmul.f32 0.5, %v1865_v63 }
0x14a9   :  { %v1867_v12 = vsub.f32 1.5, %v1866_v0 }
0x14ab   :  { %v1868_v56 = vmul.f32 %v6084_v34, %v1867_v12 }
0x14ac   :  { %v6086_v1 = vpop.eup %6085 }
0x14ad   :  { %v1872_v3 = vsel %vm1871_vm11, %v6084_v34, %v1868_v56  ;;  %v1874_v5 = vmul.f32 %v6086_v1, %v1862_v62  ;;  %vm1880_vm12 = vweird.f32 %v6086_v1 }
0x14ae   :  { %v1883_v6 = vmul.f32 %v1872_v3, %v1849_v44  ;;  %vm1881_vm14 = vmor %vm1879_vm13, %vm1880_vm12 }
0x14af   :  { %v1875_v9 = vmul.f32 %v6086_v1, %v1874_v5 }
0x14b0   :  { %v1888_v10 = vmul.f32 %v5971_v2, %v1883_v6 }
0x14b1   :  { %v1876_v13 = vmul.f32 0.5, %v1875_v9 }
0x14b2   :  { %v1893_v14 = vadd.f32 %v5972_v8, %v1888_v10 }
0x14b3   :  { %v1877_v16 = vsub.f32 1.5, %v1876_v13 }
0x14b4   :  { %v6884_v18 = vmul.f32 %v1893_v14, %v6571_v15 }
0x14b5   :  { %v1878_v17 = vmul.f32 %v6086_v1, %v1877_v16 }
0x14b6   :  { %5701 = vmatmul.msk.f32.vlgmr.msrb.gmra.mxu1 %vm88_vm0, %v6884_v18 }
0x14b7   :  { %v1882_v19 = vsel %vm1881_vm14, %v6086_v1, %v1878_v17 }
0x14b8   :  { %v1884_v22 = vmul.f32 %v1882_v19, %v1850_v49 }
0x14ba   :  { %v1889_v23 = vmul.f32 %v5971_v2, %v1884_v22 }
0x14bc   :  { %v1894_v24 = vadd.f32 %v5972_v8, %v1889_v23  ;;  %v5678_v23 = vld [vmem:[%s7823_s5 + $0x40] sm:$0xff] }
0x14be   :  { %v6889_v25 = vmul.f32 %v1894_v24, %v6609_v50 }
0x14c0   :  { %5702 = vmatmul.msk.f32.gmra.mxu1 %vm88_vm0, %v6889_v25 }
0x1533   :  { %v1963_v28 = vpop.f32.mrf.mxu1 }
0x1534   :  { %v6896_v29 = vadd.f32 %v5973_v26, %v1963_v28 }
0x1536   :  { %2101 = vrot.lane.b32.xlu1 %v6896_v29, %s7850_s18  ;;  %2103 = vrot.lane.b32.xlu0 %v6896_v29, %s7854_s17 }
0x1537   :  { %1970 = vrot.lane.b32.xlu2 %v6896_v29, %s7852_s16 }
0x153d   :  { %v1966_v20 = vpop.f32.mrf.mxu1 }
0x153e   :  { %v6904_v30 = vadd.f32 %v5973_v26, %v1966_v20 }
0x1540   :  { %2131 = vrot.lane.b32.xlu0 %v6904_v30, %s7854_s17  ;;  %1997 = vrot.lane.b32.xlu2 %v6904_v30, %s7852_s16  ;;  %s7873_s16 = smov 88   ;;  %s7874_s17 = smov 96  }
0x1548   :  { %2129 = vrot.lane.b32.xlu2 %v6904_v30, %s7850_s18  ;;  %s6294_s18 = smov 8  }
0x1591   :  { %v1971_v33 = vpop.permute.xlu2 %1970 }
0x1592   :  { %5703 = vmatpush.xpose.msk.msrb.mxu2 %vm121_vm1, %v1971_v33 }
0x1595   :  { %5704 = vmatmul.msk.f32.vlgmr.msrb.gmra.mxu2 %vm121_vm1, %v6896_v29 }
0x159a   :  { %v1998_v35 = vpop.permute.xlu2 %1997 }
0x159b   :  { %5705 = vmatpush.xpose.msk.msrb.mxu0 %vm121_vm1, %v1998_v35 }
0x159e   :  { %5706 = vmatmul.msk.f32.vlgmr.msrb.gmra.mxu0 %vm121_vm1, %v6904_v30 }
0x15a2   :  { %v2130_v40 = vpop.permute.xlu2 %2129 }
0x15a8   :  { %v2104_v36 = vpop.permute.xlu0 %2103  ;;  %v2102_v39 = vpop.permute.xlu1 %2101 }
0x15a9   :  { %5709 = vmatpush.xpose.msk.msra.mxu2 %vm121_vm1, %v2104_v36 }
0x15ac   :  { %5710 = vmatmul.msk.f32.vlgmr.msra.gmra.mxu2 %vm121_vm1, %v2102_v39 }
0x15b2   :  { %v2132_v27 = vpop.permute.xlu0 %2131 }
0x15b3   :  { %5711 = vmatpush.xpose.msk.msra.mxu0 %vm121_vm1, %v2132_v27 }
0x15b6   :  { %5712 = vmatmul.msk.f32.vlgmr.msra.gmra.mxu0 %vm121_vm1, %v2130_v40 }
0x15b7   :  { %2285 = vmatpush.msrb.mxu0 %v5678_v23 }
0x1618   :  { %v1993_v21 = vpop.f32.mrf.mxu2 }
0x1619   :  { %v2023_v32 = vmul.f32 0.35355338, %v1993_v21 }
0x161b   :  { %v2020_v41 = vpop.f32.mrf.mxu0  ;;  %v2025_v42 = vadd.f32 %v6722_v51, %v2023_v32 }
0x161c   :  { %v2024_v43 = vmul.f32 0.35355338, %v2020_v41 }
0x161d   :  { %v2027_v52 = vsel %vm121_vm1, %v2025_v42, -inf }
0x161e   :  { %2028 = vmax.xlane.f32.xlu1 %v2027_v52  ;;  %v2026_v44 = vadd.f32 %v6763_v31, %v2024_v43  ;;  %v5679_v52 = vld [vmem:[%s7823_s5 + $0x48] sm:$0xff] }
0x161f   :  { %2256 = vmatpush.msrb.mxu2 %v5679_v52  ;;  %v5681_v52 = vld [vmem:[%s7823_s5 + $0x58] sm:$0xff] }
0x1620   :  { %v2030_v4 = vsel %vm121_vm1, %v2026_v44, -inf }
0x1621   :  { %2031 = vmax.xlane.f32.xlu2 %v2030_v4 }
0x162f   :  { %v2126_v45 = vpop.f32.mrf.mxu2 }
0x1630   :  { %v2157_v47 = vmul.f32 0.35355338, %v2126_v45 }
0x1632   :  { %v2159_v48 = vadd.f32 %v6722_v51, %v2157_v47 }
0x1633   :  { %v2154_v38 = vpop.f32.mrf.mxu0 }
0x1634   :  { %v2161_v49 = vsel %vm121_vm1, %v2159_v48, -inf  ;;  %v2158_v37 = vmul.f32 0.35355338, %v2154_v38 }
0x1635   :  { %2162 = vmax.xlane.f32.xlu0 %v2161_v49 }
0x1636   :  { %v2160_v53 = vadd.f32 %v6763_v31, %v2158_v37 }
0x1638   :  { %v2164_v7 = vsel %vm121_vm1, %v2160_v53, -inf }
0x1639   :  { %2049 = vrot.lane.b32.xlu2 %v6896_v29, %s7848_s30 }
0x1641   :  { %2295 = vrot.lane.b32.xlu2 %v6896_v29, %s7871_s24 }
0x1649   :  { %2183 = vrot.lane.b32.xlu0 %v6896_v29, %s7872_s19 }
0x166a   :  { %2165 = vmax.xlane.f32.xlu2 %v2164_v7 }
0x1691   :  { %v2029_v54 = vpop.xlane.xlu1 %2028 }
0x1692   :  { %v2033_v55 = vsub.f32 %v2025_v42, %v2029_v54 }
0x1694   :  { %v2035_v57 = vmul.f32 1.442695, %v2033_v55  ;;  %v2032_v58 = vpop.xlane.xlu2 %2031 }
0x1695   :  { %v2034_v59 = vsub.f32 %v2026_v44, %v2032_v58 }
0x1696   :  { %6087 = vpow2.f32 %v2035_v57 }
0x1697   :  { %v2037_v60 = vmul.f32 1.442695, %v2034_v59 }
0x1699   :  { %6089 = vpow2.f32 %v2037_v60 }
0x169c   :  { %v6088_v34 = vpop.eup %6087  ;;  %v2050_v11 = vpop.permute.xlu2 %2049 }
0x169d   :  { %v2039_v61 = vsel %vm121_vm1, %v6088_v34, 0.0  ;;  %2070 = vmatpush.msrb.mxu3 %v2050_v11 }
0x169e   :  { %2040 = vadd.xlane.f32.xlu1 %v2039_v61 }
0x169f   :  { %v6090_v62 = vpop.eup %6089 }
0x16a0   :  { %v2042_v63 = vsel %vm121_vm1, %v6090_v62, 0.0 }
0x16a4   :  { %v2296_v5 = vpop.permute.xlu2 %2295 }
0x16a6   :  { %2043 = vadd.xlane.f32.xlu1 %v2042_v63 }
0x16a8   :  { %v2163_v0 = vpop.xlane.xlu0 %2162 }
0x16a9   :  { %v2167_v12 = vsub.f32 %v2159_v48, %v2163_v0 }
0x16ab   :  { %v2169_v56 = vmul.f32 1.442695, %v2167_v12 }
0x16ad   :  { %6091 = vpow2.f32 %v2169_v56 }
0x16b3   :  { %v6092_v1 = vpop.eup %6091 }
0x16b4   :  { %v2173_v2 = vsel %vm121_vm1, %v6092_v1, 0.0 }
0x16b5   :  { %2174 = vadd.xlane.f32.xlu0 %v2173_v2 }
0x16bb   :  { %v2184_v3 = vpop.permute.xlu0 %2183 }
0x16bc   :  { %2204 = vmatpush.msra.mxu3 %v2184_v3 }
0x16bf   :  { %2075 = vrot.lane.b32.xlu1 %v6904_v30, %s7848_s30 }
0x16c7   :  { %2209 = vrot.lane.b32.xlu1 %v6904_v30, %s7872_s19 }
0x16c9   :  { %2293 = vrot.lane.b32.xlu0 %v6896_v29, %s7866_s28 }
0x16cf   :  { %2323 = vrot.lane.b32.xlu1 %v6904_v30, %s7871_s24 }
0x16d7   :  { %2321 = vrot.lane.b32.xlu1 %v6904_v30, %s7866_s28 }
0x16dd   :  { %v2166_v6 = vpop.xlane.xlu2 %2165 }
0x16de   :  { %v2168_v8 = vsub.f32 %v2160_v53, %v2166_v6 }
0x16df   :  { %2460 = vrot.lane.b32.xlu1 %v6896_v29, %s7868_s21 }
0x16e0   :  { %v2171_v9 = vmul.f32 1.442695, %v2168_v8 }
0x16e2   :  { %6093 = vpow2.f32 %v2171_v9 }
0x16e7   :  { %2458 = vrot.lane.b32.xlu1 %v6896_v29, %s7867_s2 }
0x16e8   :  { %v6094_v10 = vpop.eup %6093 }
0x16e9   :  { %v2176_v13 = vsel %vm121_vm1, %v6094_v10, 0.0 }
0x16ef   :  { %2375 = vrot.lane.b32.xlu1 %v6896_v29, %s7869_s23 }
0x16f3   :  { %2177 = vadd.xlane.f32.xlu0 %v2176_v13 }
0x1711   :  { %v2041_v14 = vpop.xlane.xlu1 %2040 }
0x1712   :  { %6095 = vrcp.f32 %v2041_v14 }
0x1718   :  { %v6096_v16 = vpop.eup %6095 }
0x1719   :  { %v2047_v17 = vmul.f32 %v6096_v16, %v6088_v34  ;;  %v2044_v19 = vpop.xlane.xlu1 %2043 }
0x171a   :  { %6097 = vrcp.f32 %v2044_v19 }
0x171b   :  { %5707 = vmatmul.msk.f32.vlgmr.msrb.gmra.mxu3 %vm121_vm1, %v2047_v17 }
0x171c   :  { %5719 = vmatpush.xpose.msk.msrb.mxu3 %vm121_vm1, %v2296_v5 }
0x1720   :  { %v6098_v24 = vpop.eup %6097 }
0x1721   :  { %v2048_v20 = vmul.f32 %v6098_v24, %v6090_v62 }
0x1728   :  { %v2175_v22 = vpop.xlane.xlu0 %2174 }
0x1729   :  { %6099 = vrcp.f32 %v2175_v22 }
0x172f   :  { %v6100_v26 = vpop.eup %6099 }
0x1730   :  { %v2181_v28 = vmul.f32 %v6100_v26, %v6092_v1 }
0x1731   :  { %v2076_v33 = vpop.permute.xlu1 %2075 }
0x1732   :  { %2096 = vmatpush.msra.mxu1 %v2076_v33  ;;  %5713 = vmatmul.msk.f32.vlgmr.msra.gmra.mxu3 %vm121_vm1, %v2181_v28 }
0x1733   :  { %5708 = vmatmul.msk.f32.vlgmr.msra.gmra.mxu1 %vm121_vm1, %v2048_v20 }
0x1739   :  { %v2210_v35 = vpop.permute.xlu1 %2209 }
0x173a   :  { %2230 = vmatpush.msrb.mxu1 %v2210_v35 }
0x173b   :  { %v2294_v36 = vpop.permute.xlu0 %2293 }
0x173c   :  { %5720 = vmatmul.msk.f32.vlgmr.msrb.gmra.mxu3 %vm121_vm1, %v2294_v36 }
0x1741   :  { %v2324_v39 = vpop.permute.xlu1 %2323 }
0x1742   :  { %5721 = vmatpush.xpose.msk.msra.mxu1 %vm121_vm1, %v2324_v39 }
0x1749   :  { %v2322_v27 = vpop.permute.xlu1 %2321 }
0x1751   :  { %v2461_v40 = vpop.permute.xlu1 %2460 }
0x1752   :  { %5727 = vmatpush.xpose.msk.msra.mxu0 %vm121_vm1, %v2461_v40 }
0x1759   :  { %v2459_v21 = vpop.permute.xlu1 %2458 }
0x1761   :  { %v2376_v32 = vpop.permute.xlu1 %2375 }
0x1762   :  { %2396 = vmatpush.msra.mxu3 %v2376_v32 }
0x1766   :  { %v2178_v41 = vpop.xlane.xlu0 %2177 }
0x1767   :  { %6101 = vrcp.f32 %v2178_v41 }
0x176d   :  { %v6102_v42 = vpop.eup %6101 }
0x176e   :  { %v2182_v43 = vmul.f32 %v6102_v42, %v6094_v10 }
0x1770   :  { %5714 = vmatmul.msk.f32.vlgmr.msrb.gmra.mxu1 %vm121_vm1, %v2182_v43 }
0x1778   :  { %5722 = vmatmul.msk.f32.vlgmr.msra.gmra.mxu1 %vm121_vm1, %v2322_v27 }
0x179e   :  { %v2072_v44 = vpop.f32.mrf.mxu3 }
0x179f   :  { %5717 = vmatmul.msk.f32.vlgmr.msrb.gmra.mxu0 %vm121_vm1, %v2072_v44 }
0x17b0   :  { %v2098_v4 = vpop.f32.mrf.mxu1 }
0x17b1   :  { %5718 = vmatmul.msk.f32.gmra.mxu0 %vm121_vm1, %v2098_v4 }
0x17b5   :  { %v2206_v45 = vpop.f32.mrf.mxu3 }
0x17b6   :  { %5715 = vmatmul.msk.f32.vlgmr.msrb.gmra.mxu2 %vm121_vm1, %v2206_v45 }
0x17b9   :  { %5728 = vmatmul.msk.f32.vlgmr.msra.gmra.mxu0 %vm121_vm1, %v2459_v21 }
0x17bf   :  { %v2318_v47 = vpop.f32.mrf.mxu3 }
0x17c0   :  { %v2349_v48 = vmul.f32 0.35355338, %v2318_v47 }
0x17c2   :  { %v2351_v49 = vadd.f32 %v6722_v51, %v2349_v48 }
0x17c4   :  { %v2353_v38 = vsel %vm121_vm1, %v2351_v49, -inf }
0x17c5   :  { %2354 = vmax.xlane.f32.xlu2 %v2353_v38 }
0x17dd   :  { %2488 = vrot.lane.b32.xlu2 %v6904_v30, %s7868_s21 }
0x17ed   :  { %v2232_v37 = vpop.f32.mrf.mxu1 }
0x17ee   :  { %5716 = vmatmul.msk.f32.gmra.mxu2 %vm121_vm1, %v2232_v37 }
0x17f5   :  { %v2346_v53 = vpop.f32.mrf.mxu1 }
0x17f6   :  { %v2350_v7 = vmul.f32 0.35355338, %v2346_v53 }
0x17f8   :  { %v2352_v54 = vadd.f32 %v6763_v31, %v2350_v7 }
0x17fa   :  { %v2356_v55 = vsel %vm121_vm1, %v2352_v54, -inf }
0x17fb   :  { %2357 = vmax.xlane.f32.xlu1 %v2356_v55 }
0x181c   :  { %v6986_v61 = vpop.f32.mrf.mxu0 }
0x182e   :  { %v6988_v62 = vpop.f32.mrf.mxu0 }
0x1836   :  { %v2483_v56 = vpop.f32.mrf.mxu0 }
0x1837   :  { %v2514_v2 = vmul.f32 0.35355338, %v2483_v56 }
0x1838   :  { %v2355_v57 = vpop.xlane.xlu2 %2354 }
0x1839   :  { %v2359_v58 = vsub.f32 %v2351_v49, %v2355_v57  ;;  %v2516_v5 = vadd.f32 %v6722_v51, %v2514_v2  ;;  %v2258_v49 = vpop.f32.mrf.mxu2 }
0x183a   :  { %v2288_v53 = vadd.f32 %v6986_v61, %v2258_v49 }
0x183b   :  { %v2361_v59 = vmul.f32 1.442695, %v2359_v58  ;;  %v2518_v6 = vsel %vm121_vm1, %v2516_v5, -inf }
0x183d   :  { %6103 = vpow2.f32 %v2361_v59 }
0x1840   :  { %v2489_v60 = vpop.permute.xlu2 %2488 }
0x1841   :  { %5729 = vmatpush.xpose.msk.msrb.mxu3 %vm121_vm1, %v2489_v60 }
0x1843   :  { %v6104_v34 = vpop.eup %6103 }
0x1844   :  { %v2365_v11 = vsel %vm121_vm1, %v6104_v34, 0.0 }
0x1845   :  { %2366 = vadd.xlane.f32.xlu0 %v2365_v11 }
0x1859   :  { %2486 = vrot.lane.b32.xlu0 %v6904_v30, %s7867_s2 }
0x186e   :  { %v2358_v63 = vpop.xlane.xlu1 %2357 }
0x186f   :  { %v2360_v0 = vsub.f32 %v2352_v54, %v2358_v63  ;;  %v5974_v54 = vld [vmem:[%s7824_s6 + $0x2] ss:$0 sm:$0xff] }
0x1871   :  { %v2363_v12 = vmul.f32 1.442695, %v2360_v0  ;;  %v2261_v38 = vpop.f32.mrf.mxu2 }
0x1873   :  { %6105 = vpow2.f32 %v2363_v12 }
0x1879   :  { %v6106_v1 = vpop.eup %6105 }
0x187a   :  { %v2368_v3 = vsel %vm121_vm1, %v6106_v1, 0.0 }
0x187b   :  { %2369 = vadd.xlane.f32.xlu2 %v2368_v3 }
0x1883   :  { %2519 = vmax.xlane.f32.xlu0 %v2518_v6 }
0x1897   :  { %2540 = vrot.lane.b32.xlu0 %v6896_v29, %s7870_s20  ;;  %v5680_v29 = vld [vmem:[%s7823_s5 + $0x50] sm:$0xff] }
0x1898   :  { %2448 = vmatpush.msra.mxu2 %v5680_v29 }
0x18b8   :  { %v2367_v8 = vpop.xlane.xlu0 %2366 }
0x18b9   :  { %6107 = vrcp.f32 %v2367_v8 }
0x18bf   :  { %v6108_v9 = vpop.eup %6107 }
0x18c0   :  { %v2373_v10 = vmul.f32 %v6108_v9, %v6104_v34  ;;  %v5688_v9 = vld [vmem:[%s7827_s9 + $0x58] sm:$0xff] }
0x18c2   :  { %5723 = vmatmul.msk.f32.vlgmr.msra.gmra.mxu3 %vm121_vm1, %v2373_v10  ;;  %v5687_v10 = vld [vmem:[%s7827_s9 + $0x50] sm:$0xff] }
0x18c3   :  { %2613 = vmatpush.msra.mxu3 %v5681_v52  ;;  %v5692_v52 = vld [vmem:[%s7829_s11 + $0x90] sm:$0xff] }
0x18cb   :  { %v2487_v13 = vpop.permute.xlu0 %2486 }
0x18cc   :  { %5730 = vmatmul.msk.f32.vlgmr.msrb.gmra.mxu3 %vm121_vm1, %v2487_v13 }
0x18ee   :  { %v2370_v20 = vpop.xlane.xlu2 %2369 }
0x18f6   :  { %v2520_v14 = vpop.xlane.xlu0 %2519 }
0x18f7   :  { %v2524_v16 = vsub.f32 %v2516_v5, %v2520_v14 }
0x18f9   :  { %v2526_v17 = vmul.f32 1.442695, %v2524_v16 }
0x18fb   :  { %6109 = vpow2.f32 %v2526_v17 }
0x18fc   :  { %6111 = vrcp.f32 %v2370_v20 }
0x1901   :  { %v6110_v51 = vpop.eup %6109 }
0x1902   :  { %v2530_v19 = vsel %vm121_vm1, %v6110_v51, 0.0  ;;  %v6112_v35 = vpop.eup %6111 }
0x1903   :  { %2531 = vadd.xlane.f32.xlu1 %v2530_v19 }
0x1909   :  { %v2541_v39 = vpop.permute.xlu0 %2540 }
0x191c   :  { %2401 = vrot.lane.b32.xlu1 %v6904_v30, %s7869_s23 }
0x1924   :  { %2566 = vrot.lane.b32.xlu1 %v6904_v30, %s7870_s20  ;;  %v2374_v30 = vmul.f32 %v6112_v35, %v6106_v1  ;;  %v2291_v1 = vadd.f32 %v6988_v62, %v2261_v38  ;;  %v5686_v62 = vld [vmem:[%s7827_s9 + $0x48] sm:$0xff] }
0x1945   :  { %v2398_v22 = vpop.f32.mrf.mxu3 }
0x1946   :  { %5725 = vmatmul.msk.f32.vlgmr.msra.gmra.mxu2 %vm121_vm1, %v2398_v22 }
0x194f   :  { %v2511_v23 = vpop.f32.mrf.mxu3 }
0x1950   :  { %v2515_v24 = vmul.f32 0.35355338, %v2511_v23 }
0x1952   :  { %v2517_v26 = vadd.f32 %v6763_v31, %v2515_v24  ;;  %v5975_v24 = vld [vmem:[%s7825_s7 + $0x2] ss:$0 sm:$0xff] }
0x1954   :  { %v2521_v28 = vsel %vm121_vm1, %v2517_v26, -inf }
0x1955   :  { %2522 = vmax.xlane.f32.xlu2 %v2521_v28  ;;  %v5976_v28 = vld [vmem:[%s7826_s8 + $0x2] ss:$0 sm:$0xff] }
0x1976   :  { %v2532_v33 = vpop.xlane.xlu1 %2531 }
0x1977   :  { %6113 = vrcp.f32 %v2532_v33 }
0x197d   :  { %v6114_v27 = vpop.eup %6113 }
0x197e   :  { %v2538_v40 = vmul.f32 %v6114_v27, %v6110_v51  ;;  %v5695_v27 = vld [vmem:[%s7829_s11 + $0xa8] sm:$0xff] }
0x198e   :  { %v2402_v36 = vpop.permute.xlu1 %2401 }
0x198f   :  { %2422 = vmatpush.msrb.mxu1 %v2402_v36  ;;  %v5697_v36 = vld [vmem:[%s7829_s11 + $0xb8] sm:$0xff] }
0x1990   :  { %5724 = vmatmul.msk.f32.vlgmr.msrb.gmra.mxu1 %vm121_vm1, %v2374_v30  ;;  %2737 = vmatpush.msrb.mxu2 %v5697_v36  ;;  %v5979_v36 = vld [vmem:[%s7831_s13 + $0x2] ss:$0 sm:$0xff] }
0x1991   :  { %2561 = vmatpush.msra.mxu1 %v2541_v39  ;;  %v5696_v39 = vld [vmem:[%s7829_s11 + $0xb0] sm:$0xff] }
0x1992   :  { %2738 = vmatpush.msrb.mxu2 %v5696_v39 }
0x1993   :  { %2707 = vmatpush.msrb.mxu1 %v5688_v9 }
0x1994   :  { %2739 = vmatpush.msrb.mxu2 %v5695_v27 }
0x1995   :  { %2708 = vmatpush.msrb.mxu1 %v5687_v10 }
0x1996   :  { %v2567_v21 = vpop.permute.xlu1 %2566 }
0x1997   :  { %2587 = vmatpush.msrb.mxu0 %v2567_v21  ;;  %2709 = vmatpush.msrb.mxu1 %v5686_v62  ;;  %v5693_v21 = vld [vmem:[%s7829_s11 + $0x98] sm:$0xff] }
0x1998   :  { %5731 = vmatmul.msk.f32.vlgmr.msra.gmra.mxu1 %vm121_vm1, %v2538_v40  ;;  %v5694_v40 = vld [vmem:[%s7829_s11 + $0xa0] sm:$0xff] }
0x1999   :  { %2740 = vmatpush.msrb.mxu2 %v5694_v40  ;;  %v5980_v40 = vld [vmem:[%s7832_s14 + $0x2] ss:$0 sm:$0xff] }
0x199b   :  { %2741 = vmatpush.msrb.mxu2 %v5693_v21 }
0x199d   :  { %2742 = vmatpush.msrb.mxu2 %v5692_v52 }
0x19c8   :  { %v2523_v31 = vpop.xlane.xlu2 %2522 }
0x19c9   :  { %v2525_v32 = vsub.f32 %v2517_v26, %v2523_v31  ;;  %v2450_v37 = vpop.f32.mrf.mxu2 }
0x19ca   :  { %v2456_v7 = vadd.f32 %v2450_v37, %v2288_v53 }
0x19cb   :  { %v2528_v41 = vmul.f32 1.442695, %v2525_v32 }
0x19cd   :  { %6115 = vpow2.f32 %v2528_v41 }
0x19d3   :  { %v6116_v42 = vpop.eup %6115 }
0x19d4   :  { %v2533_v43 = vsel %vm121_vm1, %v6116_v42, 0.0 }
0x19d5   :  { %2534 = vadd.xlane.f32.xlu2 %v2533_v43 }
0x1a0d   :  { %v2424_v44 = vpop.f32.mrf.mxu1 }
0x1a0e   :  { %5726 = vmatmul.msk.f32.gmra.mxu2 %vm121_vm1, %v2424_v44  ;;  %v5691_v44 = vld [vmem:[%s7829_s11 + $0x88] sm:$0xff] }
0x1a0f   :  { %2743 = vmatpush.msrb.mxu2 %v5691_v44 }
0x1a15   :  { %v2563_v4 = vpop.f32.mrf.mxu1 }
0x1a16   :  { %5733 = vmatmul.msk.f32.vlgmr.msra.gmra.mxu3 %vm121_vm1, %v2563_v4  ;;  %v5690_v4 = vld [vmem:[%s7829_s11 + $0x80] sm:$0xff] }
0x1a17   :  { %2744 = vmatpush.msrb.mxu2 %v5690_v4  ;;  %v5981_v4 = vld [vmem:[%s7822_s4 + $0x3] ss:$0 sm:$0xff] }
0x1a48   :  { %v2535_v45 = vpop.xlane.xlu2 %2534 }
0x1a49   :  { %6117 = vrcp.f32 %v2535_v45  ;;  %v5977_v45 = vld [vmem:[%s7828_s10 + $0x2] ss:$0 sm:$0xff] }
0x1a4f   :  { %v6118_v47 = vpop.eup %6117 }
0x1a50   :  { %v2539_v48 = vmul.f32 %v6118_v47, %v6116_v42 }
0x1a52   :  { %5732 = vmatmul.msk.f32.vlgmr.msrb.gmra.mxu0 %vm121_vm1, %v2539_v48 }
0x1a91   :  { %v2453_v56 = vpop.f32.mrf.mxu2 }
0x1a92   :  { %v2457_v2 = vadd.f32 %v2453_v56, %v2291_v1 }
0x1a99   :  { %v2615_v55 = vpop.f32.mrf.mxu3 }
0x1a9a   :  { %v2621_v57 = vadd.f32 %v2615_v55, %v2456_v7 }
0x1a9c   :  { %v2626_v58 = vadd.f32 %v5974_v54, %v2621_v57 }
0x1a9e   :  { %v2628_v59 = vadd.f32 %v2626_v58, %v6884_v18 }
0x1aa0   :  { %v2630_v60 = vsel %vm88_vm0, %v2628_v59, 0.0 }
0x1aa1   :  { %2631 = vadd.xlane.f32.xlu2 %v2630_v60 }
0x1acf   :  { %v2589_v34 = vpop.f32.mrf.mxu0 }
0x1ad0   :  { %5734 = vmatmul.msk.f32.gmra.mxu3 %vm121_vm1, %v2589_v34 }
0x1b14   :  { %v2632_v11 = vpop.xlane.xlu2 %2631 }
0x1b15   :  { %v2636_v63 = vmul.f32 %v2632_v11, %v6545_v46 }
0x1b17   :  { %v2638_v61 = vsub.f32 %v2628_v59, %v2636_v63 }
0x1b19   :  { %v2640_v0 = vmul.f32 %v2638_v61, %v2638_v61 }
0x1b1b   :  { %v2642_v12 = vsel %vm88_vm0, %v2640_v0, 0.0  ;;  %v5978_v0 = vld [vmem:[%s7830_s12 + $0x2] ss:$0 sm:$0xff] }
0x1b1c   :  { %2643 = vadd.xlane.f32.xlu0 %v2642_v12 }
0x1b53   :  { %v2618_v3 = vpop.f32.mrf.mxu3 }
0x1b54   :  { %v2622_v18 = vadd.f32 %v2618_v3, %v2457_v2 }
0x1b56   :  { %v2627_v5 = vadd.f32 %v5974_v54, %v2622_v18 }
0x1b58   :  { %v2629_v6 = vadd.f32 %v2627_v5, %v6889_v25  ;;  %v5685_v25 = vld [vmem:[%s7827_s9 + $0x40] sm:$0xff] }
0x1b59   :  { %2710 = vmatpush.msrb.mxu1 %v5685_v25 }
0x1b5a   :  { %v2633_v8 = vsel %vm88_vm0, %v2629_v6, 0.0 }
0x1b5b   :  { %2634 = vadd.xlane.f32.xlu1 %v2633_v8 }
0x1b8f   :  { %v2644_v13 = vpop.xlane.xlu0 %2643 }
0x1b90   :  { %v2648_v14 = vmul.f32 %v2644_v13, %v6545_v46 }
0x1b92   :  { %v2650_v16 = vadd.f32 1e-05, %v2648_v14 }
0x1b94   :  { %6119 = vrsqrt.f32 %v2650_v16  ;;  %vm2658_vm2 = vweird.f32 %v2650_v16 }
0x1b9a   :  { %v6120_v17 = vpop.eup %6119 }
0x1b9b   :  { %v2653_v51 = vmul.f32 %v6120_v17, %v2650_v16  ;;  %vm2659_vm15 = vweird.f32 %v6120_v17 }
0x1b9c   :  { %vm2660_vm3 = vmor %vm2658_vm2, %vm2659_vm15 }
0x1b9d   :  { %v2654_v19 = vmul.f32 %v6120_v17, %v2653_v51  ;;  %v5741_v51 = vld [vmem:[%s7821_s3 + $0x70] sm:$0xff] }
0x1b9f   :  { %v2655_v29 = vmul.f32 0.5, %v2654_v19  ;;  %v5740_v19 = vld [vmem:[%s7821_s3 + $0x68] sm:$0xff] }
0x1ba1   :  { %v2656_v22 = vsub.f32 1.5, %v2655_v29  ;;  %v5739_v29 = vld [vmem:[%s7821_s3 + $0x60] sm:$0xff] }
0x1ba3   :  { %v2657_v23 = vmul.f32 %v6120_v17, %v2656_v22 }
0x1ba5   :  { %v2661_v26 = vsel %vm2660_vm3, %v6120_v17, %v2657_v23  ;;  %v5742_v17 = vld [vmem:[%s7821_s3 + $0x78] sm:$0xff] }
0x1ba6   :  { %v2672_v20 = vmul.f32 %v2661_v26, %v2638_v61  ;;  %2871 = vmatpush.msra.mxu0 %v5742_v17 }
0x1ba8   :  { %v2677_v33 = vmul.f32 %v5975_v24, %v2672_v20  ;;  %2872 = vmatpush.msra.mxu0 %v5741_v51 }
0x1baa   :  { %v2682_v35 = vadd.f32 %v5976_v28, %v2677_v33  ;;  %2873 = vmatpush.msra.mxu0 %v5740_v19 }
0x1bac   :  { %v2684_v30 = vmul.f32 %v2682_v35, %v6571_v15  ;;  %2874 = vmatpush.msra.mxu0 %v5739_v29 }
0x1bae   :  { %5735 = vmatmul.msk.f32.vlgmr.msrb.gmra.mxu1 %vm88_vm0, %v2684_v30 }
0x1bce   :  { %v2635_v31 = vpop.xlane.xlu1 %2634 }
0x1bcf   :  { %v2637_v32 = vmul.f32 %v2635_v31, %v6545_v46 }
0x1bd1   :  { %v2639_v41 = vsub.f32 %v2629_v6, %v2637_v32 }
0x1bd3   :  { %v2641_v42 = vmul.f32 %v2639_v41, %v2639_v41 }
0x1bd5   :  { %v2645_v43 = vsel %vm88_vm0, %v2641_v42, 0.0 }
0x1bd6   :  { %2646 = vadd.xlane.f32.xlu2 %v2645_v43 }
0x1c2b   :  { %v2712_v47 = vpop.f32.mrf.mxu1 }
0x1c2c   :  { %v2713_v48 = vadd.f32 %v5977_v45, %v2712_v47 }
0x1c2e   :  { %v2718_v49 = vmax.f32 %v2713_v48, 0.0 }
0x1c30   :  { %5737 = vmatmul.msk.f32.vlgmr.msrb.gmra.mxu2 %vm896_vm6, %v2718_v49 }
0x1c49   :  { %v2647_v38 = vpop.xlane.xlu2 %2646 }
0x1c4a   :  { %v2649_v37 = vmul.f32 %v2647_v38, %v6545_v46 }
0x1c4c   :  { %v2651_v53 = vadd.f32 1e-05, %v2649_v37 }
0x1c4e   :  { %6121 = vrsqrt.f32 %v2651_v53  ;;  %vm2668_vm5 = vweird.f32 %v2651_v53 }
0x1c54   :  { %v6122_v7 = vpop.eup %6121 }
0x1c55   :  { %v2663_v54 = vmul.f32 %v6122_v7, %v2651_v53  ;;  %vm2669_vm4 = vweird.f32 %v6122_v7 }
0x1c56   :  { %vm2670_vm7 = vmor %vm2668_vm5, %vm2669_vm4 }
0x1c57   :  { %v2664_v55 = vmul.f32 %v6122_v7, %v2663_v54 }
0x1c59   :  { %v2665_v57 = vmul.f32 0.5, %v2664_v55 }
0x1c5b   :  { %v2666_v58 = vsub.f32 1.5, %v2665_v57 }
0x1c5d   :  { %v2667_v59 = vmul.f32 %v6122_v7, %v2666_v58 }
0x1c5f   :  { %v2671_v60 = vsel %vm2670_vm7, %v6122_v7, %v2667_v59 }
0x1c60   :  { %v2673_v34 = vmul.f32 %v2671_v60, %v2639_v41 }
0x1c62   :  { %v2678_v11 = vmul.f32 %v5975_v24, %v2673_v34 }
0x1c64   :  { %v2683_v63 = vadd.f32 %v5976_v28, %v2678_v11 }
0x1c66   :  { %v2685_v61 = vmul.f32 %v2683_v63, %v6609_v50 }
0x1c68   :  { %5736 = vmatmul.msk.f32.gmra.mxu1 %vm88_vm0, %v2685_v61 }
0x1cb3   :  { %v2746_v12 = vpop.f32.mrf.mxu2 }
0x1cb4   :  { %v2747_v56 = vadd.f32 %v5978_v0, %v2746_v12 }
0x1cb6   :  { %v2752_v1 = vadd.f32 %v2747_v56, %v2684_v30 }
0x1cb8   :  { %v2754_v2 = vsel %vm88_vm0, %v2752_v1, 0.0 }
0x1cb9   :  { %2755 = vadd.xlane.f32.xlu2 %v2754_v2 }
0x1ce5   :  { %v2715_v3 = vpop.f32.mrf.mxu1 }
0x1ce6   :  { %v2716_v18 = vadd.f32 %v5977_v45, %v2715_v3  ;;  %v7148_v3 = vld [vmem:[%s7819_s1] ss:$0 sm:$0xff] }
0x1ce8   :  { %v2719_v5 = vmax.f32 %v2716_v18, 0.0 }
0x1cea   :  { %5738 = vmatmul.msk.f32.gmra.mxu2 %vm896_vm6, %v2719_v5 }
0x1d2c   :  { %v2756_v6 = vpop.xlane.xlu2 %2755 }
0x1d2d   :  { %v2760_v8 = vmul.f32 %v2756_v6, %v6545_v46 }
0x1d2f   :  { %v2762_v9 = vsub.f32 %v2752_v1, %v2760_v8 }
0x1d31   :  { %v2764_v10 = vmul.f32 %v2762_v9, %v2762_v9 }
0x1d33   :  { %v2766_v62 = vsel %vm88_vm0, %v2764_v10, 0.0 }
0x1d34   :  { %2767 = vadd.xlane.f32.xlu2 %v2766_v62 }
0x1d6d   :  { %v2749_v25 = vpop.f32.mrf.mxu2 }
0x1d6e   :  { %v2750_v13 = vadd.f32 %v5978_v0, %v2749_v25 }
0x1d70   :  { %v2753_v14 = vadd.f32 %v2750_v13, %v2685_v61 }
0x1d72   :  { %v2757_v16 = vsel %vm88_vm0, %v2753_v14, 0.0 }
0x1d73   :  { %2758 = vadd.xlane.f32.xlu2 %v2757_v16 }
0x1da7   :  { %v2768_v22 = vpop.xlane.xlu2 %2767 }
0x1da8   :  { %v2772_v23 = vmul.f32 %v2768_v22, %v6545_v46 }
0x1daa   :  { %v2774_v24 = vadd.f32 1e-05, %v2772_v23 }
0x1dac   :  { %6123 = vrsqrt.f32 %v2774_v24  ;;  %vm2782_vm9 = vweird.f32 %v2774_v24 }
0x1db2   :  { %v6124_v26 = vpop.eup %6123 }
0x1db3   :  { %v2777_v28 = vmul.f32 %v6124_v26, %v2774_v24  ;;  %vm2783_vm8 = vweird.f32 %v6124_v26 }
0x1db4   :  { %vm2784_vm10 = vmor %vm2782_vm9, %vm2783_vm8 }
0x1db5   :  { %v2778_v20 = vmul.f32 %v6124_v26, %v2777_v28 }
0x1db7   :  { %v2779_v33 = vmul.f32 0.5, %v2778_v20 }
0x1db9   :  { %v2780_v35 = vsub.f32 1.5, %v2779_v33  ;;  %v7175_v33 = vld [vmem:[%s7819_s1 + $0x1] ss:$0 sm:$0xff] }
0x1dbb   :  { %v2781_v30 = vmul.f32 %v6124_v26, %v2780_v35 }
0x1dbd   :  { %v2785_v39 = vsel %vm2784_vm10, %v6124_v26, %v2781_v30 }
0x1dbe   :  { %v2796_v27 = vmul.f32 %v2785_v39, %v2762_v9 }
0x1dc0   :  { %v2801_v21 = vmul.f32 %v5979_v36, %v2796_v27 }
0x1dc2   :  { %v2806_v31 = vadd.f32 %v5980_v40, %v2801_v21 }
0x1dc4   :  { %v7111_v32 = vmul.f32 %v2806_v31, %v6571_v15 }
0x1dc6   :  { %5767 = vmatmul.msk.f32.vlgmr.msra.gmra.mxu0 %vm88_vm0, %v7111_v32 }
0x1de6   :  { %v2759_v41 = vpop.xlane.xlu2 %2758 }
0x1de7   :  { %v2761_v42 = vmul.f32 %v2759_v41, %v6545_v46 }
0x1de9   :  { %v2763_v43 = vsub.f32 %v2753_v14, %v2761_v42 }
0x1deb   :  { %v2765_v52 = vmul.f32 %v2763_v43, %v2763_v43 }
0x1ded   :  { %v2769_v44 = vsel %vm88_vm0, %v2765_v52, 0.0 }
0x1dee   :  { %2770 = vadd.xlane.f32.xlu2 %v2769_v44 }
0x1e43   :  { %v2876_v45 = vpop.f32.mrf.mxu0 }
0x1e44   :  { %v7120_v47 = vadd.f32 %v5981_v4, %v2876_v45 }
0x1e46   :  { %3016 = vrot.lane.b32.xlu1 %v7120_v47, %s7873_s16  ;;  %2883 = vrot.lane.b32.xlu0 %v7120_v47, %s7874_s17 }
0x1e47   :  { %3014 = vrot.lane.b32.xlu2 %v7120_v47, %s7875_s26 }
0x1e61   :  { %v2771_v48 = vpop.xlane.xlu2 %2770 }
0x1e62   :  { %v2773_v49 = vmul.f32 %v2771_v48, %v6545_v46 }
0x1e64   :  { %v2775_v38 = vadd.f32 1e-05, %v2773_v49 }
0x1e66   :  { %6125 = vrsqrt.f32 %v2775_v38  ;;  %vm2792_vm12 = vweird.f32 %v2775_v38 }
0x1e6c   :  { %v6126_v37 = vpop.eup %6125 }
0x1e6d   :  { %v2787_v53 = vmul.f32 %v6126_v37, %v2775_v38  ;;  %vm2793_vm11 = vweird.f32 %v6126_v37 }
0x1e6e   :  { %vm2794_vm13 = vmor %vm2792_vm12, %vm2793_vm11 }
0x1e6f   :  { %v2788_v7 = vmul.f32 %v6126_v37, %v2787_v53  ;;  %v5745_v53 = vld [vmem:[%s7823_s5 + $0x68] sm:$0xff] }
0x1e71   :  { %v2789_v54 = vmul.f32 0.5, %v2788_v7 }
0x1e73   :  { %v2790_v55 = vsub.f32 1.5, %v2789_v54 }
0x1e75   :  { %v2791_v57 = vmul.f32 %v6126_v37, %v2790_v55 }
0x1e77   :  { %v2795_v58 = vsel %vm2794_vm13, %v6126_v37, %v2791_v57  ;;  %v5744_v37 = vld [vmem:[%s7823_s5 + $0x60] sm:$0xff] }
0x1e78   :  { %v2797_v59 = vmul.f32 %v2795_v58, %v2763_v43 }
0x1e7a   :  { %v2802_v60 = vmul.f32 %v5979_v36, %v2797_v59 }
0x1e7c   :  { %v2807_v34 = vadd.f32 %v5980_v40, %v2802_v60 }
0x1e7e   :  { %v7130_v11 = vmul.f32 %v2807_v34, %v6609_v50 }
0x1e80   :  { %5768 = vmatmul.msk.f32.gmra.mxu0 %vm88_vm0, %v7130_v11 }
0x1ea1   :  { %v3015_v0 = vpop.permute.xlu2 %3014 }
0x1eb8   :  { %v3017_v63 = vpop.permute.xlu1 %3016  ;;  %v2884_v61 = vpop.permute.xlu0 %2883 }
0x1eb9   :  { %5769 = vmatpush.xpose.msk.msrb.mxu3 %vm121_vm1, %v2884_v61 }
0x1ebc   :  { %5770 = vmatmul.msk.f32.vlgmr.msrb.gmra.mxu3 %vm121_vm1, %v7120_v47 }
0x1ebd   :  { %5775 = vmatpush.xpose.msk.msra.mxu3 %vm121_vm1, %v3017_v63 }
0x1ec1   :  { %3169 = vmatpush.msrb.mxu3 %v5745_v53 }
0x1ec4   :  { %5776 = vmatmul.msk.f32.vlgmr.msra.gmra.mxu3 %vm121_vm1, %v3015_v0 }
0x1efd   :  { %v2879_v12 = vpop.f32.mrf.mxu0 }
0x1efe   :  { %v7139_v56 = vadd.f32 %v5981_v4, %v2879_v12 }
0x1f00   :  { %2910 = vrot.lane.b32.xlu0 %v7139_v56, %s7874_s17 }
0x1f08   :  { %2962 = vrot.lane.b32.xlu0 %v7120_v47, %s7876_s27 }
0x1f3f   :  { %v2906_v1 = vpop.f32.mrf.mxu3 }
0x1f40   :  { %v2936_v2 = vmul.f32 0.35355338, %v2906_v1 }
0x1f42   :  { %v2938_v18 = vadd.f32 %v7148_v3, %v2936_v2 }
0x1f44   :  { %v2940_v5 = vsel %vm121_vm1, %v2938_v18, -inf }
0x1f45   :  { %2941 = vmax.xlane.f32.xlu1 %v2940_v5 }
0x1f47   :  { %v3039_v6 = vpop.f32.mrf.mxu3 }
0x1f48   :  { %v3070_v8 = vmul.f32 0.35355338, %v3039_v6 }
0x1f4a   :  { %v3072_v9 = vadd.f32 %v7148_v3, %v3070_v8 }
0x1f4c   :  { %v3074_v10 = vsel %vm121_vm1, %v3072_v9, -inf }
0x1f4d   :  { %3075 = vmax.xlane.f32.xlu2 %v3074_v10 }
0x1f5e   :  { %3044 = vrot.lane.b32.xlu1 %v7139_v56, %s7873_s16 }
0x1f66   :  { %3208 = vrot.lane.b32.xlu1 %v7120_v47, %s7871_s24 }
0x1f72   :  { %v2911_v62 = vpop.permute.xlu0 %2910 }
0x1f73   :  { %5771 = vmatpush.xpose.msk.msra.mxu1 %vm121_vm1, %v2911_v62 }
0x1f76   :  { %5772 = vmatmul.msk.f32.vlgmr.msra.gmra.mxu1 %vm121_vm1, %v7139_v56 }
0x1f7a   :  { %v2963_v25 = vpop.permute.xlu0 %2962 }
0x1f7b   :  { %2983 = vmatpush.msra.mxu2 %v2963_v25 }
0x1fb8   :  { %v2942_v13 = vpop.xlane.xlu1 %2941 }
0x1fb9   :  { %v2946_v14 = vsub.f32 %v2938_v18, %v2942_v13 }
0x1fbb   :  { %v2948_v16 = vmul.f32 1.442695, %v2946_v14 }
0x1fbd   :  { %6127 = vpow2.f32 %v2948_v16 }
0x1fc0   :  { %v3076_v17 = vpop.xlane.xlu2 %3075 }
0x1fc1   :  { %v3080_v51 = vsub.f32 %v3072_v9, %v3076_v17 }
0x1fc3   :  { %v6128_v19 = vpop.eup %6127  ;;  %v3082_v29 = vmul.f32 1.442695, %v3080_v51 }
0x1fc4   :  { %v2952_v22 = vsel %vm121_vm1, %v6128_v19, 0.0 }
0x1fc5   :  { %6129 = vpow2.f32 %v3082_v29  ;;  %2953 = vadd.xlane.f32.xlu0 %v2952_v22 }
0x1fcb   :  { %v6130_v23 = vpop.eup %6129 }
0x1fcc   :  { %v3086_v24 = vsel %vm121_vm1, %v6130_v23, 0.0 }
0x1fcd   :  { %3087 = vadd.xlane.f32.xlu2 %v3086_v24 }
0x1fd0   :  { %v3045_v26 = vpop.permute.xlu1 %3044 }
0x1fd1   :  { %5777 = vmatpush.xpose.msk.msrb.mxu1 %vm121_vm1, %v3045_v26 }
0x1fd5   :  { %3198 = vmatpush.msra.mxu1 %v5744_v37 }
0x1fd8   :  { %v3209_v43 = vpop.permute.xlu1 %3208 }
0x1fd9   :  { %3096 = vrot.lane.b32.xlu0 %v7120_v47, %s7872_s19 }
0x1fe1   :  { %3206 = vrot.lane.b32.xlu0 %v7120_v47, %s7866_s28 }
0x1fe5   :  { %3042 = vrot.lane.b32.xlu2 %v7139_v56, %s7875_s26 }
0x1fe9   :  { %2988 = vrot.lane.b32.xlu0 %v7139_v56, %s7876_s27 }
0x1ff3   :  { %v2933_v28 = vpop.f32.mrf.mxu1 }
0x1ff4   :  { %v2937_v20 = vmul.f32 0.35355338, %v2933_v28 }
0x1ff6   :  { %v2939_v35 = vadd.f32 %v7175_v33, %v2937_v20 }
0x1ff8   :  { %v2943_v30 = vsel %vm121_vm1, %v2939_v35, -inf }
0x200e   :  { %2944 = vmax.xlane.f32.xlu2 %v2943_v30 }
0x2038   :  { %v2954_v36 = vpop.xlane.xlu0 %2953 }
0x2039   :  { %6131 = vrcp.f32 %v2954_v36 }
0x203f   :  { %v6132_v39 = vpop.eup %6131 }
0x2040   :  { %v2960_v27 = vmul.f32 %v6132_v39, %v6128_v19  ;;  %v3088_v40 = vpop.xlane.xlu2 %3087  ;;  %v5746_v39 = vld [vmem:[%s7823_s5 + $0x70] sm:$0xff] }
0x2041   :  { %6133 = vrcp.f32 %v3088_v40  ;;  %3361 = vmatpush.msra.mxu3 %v5746_v39 }
0x2042   :  { %5773 = vmatmul.msk.f32.vlgmr.msra.gmra.mxu2 %vm121_vm1, %v2960_v27 }
0x2047   :  { %v6134_v21 = vpop.eup %6133 }
0x2048   :  { %v3043_v31 = vpop.permute.xlu2 %3042  ;;  %v3094_v41 = vmul.f32 %v6134_v21, %v6130_v23 }
0x2049   :  { %5778 = vmatmul.msk.f32.vlgmr.msrb.gmra.mxu1 %vm121_vm1, %v3043_v31 }
0x204b   :  { %v3097_v42 = vpop.permute.xlu0 %3096 }
0x204c   :  { %3117 = vmatpush.msrb.mxu2 %v3097_v42 }
0x204d   :  { %5779 = vmatmul.msk.f32.vlgmr.msrb.gmra.mxu2 %vm121_vm1, %v3094_v41 }
0x204e   :  { %5785 = vmatpush.xpose.msk.msra.mxu2 %vm121_vm1, %v3209_v43 }
0x2053   :  { %v3207_v52 = vpop.permute.xlu0 %3206 }
0x2055   :  { %5786 = vmatmul.msk.f32.vlgmr.msra.gmra.mxu2 %vm121_vm1, %v3207_v52 }
0x205b   :  { %v2989_v44 = vpop.permute.xlu0 %2988 }
0x205c   :  { %3009 = vmatpush.msrb.mxu0 %v2989_v44 }
0x2081   :  { %v2945_v4 = vpop.xlane.xlu2 %2944 }
0x2082   :  { %v2947_v45 = vsub.f32 %v2939_v35, %v2945_v4 }
0x2084   :  { %v2950_v48 = vmul.f32 1.442695, %v2947_v45 }
0x2086   :  { %6135 = vpow2.f32 %v2950_v48 }
0x208c   :  { %v6136_v49 = vpop.eup %6135 }
0x208d   :  { %v2955_v38 = vsel %vm121_vm1, %v6136_v49, 0.0 }
0x208e   :  { %2956 = vadd.xlane.f32.xlu1 %v2955_v38 }
0x20c5   :  { %v2985_v7 = vpop.f32.mrf.mxu2 }
0x20c6   :  { %v3067_v54 = vpop.f32.mrf.mxu1  ;;  %5783 = vmatmul.msk.f32.vlgmr.msra.gmra.mxu1 %vm121_vm1, %v2985_v7 }
0x20c7   :  { %v3071_v55 = vmul.f32 0.35355338, %v3067_v54 }
0x20c9   :  { %v3073_v57 = vadd.f32 %v7175_v33, %v3071_v55 }
0x20cb   :  { %v3077_v58 = vsel %vm121_vm1, %v3073_v57, -inf }
0x20cc   :  { %3078 = vmax.xlane.f32.xlu0 %v3077_v58 }
0x20d0   :  { %v3119_v59 = vpop.f32.mrf.mxu2 }
0x20d1   :  { %5781 = vmatmul.msk.f32.vlgmr.msrb.gmra.mxu3 %vm121_vm1, %v3119_v59 }
0x20d8   :  { %v3231_v60 = vpop.f32.mrf.mxu2 }
0x20d9   :  { %v3262_v34 = vmul.f32 0.35355338, %v3231_v60 }
0x20db   :  { %v3264_v63 = vadd.f32 %v7148_v3, %v3262_v34 }
0x20dd   :  { %v3266_v61 = vsel %vm121_vm1, %v3264_v63, -inf }
0x20de   :  { %3267 = vmax.xlane.f32.xlu2 %v3266_v61 }
0x20e0   :  { %3234 = vrot.lane.b32.xlu0 %v7139_v56, %s7866_s28 }
0x20e8   :  { %3373 = vrot.lane.b32.xlu0 %v7120_v47, %s7868_s21 }
0x20f0   :  { %3288 = vrot.lane.b32.xlu0 %v7120_v47, %s7869_s23 }
0x20f6   :  { %3122 = vrot.lane.b32.xlu2 %v7139_v56, %s7872_s19 }
0x20f8   :  { %3399 = vrot.lane.b32.xlu0 %v7139_v56, %s7867_s2 }
0x2101   :  { %v2957_v0 = vpop.xlane.xlu1 %2956 }
0x2102   :  { %6137 = vrcp.f32 %v2957_v0 }
0x2108   :  { %v6138_v12 = vpop.eup %6137 }
0x2109   :  { %v2961_v1 = vmul.f32 %v6138_v12, %v6136_v49 }
0x210b   :  { %5774 = vmatmul.msk.f32.vlgmr.msrb.gmra.mxu0 %vm121_vm1, %v2961_v1 }
0x213f   :  { %v3079_v2 = vpop.xlane.xlu0 %3078 }
0x2140   :  { %v3081_v18 = vsub.f32 %v3073_v57, %v3079_v2 }
0x2142   :  { %v3084_v5 = vmul.f32 1.442695, %v3081_v18 }
0x2143   :  { %v7229_v40 = vpop.f32.mrf.mxu1 }
0x2144   :  { %6139 = vpow2.f32 %v3084_v5 }
0x214a   :  { %v6140_v6 = vpop.eup %6139 }
0x214b   :  { %v3089_v8 = vsel %vm121_vm1, %v6140_v6, 0.0 }
0x214c   :  { %3090 = vadd.xlane.f32.xlu1 %v3089_v8 }
0x2151   :  { %v3268_v9 = vpop.xlane.xlu2 %3267 }
0x2152   :  { %v3272_v10 = vsub.f32 %v3264_v63, %v3268_v9  ;;  %v3235_v62 = vpop.permute.xlu0 %3234 }
0x2154   :  { %v3274_v25 = vmul.f32 1.442695, %v3272_v10 }
0x2156   :  { %6141 = vpow2.f32 %v3274_v25 }
0x2159   :  { %v3123_v13 = vpop.permute.xlu2 %3122 }
0x215a   :  { %v3374_v14 = vpop.permute.xlu0 %3373  ;;  %3143 = vmatpush.msra.mxu0 %v3123_v13 }
0x215b   :  { %5793 = vmatpush.xpose.msk.msrb.mxu1 %vm121_vm1, %v3374_v14 }
0x215c   :  { %v6142_v16 = vpop.eup %6141 }
0x215d   :  { %v3278_v17 = vsel %vm121_vm1, %v6142_v16, 0.0 }
0x215e   :  { %3279 = vadd.xlane.f32.xlu2 %v3278_v17 }
0x2162   :  { %v3289_v51 = vpop.permute.xlu0 %3288 }
0x2163   :  { %3309 = vmatpush.msrb.mxu2 %v3289_v51 }
0x2165   :  { %3236 = vrot.lane.b32.xlu1 %v7139_v56, %s7871_s24 }
0x216a   :  { %v3400_v36 = vpop.permute.xlu0 %3399 }
0x216d   :  { %3371 = vrot.lane.b32.xlu1 %v7120_v47, %s7867_s2 }
0x2175   :  { %3401 = vrot.lane.b32.xlu1 %v7139_v56, %s7868_s21 }
0x2188   :  { %v3011_v19 = vpop.f32.mrf.mxu0 }
0x2189   :  { %5784 = vmatmul.msk.f32.gmra.mxu1 %vm121_vm1, %v3011_v19 }
0x21bf   :  { %v3091_v29 = vpop.xlane.xlu1 %3090 }
0x21c0   :  { %6143 = vrcp.f32 %v3091_v29 }
0x21c6   :  { %v6144_v22 = vpop.eup %6143 }
0x21c7   :  { %v3095_v23 = vmul.f32 %v6144_v22, %v6140_v6 }
0x21c9   :  { %5780 = vmatmul.msk.f32.vlgmr.msra.gmra.mxu0 %vm121_vm1, %v3095_v23 }
0x21d1   :  { %v3280_v24 = vpop.xlane.xlu2 %3279 }
0x21d2   :  { %6145 = vrcp.f32 %v3280_v24 }
0x21d7   :  { %v3237_v26 = vpop.permute.xlu1 %3236 }
0x21d8   :  { %v6146_v28 = vpop.eup %6145  ;;  %5787 = vmatpush.xpose.msk.msrb.mxu0 %vm121_vm1, %v3237_v26 }
0x21d9   :  { %v3286_v20 = vmul.f32 %v6146_v28, %v6142_v16 }
0x21db   :  { %5788 = vmatmul.msk.f32.vlgmr.msrb.gmra.mxu0 %vm121_vm1, %v3235_v62  ;;  %5789 = vmatmul.msk.f32.vlgmr.msrb.gmra.mxu2 %vm121_vm1, %v3286_v20  ;;  %v5982_v20 = vld [vmem:[%s7824_s6 + $0x3] ss:$0 sm:$0xff] }
0x21df   :  { %v3372_v35 = vpop.permute.xlu1 %3371 }
0x21e0   :  { %5794 = vmatmul.msk.f32.vlgmr.msrb.gmra.mxu1 %vm121_vm1, %v3372_v35 }
0x21e7   :  { %v3402_v30 = vpop.permute.xlu1 %3401 }
0x21e8   :  { %5795 = vmatpush.xpose.msk.msra.mxu2 %vm121_vm1, %v3402_v30 }
0x21eb   :  { %5796 = vmatmul.msk.f32.vlgmr.msra.gmra.mxu2 %vm121_vm1, %v3400_v36 }
0x2206   :  { %v7231_v21 = vpop.f32.mrf.mxu1 }
0x2246   :  { %v3145_v27 = vpop.f32.mrf.mxu0 }
0x2247   :  { %5782 = vmatmul.msk.f32.gmra.mxu3 %vm121_vm1, %v3145_v27 }
0x2258   :  { %v3259_v31 = vpop.f32.mrf.mxu0 }
0x2259   :  { %v3263_v41 = vmul.f32 0.35355338, %v3259_v31 }
0x225b   :  { %v3265_v42 = vadd.f32 %v7175_v33, %v3263_v41 }
0x225d   :  { %v3396_v43 = vpop.f32.mrf.mxu1  ;;  %v3269_v52 = vsel %vm121_vm1, %v3265_v42, -inf }
0x225e   :  { %v3427_v44 = vmul.f32 0.35355338, %v3396_v43  ;;  %3270 = vmax.xlane.f32.xlu1 %v3269_v52  ;;  %v3311_v4 = vpop.f32.mrf.mxu2 }
0x225f   :  { %5791 = vmatmul.msk.f32.vlgmr.msra.gmra.mxu3 %vm121_vm1, %v3311_v4 }
0x2260   :  { %v3429_v45 = vadd.f32 %v7148_v3, %v3427_v44 }
0x2262   :  { %v3431_v48 = vsel %vm121_vm1, %v3429_v45, -inf }
0x2263   :  { %3432 = vmax.xlane.f32.xlu0 %v3431_v48 }
0x226e   :  { %v3424_v7 = vpop.f32.mrf.mxu2 }
0x226f   :  { %v3428_v57 = vmul.f32 0.35355338, %v3424_v7 }
0x2271   :  { %v3430_v60 = vadd.f32 %v7175_v33, %v3428_v57 }
0x2273   :  { %v3434_v34 = vsel %vm121_vm1, %v3430_v60, -inf }
0x2277   :  { %3314 = vrot.lane.b32.xlu1 %v7139_v56, %s7869_s23 }
0x22d1   :  { %v3271_v49 = vpop.xlane.xlu1 %3270 }
0x22d2   :  { %v3273_v38 = vsub.f32 %v3265_v42, %v3271_v49 }
0x22d4   :  { %v3276_v37 = vmul.f32 1.442695, %v3273_v38 }
0x22d6   :  { %6147 = vpow2.f32 %v3276_v37  ;;  %v3433_v53 = vpop.xlane.xlu0 %3432  ;;  %v5754_v37 = vld [vmem:[%s7827_s9 + $0x78] sm:$0xff] }
0x22d7   :  { %v3437_v55 = vsub.f32 %v3429_v45, %v3433_v53  ;;  %v5752_v53 = vld [vmem:[%s7827_s9 + $0x68] sm:$0xff] }
0x22d9   :  { %v3439_v59 = vmul.f32 1.442695, %v3437_v55 }
0x22db   :  { %6149 = vpow2.f32 %v3439_v59 }
0x22dc   :  { %v6148_v54 = vpop.eup %6147 }
0x22dd   :  { %v3281_v58 = vsel %vm121_vm1, %v6148_v54, 0.0 }
0x22de   :  { %3282 = vadd.xlane.f32.xlu2 %v3281_v58 }
0x22e1   :  { %v6150_v61 = vpop.eup %6149 }
0x22e2   :  { %v3443_v0 = vsel %vm121_vm1, %v6150_v61, 0.0 }
0x22e6   :  { %3435 = vmax.xlane.f32.xlu2 %v3434_v34 }
0x22e9   :  { %v3315_v63 = vpop.permute.xlu1 %3314 }
0x22ea   :  { %3335 = vmatpush.msra.mxu0 %v3315_v63 }
0x22ee   :  { %3444 = vadd.xlane.f32.xlu2 %v3443_v0 }
0x2306   :  { %3453 = vrot.lane.b32.xlu2 %v7120_v47, %s7870_s20  ;;  %v5747_v47 = vld [vmem:[%s7823_s5 + $0x78] sm:$0xff] }
0x2307   :  { %3526 = vmatpush.msrb.mxu2 %v5747_v47  ;;  %v5761_v47 = vld [vmem:[%s7829_s11 + $0xe8] sm:$0xff] }
0x2351   :  { %v3283_v12 = vpop.xlane.xlu2 %3282 }
0x2352   :  { %6151 = vrcp.f32 %v3283_v12 }
0x2358   :  { %v6152_v1 = vpop.eup %6151 }
0x2359   :  { %v3287_v2 = vmul.f32 %v6152_v1, %v6148_v54  ;;  %v3436_v18 = vpop.xlane.xlu2 %3435 }
0x235a   :  { %v3438_v5 = vsub.f32 %v3430_v60, %v3436_v18  ;;  %v5983_v18 = vld [vmem:[%s7825_s7 + $0x3] ss:$0 sm:$0xff] }
0x235b   :  { %5790 = vmatmul.msk.f32.vlgmr.msra.gmra.mxu0 %vm121_vm1, %v3287_v2 }
0x235c   :  { %v3441_v6 = vmul.f32 1.442695, %v3438_v5 }
0x235e   :  { %6153 = vpow2.f32 %v3441_v6  ;;  %v5984_v6 = vld [vmem:[%s7826_s8 + $0x3] ss:$0 sm:$0xff]  ;;  %s7877_s8 = sld [smem:[#allocation5_spill]] }
0x2361   :  { %v3445_v8 = vpop.xlane.xlu2 %3444 }
0x2362   :  { %6155 = vrcp.f32 %v3445_v8 }
0x2364   :  { %v6154_v9 = vpop.eup %6153 }
0x2365   :  { %v3446_v10 = vsel %vm121_vm1, %v6154_v9, 0.0 }
0x2366   :  { %3447 = vadd.xlane.f32.xlu0 %v3446_v10 }
0x2368   :  { %v6156_v62 = vpop.eup %6155 }
0x2369   :  { %v3451_v25 = vmul.f32 %v6156_v62, %v6150_v61  ;;  %v3454_v13 = vpop.permute.xlu2 %3453 }
0x236a   :  { %3474 = vmatpush.msrb.mxu0 %v3454_v13  ;;  %v5762_v13 = vld [vmem:[%s7829_s11 + $0xf0] sm:$0xff] }
0x236b   :  { %5797 = vmatmul.msk.f32.vlgmr.msrb.gmra.mxu0 %vm121_vm1, %v3451_v25  ;;  %v5763_v25 = vld [vmem:[%s7829_s11 + $0xf8] sm:$0xff] }
0x236c   :  { %3620 = vmatpush.msra.mxu0 %v5754_v37  ;;  %3650 = vmatpush.msrb.mxu3 %v5763_v25 }
0x236e   :  { %3651 = vmatpush.msrb.mxu3 %v5762_v13 }
0x2370   :  { %3652 = vmatpush.msrb.mxu3 %v5761_v47  ;;  %v5987_v47 = vld [vmem:[%s7831_s13 + $0x3] ss:$0 sm:$0xff] }
0x237a   :  { %3479 = vrot.lane.b32.xlu0 %v7139_v56, %s7870_s20  ;;  %v3171_v56 = vpop.f32.mrf.mxu3 }
0x237b   :  { %v3201_v24 = vadd.f32 %v7229_v40, %v3171_v56 }
0x2382   :  { %v3174_v22 = vpop.f32.mrf.mxu3 }
0x2383   :  { %v3204_v43 = vadd.f32 %v7231_v21, %v3174_v22  ;;  %v5753_v21 = vld [vmem:[%s7827_s9 + $0x70] sm:$0xff] }
0x2384   :  { %3621 = vmatpush.msra.mxu0 %v5753_v21 }
0x2386   :  { %3622 = vmatpush.msra.mxu0 %v5752_v53 }
0x238a   :  { %v3363_v23 = vpop.f32.mrf.mxu3 }
0x238b   :  { %v3369_v26 = vadd.f32 %v3363_v23, %v3201_v24 }
0x23d8   :  { %v3337_v14 = vpop.f32.mrf.mxu0 }
0x23d9   :  { %5792 = vmatmul.msk.f32.gmra.mxu3 %vm121_vm1, %v3337_v14  ;;  %v3448_v16 = vpop.xlane.xlu0 %3447  ;;  %v5760_v14 = vld [vmem:[%s7829_s11 + $0xe0] sm:$0xff] }
0x23da   :  { %6157 = vrcp.f32 %v3448_v16  ;;  %3653 = vmatpush.msrb.mxu3 %v5760_v14  ;;  %v5759_v16 = vld [vmem:[%s7829_s11 + $0xd8] sm:$0xff] }
0x23dc   :  { %3654 = vmatpush.msrb.mxu3 %v5759_v16  ;;  %v5988_v16 = vld [vmem:[%s7832_s14 + $0x3] ss:$0 sm:$0xff] }
0x23e0   :  { %v6158_v51 = vpop.eup %6157 }
0x23e1   :  { %v3452_v19 = vmul.f32 %v6158_v51, %v6154_v9  ;;  %v5757_v51 = vld [vmem:[%s7829_s11 + $0xc8] sm:$0xff] }
0x23e8   :  { %v3476_v17 = vpop.f32.mrf.mxu0 }
0x23e9   :  { %5799 = vmatmul.msk.f32.vlgmr.msrb.gmra.mxu2 %vm121_vm1, %v3476_v17  ;;  %v5758_v17 = vld [vmem:[%s7829_s11 + $0xd0] sm:$0xff] }
0x23ea   :  { %3655 = vmatpush.msrb.mxu3 %v5758_v17 }
0x23ec   :  { %v3480_v29 = vpop.permute.xlu0 %3479  ;;  %3656 = vmatpush.msrb.mxu3 %v5757_v51 }
0x23ed   :  { %3500 = vmatpush.msra.mxu1 %v3480_v29 }
0x23ee   :  { %5798 = vmatmul.msk.f32.vlgmr.msra.gmra.mxu1 %vm121_vm1, %v3452_v19  ;;  %v5756_v19 = vld [vmem:[%s7829_s11 + $0xc0] sm:$0xff] }
0x23ef   :  { %3657 = vmatpush.msrb.mxu3 %v5756_v19 }
0x245c   :  { %v3366_v42 = vpop.f32.mrf.mxu3 }
0x245d   :  { %v3370_v44 = vadd.f32 %v3366_v42, %v3204_v43 }
0x246b   :  { %v3502_v28 = vpop.f32.mrf.mxu1 }
0x246c   :  { %v3528_v35 = vpop.f32.mrf.mxu2  ;;  %5800 = vmatmul.msk.f32.gmra.mxu2 %vm121_vm1, %v3502_v28 }
0x246d   :  { %v3534_v30 = vadd.f32 %v3528_v35, %v3369_v26 }
0x246f   :  { %v3539_v36 = vadd.f32 %v5982_v20, %v3534_v30 }
0x2471   :  { %v3541_v39 = vadd.f32 %v3539_v36, %v7111_v32  ;;  %v5985_v36 = vld [vmem:[%s7828_s10 + $0x3] ss:$0 sm:$0xff] }
0x2473   :  { %v3543_v27 = vsel %vm88_vm0, %v3541_v39, 0.0 }
0x2474   :  { %3544 = vadd.xlane.f32.xlu1 %v3543_v27 }
0x24e7   :  { %v3545_v31 = vpop.xlane.xlu1 %3544 }
0x24e8   :  { %v3549_v41 = vmul.f32 %v3545_v31, %v6545_v46 }
0x24ea   :  { %v3551_v40 = vsub.f32 %v3541_v39, %v3549_v41 }
0x24ec   :  { %v3553_v52 = vmul.f32 %v3551_v40, %v3551_v40 }
0x24ee   :  { %v3555_v4 = vsel %vm88_vm0, %v3553_v52, 0.0 }
0x24ef   :  { %3556 = vadd.xlane.f32.xlu0 %v3555_v4  ;;  %v3531_v45 = vpop.f32.mrf.mxu2  ;;  %v5986_v4 = vld [vmem:[%s7830_s12 + $0x3] ss:$0 sm:$0xff] }
0x24f0   :  { %v3535_v48 = vadd.f32 %v3531_v45, %v3370_v44 }
0x24f2   :  { %v3540_v49 = vadd.f32 %v5982_v20, %v3535_v48 }
0x24f4   :  { %v3542_v32 = vadd.f32 %v3540_v49, %v7130_v11  ;;  %v5751_v11 = vld [vmem:[%s7827_s9 + $0x60] sm:$0xff] }
0x24f5   :  { %3623 = vmatpush.msra.mxu0 %v5751_v11 }
0x24f6   :  { %v3546_v38 = vsel %vm88_vm0, %v3542_v32, 0.0 }
0x24f7   :  { %3547 = vadd.xlane.f32.xlu2 %v3546_v38 }
0x2562   :  { %v3557_v7 = vpop.xlane.xlu0 %3556 }
0x2563   :  { %v3561_v54 = vmul.f32 %v3557_v7, %v6545_v46 }
0x2565   :  { %v3563_v55 = vadd.f32 1e-05, %v3561_v54 }
0x2567   :  { %6159 = vrsqrt.f32 %v3563_v55  ;;  %vm3571_vm15 = vweird.f32 %v3563_v55 }
0x256a   :  { %v3548_v57 = vpop.xlane.xlu2 %3547 }
0x256b   :  { %v3550_v58 = vmul.f32 %v3548_v57, %v6545_v46 }
0x256d   :  { %v6160_v59 = vpop.eup %6159  ;;  %v3552_v60 = vsub.f32 %v3542_v32, %v3550_v58 }
0x256e   :  { %v3566_v34 = vmul.f32 %v6160_v59, %v3563_v55  ;;  %vm3572_vm14 = vweird.f32 %v6160_v59 }
0x256f   :  { %v3554_v63 = vmul.f32 %v3552_v60, %v3552_v60  ;;  %vm3573_vm2 = vmor %vm3571_vm15, %vm3572_vm14 }
0x2570   :  { %v3567_v61 = vmul.f32 %v6160_v59, %v3566_v34  ;;  %v5806_v34 = vld [vmem:[%s7821_s3 + $0x88] sm:$0xff] }
0x2571   :  { %v3558_v0 = vsel %vm88_vm0, %v3554_v63, 0.0  ;;  %v5805_v63 = vld [vmem:[%s7821_s3 + $0x80] sm:$0xff] }
0x2572   :  { %v3568_v12 = vmul.f32 0.5, %v3567_v61  ;;  %3559 = vadd.xlane.f32.xlu1 %v3558_v0 }
0x2574   :  { %v3569_v1 = vsub.f32 1.5, %v3568_v12 }
0x2576   :  { %v3570_v2 = vmul.f32 %v6160_v59, %v3569_v1 }
0x2578   :  { %v3574_v5 = vsel %vm3573_vm2, %v6160_v59, %v3570_v2  ;;  %v5808_v59 = vld [vmem:[%s7821_s3 + $0x98] sm:$0xff] }
0x2579   :  { %v3585_v8 = vmul.f32 %v3574_v5, %v3551_v40  ;;  %3784 = vmatpush.msrb.mxu1 %v5808_v59 }
0x257b   :  { %v3590_v9 = vmul.f32 %v5983_v18, %v3585_v8 }
0x257d   :  { %v3595_v10 = vadd.f32 %v5984_v6, %v3590_v9 }
0x257f   :  { %v3597_v62 = vmul.f32 %v3595_v10, %v6571_v15 }
0x2581   :  { %5801 = vmatmul.msk.f32.vlgmr.msra.gmra.mxu0 %vm88_vm0, %v3597_v62 }
0x25e5   :  { %v3560_v29 = vpop.xlane.xlu1 %3559 }
0x25e6   :  { %v3562_v56 = vmul.f32 %v3560_v29, %v6545_v46 }
0x25e8   :  { %v3564_v22 = vadd.f32 1e-05, %v3562_v56 }
0x25ea   :  { %6161 = vrsqrt.f32 %v3564_v22  ;;  %vm3581_vm4 = vweird.f32 %v3564_v22 }
0x25f0   :  { %v6162_v23 = vpop.eup %6161 }
0x25f1   :  { %v3576_v24 = vmul.f32 %v6162_v23, %v3564_v22  ;;  %vm3582_vm3 = vweird.f32 %v6162_v23 }
0x25f2   :  { %vm3583_vm5 = vmor %vm3581_vm4, %vm3582_vm3 }
0x25f3   :  { %v3577_v26 = vmul.f32 %v6162_v23, %v3576_v24 }
0x25f5   :  { %v3578_v28 = vmul.f32 0.5, %v3577_v26 }
0x25f7   :  { %v3579_v20 = vsub.f32 1.5, %v3578_v28 }
0x25f9   :  { %v3580_v35 = vmul.f32 %v6162_v23, %v3579_v20 }
0x25fb   :  { %v3584_v30 = vsel %vm3583_vm5, %v6162_v23, %v3580_v35 }
0x25fc   :  { %v3586_v39 = vmul.f32 %v3584_v30, %v3552_v60  ;;  %v5807_v60 = vld [vmem:[%s7821_s3 + $0x90] sm:$0xff] }
0x25fd   :  { %3785 = vmatpush.msrb.mxu1 %v5807_v60 }
0x25fe   :  { %v3625_v27 = vpop.f32.mrf.mxu0  ;;  %v3591_v31 = vmul.f32 %v5983_v18, %v3586_v39  ;;  %v5989_v39 = vld [vmem:[%s7822_s4 + $0x4] ss:$0 sm:$0xff] }
0x25ff   :  { %v3626_v41 = vadd.f32 %v5985_v36, %v3625_v27  ;;  %3786 = vmatpush.msrb.mxu1 %v5806_v34 }
0x2600   :  { %v3596_v40 = vadd.f32 %v5984_v6, %v3591_v31 }
0x2601   :  { %v3631_v42 = vmax.f32 %v3626_v41, 0.0  ;;  %3787 = vmatpush.msrb.mxu1 %v5805_v63 }
0x2602   :  { %v3598_v43 = vmul.f32 %v3596_v40, %v6609_v50 }
0x2603   :  { %5803 = vmatmul.msk.f32.vlgmr.msrb.gmra.mxu3 %vm896_vm6, %v3631_v42 }
0x2604   :  { %5802 = vmatmul.msk.f32.gmra.mxu0 %vm88_vm0, %v3598_v43 }
0x2681   :  { %v3628_v52 = vpop.f32.mrf.mxu0 }
0x2682   :  { %v3629_v44 = vadd.f32 %v5985_v36, %v3628_v52 }
0x2684   :  { %v3632_v45 = vmax.f32 %v3629_v44, 0.0 }
0x2686   :  { %v3659_v48 = vpop.f32.mrf.mxu3  ;;  %5804 = vmatmul.msk.f32.gmra.mxu3 %vm896_vm6, %v3632_v45 }
0x2687   :  { %v3660_v49 = vadd.f32 %v5986_v4, %v3659_v48 }
0x2689   :  { %v3665_v32 = vadd.f32 %v3660_v49, %v3597_v62 }
0x268b   :  { %v3667_v38 = vsel %vm88_vm0, %v3665_v32, 0.0 }
0x268c   :  { %3668 = vadd.xlane.f32.xlu2 %v3667_v38 }
0x26ff   :  { %v3669_v37 = vpop.xlane.xlu2 %3668 }
0x2700   :  { %v3673_v21 = vmul.f32 %v3669_v37, %v6545_v46 }
0x2702   :  { %v3675_v53 = vsub.f32 %v3665_v32, %v3673_v21 }
0x2704   :  { %v3677_v11 = vmul.f32 %v3675_v53, %v3675_v53 }
0x2706   :  { %v3679_v7 = vsel %vm88_vm0, %v3677_v11, 0.0 }
0x2707   :  { %3680 = vadd.xlane.f32.xlu2 %v3679_v7 }
0x2709   :  { %v3662_v54 = vpop.f32.mrf.mxu3 }
0x270a   :  { %v3663_v55 = vadd.f32 %v5986_v4, %v3662_v54 }
0x270c   :  { %v3666_v57 = vadd.f32 %v3663_v55, %v3598_v43 }
0x270e   :  { %v3670_v58 = vsel %vm88_vm0, %v3666_v57, 0.0 }
0x270f   :  { %3671 = vadd.xlane.f32.xlu1 %v3670_v58 }
0x277a   :  { %v3681_v61 = vpop.xlane.xlu2 %3680 }
0x277b   :  { %v3685_v0 = vmul.f32 %v3681_v61, %v6545_v46 }
0x277d   :  { %v3687_v12 = vadd.f32 1e-05, %v3685_v0 }
0x277f   :  { %6163 = vrsqrt.f32 %v3687_v12  ;;  %vm3695_vm8 = vweird.f32 %v3687_v12 }
0x2782   :  { %v3672_v1 = vpop.xlane.xlu1 %3671 }
0x2783   :  { %v3674_v2 = vmul.f32 %v3672_v1, %v6545_v46 }
0x2785   :  { %v6164_v18 = vpop.eup %6163  ;;  %v3676_v5 = vsub.f32 %v3666_v57, %v3674_v2 }
0x2786   :  { %v3690_v6 = vmul.f32 %v6164_v18, %v3687_v12  ;;  %vm3696_vm7 = vweird.f32 %v6164_v18 }
0x2787   :  { %v3678_v8 = vmul.f32 %v3676_v5, %v3676_v5  ;;  %vm3697_vm9 = vmor %vm3695_vm8, %vm3696_vm7 }
0x2788   :  { %v3691_v9 = vmul.f32 %v6164_v18, %v3690_v6 }
0x2789   :  { %v3682_v10 = vsel %vm88_vm0, %v3678_v8, 0.0 }
0x278a   :  { %v3692_v62 = vmul.f32 0.5, %v3691_v9  ;;  %3683 = vadd.xlane.f32.xlu0 %v3682_v10 }
0x278c   :  { %v3693_v25 = vsub.f32 1.5, %v3692_v62 }
0x278e   :  { %v3694_v13 = vmul.f32 %v6164_v18, %v3693_v25 }
0x2790   :  { %v3698_v14 = vsel %vm3697_vm9, %v6164_v18, %v3694_v13 }
0x2791   :  { %v3709_v17 = vmul.f32 %v3698_v14, %v3675_v53 }
0x2793   :  { %v3714_v51 = vmul.f32 %v5987_v47, %v3709_v17 }
0x2795   :  { %v3719_v19 = vadd.f32 %v5988_v16, %v3714_v51 }
0x2797   :  { %v7353_v29 = vmul.f32 %v3719_v19, %v6571_v15 }
0x2799   :  { %5833 = vmatmul.msk.f32.vlgmr.msrb.gmra.mxu1 %vm88_vm0, %v7353_v29 }
0x27fd   :  { %v3684_v56 = vpop.xlane.xlu0 %3683 }
0x27fe   :  { %v3686_v22 = vmul.f32 %v3684_v56, %v6545_v46 }
0x2800   :  { %v3688_v23 = vadd.f32 1e-05, %v3686_v22 }
0x2802   :  { %6165 = vrsqrt.f32 %v3688_v23  ;;  %vm3705_vm11 = vweird.f32 %v3688_v23 }
0x2808   :  { %v6166_v24 = vpop.eup %6165 }
0x2809   :  { %v3700_v26 = vmul.f32 %v6166_v24, %v3688_v23  ;;  %vm3706_vm10 = vweird.f32 %v6166_v24 }
0x280a   :  { %vm3707_vm12 = vmor %vm3705_vm11, %vm3706_vm10 }
0x280b   :  { %v3701_v28 = vmul.f32 %v6166_v24, %v3700_v26 }
0x280d   :  { %v3702_v20 = vmul.f32 0.5, %v3701_v28 }
0x280f   :  { %v3703_v35 = vsub.f32 1.5, %v3702_v20 }
0x2811   :  { %v3704_v30 = vmul.f32 %v6166_v24, %v3703_v35 }
0x2813   :  { %v3708_v36 = vsel %vm3707_vm12, %v6166_v24, %v3704_v30 }
0x2814   :  { %v3710_v27 = vmul.f32 %v3708_v36, %v3676_v5 }
0x2816   :  { %v3789_v31 = vpop.f32.mrf.mxu1  ;;  %v3715_v41 = vmul.f32 %v5987_v47, %v3710_v27 }
0x2817   :  { %v7361_v40 = vadd.f32 %v5989_v39, %v3789_v31 }
0x2818   :  { %v3720_v42 = vadd.f32 %v5988_v16, %v3715_v41  ;;  %v5810_v41 = vld [vmem:[%s7823_s5 + $0x80] sm:$0xff] }
0x2819   :  { %3929 = vrot.lane.b32.xlu0 %v7361_v40, %s7873_s16  ;;  %3796 = vrot.lane.b32.xlu1 %v7361_v40, %s7874_s17 }
0x281a   :  { %v7368_v43 = vmul.f32 %v3720_v42, %v6609_v50 }
0x281c   :  { %5834 = vmatmul.msk.f32.gmra.mxu1 %vm88_vm0, %v7368_v43 }
0x2821   :  { %3927 = vrot.lane.b32.xlu0 %v7361_v40, %s7875_s26 }
0x288b   :  { %v3930_v52 = vpop.permute.xlu0 %3929  ;;  %v3797_v44 = vpop.permute.xlu1 %3796 }
0x288c   :  { %5835 = vmatpush.xpose.msk.msra.mxu2 %vm121_vm1, %v3797_v44 }
0x288f   :  { %5836 = vmatmul.msk.f32.vlgmr.msra.gmra.mxu2 %vm121_vm1, %v7361_v40 }
0x2890   :  { %5841 = vmatpush.xpose.msk.msrb.mxu2 %vm121_vm1, %v3930_v52 }
0x2893   :  { %v3928_v4 = vpop.permute.xlu0 %3927 }
0x2897   :  { %5842 = vmatmul.msk.f32.vlgmr.msrb.gmra.mxu2 %vm121_vm1, %v3928_v4 }
0x2899   :  { %v3792_v45 = vpop.f32.mrf.mxu1 }
0x289a   :  { %v7379_v48 = vadd.f32 %v5989_v39, %v3792_v45 }
0x289c   :  { %3823 = vrot.lane.b32.xlu2 %v7379_v48, %s7874_s17  ;;  %3957 = vrot.lane.b32.xlu1 %v7379_v48, %s7873_s16 }
0x28a4   :  { %3955 = vrot.lane.b32.xlu2 %v7379_v48, %s7875_s26 }
0x28f6   :  { %v3824_v49 = vpop.permute.xlu2 %3823 }
0x28f7   :  { %5837 = vmatpush.xpose.msk.msrb.mxu0 %vm121_vm1, %v3824_v49  ;;  %v5811_v49 = vld [vmem:[%s7823_s5 + $0x88] sm:$0xff] }
0x28f8   :  { %4082 = vmatpush.msra.mxu2 %v5811_v49 }
0x28fa   :  { %5838 = vmatmul.msk.f32.vlgmr.msrb.gmra.mxu0 %vm121_vm1, %v7379_v48 }
0x28fe   :  { %v3956_v38 = vpop.permute.xlu2 %3955 }
0x290e   :  { %v3958_v32 = vpop.permute.xlu1 %3957 }
0x290f   :  { %5843 = vmatpush.xpose.msk.msra.mxu0 %vm121_vm1, %v3958_v32 }
0x2912   :  { %v3819_v37 = vpop.f32.mrf.mxu2  ;;  %5844 = vmatmul.msk.f32.vlgmr.msra.gmra.mxu0 %vm121_vm1, %v3956_v38 }
0x2913   :  { %v3849_v21 = vmul.f32 0.35355338, %v3819_v37  ;;  %4111 = vmatpush.msrb.mxu0 %v5810_v41 }
0x2915   :  { %v3851_v53 = vadd.f32 %v7148_v3, %v3849_v21 }
0x2917   :  { %v3853_v11 = vsel %vm121_vm1, %v3851_v53, -inf }
0x2918   :  { %3854 = vmax.xlane.f32.xlu0 %v3853_v11 }
0x291a   :  { %v3952_v7 = vpop.f32.mrf.mxu2 }
0x291b   :  { %v3983_v54 = vmul.f32 0.35355338, %v3952_v7 }
0x291d   :  { %v3985_v55 = vadd.f32 %v7148_v3, %v3983_v54 }
0x291f   :  { %v3987_v57 = vsel %vm121_vm1, %v3985_v55, -inf }
0x2920   :  { %3988 = vmax.xlane.f32.xlu2 %v3987_v57 }
0x2938   :  { %3901 = vrot.lane.b32.xlu2 %v7379_v48, %s7876_s27 }
0x2977   :  { %v3846_v58 = vpop.f32.mrf.mxu0 }
0x2978   :  { %v3850_v59 = vmul.f32 0.35355338, %v3846_v58 }
0x297a   :  { %v3852_v60 = vadd.f32 %v7175_v33, %v3850_v59 }
0x297c   :  { %v3856_v34 = vsel %vm121_vm1, %v3852_v60, -inf }
0x297d   :  { %3857 = vmax.xlane.f32.xlu1 %v3856_v34 }
0x298b   :  { %v3855_v63 = vpop.xlane.xlu0 %3854 }
0x298c   :  { %v3859_v61 = vsub.f32 %v3851_v53, %v3855_v63 }
0x298e   :  { %v3861_v0 = vmul.f32 1.442695, %v3859_v61 }
0x298f   :  { %v3980_v9 = vpop.f32.mrf.mxu0 }
0x2990   :  { %6167 = vpow2.f32 %v3861_v0  ;;  %v3984_v10 = vmul.f32 0.35355338, %v3980_v9 }
0x2992   :  { %v3986_v62 = vadd.f32 %v7175_v33, %v3984_v10 }
0x2993   :  { %v3989_v12 = vpop.xlane.xlu2 %3988 }
0x2994   :  { %v3993_v1 = vsub.f32 %v3985_v55, %v3989_v12  ;;  %v3990_v25 = vsel %vm121_vm1, %v3986_v62, -inf }
0x2996   :  { %v6168_v3 = vpop.eup %6167  ;;  %v3995_v2 = vmul.f32 1.442695, %v3993_v1  ;;  %3875 = vrot.lane.b32.xlu1 %v7361_v40, %s7876_s27 }
0x2997   :  { %v3865_v18 = vsel %vm121_vm1, %v6168_v3, 0.0 }
0x2998   :  { %6169 = vpow2.f32 %v3995_v2  ;;  %3866 = vadd.xlane.f32.xlu0 %v3865_v18 }
0x299b   :  { %v3902_v5 = vpop.permute.xlu2 %3901 }
0x299c   :  { %3922 = vmatpush.msra.mxu1 %v3902_v5 }
0x299e   :  { %v6170_v6 = vpop.eup %6169  ;;  %4121 = vrot.lane.b32.xlu1 %v7361_v40, %s7871_s24 }
0x299f   :  { %v3999_v8 = vsel %vm121_vm1, %v6170_v6, 0.0 }
0x29a0   :  { %4000 = vadd.xlane.f32.xlu0 %v3999_v8 }
0x29b4   :  { %4009 = vrot.lane.b32.xlu0 %v7361_v40, %s7872_s19 }
0x29c8   :  { %3991 = vmax.xlane.f32.xlu1 %v3990_v25 }
0x29f0   :  { %v3858_v13 = vpop.xlane.xlu1 %3857 }
0x29f1   :  { %v3860_v47 = vsub.f32 %v3852_v60, %v3858_v13  ;;  %v7447_v60 = vld [vmem:[%s7819_s1] ss:$0 sm:$0xff] }
0x29f3   :  { %v3863_v14 = vmul.f32 1.442695, %v3860_v47 }
0x29f5   :  { %6171 = vpow2.f32 %v3863_v14 }
0x29fb   :  { %v6172_v16 = vpop.eup %6171 }
0x29fc   :  { %v3868_v17 = vsel %vm121_vm1, %v6172_v16, 0.0 }
0x29fd   :  { %3869 = vadd.xlane.f32.xlu2 %v3868_v17 }
0x2a08   :  { %v3876_v51 = vpop.permute.xlu1 %3875 }
0x2a09   :  { %3896 = vmatpush.msra.mxu3 %v3876_v51 }
0x2a0b   :  { %v3867_v19 = vpop.xlane.xlu0 %3866 }
0x2a0c   :  { %6173 = vrcp.f32 %v3867_v19 }
0x2a10   :  { %v4122_v20 = vpop.permute.xlu1 %4121 }
0x2a12   :  { %v6174_v56 = vpop.eup %6173 }
0x2a13   :  { %v3873_v22 = vmul.f32 %v6174_v56, %v6168_v3  ;;  %v4001_v23 = vpop.xlane.xlu0 %4000 }
0x2a14   :  { %6175 = vrcp.f32 %v4001_v23 }
0x2a15   :  { %4119 = vrot.lane.b32.xlu2 %v7361_v40, %s7866_s28  ;;  %5839 = vmatmul.msk.f32.vlgmr.msra.gmra.mxu3 %vm121_vm1, %v3873_v22 }
0x2a1a   :  { %v6176_v24 = vpop.eup %6175 }
0x2a1b   :  { %v4007_v26 = vmul.f32 %v6176_v24, %v6170_v6 }
0x2a1d   :  { %4035 = vrot.lane.b32.xlu2 %v7379_v48, %s7872_s19 }
0x2a25   :  { %4149 = vrot.lane.b32.xlu2 %v7379_v48, %s7871_s24 }
0x2a26   :  { %v4010_v28 = vpop.permute.xlu0 %4009 }
0x2a27   :  { %4030 = vmatpush.msrb.mxu3 %v4010_v28 }
0x2a28   :  { %5845 = vmatmul.msk.f32.vlgmr.msrb.gmra.mxu3 %vm121_vm1, %v4007_v26 }
0x2a29   :  { %5851 = vmatpush.xpose.msk.msra.mxu3 %vm121_vm1, %v4122_v20 }
0x2a2d   :  { %4147 = vrot.lane.b32.xlu2 %v7379_v48, %s7866_s28 }
0x2a35   :  { %4286 = vrot.lane.b32.xlu2 %v7361_v40, %s7868_s21 }
0x2a3b   :  { %v3992_v35 = vpop.xlane.xlu1 %3991 }
0x2a3c   :  { %v3994_v30 = vsub.f32 %v3986_v62, %v3992_v35 }
0x2a3d   :  { %4284 = vrot.lane.b32.xlu2 %v7361_v40, %s7867_s2 }
0x2a3e   :  { %v3997_v36 = vmul.f32 1.442695, %v3994_v30 }
0x2a40   :  { %6177 = vpow2.f32 %v3997_v36 }
0x2a45   :  { %4201 = vrot.lane.b32.xlu2 %v7361_v40, %s7869_s23 }
0x2a46   :  { %v6178_v39 = vpop.eup %6177 }
0x2a47   :  { %v4002_v27 = vsel %vm121_vm1, %v6178_v39, 0.0 }
0x2a48   :  { %4003 = vadd.xlane.f32.xlu0 %v4002_v27 }
0x2a70   :  { %v3870_v31 = vpop.xlane.xlu2 %3869 }
0x2a71   :  { %6179 = vrcp.f32 %v3870_v31  ;;  %v7484_v31 = vld [vmem:[%s7819_s1 + $0x1] ss:$0 sm:$0xff] }
0x2a77   :  { %v6180_v42 = vpop.eup %6179 }
0x2a78   :  { %v3874_v52 = vmul.f32 %v6180_v42, %v6172_v16  ;;  %v4120_v44 = vpop.permute.xlu2 %4119 }
0x2a79   :  { %5852 = vmatmul.msk.f32.vlgmr.msra.gmra.mxu3 %vm121_vm1, %v4120_v44 }
0x2a7a   :  { %5840 = vmatmul.msk.f32.vlgmr.msra.gmra.mxu1 %vm121_vm1, %v3874_v52 }
0x2a80   :  { %v4036_v4 = vpop.permute.xlu2 %4035 }
0x2a81   :  { %4056 = vmatpush.msrb.mxu1 %v4036_v4 }
0x2a88   :  { %v4150_v45 = vpop.permute.xlu2 %4149 }
0x2a89   :  { %5853 = vmatpush.xpose.msk.msra.mxu1 %vm121_vm1, %v4150_v45 }
0x2a90   :  { %v4148_v32 = vpop.permute.xlu2 %4147 }
0x2a98   :  { %v4287_v38 = vpop.permute.xlu2 %4286  ;;  %v3898_v37 = vpop.f32.mrf.mxu3 }
0x2a99   :  { %5849 = vmatmul.msk.f32.vlgmr.msrb.gmra.mxu0 %vm121_vm1, %v3898_v37 }
0x2a9a   :  { %5859 = vmatpush.xpose.msk.msra.mxu0 %vm121_vm1, %v4287_v38 }
0x2aa0   :  { %v4285_v21 = vpop.permute.xlu2 %4284 }
0x2aa8   :  { %v4202_v53 = vpop.permute.xlu2 %4201 }
0x2aa9   :  { %4222 = vmatpush.msrb.mxu3 %v4202_v53 }
0x2aab   :  { %v4032_v11 = vpop.f32.mrf.mxu3 }
0x2aac   :  { %5847 = vmatmul.msk.f32.vlgmr.msra.gmra.mxu2 %vm121_vm1, %v4032_v11 }
0x2abb   :  { %v4004_v7 = vpop.xlane.xlu0 %4003 }
0x2abc   :  { %6181 = vrcp.f32 %v4004_v7 }
0x2ac2   :  { %v6182_v54 = vpop.eup %6181 }
0x2ac3   :  { %v4008_v55 = vmul.f32 %v6182_v54, %v6178_v39 }
0x2ac5   :  { %5846 = vmatmul.msk.f32.vlgmr.msrb.gmra.mxu1 %vm121_vm1, %v4008_v55  ;;  %v5813_v55 = vld [vmem:[%s7823_s5 + $0x98] sm:$0xff] }
0x2acd   :  { %5854 = vmatmul.msk.f32.vlgmr.msra.gmra.mxu1 %vm121_vm1, %v4148_v32 }
0x2af7   :  { %v3924_v57 = vpop.f32.mrf.mxu1 }
0x2af8   :  { %5850 = vmatmul.msk.f32.gmra.mxu0 %vm121_vm1, %v3924_v57 }
0x2afc   :  { %v4144_v58 = vpop.f32.mrf.mxu3 }
0x2afd   :  { %v4175_v59 = vmul.f32 0.35355338, %v4144_v58 }
0x2aff   :  { %v4177_v34 = vadd.f32 %v7447_v60, %v4175_v59 }
0x2b00   :  { %5860 = vmatmul.msk.f32.vlgmr.msra.gmra.mxu0 %vm121_vm1, %v4285_v21 }
0x2b01   :  { %v4179_v63 = vsel %vm121_vm1, %v4177_v34, -inf }
0x2b02   :  { %4180 = vmax.xlane.f32.xlu1 %v4179_v63 }
0x2b16   :  { %v7461_v10 = vpop.f32.mrf.mxu0 }
0x2b1b   :  { %4314 = vrot.lane.b32.xlu1 %v7379_v48, %s7868_s21 }
0x2b42   :  { %v4058_v61 = vpop.f32.mrf.mxu1 }
0x2b43   :  { %5848 = vmatmul.msk.f32.gmra.mxu2 %vm121_vm1, %v4058_v61  ;;  %v4084_v61 = vpop.f32.mrf.mxu2 }
0x2b4a   :  { %v4172_v0 = vpop.f32.mrf.mxu1 }
0x2b4b   :  { %v4176_v12 = vmul.f32 0.35355338, %v4172_v0 }
0x2b4d   :  { %v4178_v1 = vadd.f32 %v7175_v33, %v4176_v12 }
0x2b4f   :  { %v4182_v3 = vsel %vm121_vm1, %v4178_v1, -inf }
0x2b50   :  { %4183 = vmax.xlane.f32.xlu2 %v4182_v3 }
0x2b75   :  { %v4181_v2 = vpop.xlane.xlu1 %4180  ;;  %v7463_v33 = vpop.f32.mrf.mxu0 }
0x2b76   :  { %v4185_v18 = vsub.f32 %v4177_v34, %v4181_v2  ;;  %v5990_v2 = vld [vmem:[%s7877_s8 + $0x4] ss:$0 sm:$0xff] }
0x2b78   :  { %v4187_v5 = vmul.f32 1.442695, %v4185_v18 }
0x2b7a   :  { %6183 = vpow2.f32 %v4187_v5 }
0x2b7d   :  { %v4309_v62 = vpop.f32.mrf.mxu0 }
0x2b7e   :  { %v4340_v25 = vmul.f32 0.35355338, %v4309_v62 }
0x2b80   :  { %v6184_v6 = vpop.eup %6183  ;;  %v4342_v13 = vadd.f32 %v7447_v60, %v4340_v25 }
0x2b81   :  { %v4191_v8 = vsel %vm121_vm1, %v6184_v6, 0.0 }
0x2b82   :  { %4192 = vadd.xlane.f32.xlu0 %v4191_v8  ;;  %v4344_v47 = vsel %vm121_vm1, %v4342_v13, -inf }
0x2b8d   :  { %v4315_v9 = vpop.permute.xlu1 %4314 }
0x2b8e   :  { %5861 = vmatpush.xpose.msk.msra.mxu3 %vm121_vm1, %v4315_v9 }
0x2b96   :  { %4312 = vrot.lane.b32.xlu0 %v7379_v48, %s7867_s2 }
0x2bc0   :  { %4345 = vmax.xlane.f32.xlu0 %v4344_v47 }
0x2bc3   :  { %v4184_v14 = vpop.xlane.xlu2 %4183 }
0x2bc4   :  { %v4186_v16 = vsub.f32 %v4178_v1, %v4184_v14  ;;  %v4114_v1 = vadd.f32 %v7461_v10, %v4084_v61 }
0x2bc6   :  { %v4189_v17 = vmul.f32 1.442695, %v4186_v16  ;;  %v4087_v0 = vpop.f32.mrf.mxu2 }
0x2bc8   :  { %6185 = vpow2.f32 %v4189_v17  ;;  %v4117_v17 = vadd.f32 %v7463_v33, %v4087_v0  ;;  %v5818_v33 = vld [vmem:[%s7827_s9 + $0x88] sm:$0xff] }
0x2bce   :  { %v6186_v51 = vpop.eup %6185 }
0x2bcf   :  { %v4194_v19 = vsel %vm121_vm1, %v6186_v51, 0.0 }
0x2bd0   :  { %4195 = vadd.xlane.f32.xlu1 %v4194_v19 }
0x2bd4   :  { %4366 = vrot.lane.b32.xlu0 %v7361_v40, %s7870_s20  ;;  %v5812_v40 = vld [vmem:[%s7823_s5 + $0x90] sm:$0xff] }
0x2bd5   :  { %4274 = vmatpush.msrb.mxu2 %v5812_v40 }
0x2bf5   :  { %v4193_v56 = vpop.xlane.xlu0 %4192 }
0x2bf6   :  { %6187 = vrcp.f32 %v4193_v56 }
0x2bfc   :  { %v6188_v22 = vpop.eup %6187 }
0x2bfd   :  { %v4199_v23 = vmul.f32 %v6188_v22, %v6184_v6 }
0x2bff   :  { %5855 = vmatmul.msk.f32.vlgmr.msrb.gmra.mxu3 %vm121_vm1, %v4199_v23 }
0x2c00   :  { %4439 = vmatpush.msrb.mxu3 %v5813_v55 }
0x2c08   :  { %v4313_v24 = vpop.permute.xlu0 %4312 }
0x2c09   :  { %5862 = vmatmul.msk.f32.vlgmr.msra.gmra.mxu3 %vm121_vm1, %v4313_v24  ;;  %v5820_v24 = vld [vmem:[%s7827_s9 + $0x98] sm:$0xff] }
0x2c33   :  { %v4346_v26 = vpop.xlane.xlu0 %4345 }
0x2c34   :  { %v4350_v28 = vsub.f32 %v4342_v13, %v4346_v26  ;;  %v5819_v26 = vld [vmem:[%s7827_s9 + $0x90] sm:$0xff] }
0x2c36   :  { %v4352_v20 = vmul.f32 1.442695, %v4350_v28 }
0x2c38   :  { %6189 = vpow2.f32 %v4352_v20 }
0x2c3e   :  { %v6190_v35 = vpop.eup %6189 }
0x2c3f   :  { %v4356_v30 = vsel %vm121_vm1, %v6190_v35, 0.0 }
0x2c40   :  { %4357 = vadd.xlane.f32.xlu2 %v4356_v30 }
0x2c46   :  { %v4367_v49 = vpop.permute.xlu0 %4366 }
0x2c58   :  { %4227 = vrot.lane.b32.xlu2 %v7379_v48, %s7869_s23 }
0x2c60   :  { %4392 = vrot.lane.b32.xlu2 %v7379_v48, %s7870_s20  ;;  %v4196_v48 = vpop.xlane.xlu1 %4195 }
0x2c61   :  { %6191 = vrcp.f32 %v4196_v48 }
0x2c67   :  { %v6192_v44 = vpop.eup %6191 }
0x2c68   :  { %v4200_v4 = vmul.f32 %v6192_v44, %v6186_v51 }
0x2c82   :  { %v4224_v36 = vpop.f32.mrf.mxu3 }
0x2c83   :  { %5857 = vmatmul.msk.f32.vlgmr.msrb.gmra.mxu2 %vm121_vm1, %v4224_v36 }
0x2c8c   :  { %v4337_v39 = vpop.f32.mrf.mxu3 }
0x2c8d   :  { %v4341_v27 = vmul.f32 0.35355338, %v4337_v39 }
0x2c8f   :  { %v4343_v41 = vadd.f32 %v7484_v31, %v4341_v27 }
0x2c91   :  { %v4347_v42 = vsel %vm121_vm1, %v4343_v41, -inf }
0x2c92   :  { %4348 = vmax.xlane.f32.xlu1 %v4347_v42  ;;  %v5991_v42 = vld [vmem:[%s7878_s25 + $0x4] ss:$0 sm:$0xff] }
0x2cb3   :  { %v4358_v52 = vpop.xlane.xlu2 %4357 }
0x2cb4   :  { %6193 = vrcp.f32 %v4358_v52  ;;  %v5992_v52 = vld [vmem:[%s7879_s22 + $0x4] ss:$0 sm:$0xff] }
0x2cba   :  { %v6194_v32 = vpop.eup %6193 }
0x2cbb   :  { %v4228_v45 = vpop.permute.xlu2 %4227  ;;  %v4364_v38 = vmul.f32 %v6194_v32, %v6190_v35  ;;  %v5829_v32 = vld [vmem:[%s7829_s11 + $0x138] sm:$0xff] }
0x2cbc   :  { %4248 = vmatpush.msrb.mxu1 %v4228_v45  ;;  %4563 = vmatpush.msra.mxu2 %v5829_v32 }
0x2cbd   :  { %5856 = vmatmul.msk.f32.vlgmr.msrb.gmra.mxu1 %vm121_vm1, %v4200_v4 }
0x2cbe   :  { %4387 = vmatpush.msra.mxu1 %v4367_v49 }
0x2cc0   :  { %4533 = vmatpush.msrb.mxu1 %v5820_v24 }
0x2cc2   :  { %4534 = vmatpush.msrb.mxu1 %v5819_v26 }
0x2cc3   :  { %v4393_v37 = vpop.permute.xlu2 %4392 }
0x2cc4   :  { %4413 = vmatpush.msrb.mxu0 %v4393_v37  ;;  %4535 = vmatpush.msrb.mxu1 %v5818_v33  ;;  %v5827_v37 = vld [vmem:[%s7829_s11 + $0x128] sm:$0xff] }
0x2cc5   :  { %5863 = vmatmul.msk.f32.vlgmr.msra.gmra.mxu1 %vm121_vm1, %v4364_v38  ;;  %v5828_v38 = vld [vmem:[%s7829_s11 + $0x130] sm:$0xff] }
0x2cc6   :  { %4564 = vmatpush.msra.mxu2 %v5828_v38 }
0x2cc8   :  { %4565 = vmatpush.msra.mxu2 %v5827_v37  ;;  %v5995_v37 = vld [vmem:[%s7831_s13 + $0x4] ss:$0 sm:$0xff] }
0x2d05   :  { %v4349_v21 = vpop.xlane.xlu1 %4348 }
0x2d06   :  { %v4351_v53 = vsub.f32 %v4343_v41, %v4349_v21  ;;  %v4276_v12 = vpop.f32.mrf.mxu2  ;;  %v5826_v21 = vld [vmem:[%s7829_s11 + $0x120] sm:$0xff] }
0x2d07   :  { %v4282_v3 = vadd.f32 %v4276_v12, %v4114_v1  ;;  %4566 = vmatpush.msra.mxu2 %v5826_v21 }
0x2d08   :  { %v4354_v11 = vmul.f32 1.442695, %v4351_v53  ;;  %v5825_v53 = vld [vmem:[%s7829_s11 + $0x118] sm:$0xff] }
0x2d09   :  { %4567 = vmatpush.msra.mxu2 %v5825_v53  ;;  %v5996_v53 = vld [vmem:[%s7832_s14 + $0x4] ss:$0 sm:$0xff] }
0x2d0a   :  { %6195 = vpow2.f32 %v4354_v11 }
0x2d10   :  { %v6196_v7 = vpop.eup %6195 }
0x2d11   :  { %v4359_v54 = vsel %vm121_vm1, %v6196_v7, 0.0 }
0x2d12   :  { %4360 = vadd.xlane.f32.xlu1 %v4359_v54 }
0x2d3a   :  { %v4250_v57 = vpop.f32.mrf.mxu1 }
0x2d3b   :  { %5858 = vmatmul.msk.f32.gmra.mxu2 %vm121_vm1, %v4250_v57 }
0x2d42   :  { %v4389_v58 = vpop.f32.mrf.mxu1 }
0x2d43   :  { %5865 = vmatmul.msk.f32.vlgmr.msrb.gmra.mxu3 %vm121_vm1, %v4389_v58  ;;  %v5824_v58 = vld [vmem:[%s7829_s11 + $0x110] sm:$0xff] }
0x2d44   :  { %4568 = vmatpush.msra.mxu2 %v5824_v58 }
0x2d85   :  { %v4361_v59 = vpop.xlane.xlu1 %4360 }
0x2d86   :  { %6197 = vrcp.f32 %v4361_v59  ;;  %v5823_v59 = vld [vmem:[%s7829_s11 + $0x108] sm:$0xff] }
0x2d87   :  { %4569 = vmatpush.msra.mxu2 %v5823_v59 }
0x2d8c   :  { %v6198_v34 = vpop.eup %6197 }
0x2d8d   :  { %v4365_v63 = vmul.f32 %v6198_v34, %v6196_v7  ;;  %v5822_v34 = vld [vmem:[%s7829_s11 + $0x100] sm:$0xff] }
0x2d8e   :  { %4570 = vmatpush.msra.mxu2 %v5822_v34 }
0x2d8f   :  { %5864 = vmatmul.msk.f32.vlgmr.msrb.gmra.mxu0 %vm121_vm1, %v4365_v63  ;;  %v5993_v63 = vld [vmem:[%s7828_s10 + $0x4] ss:$0 sm:$0xff] }
0x2dbe   :  { %v4279_v16 = vpop.f32.mrf.mxu2 }
0x2dbf   :  { %v4283_v51 = vadd.f32 %v4279_v16, %v4117_v17  ;;  %v5994_v16 = vld [vmem:[%s7830_s12 + $0x4] ss:$0 sm:$0xff] }
0x2dc6   :  { %v4441_v18 = vpop.f32.mrf.mxu3 }
0x2dc7   :  { %v4447_v5 = vadd.f32 %v4441_v18, %v4282_v3 }
0x2dc9   :  { %v4452_v6 = vadd.f32 %v5990_v2, %v4447_v5 }
0x2dcb   :  { %v4454_v8 = vadd.f32 %v4452_v6, %v7353_v29 }
0x2dcd   :  { %v4456_v9 = vsel %vm88_vm0, %v4454_v8, 0.0 }
0x2dce   :  { %4457 = vadd.xlane.f32.xlu0 %v4456_v9 }
0x2e0c   :  { %v4415_v62 = vpop.f32.mrf.mxu0 }
0x2e0d   :  { %5866 = vmatmul.msk.f32.gmra.mxu3 %vm121_vm1, %v4415_v62 }
0x2e41   :  { %v4458_v25 = vpop.xlane.xlu0 %4457 }
0x2e42   :  { %v4462_v13 = vmul.f32 %v4458_v25, %v6545_v46 }
0x2e44   :  { %v4464_v10 = vsub.f32 %v4454_v8, %v4462_v13 }
0x2e46   :  { %v4466_v47 = vmul.f32 %v4464_v10, %v4464_v10 }
0x2e48   :  { %v4468_v14 = vsel %vm88_vm0, %v4466_v47, 0.0 }
0x2e49   :  { %4469 = vadd.xlane.f32.xlu1 %v4468_v14 }
0x2e90   :  { %v4444_v19 = vpop.f32.mrf.mxu3 }
0x2e91   :  { %v4448_v29 = vadd.f32 %v4444_v19, %v4283_v51 }
0x2e93   :  { %v4453_v56 = vadd.f32 %v5990_v2, %v4448_v29 }
0x2e95   :  { %v4455_v22 = vadd.f32 %v4453_v56, %v7368_v43  ;;  %v5817_v43 = vld [vmem:[%s7827_s9 + $0x80] sm:$0xff] }
0x2e96   :  { %4536 = vmatpush.msrb.mxu1 %v5817_v43 }
0x2e97   :  { %v4459_v23 = vsel %vm88_vm0, %v4455_v22, 0.0 }
0x2e98   :  { %4460 = vadd.xlane.f32.xlu2 %v4459_v23 }
0x2ebc   :  { %v4470_v28 = vpop.xlane.xlu1 %4469 }
0x2ebd   :  { %v4474_v20 = vmul.f32 %v4470_v28, %v6545_v46 }
0x2ebf   :  { %v4476_v35 = vadd.f32 1e-05, %v4474_v20 }
0x2ec1   :  { %6199 = vrsqrt.f32 %v4476_v35  ;;  %vm4484_vm14 = vweird.f32 %v4476_v35 }
0x2ec7   :  { %v6200_v30 = vpop.eup %6199 }
0x2ec8   :  { %v4479_v40 = vmul.f32 %v6200_v30, %v4476_v35  ;;  %vm4485_vm13 = vweird.f32 %v6200_v30 }
0x2ec9   :  { %vm4486_vm15 = vmor %vm4484_vm14, %vm4485_vm13 }
0x2eca   :  { %v4480_v36 = vmul.f32 %v6200_v30, %v4479_v40 }
0x2ecc   :  { %v4481_v39 = vmul.f32 0.5, %v4480_v36  ;;  %v5874_v36 = vld [vmem:[%s7821_s3 + $0xb8] sm:$0xff] }
0x2ecd   :  { %4697 = vmatpush.msra.mxu0 %v5874_v36 }
0x2ece   :  { %v4482_v27 = vsub.f32 1.5, %v4481_v39  ;;  %v5873_v39 = vld [vmem:[%s7821_s3 + $0xb0] sm:$0xff] }
0x2ecf   :  { %4698 = vmatpush.msra.mxu0 %v5873_v39 }
0x2ed0   :  { %v4483_v41 = vmul.f32 %v6200_v30, %v4482_v27  ;;  %v5872_v27 = vld [vmem:[%s7821_s3 + $0xa8] sm:$0xff] }
0x2ed1   :  { %4699 = vmatpush.msra.mxu0 %v5872_v27 }
0x2ed2   :  { %v4487_v48 = vsel %vm4486_vm15, %v6200_v30, %v4483_v41  ;;  %v5871_v41 = vld [vmem:[%s7821_s3 + $0xa0] sm:$0xff]  ;;  %s7882_s3 = sld [smem:[#allocation8_spill]] }
0x2ed3   :  { %v4498_v44 = vmul.f32 %v4487_v48, %v4464_v10  ;;  %4700 = vmatpush.msra.mxu0 %v5871_v41 }
0x2ed5   :  { %v4503_v4 = vmul.f32 %v5991_v42, %v4498_v44 }
0x2ed7   :  { %v4508_v45 = vadd.f32 %v5992_v52, %v4503_v4 }
0x2ed8   :  { %s5557_s30 = sshll.u32 %s7882_s3, 4  ;;  %s5558_s30 = int_to_ptr.hbm [resolvable:$true] %s5557_s30 }
0x2ed9   :  { %v4510_v49 = vmul.f32 %v4508_v45, %v6571_v15 }
0x2edb   :  { %5867 = vmatmul.msk.f32.vlgmr.msrb.gmra.mxu1 %vm88_vm0, %v4510_v49 }
0x2f0b   :  { %v4461_v11 = vpop.xlane.xlu2 %4460 }
0x2f0c   :  { %v4463_v7 = vmul.f32 %v4461_v11, %v6545_v46 }
0x2f0e   :  { %v4465_v54 = vsub.f32 %v4455_v22, %v4463_v7 }
0x2f10   :  { %v4467_v55 = vmul.f32 %v4465_v54, %v4465_v54 }
0x2f12   :  { %v4471_v57 = vsel %vm88_vm0, %v4467_v55, 0.0 }
0x2f13   :  { %4472 = vadd.xlane.f32.xlu1 %v4471_v57 }
0x2f58   :  { %v4538_v61 = vpop.f32.mrf.mxu1 }
0x2f59   :  { %v4539_v0 = vadd.f32 %v5993_v63, %v4538_v61  ;;  %v5997_v61 = vld [vmem:[%s7822_s4 + $0x5] ss:$0 sm:$0xff] }
0x2f5b   :  { %v4544_v12 = vmax.f32 %v4539_v0, 0.0 }
0x2f5d   :  { %5869 = vmatmul.msk.f32.vlgmr.msra.gmra.mxu2 %vm896_vm6, %v4544_v12 }
0x2f86   :  { %v4473_v1 = vpop.xlane.xlu1 %4472 }
0x2f87   :  { %v4475_v3 = vmul.f32 %v4473_v1, %v6545_v46 }
0x2f89   :  { %v4477_v2 = vadd.f32 1e-05, %v4475_v3 }
0x2f8b   :  { %6201 = vrsqrt.f32 %v4477_v2  ;;  %vm4494_vm3 = vweird.f32 %v4477_v2 }
0x2f91   :  { %v6202_v18 = vpop.eup %6201 }
0x2f92   :  { %v4489_v5 = vmul.f32 %v6202_v18, %v4477_v2  ;;  %vm4495_vm2 = vweird.f32 %v6202_v18 }
0x2f93   :  { %vm4496_vm4 = vmor %vm4494_vm3, %vm4495_vm2 }
0x2f94   :  { %v4490_v6 = vmul.f32 %v6202_v18, %v4489_v5 }
0x2f96   :  { %v4491_v8 = vmul.f32 0.5, %v4490_v6 }
0x2f98   :  { %v4492_v9 = vsub.f32 1.5, %v4491_v8 }
0x2f9a   :  { %v4493_v62 = vmul.f32 %v6202_v18, %v4492_v9 }
0x2f9c   :  { %v4497_v25 = vsel %vm4496_vm4, %v6202_v18, %v4493_v62 }
0x2f9d   :  { %v4499_v13 = vmul.f32 %v4497_v25, %v4465_v54 }
0x2f9f   :  { %v4504_v10 = vmul.f32 %v5991_v42, %v4499_v13 }
0x2fa1   :  { %v4509_v47 = vadd.f32 %v5992_v52, %v4504_v10 }
0x2fa3   :  { %v4511_v14 = vmul.f32 %v4509_v47, %v6609_v50 }
0x2fa5   :  { %5868 = vmatmul.msk.f32.gmra.mxu1 %vm88_vm0, %v4511_v14 }
0x2fe0   :  { %v4572_v17 = vpop.f32.mrf.mxu2 }
0x2fe1   :  { %v4573_v51 = vadd.f32 %v5994_v16, %v4572_v17 }
0x2fe3   :  { %v4578_v19 = vadd.f32 %v4573_v51, %v4510_v49 }
0x2fe5   :  { %v4580_v29 = vsel %vm88_vm0, %v4578_v19, 0.0 }
0x2fe6   :  { %4581 = vadd.xlane.f32.xlu1 %v4580_v29 }
0x3022   :  { %v4541_v56 = vpop.f32.mrf.mxu1 }
0x3023   :  { %v4542_v22 = vadd.f32 %v5993_v63, %v4541_v56 }
0x3025   :  { %v4545_v23 = vmax.f32 %v4542_v22, 0.0 }
0x3027   :  { %5870 = vmatmul.msk.f32.gmra.mxu2 %vm896_vm6, %v4545_v23 }
0x3059   :  { %v4582_v24 = vpop.xlane.xlu1 %4581 }
0x305a   :  { %v4586_v26 = vmul.f32 %v4582_v24, %v6545_v46 }
0x305c   :  { %v4588_v33 = vsub.f32 %v4578_v19, %v4586_v26 }
0x305e   :  { %v4590_v43 = vmul.f32 %v4588_v33, %v4588_v33 }
0x3060   :  { %v4592_v28 = vsel %vm88_vm0, %v4590_v43, 0.0 }
0x3061   :  { %4593 = vadd.xlane.f32.xlu1 %v4592_v28 }
0x30aa   :  { %v4575_v20 = vpop.f32.mrf.mxu2 }
0x30ab   :  { %v4576_v35 = vadd.f32 %v5994_v16, %v4575_v20 }
0x30ad   :  { %v4579_v30 = vadd.f32 %v4576_v35, %v4511_v14 }
0x30af   :  { %v4583_v40 = vsel %vm88_vm0, %v4579_v30, 0.0 }
0x30b0   :  { %4584 = vadd.xlane.f32.xlu1 %v4583_v40 }
0x30d4   :  { %v4594_v42 = vpop.xlane.xlu1 %4593 }
0x30d5   :  { %v4598_v48 = vmul.f32 %v4594_v42, %v6545_v46 }
0x30d7   :  { %v4600_v52 = vadd.f32 1e-05, %v4598_v48 }
0x30d9   :  { %6203 = vrsqrt.f32 %v4600_v52  ;;  %vm4608_vm7 = vweird.f32 %v4600_v52 }
0x30df   :  { %v6204_v44 = vpop.eup %6203 }
0x30e0   :  { %v4603_v4 = vmul.f32 %v6204_v44, %v4600_v52  ;;  %vm4609_vm5 = vweird.f32 %v6204_v44 }
0x30e1   :  { %vm4610_vm8 = vmor %vm4608_vm7, %vm4609_vm5 }
0x30e2   :  { %v4604_v45 = vmul.f32 %v6204_v44, %v4603_v4 }
0x30e4   :  { %v4605_v49 = vmul.f32 0.5, %v4604_v45 }
0x30e6   :  { %v4606_v32 = vsub.f32 1.5, %v4605_v49 }
0x30e8   :  { %v4607_v38 = vmul.f32 %v6204_v44, %v4606_v32 }
0x30ea   :  { %v4611_v21 = vsel %vm4610_vm8, %v6204_v44, %v4607_v38 }
0x30eb   :  { %v4622_v11 = vmul.f32 %v4611_v21, %v4588_v33 }
0x30ed   :  { %v4627_v7 = vmul.f32 %v5995_v37, %v4622_v11 }
0x30ef   :  { %v4632_v54 = vadd.f32 %v5996_v53, %v4627_v7 }
0x30f1   :  { %v7591_v55 = vmul.f32 %v4632_v54, %v6571_v15 }
0x30f3   :  { %5899 = vmatmul.msk.f32.vlgmr.msra.gmra.mxu0 %vm88_vm0, %v7591_v55 }
0x3123   :  { %v4585_v57 = vpop.xlane.xlu1 %4584 }
0x3124   :  { %v4587_v58 = vmul.f32 %v4585_v57, %v6545_v46 }
0x3126   :  { %v4589_v59 = vsub.f32 %v4579_v30, %v4587_v58 }
0x3128   :  { %v4591_v34 = vmul.f32 %v4589_v59, %v4589_v59 }
0x312a   :  { %v4595_v63 = vsel %vm88_vm0, %v4591_v34, 0.0 }
0x312b   :  { %4596 = vadd.xlane.f32.xlu1 %v4595_v63 }
0x3170   :  { %v4702_v0 = vpop.f32.mrf.mxu0 }
0x3171   :  { %v7600_v12 = vadd.f32 %v5997_v61, %v4702_v0 }
0x3173   :  { %4842 = vrot.lane.b32.xlu2 %v7600_v12, %s7873_s16  ;;  %4709 = vrot.lane.b32.xlu0 %v7600_v12, %s7874_s17 }
0x3174   :  { %4840 = vrot.lane.b32.xlu1 %v7600_v12, %s7875_s26 }
0x317c   :  { %4922 = vrot.lane.b32.xlu1 %v7600_v12, %s7872_s19 }
0x319e   :  { %v4597_v1 = vpop.xlane.xlu1 %4596 }
0x319f   :  { %v4599_v3 = vmul.f32 %v4597_v1, %v6545_v46 }
0x31a1   :  { %v4601_v2 = vadd.f32 1e-05, %v4599_v3 }
0x31a3   :  { %6205 = vrsqrt.f32 %v4601_v2  ;;  %vm4618_vm10 = vweird.f32 %v4601_v2 }
0x31a9   :  { %v6206_v18 = vpop.eup %6205 }
0x31aa   :  { %v4613_v5 = vmul.f32 %v6206_v18, %v4601_v2  ;;  %vm4619_vm9 = vweird.f32 %v6206_v18 }
0x31ab   :  { %vm4620_vm11 = vmor %vm4618_vm10, %vm4619_vm9 }
0x31ac   :  { %v4614_v6 = vmul.f32 %v6206_v18, %v4613_v5  ;;  %v5877_v5 = vld [vmem:[%s7823_s5 + $0xa8] sm:$0xff] }
0x31ae   :  { %v4615_v8 = vmul.f32 0.5, %v4614_v6 }
0x31b0   :  { %v4616_v9 = vsub.f32 1.5, %v4615_v8 }
0x31b2   :  { %v4617_v62 = vmul.f32 %v6206_v18, %v4616_v9 }
0x31b4   :  { %v4621_v25 = vsel %vm4620_vm11, %v6206_v18, %v4617_v62  ;;  %v5876_v18 = vld [vmem:[%s7823_s5 + $0xa0] sm:$0xff] }
0x31b5   :  { %v4623_v13 = vmul.f32 %v4621_v25, %v4589_v59 }
0x31b7   :  { %v4628_v10 = vmul.f32 %v5995_v37, %v4623_v13 }
0x31b9   :  { %v4633_v47 = vadd.f32 %v5996_v53, %v4628_v10 }
0x31bb   :  { %v7612_v14 = vmul.f32 %v4633_v47, %v6609_v50 }
0x31bd   :  { %5900 = vmatmul.msk.f32.gmra.mxu0 %vm88_vm0, %v7612_v14 }
0x31cd   :  { %v4843_v17 = vpop.permute.xlu2 %4842 }
0x31e5   :  { %v4710_v16 = vpop.permute.xlu0 %4709 }
0x31e6   :  { %5901 = vmatpush.xpose.msk.msra.mxu3 %vm121_vm1, %v4710_v16  ;;  %v4841_v51 = vpop.permute.xlu1 %4840 }
0x31e9   :  { %5902 = vmatmul.msk.f32.vlgmr.msra.gmra.mxu3 %vm121_vm1, %v7600_v12 }
0x31ea   :  { %5907 = vmatpush.xpose.msk.msrb.mxu3 %vm121_vm1, %v4843_v17 }
0x31ee   :  { %v4923_v4 = vpop.permute.xlu1 %4922  ;;  %4995 = vmatpush.msra.mxu3 %v5877_v5 }
0x31f1   :  { %5908 = vmatmul.msk.f32.vlgmr.msrb.gmra.mxu3 %vm121_vm1, %v4841_v51 }
0x323a   :  { %v4705_v19 = vpop.f32.mrf.mxu0 }
0x323b   :  { %v7621_v29 = vadd.f32 %v5997_v61, %v4705_v19 }
0x323d   :  { %4736 = vrot.lane.b32.xlu0 %v7621_v29, %s7874_s17 }
0x326c   :  { %v4732_v56 = vpop.f32.mrf.mxu3 }
0x326d   :  { %v4762_v22 = vmul.f32 0.35355338, %v4732_v56 }
0x326f   :  { %v4764_v23 = vadd.f32 %v7447_v60, %v4762_v22 }
0x3271   :  { %v4766_v24 = vsel %vm121_vm1, %v4764_v23, -inf }
0x3272   :  { %4767 = vmax.xlane.f32.xlu2 %v4766_v24 }
0x3274   :  { %v4865_v26 = vpop.f32.mrf.mxu3 }
0x3275   :  { %v4896_v33 = vmul.f32 0.35355338, %v4865_v26 }
0x3277   :  { %v4898_v43 = vadd.f32 %v7447_v60, %v4896_v33 }
0x3279   :  { %v4900_v28 = vsel %vm121_vm1, %v4898_v43, -inf }
0x327a   :  { %4901 = vmax.xlane.f32.xlu0 %v4900_v28 }
0x328e   :  { %4788 = vrot.lane.b32.xlu0 %v7600_v12, %s7876_s27 }
0x3296   :  { %4868 = vrot.lane.b32.xlu0 %v7621_v29, %s7875_s26 }
0x329e   :  { %5034 = vrot.lane.b32.xlu0 %v7600_v12, %s7871_s24 }
0x32af   :  { %v4737_v20 = vpop.permute.xlu0 %4736 }
0x32b0   :  { %5903 = vmatpush.xpose.msk.msra.mxu1 %vm121_vm1, %v4737_v20 }
0x32b3   :  { %5904 = vmatmul.msk.f32.vlgmr.msra.gmra.mxu1 %vm121_vm1, %v7621_v29 }
0x32e5   :  { %v4768_v35 = vpop.xlane.xlu2 %4767 }
0x32e6   :  { %v4772_v30 = vsub.f32 %v4764_v23, %v4768_v35 }
0x32e8   :  { %v4774_v40 = vmul.f32 1.442695, %v4772_v30 }
0x32ea   :  { %6207 = vpow2.f32 %v4774_v40 }
0x32ed   :  { %v4902_v36 = vpop.xlane.xlu0 %4901 }
0x32ee   :  { %v4906_v39 = vsub.f32 %v4898_v43, %v4902_v36 }
0x32f0   :  { %v6208_v27 = vpop.eup %6207  ;;  %v4908_v41 = vmul.f32 1.442695, %v4906_v39 }
0x32f1   :  { %v4778_v42 = vsel %vm121_vm1, %v6208_v27, 0.0 }
0x32f2   :  { %6209 = vpow2.f32 %v4908_v41  ;;  %4779 = vadd.xlane.f32.xlu1 %v4778_v42 }
0x32f8   :  { %v6210_v48 = vpop.eup %6209 }
0x32f9   :  { %v4912_v52 = vsel %vm121_vm1, %v6210_v48, 0.0 }
0x32fa   :  { %4913 = vadd.xlane.f32.xlu2 %v4912_v52 }
0x3300   :  { %v4789_v44 = vpop.permute.xlu0 %4788 }
0x3301   :  { %4809 = vmatpush.msrb.mxu2 %v4789_v44 }
0x3303   :  { %4943 = vmatpush.msra.mxu2 %v4923_v4 }
0x3308   :  { %v4869_v37 = vpop.permute.xlu0 %4868 }
0x330b   :  { %5032 = vrot.lane.b32.xlu1 %v7600_v12, %s7866_s28 }
0x3310   :  { %v5035_v54 = vpop.permute.xlu0 %5034 }
0x3312   :  { %4870 = vrot.lane.b32.xlu2 %v7621_v29, %s7873_s16 }
0x3313   :  { %4814 = vrot.lane.b32.xlu1 %v7621_v29, %s7876_s27 }
0x3330   :  { %v4759_v45 = vpop.f32.mrf.mxu1 }
0x3331   :  { %v4763_v49 = vmul.f32 0.35355338, %v4759_v45 }
0x3333   :  { %v4765_v32 = vadd.f32 %v7484_v31, %v4763_v49 }
0x3335   :  { %v4769_v38 = vsel %vm121_vm1, %v4765_v32, -inf }
0x333b   :  { %4770 = vmax.xlane.f32.xlu2 %v4769_v38 }
0x3365   :  { %v4780_v21 = vpop.xlane.xlu1 %4779 }
0x3366   :  { %6211 = vrcp.f32 %v4780_v21 }
0x336c   :  { %v6212_v53 = vpop.eup %6211 }
0x336d   :  { %v4786_v11 = vmul.f32 %v6212_v53, %v6208_v27  ;;  %v4914_v7 = vpop.xlane.xlu2 %4913 }
0x336e   :  { %6213 = vrcp.f32 %v4914_v7 }
0x336f   :  { %5905 = vmatmul.msk.f32.vlgmr.msrb.gmra.mxu2 %vm121_vm1, %v4786_v11 }
0x3370   :  { %5917 = vmatpush.xpose.msk.msrb.mxu2 %vm121_vm1, %v5035_v54 }
0x3374   :  { %v6214_v57 = vpop.eup %6213 }
0x3375   :  { %v4920_v58 = vmul.f32 %v6214_v57, %v6210_v48  ;;  %v4871_v59 = vpop.permute.xlu2 %4870  ;;  %v5878_v57 = vld [vmem:[%s7823_s5 + $0xb0] sm:$0xff] }
0x3376   :  { %5909 = vmatpush.xpose.msk.msrb.mxu1 %vm121_vm1, %v4871_v59  ;;  %5187 = vmatpush.msrb.mxu3 %v5878_v57 }
0x3377   :  { %5911 = vmatmul.msk.f32.vlgmr.msra.gmra.mxu2 %vm121_vm1, %v4920_v58 }
0x3379   :  { %5910 = vmatmul.msk.f32.vlgmr.msrb.gmra.mxu1 %vm121_vm1, %v4869_v37 }
0x337a   :  { %5024 = vmatpush.msra.mxu1 %v5876_v18 }
0x337d   :  { %v5033_v34 = vpop.permute.xlu1 %5032 }
0x337f   :  { %5918 = vmatmul.msk.f32.vlgmr.msrb.gmra.mxu2 %vm121_vm1, %v5033_v34 }
0x3385   :  { %v4815_v63 = vpop.permute.xlu1 %4814 }
0x3386   :  { %4835 = vmatpush.msrb.mxu0 %v4815_v63 }
0x33ae   :  { %v4771_v61 = vpop.xlane.xlu2 %4770 }
0x33af   :  { %v4773_v0 = vsub.f32 %v4765_v32, %v4771_v61 }
0x33b1   :  { %v4776_v1 = vmul.f32 1.442695, %v4773_v0 }
0x33b3   :  { %6215 = vpow2.f32 %v4776_v1 }
0x33b9   :  { %v6216_v3 = vpop.eup %6215 }
0x33ba   :  { %v4781_v2 = vsel %vm121_vm1, %v6216_v3, 0.0 }
0x33bb   :  { %4782 = vadd.xlane.f32.xlu0 %v4781_v2 }
0x33f2   :  { %v4811_v6 = vpop.f32.mrf.mxu2 }
0x33f3   :  { %5915 = vmatmul.msk.f32.vlgmr.msra.gmra.mxu1 %vm121_vm1, %v4811_v6 }
0x33f6   :  { %v4893_v8 = vpop.f32.mrf.mxu1 }
0x33f7   :  { %v4897_v9 = vmul.f32 0.35355338, %v4893_v8 }
0x33f9   :  { %v4899_v62 = vadd.f32 %v7484_v31, %v4897_v9 }
0x33fa   :  { %v4945_v25 = vpop.f32.mrf.mxu2 }
0x33fb   :  { %5913 = vmatmul.msk.f32.vlgmr.msra.gmra.mxu3 %vm121_vm1, %v4945_v25  ;;  %v4903_v13 = vsel %vm121_vm1, %v4899_v62, -inf }
0x33fc   :  { %4904 = vmax.xlane.f32.xlu1 %v4903_v13 }
0x3402   :  { %v5057_v10 = vpop.f32.mrf.mxu2 }
0x3403   :  { %v5088_v47 = vmul.f32 0.35355338, %v5057_v10 }
0x3405   :  { %v5090_v16 = vadd.f32 %v7447_v60, %v5088_v47 }
0x3407   :  { %v5092_v17 = vsel %vm121_vm1, %v5090_v16, -inf }
0x3408   :  { %5093 = vmax.xlane.f32.xlu2 %v5092_v17 }
0x3415   :  { %5062 = vrot.lane.b32.xlu1 %v7621_v29, %s7871_s24 }
0x341d   :  { %5227 = vrot.lane.b32.xlu1 %v7621_v29, %s7868_s21 }
0x3420   :  { %4948 = vrot.lane.b32.xlu2 %v7621_v29, %s7872_s19 }
0x3428   :  { %5114 = vrot.lane.b32.xlu2 %v7600_v12, %s7869_s23 }
0x342e   :  { %v4783_v51 = vpop.xlane.xlu0 %4782 }
0x342f   :  { %6217 = vrcp.f32 %v4783_v51 }
0x3430   :  { %5199 = vrot.lane.b32.xlu2 %v7600_v12, %s7868_s21 }
0x3435   :  { %v6218_v19 = vpop.eup %6217 }
0x3436   :  { %v4787_v56 = vmul.f32 %v6218_v19, %v6216_v3 }
0x3438   :  { %5225 = vrot.lane.b32.xlu2 %v7621_v29, %s7867_s2  ;;  %5906 = vmatmul.msk.f32.vlgmr.msrb.gmra.mxu0 %vm121_vm1, %v4787_v56 }
0x346f   :  { %v4905_v22 = vpop.xlane.xlu1 %4904 }
0x3470   :  { %v4907_v23 = vsub.f32 %v4899_v62, %v4905_v22  ;;  %v7701_v58 = vpop.f32.mrf.mxu1 }
0x3472   :  { %v4910_v24 = vmul.f32 1.442695, %v4907_v23 }
0x3474   :  { %6219 = vpow2.f32 %v4910_v24 }
0x347a   :  { %v6220_v26 = vpop.eup %6219 }
0x347b   :  { %v5094_v33 = vpop.xlane.xlu2 %5093  ;;  %v4915_v43 = vsel %vm121_vm1, %v6220_v26, 0.0 }
0x347c   :  { %4916 = vadd.xlane.f32.xlu0 %v4915_v43  ;;  %v5098_v36 = vsub.f32 %v5090_v16, %v5094_v33 }
0x347e   :  { %v5100_v39 = vmul.f32 1.442695, %v5098_v36  ;;  %v5879_v36 = vld [vmem:[%s7823_s5 + $0xb8] sm:$0xff] }
0x3480   :  { %6221 = vpow2.f32 %v5100_v39 }
0x3483   :  { %v4949_v28 = vpop.permute.xlu2 %4948 }
0x3484   :  { %4969 = vmatpush.msra.mxu0 %v4949_v28 }
0x3486   :  { %v6222_v41 = vpop.eup %6221 }
0x3487   :  { %v5063_v20 = vpop.permute.xlu1 %5062  ;;  %v5104_v42 = vsel %vm121_vm1, %v6222_v41, 0.0 }
0x3488   :  { %5919 = vmatpush.xpose.msk.msrb.mxu0 %vm121_vm1, %v5063_v20 }
0x348b   :  { %v5115_v35 = vpop.permute.xlu2 %5114 }
0x348c   :  { %5135 = vmatpush.msra.mxu2 %v5115_v35 }
0x348f   :  { %v5228_v30 = vpop.permute.xlu1 %5227 }
0x3490   :  { %5060 = vrot.lane.b32.xlu0 %v7621_v29, %s7866_s28  ;;  %5927 = vmatpush.xpose.msk.msrb.mxu2 %vm121_vm1, %v5228_v30  ;;  %s7880_s28 = sld [smem:[#allocation6_spill]] }
0x3493   :  { %v5200_v40 = vpop.permute.xlu2 %5199 }
0x3494   :  { %5925 = vmatpush.xpose.msk.msrb.mxu1 %vm121_vm1, %v5200_v40 }
0x349b   :  { %v5226_v38 = vpop.permute.xlu2 %5225 }
0x34b5   :  { %v4837_v27 = vpop.f32.mrf.mxu0 }
0x34b6   :  { %5916 = vmatmul.msk.f32.gmra.mxu1 %vm121_vm1, %v4837_v27 }
0x34ba   :  { %5105 = vadd.xlane.f32.xlu0 %v5104_v42 }
0x34ce   :  { %5197 = vrot.lane.b32.xlu0 %v7600_v12, %s7867_s2 }
0x34ef   :  { %v4917_v48 = vpop.xlane.xlu0 %4916 }
0x34f0   :  { %6223 = vrcp.f32 %v4917_v48 }
0x34f6   :  { %v6224_v52 = vpop.eup %6223 }
0x34f7   :  { %v4921_v44 = vmul.f32 %v6224_v52, %v6220_v26 }
0x34f9   :  { %5912 = vmatmul.msk.f32.vlgmr.msra.gmra.mxu0 %vm121_vm1, %v4921_v44 }
0x3502   :  { %v5061_v4 = vpop.permute.xlu0 %5060 }
0x3503   :  { %5920 = vmatmul.msk.f32.vlgmr.msrb.gmra.mxu0 %vm121_vm1, %v5061_v4  ;;  %v5998_v4 = vld [vmem:[%s7877_s8 + $0x5] ss:$0 sm:$0xff] }
0x352d   :  { %v5106_v45 = vpop.xlane.xlu0 %5105 }
0x352e   :  { %6225 = vrcp.f32 %v5106_v45 }
0x3533   :  { %v7703_v59 = vpop.f32.mrf.mxu1 }
0x3534   :  { %v6226_v49 = vpop.eup %6225 }
0x3535   :  { %v5112_v32 = vmul.f32 %v6226_v49, %v6222_v41  ;;  %v4997_v41 = vpop.f32.mrf.mxu3 }
0x3536   :  { %v5027_v52 = vadd.f32 %v7701_v58, %v4997_v41 }
0x3537   :  { %5921 = vmatmul.msk.f32.vlgmr.msra.gmra.mxu2 %vm121_vm1, %v5112_v32 }
0x3538   :  { %5352 = vmatpush.msra.mxu2 %v5879_v36 }
0x353f   :  { %5928 = vmatmul.msk.f32.vlgmr.msrb.gmra.mxu2 %vm121_vm1, %v5226_v38 }
0x3540   :  { %v5198_v37 = vpop.permute.xlu0 %5197 }
0x3541   :  { %5926 = vmatmul.msk.f32.vlgmr.msrb.gmra.mxu1 %vm121_vm1, %v5198_v37 }
0x3576   :  { %v4971_v21 = vpop.f32.mrf.mxu0 }
0x3577   :  { %5914 = vmatmul.msk.f32.gmra.mxu3 %vm121_vm1, %v4971_v21 }
0x3580   :  { %v5085_v53 = vpop.f32.mrf.mxu0 }
0x3581   :  { %v5089_v11 = vmul.f32 0.35355338, %v5085_v53 }
0x3583   :  { %v5091_v7 = vadd.f32 %v7484_v31, %v5089_v11 }
0x3585   :  { %v5095_v54 = vsel %vm121_vm1, %v5091_v7, -inf }
0x3586   :  { %5096 = vmax.xlane.f32.xlu1 %v5095_v54 }
0x35ba   :  { %v5137_v34 = vpop.f32.mrf.mxu2 }
0x35bb   :  { %5923 = vmatmul.msk.f32.vlgmr.msrb.gmra.mxu3 %vm121_vm1, %v5137_v34 }
0x35be   :  { %v5222_v63 = vpop.f32.mrf.mxu1 }
0x35bf   :  { %v5253_v61 = vmul.f32 0.35355338, %v5222_v63 }
0x35c1   :  { %v5255_v0 = vadd.f32 %v7447_v60, %v5253_v61 }
0x35c2   :  { %v5250_v1 = vpop.f32.mrf.mxu2 }
0x35c3   :  { %v5254_v3 = vmul.f32 0.35355338, %v5250_v1  ;;  %v5257_v2 = vsel %vm121_vm1, %v5255_v0, -inf }
0x35c4   :  { %5258 = vmax.xlane.f32.xlu0 %v5257_v2 }
0x35c5   :  { %v5256_v18 = vadd.f32 %v7484_v31, %v5254_v3 }
0x35c7   :  { %v5260_v5 = vsel %vm121_vm1, %v5256_v18, -inf }
0x35c8   :  { %5261 = vmax.xlane.f32.xlu2 %v5260_v5 }
0x35e0   :  { %5140 = vrot.lane.b32.xlu2 %v7621_v29, %s7869_s23  ;;  %s7881_s23 = sld [smem:[#allocation7_spill]] }
0x35f9   :  { %v5097_v6 = vpop.xlane.xlu1 %5096 }
0x35fa   :  { %v5099_v8 = vsub.f32 %v5091_v7, %v5097_v6  ;;  %v5000_v42 = vpop.f32.mrf.mxu3  ;;  %v5885_v6 = vld [vmem:[%s7827_s9 + $0xb0] sm:$0xff] }
0x35fb   :  { %v5030_v21 = vadd.f32 %v7703_v59, %v5000_v42 }
0x35fc   :  { %v5102_v9 = vmul.f32 1.442695, %v5099_v8  ;;  %v5884_v8 = vld [vmem:[%s7827_s9 + $0xa8] sm:$0xff] }
0x35fe   :  { %6227 = vpow2.f32 %v5102_v9  ;;  %v5883_v9 = vld [vmem:[%s7827_s9 + $0xa0] sm:$0xff] }
0x3604   :  { %v6228_v62 = vpop.eup %6227 }
0x3605   :  { %v5107_v60 = vsel %vm121_vm1, %v6228_v62, 0.0 }
0x3606   :  { %5108 = vadd.xlane.f32.xlu1 %v5107_v60 }
0x3637   :  { %v5259_v25 = vpop.xlane.xlu0 %5258 }
0x3638   :  { %v5263_v13 = vsub.f32 %v5255_v0, %v5259_v25 }
0x363a   :  { %v5265_v10 = vmul.f32 1.442695, %v5263_v13  ;;  %v5895_v13 = vld [vmem:[%s7829_s11 + $0x178] sm:$0xff] }
0x363b   :  { %v5262_v47 = vpop.xlane.xlu2 %5261  ;;  %5476 = vmatpush.msra.mxu3 %v5895_v13 }
0x363c   :  { %6229 = vpow2.f32 %v5265_v10  ;;  %v5264_v31 = vsub.f32 %v5256_v18, %v5262_v47  ;;  %v5894_v10 = vld [vmem:[%s7829_s11 + $0x170] sm:$0xff] }
0x363d   :  { %5477 = vmatpush.msra.mxu3 %v5894_v10 }
0x363e   :  { %v5267_v16 = vmul.f32 1.442695, %v5264_v31  ;;  %v5189_v48 = vpop.f32.mrf.mxu3 }
0x363f   :  { %v5195_v44 = vadd.f32 %v5189_v48, %v5027_v52 }
0x3640   :  { %6231 = vpow2.f32 %v5267_v16  ;;  %v5893_v16 = vld [vmem:[%s7829_s11 + $0x168] sm:$0xff] }
0x3641   :  { %5478 = vmatpush.msra.mxu3 %v5893_v16 }
0x3642   :  { %v6230_v17 = vpop.eup %6229 }
0x3643   :  { %v5141_v51 = vpop.permute.xlu2 %5140  ;;  %v5269_v19 = vsel %vm121_vm1, %v6230_v17, 0.0 }
0x3644   :  { %5270 = vadd.xlane.f32.xlu0 %v5269_v19  ;;  %5161 = vmatpush.msra.mxu0 %v5141_v51 }
0x3646   :  { %v6232_v56 = vpop.eup %6231 }
0x3647   :  { %v5272_v22 = vsel %vm121_vm1, %v6232_v56, 0.0 }
0x3648   :  { %5273 = vadd.xlane.f32.xlu1 %v5272_v22 }
0x3658   :  { %5279 = vrot.lane.b32.xlu0 %v7600_v12, %s7870_s20 }
0x3661   :  { %5305 = vrot.lane.b32.xlu1 %v7621_v29, %s7870_s20 }
0x3679   :  { %v5109_v23 = vpop.xlane.xlu1 %5108 }
0x367a   :  { %6233 = vrcp.f32 %v5109_v23  ;;  %v5891_v23 = vld [vmem:[%s7829_s11 + $0x158] sm:$0xff] }
0x3680   :  { %v6234_v24 = vpop.eup %6233 }
0x3681   :  { %v5113_v26 = vmul.f32 %v6234_v24, %v6228_v62 }
0x3683   :  { %5922 = vmatmul.msk.f32.vlgmr.msra.gmra.mxu0 %vm121_vm1, %v5113_v26 }
0x36b7   :  { %v5271_v33 = vpop.xlane.xlu0 %5270 }
0x36b8   :  { %6235 = vrcp.f32 %v5271_v33 }
0x36bb   :  { %v5274_v28 = vpop.xlane.xlu1 %5273 }
0x36bc   :  { %6237 = vrcp.f32 %v5274_v28  ;;  %v5999_v28 = vld [vmem:[%s7880_s28 + $0x5] ss:$0 sm:$0xff] }
0x36be   :  { %v6236_v43 = vpop.eup %6235 }
0x36bf   :  { %v5277_v20 = vmul.f32 %v6236_v43, %v6230_v17 }
0x36c2   :  { %v6238_v12 = vpop.eup %6237 }
0x36c3   :  { %v5278_v30 = vmul.f32 %v6238_v12, %v6232_v56  ;;  %v5892_v56 = vld [vmem:[%s7829_s11 + $0x160] sm:$0xff] }
0x36c4   :  { %5479 = vmatpush.msra.mxu3 %v5892_v56  ;;  %v6000_v12 = vld [vmem:[%s7881_s23 + $0x5] ss:$0 sm:$0xff] }
0x36c6   :  { %5480 = vmatpush.msra.mxu3 %v5891_v23 }
0x36ca   :  { %v5280_v35 = vpop.permute.xlu0 %5279 }
0x36cb   :  { %5300 = vmatpush.msrb.mxu0 %v5280_v35 }
0x36cc   :  { %5929 = vmatmul.msk.f32.vlgmr.msrb.gmra.mxu0 %vm121_vm1, %v5277_v20 }
0x36d3   :  { %v5306_v40 = vpop.permute.xlu1 %5305 }
0x36d4   :  { %5326 = vmatpush.msra.mxu1 %v5306_v40 }
0x36d5   :  { %5930 = vmatmul.msk.f32.vlgmr.msra.gmra.mxu1 %vm121_vm1, %v5278_v30 }
0x3700   :  { %v5163_v29 = vpop.f32.mrf.mxu0 }
0x3701   :  { %5924 = vmatmul.msk.f32.gmra.mxu3 %vm121_vm1, %v5163_v29 }
0x3749   :  { %v5302_v39 = vpop.f32.mrf.mxu0 }
0x374a   :  { %5931 = vmatmul.msk.f32.vlgmr.msra.gmra.mxu2 %vm121_vm1, %v5302_v39 }
0x3752   :  { %v5328_v27 = vpop.f32.mrf.mxu1 }
0x3753   :  { %5932 = vmatmul.msk.f32.gmra.mxu2 %vm121_vm1, %v5328_v27 }
0x3784   :  { %v5192_v38 = vpop.f32.mrf.mxu3 }
0x3785   :  { %v5196_v11 = vadd.f32 %v5192_v38, %v5030_v21  ;;  %v5888_v38 = vld [vmem:[%s7829_s11 + $0x140] sm:$0xff] }
0x37cd   :  { %v5354_v45 = vpop.f32.mrf.mxu2 }
0x37ce   :  { %v5360_v49 = vadd.f32 %v5354_v45, %v5195_v44 }
0x37d0   :  { %v5365_v32 = vadd.f32 %v5998_v4, %v5360_v49  ;;  %v5890_v49 = vld [vmem:[%s7829_s11 + $0x150] sm:$0xff] }
0x37d1   :  { %5481 = vmatpush.msra.mxu3 %v5890_v49 }
0x37d2   :  { %v5367_v37 = vadd.f32 %v5365_v32, %v7591_v55  ;;  %v5889_v32 = vld [vmem:[%s7829_s11 + $0x148] sm:$0xff] }
0x37d3   :  { %5482 = vmatpush.msra.mxu3 %v5889_v32 }
0x37d4   :  { %v5369_v53 = vsel %vm88_vm0, %v5367_v37, 0.0 }
0x37d5   :  { %5370 = vadd.xlane.f32.xlu2 %v5369_v53  ;;  %5483 = vmatpush.msra.mxu3 %v5888_v38 }
0x37d6   :  { %v5357_v7 = vpop.f32.mrf.mxu2 }
0x37d7   :  { %v5361_v54 = vadd.f32 %v5357_v7, %v5196_v11 }
0x37d9   :  { %v5366_v57 = vadd.f32 %v5998_v4, %v5361_v54 }
0x37db   :  { %v5368_v58 = vadd.f32 %v5366_v57, %v7612_v14  ;;  %v5886_v14 = vld [vmem:[%s7827_s9 + $0xb8] sm:$0xff]  ;;  %s6293_s9 = smov 128  }
0x37dc   :  { %5446 = vmatpush.msra.mxu0 %v5886_v14 }
0x37dd   :  { %v5372_v34 = vsel %vm88_vm0, %v5368_v58, 0.0 }
0x37de   :  { %5373 = vadd.xlane.f32.xlu0 %v5372_v34  ;;  %5447 = vmatpush.msra.mxu0 %v5885_v6 }
0x37e0   :  { %5448 = vmatpush.msra.mxu0 %v5884_v8 }
0x37e2   :  { %5449 = vmatpush.msra.mxu0 %v5883_v9 }
0x3848   :  { %v5371_v63 = vpop.xlane.xlu2 %5370 }
0x3849   :  { %v5375_v61 = vmul.f32 %v5371_v63, %v6545_v46 }
0x384b   :  { %v5377_v0 = vsub.f32 %v5367_v37, %v5375_v61  ;;  %v6001_v37 = vld [vmem:[%s7828_s10 + $0x5] ss:$0 sm:$0xff] }
0x384d   :  { %v5379_v1 = vmul.f32 %v5377_v0, %v5377_v0 }
0x384f   :  { %v5381_v55 = vsel %vm88_vm0, %v5379_v1, 0.0 }
0x3850   :  { %5382 = vadd.xlane.f32.xlu1 %v5381_v55 }
0x3851   :  { %v5374_v59 = vpop.xlane.xlu0 %5373 }
0x3852   :  { %v5376_v3 = vmul.f32 %v5374_v59, %v6545_v46 }
0x3854   :  { %v5378_v2 = vsub.f32 %v5368_v58, %v5376_v3  ;;  %v6002_v58 = vld [vmem:[%s7830_s12 + $0x5] ss:$0 sm:$0xff] }
0x3856   :  { %v5380_v18 = vmul.f32 %v5378_v2, %v5378_v2 }
0x3858   :  { %v5384_v5 = vsel %vm88_vm0, %v5380_v18, 0.0 }
0x3859   :  { %5385 = vadd.xlane.f32.xlu2 %v5384_v5 }
0x38c3   :  { %v5383_v62 = vpop.xlane.xlu1 %5382 }
0x38c4   :  { %v5387_v60 = vmul.f32 %v5383_v62, %v6545_v46 }
0x38c6   :  { %v5389_v25 = vadd.f32 1e-05, %v5387_v60 }
0x38c8   :  { %6239 = vrsqrt.f32 %v5389_v25  ;;  %vm5397_vm12 = vweird.f32 %v5389_v25 }
0x38cc   :  { %v5386_v47 = vpop.xlane.xlu2 %5385 }
0x38cd   :  { %v5388_v31 = vmul.f32 %v5386_v47, %v6545_v46 }
0x38ce   :  { %v6240_v17 = vpop.eup %6239 }
0x38cf   :  { %v5392_v51 = vmul.f32 %v6240_v17, %v5389_v25  ;;  %v5390_v19 = vadd.f32 1e-05, %v5388_v31  ;;  %vm5398_vm1 = vweird.f32 %v6240_v17 }
0x38d0   :  { %vm5399_vm13 = vmor %vm5397_vm12, %vm5398_vm1 }
0x38d1   :  { %v5393_v22 = vmul.f32 %v6240_v17, %v5392_v51  ;;  %6241 = vrsqrt.f32 %v5390_v19  ;;  %vm5407_vm15 = vweird.f32 %v5390_v19 }
0x38d3   :  { %v5394_v24 = vmul.f32 0.5, %v5393_v22 }
0x38d5   :  { %v5395_v26 = vsub.f32 1.5, %v5394_v24 }
0x38d7   :  { %v6242_v33 = vpop.eup %6241  ;;  %v5396_v43 = vmul.f32 %v6240_v17, %v5395_v26 }
0x38d8   :  { %v5402_v20 = vmul.f32 %v6242_v33, %v5390_v19  ;;  %vm5408_vm14 = vweird.f32 %v6242_v33 }
0x38d9   :  { %v5400_v35 = vsel %vm5399_vm13, %v6240_v17, %v5396_v43  ;;  %vm5409_vm2 = vmor %vm5407_vm15, %vm5408_vm14 }
0x38da   :  { %v5411_v30 = vmul.f32 %v5400_v35, %v5377_v0  ;;  %v5403_v40 = vmul.f32 %v6242_v33, %v5402_v20 }
0x38dc   :  { %v5416_v29 = vmul.f32 %v5999_v28, %v5411_v30  ;;  %v5404_v36 = vmul.f32 0.5, %v5403_v40 }
0x38de   :  { %v5421_v39 = vadd.f32 %v6000_v12, %v5416_v29  ;;  %v5405_v27 = vsub.f32 1.5, %v5404_v36 }
0x38e0   :  { %v5423_v41 = vmul.f32 %v5421_v39, %v6571_v15  ;;  %v5406_v42 = vmul.f32 %v6242_v33, %v5405_v27 }
0x38e2   :  { %v5410_v48 = vsel %vm5409_vm2, %v6242_v33, %v5406_v42  ;;  %5933 = vmatmul.msk.f32.vlgmr.msra.gmra.mxu0 %vm88_vm0, %v5423_v41  ;;  %v6003_v33 = vld [vmem:[%s7831_s13 + $0x5] ss:$0 sm:$0xff]  ;;  %s6292_s13 = smov [#allocation2]  }
0x38e3   :  { %v5412_v52 = vmul.f32 %v5410_v48, %v5378_v2  ;;  %s5555_s0 = sshll.u32 %s6292_s13, 4  ;;  %s5556_s0 = int_to_ptr.vmem [resolvable:$true] %s5555_s0 }
0x38e5   :  { %v5417_v44 = vmul.f32 %v5999_v28, %v5412_v52 }
0x38e7   :  { %v5422_v4 = vadd.f32 %v6000_v12, %v5417_v44 }
0x38e9   :  { %v5424_v45 = vmul.f32 %v5422_v4, %v6609_v50 }
0x38eb   :  { %5934 = vmatmul.msk.f32.gmra.mxu0 %vm88_vm0, %v5424_v45 }
0x395f   :  { %v5451_v21 = vpop.f32.mrf.mxu0 }
0x3960   :  { %v5452_v53 = vadd.f32 %v6001_v37, %v5451_v21 }
0x3962   :  { %v5457_v11 = vmax.f32 %v5452_v53, 0.0 }
0x3964   :  { %5935 = vmatmul.msk.f32.vlgmr.msra.gmra.mxu3 %vm896_vm6, %v5457_v11 }
0x3968   :  { %v5454_v7 = vpop.f32.mrf.mxu0 }
0x3969   :  { %v5455_v54 = vadd.f32 %v6001_v37, %v5454_v7 }
0x396b   :  { %v5458_v57 = vmax.f32 %v5455_v54, 0.0 }
0x396d   :  { %5936 = vmatmul.msk.f32.gmra.mxu3 %vm896_vm6, %v5458_v57 }
0x39e7   :  { %v5485_v34 = vpop.f32.mrf.mxu3 }
0x39e8   :  { %v5486_v63 = vadd.f32 %v6002_v58, %v5485_v34 }
0x39ea   :  { %v5491_v61 = vadd.f32 %v5486_v63, %v5423_v41 }
0x39ec   :  { %v5493_v0 = vsel %vm88_vm0, %v5491_v61, 0.0 }
0x39ed   :  { %5494 = vadd.xlane.f32.xlu0 %v5493_v0 }
0x39f0   :  { %v5488_v1 = vpop.f32.mrf.mxu3 }
0x39f1   :  { %v5489_v55 = vadd.f32 %v6002_v58, %v5488_v1 }
0x39f3   :  { %v5492_v59 = vadd.f32 %v5489_v55, %v5424_v45 }
0x39f5   :  { %v5496_v3 = vsel %vm88_vm0, %v5492_v59, 0.0 }
0x39f6   :  { %5497 = vadd.xlane.f32.xlu2 %v5496_v3 }
0x3a60   :  { %v5495_v2 = vpop.xlane.xlu0 %5494 }
0x3a61   :  { %v5499_v18 = vmul.f32 %v5495_v2, %v6545_v46 }
0x3a63   :  { %v5501_v5 = vsub.f32 %v5491_v61, %v5499_v18 }
0x3a65   :  { %v5503_v14 = vmul.f32 %v5501_v5, %v5501_v5 }
0x3a67   :  { %v5505_v6 = vsel %vm88_vm0, %v5503_v14, 0.0 }
0x3a68   :  { %5506 = vadd.xlane.f32.xlu0 %v5505_v6 }
0x3a69   :  { %v5498_v8 = vpop.xlane.xlu2 %5497 }
0x3a6a   :  { %v5500_v9 = vmul.f32 %v5498_v8, %v6545_v46 }
0x3a6c   :  { %v5502_v62 = vsub.f32 %v5492_v59, %v5500_v9 }
0x3a6e   :  { %v5504_v60 = vmul.f32 %v5502_v62, %v5502_v62 }
0x3a70   :  { %v5508_v25 = vsel %vm88_vm0, %v5504_v60, 0.0 }
0x3a71   :  { %5509 = vadd.xlane.f32.xlu1 %v5508_v25 }
0x3adb   :  { %v5507_v13 = vpop.xlane.xlu0 %5506 }
0x3adc   :  { %v5511_v10 = vmul.f32 %v5507_v13, %v6545_v46 }
0x3ade   :  { %v5513_v47 = vadd.f32 1e-05, %v5511_v10 }
0x3ae0   :  { %6243 = vrsqrt.f32 %v5513_v47  ;;  %vm5521_vm3 = vweird.f32 %v5513_v47 }
0x3ae4   :  { %v5510_v31 = vpop.xlane.xlu1 %5509 }
0x3ae5   :  { %v5512_v16 = vmul.f32 %v5510_v31, %v6545_v46  ;;  %v6004_v46 = vld [vmem:[%s7832_s14 + $0x5] ss:$0 sm:$0xff] }
0x3ae6   :  { %v6244_v17 = vpop.eup %6243 }
0x3ae7   :  { %v5516_v51 = vmul.f32 %v6244_v17, %v5513_v47  ;;  %v5514_v19 = vadd.f32 1e-05, %v5512_v16  ;;  %vm5522_vm6 = vweird.f32 %v6244_v17 }
0x3ae8   :  { %vm5523_vm4 = vmor %vm5521_vm3, %vm5522_vm6 }
0x3ae9   :  { %v5517_v56 = vmul.f32 %v6244_v17, %v5516_v51  ;;  %6245 = vrsqrt.f32 %v5514_v19  ;;  %vm5531_vm7 = vweird.f32 %v5514_v19 }
0x3aeb   :  { %v5518_v22 = vmul.f32 0.5, %v5517_v56 }
0x3aed   :  { %v5519_v23 = vsub.f32 1.5, %v5518_v22 }
0x3aef   :  { %v6246_v24 = vpop.eup %6245  ;;  %v5520_v26 = vmul.f32 %v6244_v17, %v5519_v23 }
0x3af0   :  { %v5526_v43 = vmul.f32 %v6246_v24, %v5514_v19  ;;  %vm5532_vm5 = vweird.f32 %v6246_v24 }
0x3af1   :  { %v5524_v28 = vsel %vm5523_vm4, %v6244_v17, %v5520_v26  ;;  %vm5533_vm8 = vmor %vm5531_vm7, %vm5532_vm5 }
0x3af2   :  { %v5535_v20 = vmul.f32 %v5524_v28, %v5501_v5  ;;  %v5527_v35 = vmul.f32 %v6246_v24, %v5526_v43 }
0x3af4   :  { %v5540_v12 = vmul.f32 %v6003_v33, %v5535_v20  ;;  %v5528_v30 = vmul.f32 0.5, %v5527_v35 }
0x3af6   :  { %v5545_v40 = vadd.f32 %v6004_v46, %v5540_v12  ;;  %v5529_v29 = vsub.f32 1.5, %v5528_v30 }
0x3af8   :  { %v5530_v36 = vmul.f32 %v6246_v24, %v5529_v29  ;;  %v5547_v39 = vmul.f32 %v5545_v40, %v6571_v15 }
0x3afa   :  { %v5534_v27 = vsel %vm5533_vm8, %v6246_v24, %v5530_v36  ;;  %5549 = vst.msk [vmem:[#allocation2] sm:$0xff] %vm88_vm0, %v5547_v39 }
0x3afb   :  { %v5536_v41 = vmul.f32 %v5534_v27, %v5502_v62 }
0x3afd   :  { %v5541_v42 = vmul.f32 %v6003_v33, %v5536_v41 }
0x3aff   :  { %v5546_v48 = vadd.f32 %v6004_v46, %v5541_v42 }
0x3b01   :  { %v5548_v52 = vmul.f32 %v5546_v48, %v6609_v50 }
0x3b03   :  { %5550 = vst.msk [vmem:[#allocation2 + $0x8] sm:$0xff] %vm88_vm0, %v5548_v52 }
0x3b04   :  { %5563 = dma.vmem_to_hbm [thread:$0]  %s5556_s0, 256, %s5558_s30, [#allocation3], %s6293_s9, %s6293_s9, %s6294_s18  }
0x3b05   :  { %6277 = dma.done.wait [#allocation3], 256  }
0x3b06   :  { %6278 = vsyncadd [#allocation3], 4294967040 }
0x3b07   :  { %5568 = vsyncpa [#allocation3], 1 }

</bundles_post_ra>
